<compile_context>
chip_gen: v5e
topology: v5e:2x2
jax: 0.10.0
libtpu: 0.0.40
codegen_flags: <defaults>
</compile_context>

<pallas_src>
import jax
import jax.numpy as jnp
from jax import lax
from jax.experimental import pallas as pl
from jax.experimental.pallas import tpu as pltpu

# Halo must be >= the largest spatial padding (5, branch2's 3x3 dilation-5
# conv) and is rounded up to 8 so the interior store is sublane-aligned.
HALO = 8

# Spatial convs: (weight key, bias key, kh, kw, padding, dilation).
_SPATIAL = (
    ("b1_w2", "b1_b2", 1, 3, (0, 1), (1, 1)),
    ("b1_w3", "b1_b3", 3, 1, (1, 0), (1, 1)),
    ("b1_w4", "b1_b4", 3, 3, (3, 3), (3, 3)),
    ("b2_w2", "b2_b2", 1, 5, (0, 2), (1, 1)),
    ("b2_w3", "b2_b3", 5, 1, (2, 0), (1, 1)),
    ("b2_w4", "b2_b4", 3, 3, (5, 5), (5, 5)),
)
_TAP_OFFS = []
_o = 0
for _, _, _kh, _kw, _, _ in _SPATIAL:
    _TAP_OFFS.append(_o)
    _o += _kh * _kw
_TAP_OFFS = tuple(_TAP_OFFS)   # tap-row offset of each conv inside sp_w
_NUM_TAPS = _o                 # 34


def _rfb_kernel(x_ref, head_w, head_b, sp_w, sp_b, cl_w, out_ref, pad_scratch):
    _, H, W, Cin = x_ref.shape
    Cout = out_ref.shape[3]
    inter = cl_w.shape[1]
    HW = H * W
    cdt = pad_scratch.dtype            # matmul compute dtype (f32 or bf16)
    Hp, Wp, _ = pad_scratch.shape

    # Re-zero only the halo strips (O(perimeter)).  The interior is fully
    # overwritten by every spatial conv and the halo is never written, so zero
    # padding stays correct on every grid step and on every TensorCore.
    pad_scratch[0:HALO, :, :] = jnp.zeros((HALO, Wp, inter), cdt)
    pad_scratch[HALO + H:, :, :] = jnp.zeros((Hp - HALO - H, Wp, inter), cdt)
    pad_scratch[HALO:HALO + H, 0:HALO, :] = jnp.zeros((H, HALO, inter), cdt)
    pad_scratch[HALO:HALO + H, HALO + W:, :] = jnp.zeros((H, Wp - HALO - W, inter), cdt)

    xf = x_ref[0].reshape(HW, Cin)

    # Packed 1x1 heads: [shortcut | branch0 | branch1-in | branch2-in].
    # bn_final is already folded into the shortcut columns + head bias.
    head = jnp.dot(xf, head_w[...], preferred_element_type=jnp.float32) + head_b[...]
    acc = head[:, :Cout]                          # shortcut (+ folded output bias)
    rest = jnp.maximum(head[:, Cout:], 0.0)       # ReLU over the 3 branch heads

    def conv_spatial(feat, conv_id, relu):
        _, _, kh, kw, pad, dil = _SPATIAL[conv_id]
        w_off = _TAP_OFFS[conv_id]
        pad_scratch[HALO:HALO + H, HALO:HALO + W, :] = (
            feat.reshape(H, W, inter).astype(cdt))
        a = jnp.zeros((HW, inter), jnp.float32)
        for i in range(kh):                       # small static trip counts
            for j in range(kw):
                h0 = HALO - pad[0] + i * dil[0]
                w0 = HALO - pad[1] + j * dil[1]
                patch = pad_scratch[h0:h0 + H, w0:w0 + W, :].reshape(HW, inter)
                a = a + jnp.dot(patch, sp_w[w_off + i * kw + j],
                                preferred_element_type=jnp.float32)
        a = a + sp_b[conv_id:conv_id + 1, :]
        if relu:
            a = jnp.maximum(a, 0.0)
        return a

    def run_branch(t, conv_ids):
        for n, cid in enumerate(conv_ids):
            t = conv_spatial(t, cid, relu=(n < len(conv_ids) - 1))
        return t

    # branch0 -> conv_linear accumulation (fused; cl_w pre-split per branch).
    acc = acc + jnp.dot(rest[:, 0:inter].astype(cdt), cl_w[0],
                        preferred_element_type=jnp.float32)
    # branch1: (1,3) -> (3,1) -> 3x3 dilation 3.
    b1 = run_branch(rest[:, inter:2 * inter], (0, 1, 2))
    acc = acc + jnp.dot(b1.astype(cdt), cl_w[1], preferred_element_type=jnp.float32)
    # branch2: (1,5) -> (5,1) -> 3x3 dilation 5.
    b2 = run_branch(rest[:, 2 * inter:3 * inter], (3, 4, 5))
    acc = acc + jnp.dot(b2.astype(cdt), cl_w[2], preferred_element_type=jnp.float32)

    # bn_final folded into weights/bias; only the final ReLU remains.
    out_ref[...] = jnp.maximum(acc, 0.0).reshape(1, H, W, Cout).astype(out_ref.dtype)


def basic_rfb_forward(x_nhwc, p, compute_dtype=jnp.float32):
    """x_nhwc: (N, H, W, Cin) float32.  p: dict of folded HWIO weights / 1-D biases."""
    N, H, W, Cin = x_nhwc.shape
    Cout = p["sc_w"].shape[-1]
    inter = p["b0_w"].shape[-1]
    cdt = compute_dtype

    # ---- wrapper-side weight packing / bn_final folding (plain-JAX glue) ----
    s = p["bnf_s"]                                           # (Cout,)
    sc_w_f = p["sc_w"].reshape(Cin, Cout) * s                # bn_final folded
    cl_w_f = p["cl_w"].reshape(3 * inter, Cout) * s
    final_b = (p["sc_b"] + p["cl_b"]) * s + p["bnf_b"]       # combined output bias

    head_w = jnp.concatenate(
        [sc_w_f,
         p["b0_w"].reshape(Cin, inter),
         p["b1_w1"].reshape(Cin, inter),
         p["b2_w1"].reshape(Cin, inter)], axis=1).astype(cdt)          # (Cin, Cout+3i)
    head_b = jnp.concatenate(
        [final_b, p["b0_b"], p["b1_b1"], p["b2_b1"]]
    ).reshape(1, -1).astype(jnp.float32)                               # (1, Cout+3i)

    sp_w = jnp.concatenate(
        [p[wk].reshape(-1, inter, inter) for wk, *_ in _SPATIAL],
        axis=0).astype(cdt)                                            # (34, i, i)
    sp_b = jnp.stack([p[bk] for _, bk, *_ in _SPATIAL],
                     axis=0).astype(jnp.float32)                       # (6, i)
    cl_w3 = jnp.stack([cl_w_f[k * inter:(k + 1) * inter] for k in range(3)],
                      axis=0).astype(cdt)                              # (3, i, Cout)

    x = x_nhwc.astype(cdt)
    inputs = [x, head_w, head_b, sp_w, sp_b, cl_w3]

    def full_spec(arr):
        zeros = (0,) * arr.ndim
        return pl.BlockSpec(arr.shape, lambda n, _z=zeros: _z)

    in_specs = [pl.BlockSpec((1, H, W, Cin), lambda n: (n, 0, 0, 0))]
    in_specs += [full_spec(a) for a in inputs[1:]]
    out_spec = pl.BlockSpec((1, H, W, Cout), lambda n: (n, 0, 0, 0))

    return pl.pallas_call(
        _rfb_kernel,
        out_shape=jax.ShapeDtypeStruct((N, H, W, Cout), jnp.float32),
        grid_spec=pltpu.PrefetchScalarGridSpec(
            num_scalar_prefetch=0,
            grid=(N,),
            in_specs=in_specs,
            out_specs=out_spec,
            scratch_shapes=[pltpu.VMEM((H + 2 * HALO, W + 2 * HALO, inter),
                                       compute_dtype)],
        ),
        # Batch elements are independent and write disjoint output blocks:
        # "parallel" lets v7x shard them across its two TensorCores.
        compiler_params=pltpu.CompilerParams(dimension_semantics=("parallel",)),
    )(*inputs)


# ----------------------------- glue: params --------------------------------

def _make_conv(key, kh, kw, ci, co):
    k1, k2 = jax.random.split(key)
    w = jax.random.normal(k1, (kh, kw, ci, co), jnp.float32) / jnp.sqrt(kh * kw * ci)
    b = 0.1 * jax.random.normal(k2, (co,), jnp.float32)
    return w, b


def _make_bn(key, c):
    k1, k2, k3, k4 = jax.random.split(key, 4)
    gamma = 1.0 + 0.1 * jax.random.normal(k1, (c,), jnp.float32)
    beta = 0.1 * jax.random.normal(k2, (c,), jnp.float32)
    mean = 0.1 * jax.random.normal(k3, (c,), jnp.float32)
    var = 0.5 + jax.random.uniform(k4, (c,), jnp.float32)
    return gamma, beta, mean, var


def _fold_bn(w, b, bn, eps=1e-5):
    gamma, beta, mean, var = bn
    s = gamma / jnp.sqrt(var + eps)
    return w * s, (b - mean) * s + beta


def make_params(key, in_channels, out_channels):
    inter = in_channels // 4 if in_channels >= 4 else in_channels
    keys = jax.random.split(key, 32)
    ki = iter(keys)
    p = {}

    # shortcut conv (no BN)
    p["sc_w"], p["sc_b"] = _make_conv(next(ki), 1, 1, in_channels, out_channels)

    # branch0: 1x1 + BN
    w, b = _make_conv(next(ki), 1, 1, in_channels, inter)
    p["b0_w"], p["b0_b"] = _fold_bn(w, b, _make_bn(next(ki), inter))

    # branch1
    w, b = _make_conv(next(ki), 1, 1, in_channels, inter)
    p["b1_w1"], p["b1_b1"] = _fold_bn(w, b, _make_bn(next(ki), inter))
    w, b = _make_conv(next(ki), 1, 3, inter, inter)
    p["b1_w2"], p["b1_b2"] = _fold_bn(w, b, _make_bn(next(ki), inter))
    w, b = _make_conv(next(ki), 3, 1, inter, inter)
    p["b1_w3"], p["b1_b3"] = _fold_bn(w, b, _make_bn(next(ki), inter))
    p["b1_w4"], p["b1_b4"] = _make_conv(next(ki), 3, 3, inter, inter)  # no BN

    # branch2
    w, b = _make_conv(next(ki), 1, 1, in_channels, inter)
    p["b2_w1"], p["b2_b1"] = _fold_bn(w, b, _make_bn(next(ki), inter))
    w, b = _make_conv(next(ki), 1, 5, inter, inter)
    p["b2_w2"], p["b2_b2"] = _fold_bn(w, b, _make_bn(next(ki), inter))
    w, b = _make_conv(next(ki), 5, 1, inter, inter)
    p["b2_w3"], p["b2_b3"] = _fold_bn(w, b, _make_bn(next(ki), inter))
    p["b2_w4"], p["b2_b4"] = _make_conv(next(ki), 3, 3, inter, inter)  # no BN

    # conv_linear (no BN directly after it)
    p["cl_w"], p["cl_b"] = _make_conv(next(ki), 1, 1, 3 * inter, out_channels)

    # bn_final, folded to per-channel scale/bias
    gamma, beta, mean, var = _make_bn(next(ki), out_channels)
    s = gamma / jnp.sqrt(var + 1e-5)
    p["bnf_s"] = s
    p["bnf_b"] = beta - mean * s
    return p


# ----------------------------- pure-JAX reference ---------------------------

def ref_forward(x, p):
    def conv(inp, w, b, pad, dil=(1, 1)):
        y = lax.conv_general_dilated(
            inp, w, window_strides=(1, 1),
            padding=[(pad[0], pad[0]), (pad[1], pad[1])],
            rhs_dilation=dil,
            dimension_numbers=("NHWC", "HWIO", "NHWC"))
        return y + b.reshape(1, 1, 1, -1)

    relu = lambda v: jnp.maximum(v, 0.0)

    sc = conv(x, p["sc_w"], p["sc_b"], (0, 0))
    b0 = relu(conv(x, p["b0_w"], p["b0_b"], (0, 0)))

    t = relu(conv(x, p["b1_w1"], p["b1_b1"], (0, 0)))
    t = relu(conv(t, p["b1_w2"], p["b1_b2"], (0, 1)))
    t = relu(conv(t, p["b1_w3"], p["b1_b3"], (1, 0)))
    b1 = conv(t, p["b1_w4"], p["b1_b4"], (3, 3), (3, 3))

    t = relu(conv(x, p["b2_w1"], p["b2_b1"], (0, 0)))
    t = relu(conv(t, p["b2_w2"], p["b2_b2"], (0, 2)))
    t = relu(conv(t, p["b2_w3"], p["b2_b3"], (2, 0)))
    b2 = conv(t, p["b2_w4"], p["b2_b4"], (5, 5), (5, 5))

    cat = jnp.concatenate([b0, b1, b2], axis=-1)
    lin = conv(cat, p["cl_w"], p["cl_b"], (0, 0))
    out = lin + sc
    out = out * p["bnf_s"].reshape(1, 1, 1, -1) + p["bnf_b"].reshape(1, 1, 1, -1)
    return relu(out)


if __name__ == "__main__":
    key = jax.random.PRNGKey(0)
    k_x, k_p = jax.random.split(key)

    N, Cin, H, W = 2, 8, 16, 16          # NCHW, as the PyTorch module expects
    Cout = 16

    x_nchw = jax.random.normal(k_x, (N, Cin, H, W), jnp.float32)
    params = make_params(k_p, Cin, Cout)

    x_nhwc = jnp.transpose(x_nchw, (0, 2, 3, 1))   # kernel layout: NHWC
    ref = ref_forward(x_nhwc, params)

    # f32 compute path: strict correctness check against the XLA reference.
    out_f32 = jax.block_until_ready(jax.jit(basic_rfb_forward)(x_nhwc, params))
    assert out_f32.shape == (N, H, W, Cout)
    assert jnp.allclose(out_f32, ref, rtol=1e-4, atol=1e-4), (
        "f32 max abs err %e" % float(jnp.max(jnp.abs(out_f32 - ref))))

    # bf16 matmul path (v6e/v7x MXU throughput); loose tolerance — the kernel
    # logic itself is validated by the strict f32 check above.
    out_bf16 = jax.block_until_ready(
        jax.jit(lambda xx, pp: basic_rfb_forward(xx, pp,
                                                 compute_dtype=jnp.bfloat16))(
            x_nhwc, params))
    assert out_bf16.shape == (N, H, W, Cout)
    assert jnp.allclose(out_bf16, ref, rtol=1e-1, atol=1e-1), (
        "bf16 max abs err %e" % float(jnp.max(jnp.abs(out_bf16 - ref))))

    print("KERNEL_OK")
</pallas_src>

<mosaic_0001>
module attributes {stable_mosaic.version = 11 : i64} {
  func.func @_rfb_kernel(%arg0: i32, %arg1: memref<1x16x16x8xf32, #tpu.memory_space<vmem>>, %arg2: memref<8x22xf32, #tpu.memory_space<vmem>>, %arg3: memref<1x22xf32, #tpu.memory_space<vmem>>, %arg4: memref<34x2x2xf32, #tpu.memory_space<vmem>>, %arg5: memref<6x2xf32, #tpu.memory_space<vmem>>, %arg6: memref<3x2x16xf32, #tpu.memory_space<vmem>>, %arg7: memref<1x16x16x16xf32, #tpu.memory_space<vmem>>, %arg8: memref<32x32x2xf32, #tpu.memory_space<vmem>>) attributes {dimension_semantics = [#tpu.dimension_semantics<parallel>], iteration_bounds = array<i64: 2>, scalar_prefetch = 0 : i64, scratch_operands = 1 : i64, tpu.core_type = #tpu.core_type<tc>, window_params = [{transform_indices = @transform_0, window_bounds = array<i64: 1, 16, 16, 8>}, {pipeline_mode = #tpu.pipeline_mode<synchronous>, transform_indices = @transform_1, window_bounds = array<i64: 8, 22>}, {pipeline_mode = #tpu.pipeline_mode<synchronous>, transform_indices = @transform_2, window_bounds = array<i64: 1, 22>}, {pipeline_mode = #tpu.pipeline_mode<synchronous>, transform_indices = @transform_3, window_bounds = array<i64: 34, 2, 2>}, {pipeline_mode = #tpu.pipeline_mode<synchronous>, transform_indices = @transform_4, window_bounds = array<i64: 6, 2>}, {pipeline_mode = #tpu.pipeline_mode<synchronous>, transform_indices = @transform_5, window_bounds = array<i64: 3, 2, 16>}, {transform_indices = @transform_6, window_bounds = array<i64: 1, 16, 16, 16>}]} {
    %cst = arith.constant 0.000000e+00 : f32
    %0 = vector.broadcast %cst : f32 to vector<8x32x2xf32>
    %c0 = arith.constant 0 : index
    %c0_0 = arith.constant 0 : index
    %c0_1 = arith.constant 0 : index
    %1 = vector.load %arg8[%c0, %c0_0, %c0_1] : memref<32x32x2xf32, #tpu.memory_space<vmem>>, vector<8x32x2xf32>
    tpu.vector_store %arg8[%c0, %c0_0, %c0_1], %0 {strides = array<i32>} : memref<32x32x2xf32, #tpu.memory_space<vmem>>, vector<8x32x2xf32>,
    %cst_2 = arith.constant 0.000000e+00 : f32
    %2 = vector.broadcast %cst_2 : f32 to vector<8x32x2xf32>
    %c24 = arith.constant 24 : index
    %c0_3 = arith.constant 0 : index
    %c0_4 = arith.constant 0 : index
    %3 = vector.load %arg8[%c24, %c0_3, %c0_4] : memref<32x32x2xf32, #tpu.memory_space<vmem>>, vector<8x32x2xf32>
    tpu.vector_store %arg8[%c24, %c0_3, %c0_4], %2 {strides = array<i32>} : memref<32x32x2xf32, #tpu.memory_space<vmem>>, vector<8x32x2xf32>,
    %cst_5 = arith.constant 0.000000e+00 : f32
    %4 = vector.broadcast %cst_5 : f32 to vector<16x8x2xf32>
    %c8 = arith.constant 8 : index
    %c0_6 = arith.constant 0 : index
    %c0_7 = arith.constant 0 : index
    %5 = vector.load %arg8[%c8, %c0_6, %c0_7] : memref<32x32x2xf32, #tpu.memory_space<vmem>>, vector<16x8x2xf32>
    tpu.vector_store %arg8[%c8, %c0_6, %c0_7], %4 {strides = array<i32>} : memref<32x32x2xf32, #tpu.memory_space<vmem>>, vector<16x8x2xf32>,
    %cst_8 = arith.constant 0.000000e+00 : f32
    %6 = vector.broadcast %cst_8 : f32 to vector<16x8x2xf32>
    %c8_9 = arith.constant 8 : index
    %c24_10 = arith.constant 24 : index
    %c0_11 = arith.constant 0 : index
    %7 = vector.load %arg8[%c8_9, %c24_10, %c0_11] : memref<32x32x2xf32, #tpu.memory_space<vmem>>, vector<16x8x2xf32>
    tpu.vector_store %arg8[%c8_9, %c24_10, %c0_11], %6 {strides = array<i32>} : memref<32x32x2xf32, #tpu.memory_space<vmem>>, vector<16x8x2xf32>,
    %c0_12 = arith.constant 0 : index
    %c0_13 = arith.constant 0 : index
    %c0_14 = arith.constant 0 : index
    %c0_15 = arith.constant 0 : index
    %8 = vector.load %arg1[%c0_12, %c0_13, %c0_14, %c0_15] : memref<1x16x16x8xf32, #tpu.memory_space<vmem>>, vector<1x16x16x8xf32>
    %9 = vector.shape_cast %8 : vector<1x16x16x8xf32> to vector<16x16x8xf32>
    %10 = vector.shape_cast %9 : vector<16x16x8xf32> to vector<256x8xf32>
    %c0_16 = arith.constant 0 : index
    %c0_17 = arith.constant 0 : index
    %11 = vector.load %arg2[%c0_16, %c0_17] : memref<8x22xf32, #tpu.memory_space<vmem>>, vector<8x22xf32>
    %cst_18 = arith.constant dense<0.000000e+00> : vector<256x22xf32>
    %12 = tpu.matmul %10, %11, %cst_18 {dimension_numbers = #tpu.dot_dimension_numbers<[1], [0], [0], [1], [0, 0, 1, 1], [], []>} : vector<256x8xf32>, vector<8x22xf32>, vector<256x22xf32> -> vector<256x22xf32>
    %c0_19 = arith.constant 0 : index
    %c0_20 = arith.constant 0 : index
    %13 = vector.load %arg3[%c0_19, %c0_20] : memref<1x22xf32, #tpu.memory_space<vmem>>, vector<1x22xf32>
    %14 = vector.broadcast %13 : vector<1x22xf32> to vector<256x22xf32>
    %15 = arith.addf %12, %14 : vector<256x22xf32>
    %16 = vector.extract_strided_slice %15 {offsets = [0, 0], sizes = [256, 16], strides = [1, 1]} : vector<256x22xf32> to vector<256x16xf32>
    %17 = vector.extract_strided_slice %15 {offsets = [0, 16], sizes = [256, 6], strides = [1, 1]} : vector<256x22xf32> to vector<256x6xf32>
    %cst_21 = arith.constant 0.000000e+00 : f32
    %18 = vector.broadcast %cst_21 : f32 to vector<256x6xf32>
    %19 = arith.maximumf %17, %18 : vector<256x6xf32>
    %20 = vector.extract_strided_slice %19 {offsets = [0, 0], sizes = [256, 2], strides = [1, 1]} : vector<256x6xf32> to vector<256x2xf32>
    %c0_22 = arith.constant 0 : index
    %c0_23 = arith.constant 0 : index
    %c0_24 = arith.constant 0 : index
    %21 = vector.load %arg6[%c0_22, %c0_23, %c0_24] : memref<3x2x16xf32, #tpu.memory_space<vmem>>, vector<1x2x16xf32>
    %22 = vector.shape_cast %21 : vector<1x2x16xf32> to vector<2x16xf32>
    %cst_25 = arith.constant dense<0.000000e+00> : vector<256x16xf32>
    %23 = tpu.matmul %20, %22, %cst_25 {dimension_numbers = #tpu.dot_dimension_numbers<[1], [0], [0], [1], [0, 0, 1, 1], [], []>} : vector<256x2xf32>, vector<2x16xf32>, vector<256x16xf32> -> vector<256x16xf32>
    %24 = arith.addf %16, %23 : vector<256x16xf32>
    %25 = vector.extract_strided_slice %19 {offsets = [0, 2], sizes = [256, 2], strides = [1, 1]} : vector<256x6xf32> to vector<256x2xf32>
    %26 = vector.shape_cast %25 : vector<256x2xf32> to vector<16x16x2xf32>
    %c8_26 = arith.constant 8 : index
    %c8_27 = arith.constant 8 : index
    %c0_28 = arith.constant 0 : index
    %27 = vector.load %arg8[%c8_26, %c8_27, %c0_28] : memref<32x32x2xf32, #tpu.memory_space<vmem>>, vector<16x16x2xf32>
    tpu.vector_store %arg8[%c8_26, %c8_27, %c0_28], %26 {strides = array<i32>} : memref<32x32x2xf32, #tpu.memory_space<vmem>>, vector<16x16x2xf32>,
    %cst_29 = arith.constant 0.000000e+00 : f32
    %28 = vector.broadcast %cst_29 : f32 to vector<256x2xf32>
    %c8_30 = arith.constant 8 : index
    %c7 = arith.constant 7 : index
    %c0_31 = arith.constant 0 : index
    %29 = vector.load %arg8[%c8_30, %c7, %c0_31] : memref<32x32x2xf32, #tpu.memory_space<vmem>>, vector<16x16x2xf32>
    %30 = vector.shape_cast %29 : vector<16x16x2xf32> to vector<256x2xf32>
    %c0_32 = arith.constant 0 : index
    %c0_33 = arith.constant 0 : index
    %c0_34 = arith.constant 0 : index
    %31 = vector.load %arg4[%c0_32, %c0_33, %c0_34] : memref<34x2x2xf32, #tpu.memory_space<vmem>>, vector<1x2x2xf32>
    %32 = vector.shape_cast %31 : vector<1x2x2xf32> to vector<2x2xf32>
    %cst_35 = arith.constant dense<0.000000e+00> : vector<256x2xf32>
    %33 = tpu.matmul %30, %32, %cst_35 {dimension_numbers = #tpu.dot_dimension_numbers<[1], [0], [0], [1], [0, 0, 1, 1], [], []>} : vector<256x2xf32>, vector<2x2xf32>, vector<256x2xf32> -> vector<256x2xf32>
    %34 = arith.addf %28, %33 : vector<256x2xf32>
    %c8_36 = arith.constant 8 : index
    %c8_37 = arith.constant 8 : index
    %c0_38 = arith.constant 0 : index
    %35 = vector.load %arg8[%c8_36, %c8_37, %c0_38] : memref<32x32x2xf32, #tpu.memory_space<vmem>>, vector<16x16x2xf32>
    %36 = vector.shape_cast %35 : vector<16x16x2xf32> to vector<256x2xf32>
    %c1 = arith.constant 1 : index
    %c0_39 = arith.constant 0 : index
    %c0_40 = arith.constant 0 : index
    %37 = vector.load %arg4[%c1, %c0_39, %c0_40] : memref<34x2x2xf32, #tpu.memory_space<vmem>>, vector<1x2x2xf32>
    %38 = vector.shape_cast %37 : vector<1x2x2xf32> to vector<2x2xf32>
    %cst_41 = arith.constant dense<0.000000e+00> : vector<256x2xf32>
    %39 = tpu.matmul %36, %38, %cst_41 {dimension_numbers = #tpu.dot_dimension_numbers<[1], [0], [0], [1], [0, 0, 1, 1], [], []>} : vector<256x2xf32>, vector<2x2xf32>, vector<256x2xf32> -> vector<256x2xf32>
    %40 = arith.addf %34, %39 : vector<256x2xf32>
    %c8_42 = arith.constant 8 : index
    %c9 = arith.constant 9 : index
    %c0_43 = arith.constant 0 : index
    %41 = vector.load %arg8[%c8_42, %c9, %c0_43] : memref<32x32x2xf32, #tpu.memory_space<vmem>>, vector<16x16x2xf32>
    %42 = vector.shape_cast %41 : vector<16x16x2xf32> to vector<256x2xf32>
    %c2 = arith.constant 2 : index
    %c0_44 = arith.constant 0 : index
    %c0_45 = arith.constant 0 : index
    %43 = vector.load %arg4[%c2, %c0_44, %c0_45] : memref<34x2x2xf32, #tpu.memory_space<vmem>>, vector<1x2x2xf32>
    %44 = vector.shape_cast %43 : vector<1x2x2xf32> to vector<2x2xf32>
    %cst_46 = arith.constant dense<0.000000e+00> : vector<256x2xf32>
    %45 = tpu.matmul %42, %44, %cst_46 {dimension_numbers = #tpu.dot_dimension_numbers<[1], [0], [0], [1], [0, 0, 1, 1], [], []>} : vector<256x2xf32>, vector<2x2xf32>, vector<256x2xf32> -> vector<256x2xf32>
    %46 = arith.addf %40, %45 : vector<256x2xf32>
    %c0_47 = arith.constant 0 : index
    %c0_48 = arith.constant 0 : index
    %47 = vector.load %arg5[%c0_47, %c0_48] : memref<6x2xf32, #tpu.memory_space<vmem>>, vector<1x2xf32>
    %48 = vector.broadcast %47 : vector<1x2xf32> to vector<256x2xf32>
    %49 = arith.addf %46, %48 : vector<256x2xf32>
    %cst_49 = arith.constant 0.000000e+00 : f32
    %50 = vector.broadcast %cst_49 : f32 to vector<256x2xf32>
    %51 = arith.maximumf %49, %50 : vector<256x2xf32>
    %52 = vector.shape_cast %51 : vector<256x2xf32> to vector<16x16x2xf32>
    %c8_50 = arith.constant 8 : index
    %c8_51 = arith.constant 8 : index
    %c0_52 = arith.constant 0 : index
    %53 = vector.load %arg8[%c8_50, %c8_51, %c0_52] : memref<32x32x2xf32, #tpu.memory_space<vmem>>, vector<16x16x2xf32>
    tpu.vector_store %arg8[%c8_50, %c8_51, %c0_52], %52 {strides = array<i32>} : memref<32x32x2xf32, #tpu.memory_space<vmem>>, vector<16x16x2xf32>,
    %cst_53 = arith.constant 0.000000e+00 : f32
    %54 = vector.broadcast %cst_53 : f32 to vector<256x2xf32>
    %c7_54 = arith.constant 7 : index
    %c8_55 = arith.constant 8 : index
    %c0_56 = arith.constant 0 : index
    %55 = vector.load %arg8[%c7_54, %c8_55, %c0_56] : memref<32x32x2xf32, #tpu.memory_space<vmem>>, vector<16x16x2xf32>
    %56 = vector.shape_cast %55 : vector<16x16x2xf32> to vector<256x2xf32>
    %c3 = arith.constant 3 : index
    %c0_57 = arith.constant 0 : index
    %c0_58 = arith.constant 0 : index
    %57 = vector.load %arg4[%c3, %c0_57, %c0_58] : memref<34x2x2xf32, #tpu.memory_space<vmem>>, vector<1x2x2xf32>
    %58 = vector.shape_cast %57 : vector<1x2x2xf32> to vector<2x2xf32>
    %cst_59 = arith.constant dense<0.000000e+00> : vector<256x2xf32>
    %59 = tpu.matmul %56, %58, %cst_59 {dimension_numbers = #tpu.dot_dimension_numbers<[1], [0], [0], [1], [0, 0, 1, 1], [], []>} : vector<256x2xf32>, vector<2x2xf32>, vector<256x2xf32> -> vector<256x2xf32>
    %60 = arith.addf %54, %59 : vector<256x2xf32>
    %c8_60 = arith.constant 8 : index
    %c8_61 = arith.constant 8 : index
    %c0_62 = arith.constant 0 : index
    %61 = vector.load %arg8[%c8_60, %c8_61, %c0_62] : memref<32x32x2xf32, #tpu.memory_space<vmem>>, vector<16x16x2xf32>
    %62 = vector.shape_cast %61 : vector<16x16x2xf32> to vector<256x2xf32>
    %c4 = arith.constant 4 : index
    %c0_63 = arith.constant 0 : index
    %c0_64 = arith.constant 0 : index
    %63 = vector.load %arg4[%c4, %c0_63, %c0_64] : memref<34x2x2xf32, #tpu.memory_space<vmem>>, vector<1x2x2xf32>
    %64 = vector.shape_cast %63 : vector<1x2x2xf32> to vector<2x2xf32>
    %cst_65 = arith.constant dense<0.000000e+00> : vector<256x2xf32>
    %65 = tpu.matmul %62, %64, %cst_65 {dimension_numbers = #tpu.dot_dimension_numbers<[1], [0], [0], [1], [0, 0, 1, 1], [], []>} : vector<256x2xf32>, vector<2x2xf32>, vector<256x2xf32> -> vector<256x2xf32>
    %66 = arith.addf %60, %65 : vector<256x2xf32>
    %c9_66 = arith.constant 9 : index
    %c8_67 = arith.constant 8 : index
    %c0_68 = arith.constant 0 : index
    %67 = vector.load %arg8[%c9_66, %c8_67, %c0_68] : memref<32x32x2xf32, #tpu.memory_space<vmem>>, vector<16x16x2xf32>
    %68 = vector.shape_cast %67 : vector<16x16x2xf32> to vector<256x2xf32>
    %c5 = arith.constant 5 : index
    %c0_69 = arith.constant 0 : index
    %c0_70 = arith.constant 0 : index
    %69 = vector.load %arg4[%c5, %c0_69, %c0_70] : memref<34x2x2xf32, #tpu.memory_space<vmem>>, vector<1x2x2xf32>
    %70 = vector.shape_cast %69 : vector<1x2x2xf32> to vector<2x2xf32>
    %cst_71 = arith.constant dense<0.000000e+00> : vector<256x2xf32>
    %71 = tpu.matmul %68, %70, %cst_71 {dimension_numbers = #tpu.dot_dimension_numbers<[1], [0], [0], [1], [0, 0, 1, 1], [], []>} : vector<256x2xf32>, vector<2x2xf32>, vector<256x2xf32> -> vector<256x2xf32>
    %72 = arith.addf %66, %71 : vector<256x2xf32>
    %c1_72 = arith.constant 1 : index
    %c0_73 = arith.constant 0 : index
    %73 = vector.load %arg5[%c1_72, %c0_73] : memref<6x2xf32, #tpu.memory_space<vmem>>, vector<1x2xf32>
    %74 = vector.broadcast %73 : vector<1x2xf32> to vector<256x2xf32>
    %75 = arith.addf %72, %74 : vector<256x2xf32>
    %cst_74 = arith.constant 0.000000e+00 : f32
    %76 = vector.broadcast %cst_74 : f32 to vector<256x2xf32>
    %77 = arith.maximumf %75, %76 : vector<256x2xf32>
    %78 = vector.shape_cast %77 : vector<256x2xf32> to vector<16x16x2xf32>
    %c8_75 = arith.constant 8 : index
    %c8_76 = arith.constant 8 : index
    %c0_77 = arith.constant 0 : index
    %79 = vector.load %arg8[%c8_75, %c8_76, %c0_77] : memref<32x32x2xf32, #tpu.memory_space<vmem>>, vector<16x16x2xf32>
    tpu.vector_store %arg8[%c8_75, %c8_76, %c0_77], %78 {strides = array<i32>} : memref<32x32x2xf32, #tpu.memory_space<vmem>>, vector<16x16x2xf32>,
    %cst_78 = arith.constant 0.000000e+00 : f32
    %80 = vector.broadcast %cst_78 : f32 to vector<256x2xf32>
    %c5_79 = arith.constant 5 : index
    %c5_80 = arith.constant 5 : index
    %c0_81 = arith.constant 0 : index
    %81 = vector.load %arg8[%c5_79, %c5_80, %c0_81] : memref<32x32x2xf32, #tpu.memory_space<vmem>>, vector<16x16x2xf32>
    %82 = vector.shape_cast %81 : vector<16x16x2xf32> to vector<256x2xf32>
    %c6 = arith.constant 6 : index
    %c0_82 = arith.constant 0 : index
    %c0_83 = arith.constant 0 : index
    %83 = vector.load %arg4[%c6, %c0_82, %c0_83] : memref<34x2x2xf32, #tpu.memory_space<vmem>>, vector<1x2x2xf32>
    %84 = vector.shape_cast %83 : vector<1x2x2xf32> to vector<2x2xf32>
    %cst_84 = arith.constant dense<0.000000e+00> : vector<256x2xf32>
    %85 = tpu.matmul %82, %84, %cst_84 {dimension_numbers = #tpu.dot_dimension_numbers<[1], [0], [0], [1], [0, 0, 1, 1], [], []>} : vector<256x2xf32>, vector<2x2xf32>, vector<256x2xf32> -> vector<256x2xf32>
    %86 = arith.addf %80, %85 : vector<256x2xf32>
    %c5_85 = arith.constant 5 : index
    %c8_86 = arith.constant 8 : index
    %c0_87 = arith.constant 0 : index
    %87 = vector.load %arg8[%c5_85, %c8_86, %c0_87] : memref<32x32x2xf32, #tpu.memory_space<vmem>>, vector<16x16x2xf32>
    %88 = vector.shape_cast %87 : vector<16x16x2xf32> to vector<256x2xf32>
    %c7_88 = arith.constant 7 : index
    %c0_89 = arith.constant 0 : index
    %c0_90 = arith.constant 0 : index
    %89 = vector.load %arg4[%c7_88, %c0_89, %c0_90] : memref<34x2x2xf32, #tpu.memory_space<vmem>>, vector<1x2x2xf32>
    %90 = vector.shape_cast %89 : vector<1x2x2xf32> to vector<2x2xf32>
    %cst_91 = arith.constant dense<0.000000e+00> : vector<256x2xf32>
    %91 = tpu.matmul %88, %90, %cst_91 {dimension_numbers = #tpu.dot_dimension_numbers<[1], [0], [0], [1], [0, 0, 1, 1], [], []>} : vector<256x2xf32>, vector<2x2xf32>, vector<256x2xf32> -> vector<256x2xf32>
    %92 = arith.addf %86, %91 : vector<256x2xf32>
    %c5_92 = arith.constant 5 : index
    %c11 = arith.constant 11 : index
    %c0_93 = arith.constant 0 : index
    %93 = vector.load %arg8[%c5_92, %c11, %c0_93] : memref<32x32x2xf32, #tpu.memory_space<vmem>>, vector<16x16x2xf32>
    %94 = vector.shape_cast %93 : vector<16x16x2xf32> to vector<256x2xf32>
    %c8_94 = arith.constant 8 : index
    %c0_95 = arith.constant 0 : index
    %c0_96 = arith.constant 0 : index
    %95 = vector.load %arg4[%c8_94, %c0_95, %c0_96] : memref<34x2x2xf32, #tpu.memory_space<vmem>>, vector<1x2x2xf32>
    %96 = vector.shape_cast %95 : vector<1x2x2xf32> to vector<2x2xf32>
    %cst_97 = arith.constant dense<0.000000e+00> : vector<256x2xf32>
    %97 = tpu.matmul %94, %96, %cst_97 {dimension_numbers = #tpu.dot_dimension_numbers<[1], [0], [0], [1], [0, 0, 1, 1], [], []>} : vector<256x2xf32>, vector<2x2xf32>, vector<256x2xf32> -> vector<256x2xf32>
    %98 = arith.addf %92, %97 : vector<256x2xf32>
    %c8_98 = arith.constant 8 : index
    %c5_99 = arith.constant 5 : index
    %c0_100 = arith.constant 0 : index
    %99 = vector.load %arg8[%c8_98, %c5_99, %c0_100] : memref<32x32x2xf32, #tpu.memory_space<vmem>>, vector<16x16x2xf32>
    %100 = vector.shape_cast %99 : vector<16x16x2xf32> to vector<256x2xf32>
    %c9_101 = arith.constant 9 : index
    %c0_102 = arith.constant 0 : index
    %c0_103 = arith.constant 0 : index
    %101 = vector.load %arg4[%c9_101, %c0_102, %c0_103] : memref<34x2x2xf32, #tpu.memory_space<vmem>>, vector<1x2x2xf32>
    %102 = vector.shape_cast %101 : vector<1x2x2xf32> to vector<2x2xf32>
    %cst_104 = arith.constant dense<0.000000e+00> : vector<256x2xf32>
    %103 = tpu.matmul %100, %102, %cst_104 {dimension_numbers = #tpu.dot_dimension_numbers<[1], [0], [0], [1], [0, 0, 1, 1], [], []>} : vector<256x2xf32>, vector<2x2xf32>, vector<256x2xf32> -> vector<256x2xf32>
    %104 = arith.addf %98, %103 : vector<256x2xf32>
    %c8_105 = arith.constant 8 : index
    %c8_106 = arith.constant 8 : index
    %c0_107 = arith.constant 0 : index
    %105 = vector.load %arg8[%c8_105, %c8_106, %c0_107] : memref<32x32x2xf32, #tpu.memory_space<vmem>>, vector<16x16x2xf32>
    %106 = vector.shape_cast %105 : vector<16x16x2xf32> to vector<256x2xf32>
    %c10 = arith.constant 10 : index
    %c0_108 = arith.constant 0 : index
    %c0_109 = arith.constant 0 : index
    %107 = vector.load %arg4[%c10, %c0_108, %c0_109] : memref<34x2x2xf32, #tpu.memory_space<vmem>>, vector<1x2x2xf32>
    %108 = vector.shape_cast %107 : vector<1x2x2xf32> to vector<2x2xf32>
    %cst_110 = arith.constant dense<0.000000e+00> : vector<256x2xf32>
    %109 = tpu.matmul %106, %108, %cst_110 {dimension_numbers = #tpu.dot_dimension_numbers<[1], [0], [0], [1], [0, 0, 1, 1], [], []>} : vector<256x2xf32>, vector<2x2xf32>, vector<256x2xf32> -> vector<256x2xf32>
    %110 = arith.addf %104, %109 : vector<256x2xf32>
    %c8_111 = arith.constant 8 : index
    %c11_112 = arith.constant 11 : index
    %c0_113 = arith.constant 0 : index
    %111 = vector.load %arg8[%c8_111, %c11_112, %c0_113] : memref<32x32x2xf32, #tpu.memory_space<vmem>>, vector<16x16x2xf32>
    %112 = vector.shape_cast %111 : vector<16x16x2xf32> to vector<256x2xf32>
    %c11_114 = arith.constant 11 : index
    %c0_115 = arith.constant 0 : index
    %c0_116 = arith.constant 0 : index
    %113 = vector.load %arg4[%c11_114, %c0_115, %c0_116] : memref<34x2x2xf32, #tpu.memory_space<vmem>>, vector<1x2x2xf32>
    %114 = vector.shape_cast %113 : vector<1x2x2xf32> to vector<2x2xf32>
    %cst_117 = arith.constant dense<0.000000e+00> : vector<256x2xf32>
    %115 = tpu.matmul %112, %114, %cst_117 {dimension_numbers = #tpu.dot_dimension_numbers<[1], [0], [0], [1], [0, 0, 1, 1], [], []>} : vector<256x2xf32>, vector<2x2xf32>, vector<256x2xf32> -> vector<256x2xf32>
    %116 = arith.addf %110, %115 : vector<256x2xf32>
    %c11_118 = arith.constant 11 : index
    %c5_119 = arith.constant 5 : index
    %c0_120 = arith.constant 0 : index
    %117 = vector.load %arg8[%c11_118, %c5_119, %c0_120] : memref<32x32x2xf32, #tpu.memory_space<vmem>>, vector<16x16x2xf32>
    %118 = vector.shape_cast %117 : vector<16x16x2xf32> to vector<256x2xf32>
    %c12 = arith.constant 12 : index
    %c0_121 = arith.constant 0 : index
    %c0_122 = arith.constant 0 : index
    %119 = vector.load %arg4[%c12, %c0_121, %c0_122] : memref<34x2x2xf32, #tpu.memory_space<vmem>>, vector<1x2x2xf32>
    %120 = vector.shape_cast %119 : vector<1x2x2xf32> to vector<2x2xf32>
    %cst_123 = arith.constant dense<0.000000e+00> : vector<256x2xf32>
    %121 = tpu.matmul %118, %120, %cst_123 {dimension_numbers = #tpu.dot_dimension_numbers<[1], [0], [0], [1], [0, 0, 1, 1], [], []>} : vector<256x2xf32>, vector<2x2xf32>, vector<256x2xf32> -> vector<256x2xf32>
    %122 = arith.addf %116, %121 : vector<256x2xf32>
    %c11_124 = arith.constant 11 : index
    %c8_125 = arith.constant 8 : index
    %c0_126 = arith.constant 0 : index
    %123 = vector.load %arg8[%c11_124, %c8_125, %c0_126] : memref<32x32x2xf32, #tpu.memory_space<vmem>>, vector<16x16x2xf32>
    %124 = vector.shape_cast %123 : vector<16x16x2xf32> to vector<256x2xf32>
    %c13 = arith.constant 13 : index
    %c0_127 = arith.constant 0 : index
    %c0_128 = arith.constant 0 : index
    %125 = vector.load %arg4[%c13, %c0_127, %c0_128] : memref<34x2x2xf32, #tpu.memory_space<vmem>>, vector<1x2x2xf32>
    %126 = vector.shape_cast %125 : vector<1x2x2xf32> to vector<2x2xf32>
    %cst_129 = arith.constant dense<0.000000e+00> : vector<256x2xf32>
    %127 = tpu.matmul %124, %126, %cst_129 {dimension_numbers = #tpu.dot_dimension_numbers<[1], [0], [0], [1], [0, 0, 1, 1], [], []>} : vector<256x2xf32>, vector<2x2xf32>, vector<256x2xf32> -> vector<256x2xf32>
    %128 = arith.addf %122, %127 : vector<256x2xf32>
    %c11_130 = arith.constant 11 : index
    %c11_131 = arith.constant 11 : index
    %c0_132 = arith.constant 0 : index
    %129 = vector.load %arg8[%c11_130, %c11_131, %c0_132] : memref<32x32x2xf32, #tpu.memory_space<vmem>>, vector<16x16x2xf32>
    %130 = vector.shape_cast %129 : vector<16x16x2xf32> to vector<256x2xf32>
    %c14 = arith.constant 14 : index
    %c0_133 = arith.constant 0 : index
    %c0_134 = arith.constant 0 : index
    %131 = vector.load %arg4[%c14, %c0_133, %c0_134] : memref<34x2x2xf32, #tpu.memory_space<vmem>>, vector<1x2x2xf32>
    %132 = vector.shape_cast %131 : vector<1x2x2xf32> to vector<2x2xf32>
    %cst_135 = arith.constant dense<0.000000e+00> : vector<256x2xf32>
    %133 = tpu.matmul %130, %132, %cst_135 {dimension_numbers = #tpu.dot_dimension_numbers<[1], [0], [0], [1], [0, 0, 1, 1], [], []>} : vector<256x2xf32>, vector<2x2xf32>, vector<256x2xf32> -> vector<256x2xf32>
    %134 = arith.addf %128, %133 : vector<256x2xf32>
    %c2_136 = arith.constant 2 : index
    %c0_137 = arith.constant 0 : index
    %135 = vector.load %arg5[%c2_136, %c0_137] : memref<6x2xf32, #tpu.memory_space<vmem>>, vector<1x2xf32>
    %136 = vector.broadcast %135 : vector<1x2xf32> to vector<256x2xf32>
    %137 = arith.addf %134, %136 : vector<256x2xf32>
    %c1_138 = arith.constant 1 : index
    %c0_139 = arith.constant 0 : index
    %c0_140 = arith.constant 0 : index
    %138 = vector.load %arg6[%c1_138, %c0_139, %c0_140] : memref<3x2x16xf32, #tpu.memory_space<vmem>>, vector<1x2x16xf32>
    %139 = vector.shape_cast %138 : vector<1x2x16xf32> to vector<2x16xf32>
    %cst_141 = arith.constant dense<0.000000e+00> : vector<256x16xf32>
    %140 = tpu.matmul %137, %139, %cst_141 {dimension_numbers = #tpu.dot_dimension_numbers<[1], [0], [0], [1], [0, 0, 1, 1], [], []>} : vector<256x2xf32>, vector<2x16xf32>, vector<256x16xf32> -> vector<256x16xf32>
    %141 = arith.addf %24, %140 : vector<256x16xf32>
    %142 = vector.extract_strided_slice %19 {offsets = [0, 4], sizes = [256, 2], strides = [1, 1]} : vector<256x6xf32> to vector<256x2xf32>
    %143 = vector.shape_cast %142 : vector<256x2xf32> to vector<16x16x2xf32>
    %c8_142 = arith.constant 8 : index
    %c8_143 = arith.constant 8 : index
    %c0_144 = arith.constant 0 : index
    %144 = vector.load %arg8[%c8_142, %c8_143, %c0_144] : memref<32x32x2xf32, #tpu.memory_space<vmem>>, vector<16x16x2xf32>
    tpu.vector_store %arg8[%c8_142, %c8_143, %c0_144], %143 {strides = array<i32>} : memref<32x32x2xf32, #tpu.memory_space<vmem>>, vector<16x16x2xf32>,
    %cst_145 = arith.constant 0.000000e+00 : f32
    %145 = vector.broadcast %cst_145 : f32 to vector<256x2xf32>
    %c8_146 = arith.constant 8 : index
    %c6_147 = arith.constant 6 : index
    %c0_148 = arith.constant 0 : index
    %146 = vector.load %arg8[%c8_146, %c6_147, %c0_148] : memref<32x32x2xf32, #tpu.memory_space<vmem>>, vector<16x16x2xf32>
    %147 = vector.shape_cast %146 : vector<16x16x2xf32> to vector<256x2xf32>
    %c15 = arith.constant 15 : index
    %c0_149 = arith.constant 0 : index
    %c0_150 = arith.constant 0 : index
    %148 = vector.load %arg4[%c15, %c0_149, %c0_150] : memref<34x2x2xf32, #tpu.memory_space<vmem>>, vector<1x2x2xf32>
    %149 = vector.shape_cast %148 : vector<1x2x2xf32> to vector<2x2xf32>
    %cst_151 = arith.constant dense<0.000000e+00> : vector<256x2xf32>
    %150 = tpu.matmul %147, %149, %cst_151 {dimension_numbers = #tpu.dot_dimension_numbers<[1], [0], [0], [1], [0, 0, 1, 1], [], []>} : vector<256x2xf32>, vector<2x2xf32>, vector<256x2xf32> -> vector<256x2xf32>
    %151 = arith.addf %145, %150 : vector<256x2xf32>
    %c8_152 = arith.constant 8 : index
    %c7_153 = arith.constant 7 : index
    %c0_154 = arith.constant 0 : index
    %152 = vector.load %arg8[%c8_152, %c7_153, %c0_154] : memref<32x32x2xf32, #tpu.memory_space<vmem>>, vector<16x16x2xf32>
    %153 = vector.shape_cast %152 : vector<16x16x2xf32> to vector<256x2xf32>
    %c16 = arith.constant 16 : index
    %c0_155 = arith.constant 0 : index
    %c0_156 = arith.constant 0 : index
    %154 = vector.load %arg4[%c16, %c0_155, %c0_156] : memref<34x2x2xf32, #tpu.memory_space<vmem>>, vector<1x2x2xf32>
    %155 = vector.shape_cast %154 : vector<1x2x2xf32> to vector<2x2xf32>
    %cst_157 = arith.constant dense<0.000000e+00> : vector<256x2xf32>
    %156 = tpu.matmul %153, %155, %cst_157 {dimension_numbers = #tpu.dot_dimension_numbers<[1], [0], [0], [1], [0, 0, 1, 1], [], []>} : vector<256x2xf32>, vector<2x2xf32>, vector<256x2xf32> -> vector<256x2xf32>
    %157 = arith.addf %151, %156 : vector<256x2xf32>
    %c8_158 = arith.constant 8 : index
    %c8_159 = arith.constant 8 : index
    %c0_160 = arith.constant 0 : index
    %158 = vector.load %arg8[%c8_158, %c8_159, %c0_160] : memref<32x32x2xf32, #tpu.memory_space<vmem>>, vector<16x16x2xf32>
    %159 = vector.shape_cast %158 : vector<16x16x2xf32> to vector<256x2xf32>
    %c17 = arith.constant 17 : index
    %c0_161 = arith.constant 0 : index
    %c0_162 = arith.constant 0 : index
    %160 = vector.load %arg4[%c17, %c0_161, %c0_162] : memref<34x2x2xf32, #tpu.memory_space<vmem>>, vector<1x2x2xf32>
    %161 = vector.shape_cast %160 : vector<1x2x2xf32> to vector<2x2xf32>
    %cst_163 = arith.constant dense<0.000000e+00> : vector<256x2xf32>
    %162 = tpu.matmul %159, %161, %cst_163 {dimension_numbers = #tpu.dot_dimension_numbers<[1], [0], [0], [1], [0, 0, 1, 1], [], []>} : vector<256x2xf32>, vector<2x2xf32>, vector<256x2xf32> -> vector<256x2xf32>
    %163 = arith.addf %157, %162 : vector<256x2xf32>
    %c8_164 = arith.constant 8 : index
    %c9_165 = arith.constant 9 : index
    %c0_166 = arith.constant 0 : index
    %164 = vector.load %arg8[%c8_164, %c9_165, %c0_166] : memref<32x32x2xf32, #tpu.memory_space<vmem>>, vector<16x16x2xf32>
    %165 = vector.shape_cast %164 : vector<16x16x2xf32> to vector<256x2xf32>
    %c18 = arith.constant 18 : index
    %c0_167 = arith.constant 0 : index
    %c0_168 = arith.constant 0 : index
    %166 = vector.load %arg4[%c18, %c0_167, %c0_168] : memref<34x2x2xf32, #tpu.memory_space<vmem>>, vector<1x2x2xf32>
    %167 = vector.shape_cast %166 : vector<1x2x2xf32> to vector<2x2xf32>
    %cst_169 = arith.constant dense<0.000000e+00> : vector<256x2xf32>
    %168 = tpu.matmul %165, %167, %cst_169 {dimension_numbers = #tpu.dot_dimension_numbers<[1], [0], [0], [1], [0, 0, 1, 1], [], []>} : vector<256x2xf32>, vector<2x2xf32>, vector<256x2xf32> -> vector<256x2xf32>
    %169 = arith.addf %163, %168 : vector<256x2xf32>
    %c8_170 = arith.constant 8 : index
    %c10_171 = arith.constant 10 : index
    %c0_172 = arith.constant 0 : index
    %170 = vector.load %arg8[%c8_170, %c10_171, %c0_172] : memref<32x32x2xf32, #tpu.memory_space<vmem>>, vector<16x16x2xf32>
    %171 = vector.shape_cast %170 : vector<16x16x2xf32> to vector<256x2xf32>
    %c19 = arith.constant 19 : index
    %c0_173 = arith.constant 0 : index
    %c0_174 = arith.constant 0 : index
    %172 = vector.load %arg4[%c19, %c0_173, %c0_174] : memref<34x2x2xf32, #tpu.memory_space<vmem>>, vector<1x2x2xf32>
    %173 = vector.shape_cast %172 : vector<1x2x2xf32> to vector<2x2xf32>
    %cst_175 = arith.constant dense<0.000000e+00> : vector<256x2xf32>
    %174 = tpu.matmul %171, %173, %cst_175 {dimension_numbers = #tpu.dot_dimension_numbers<[1], [0], [0], [1], [0, 0, 1, 1], [], []>} : vector<256x2xf32>, vector<2x2xf32>, vector<256x2xf32> -> vector<256x2xf32>
    %175 = arith.addf %169, %174 : vector<256x2xf32>
    %c3_176 = arith.constant 3 : index
    %c0_177 = arith.constant 0 : index
    %176 = vector.load %arg5[%c3_176, %c0_177] : memref<6x2xf32, #tpu.memory_space<vmem>>, vector<1x2xf32>
    %177 = vector.broadcast %176 : vector<1x2xf32> to vector<256x2xf32>
    %178 = arith.addf %175, %177 : vector<256x2xf32>
    %cst_178 = arith.constant 0.000000e+00 : f32
    %179 = vector.broadcast %cst_178 : f32 to vector<256x2xf32>
    %180 = arith.maximumf %178, %179 : vector<256x2xf32>
    %181 = vector.shape_cast %180 : vector<256x2xf32> to vector<16x16x2xf32>
    %c8_179 = arith.constant 8 : index
    %c8_180 = arith.constant 8 : index
    %c0_181 = arith.constant 0 : index
    %182 = vector.load %arg8[%c8_179, %c8_180, %c0_181] : memref<32x32x2xf32, #tpu.memory_space<vmem>>, vector<16x16x2xf32>
    tpu.vector_store %arg8[%c8_179, %c8_180, %c0_181], %181 {strides = array<i32>} : memref<32x32x2xf32, #tpu.memory_space<vmem>>, vector<16x16x2xf32>,
    %cst_182 = arith.constant 0.000000e+00 : f32
    %183 = vector.broadcast %cst_182 : f32 to vector<256x2xf32>
    %c6_183 = arith.constant 6 : index
    %c8_184 = arith.constant 8 : index
    %c0_185 = arith.constant 0 : index
    %184 = vector.load %arg8[%c6_183, %c8_184, %c0_185] : memref<32x32x2xf32, #tpu.memory_space<vmem>>, vector<16x16x2xf32>
    %185 = vector.shape_cast %184 : vector<16x16x2xf32> to vector<256x2xf32>
    %c20 = arith.constant 20 : index
    %c0_186 = arith.constant 0 : index
    %c0_187 = arith.constant 0 : index
    %186 = vector.load %arg4[%c20, %c0_186, %c0_187] : memref<34x2x2xf32, #tpu.memory_space<vmem>>, vector<1x2x2xf32>
    %187 = vector.shape_cast %186 : vector<1x2x2xf32> to vector<2x2xf32>
    %cst_188 = arith.constant dense<0.000000e+00> : vector<256x2xf32>
    %188 = tpu.matmul %185, %187, %cst_188 {dimension_numbers = #tpu.dot_dimension_numbers<[1], [0], [0], [1], [0, 0, 1, 1], [], []>} : vector<256x2xf32>, vector<2x2xf32>, vector<256x2xf32> -> vector<256x2xf32>
    %189 = arith.addf %183, %188 : vector<256x2xf32>
    %c7_189 = arith.constant 7 : index
    %c8_190 = arith.constant 8 : index
    %c0_191 = arith.constant 0 : index
    %190 = vector.load %arg8[%c7_189, %c8_190, %c0_191] : memref<32x32x2xf32, #tpu.memory_space<vmem>>, vector<16x16x2xf32>
    %191 = vector.shape_cast %190 : vector<16x16x2xf32> to vector<256x2xf32>
    %c21 = arith.constant 21 : index
    %c0_192 = arith.constant 0 : index
    %c0_193 = arith.constant 0 : index
    %192 = vector.load %arg4[%c21, %c0_192, %c0_193] : memref<34x2x2xf32, #tpu.memory_space<vmem>>, vector<1x2x2xf32>
    %193 = vector.shape_cast %192 : vector<1x2x2xf32> to vector<2x2xf32>
    %cst_194 = arith.constant dense<0.000000e+00> : vector<256x2xf32>
    %194 = tpu.matmul %191, %193, %cst_194 {dimension_numbers = #tpu.dot_dimension_numbers<[1], [0], [0], [1], [0, 0, 1, 1], [], []>} : vector<256x2xf32>, vector<2x2xf32>, vector<256x2xf32> -> vector<256x2xf32>
    %195 = arith.addf %189, %194 : vector<256x2xf32>
    %c8_195 = arith.constant 8 : index
    %c8_196 = arith.constant 8 : index
    %c0_197 = arith.constant 0 : index
    %196 = vector.load %arg8[%c8_195, %c8_196, %c0_197] : memref<32x32x2xf32, #tpu.memory_space<vmem>>, vector<16x16x2xf32>
    %197 = vector.shape_cast %196 : vector<16x16x2xf32> to vector<256x2xf32>
    %c22 = arith.constant 22 : index
    %c0_198 = arith.constant 0 : index
    %c0_199 = arith.constant 0 : index
    %198 = vector.load %arg4[%c22, %c0_198, %c0_199] : memref<34x2x2xf32, #tpu.memory_space<vmem>>, vector<1x2x2xf32>
    %199 = vector.shape_cast %198 : vector<1x2x2xf32> to vector<2x2xf32>
    %cst_200 = arith.constant dense<0.000000e+00> : vector<256x2xf32>
    %200 = tpu.matmul %197, %199, %cst_200 {dimension_numbers = #tpu.dot_dimension_numbers<[1], [0], [0], [1], [0, 0, 1, 1], [], []>} : vector<256x2xf32>, vector<2x2xf32>, vector<256x2xf32> -> vector<256x2xf32>
    %201 = arith.addf %195, %200 : vector<256x2xf32>
    %c9_201 = arith.constant 9 : index
    %c8_202 = arith.constant 8 : index
    %c0_203 = arith.constant 0 : index
    %202 = vector.load %arg8[%c9_201, %c8_202, %c0_203] : memref<32x32x2xf32, #tpu.memory_space<vmem>>, vector<16x16x2xf32>
    %203 = vector.shape_cast %202 : vector<16x16x2xf32> to vector<256x2xf32>
    %c23 = arith.constant 23 : index
    %c0_204 = arith.constant 0 : index
    %c0_205 = arith.constant 0 : index
    %204 = vector.load %arg4[%c23, %c0_204, %c0_205] : memref<34x2x2xf32, #tpu.memory_space<vmem>>, vector<1x2x2xf32>
    %205 = vector.shape_cast %204 : vector<1x2x2xf32> to vector<2x2xf32>
    %cst_206 = arith.constant dense<0.000000e+00> : vector<256x2xf32>
    %206 = tpu.matmul %203, %205, %cst_206 {dimension_numbers = #tpu.dot_dimension_numbers<[1], [0], [0], [1], [0, 0, 1, 1], [], []>} : vector<256x2xf32>, vector<2x2xf32>, vector<256x2xf32> -> vector<256x2xf32>
    %207 = arith.addf %201, %206 : vector<256x2xf32>
    %c10_207 = arith.constant 10 : index
    %c8_208 = arith.constant 8 : index
    %c0_209 = arith.constant 0 : index
    %208 = vector.load %arg8[%c10_207, %c8_208, %c0_209] : memref<32x32x2xf32, #tpu.memory_space<vmem>>, vector<16x16x2xf32>
    %209 = vector.shape_cast %208 : vector<16x16x2xf32> to vector<256x2xf32>
    %c24_210 = arith.constant 24 : index
    %c0_211 = arith.constant 0 : index
    %c0_212 = arith.constant 0 : index
    %210 = vector.load %arg4[%c24_210, %c0_211, %c0_212] : memref<34x2x2xf32, #tpu.memory_space<vmem>>, vector<1x2x2xf32>
    %211 = vector.shape_cast %210 : vector<1x2x2xf32> to vector<2x2xf32>
    %cst_213 = arith.constant dense<0.000000e+00> : vector<256x2xf32>
    %212 = tpu.matmul %209, %211, %cst_213 {dimension_numbers = #tpu.dot_dimension_numbers<[1], [0], [0], [1], [0, 0, 1, 1], [], []>} : vector<256x2xf32>, vector<2x2xf32>, vector<256x2xf32> -> vector<256x2xf32>
    %213 = arith.addf %207, %212 : vector<256x2xf32>
    %c4_214 = arith.constant 4 : index
    %c0_215 = arith.constant 0 : index
    %214 = vector.load %arg5[%c4_214, %c0_215] : memref<6x2xf32, #tpu.memory_space<vmem>>, vector<1x2xf32>
    %215 = vector.broadcast %214 : vector<1x2xf32> to vector<256x2xf32>
    %216 = arith.addf %213, %215 : vector<256x2xf32>
    %cst_216 = arith.constant 0.000000e+00 : f32
    %217 = vector.broadcast %cst_216 : f32 to vector<256x2xf32>
    %218 = arith.maximumf %216, %217 : vector<256x2xf32>
    %219 = vector.shape_cast %218 : vector<256x2xf32> to vector<16x16x2xf32>
    %c8_217 = arith.constant 8 : index
    %c8_218 = arith.constant 8 : index
    %c0_219 = arith.constant 0 : index
    %220 = vector.load %arg8[%c8_217, %c8_218, %c0_219] : memref<32x32x2xf32, #tpu.memory_space<vmem>>, vector<16x16x2xf32>
    tpu.vector_store %arg8[%c8_217, %c8_218, %c0_219], %219 {strides = array<i32>} : memref<32x32x2xf32, #tpu.memory_space<vmem>>, vector<16x16x2xf32>,
    %cst_220 = arith.constant 0.000000e+00 : f32
    %221 = vector.broadcast %cst_220 : f32 to vector<256x2xf32>
    %c3_221 = arith.constant 3 : index
    %c3_222 = arith.constant 3 : index
    %c0_223 = arith.constant 0 : index
    %222 = vector.load %arg8[%c3_221, %c3_222, %c0_223] : memref<32x32x2xf32, #tpu.memory_space<vmem>>, vector<16x16x2xf32>
    %223 = vector.shape_cast %222 : vector<16x16x2xf32> to vector<256x2xf32>
    %c25 = arith.constant 25 : index
    %c0_224 = arith.constant 0 : index
    %c0_225 = arith.constant 0 : index
    %224 = vector.load %arg4[%c25, %c0_224, %c0_225] : memref<34x2x2xf32, #tpu.memory_space<vmem>>, vector<1x2x2xf32>
    %225 = vector.shape_cast %224 : vector<1x2x2xf32> to vector<2x2xf32>
    %cst_226 = arith.constant dense<0.000000e+00> : vector<256x2xf32>
    %226 = tpu.matmul %223, %225, %cst_226 {dimension_numbers = #tpu.dot_dimension_numbers<[1], [0], [0], [1], [0, 0, 1, 1], [], []>} : vector<256x2xf32>, vector<2x2xf32>, vector<256x2xf32> -> vector<256x2xf32>
    %227 = arith.addf %221, %226 : vector<256x2xf32>
    %c3_227 = arith.constant 3 : index
    %c8_228 = arith.constant 8 : index
    %c0_229 = arith.constant 0 : index
    %228 = vector.load %arg8[%c3_227, %c8_228, %c0_229] : memref<32x32x2xf32, #tpu.memory_space<vmem>>, vector<16x16x2xf32>
    %229 = vector.shape_cast %228 : vector<16x16x2xf32> to vector<256x2xf32>
    %c26 = arith.constant 26 : index
    %c0_230 = arith.constant 0 : index
    %c0_231 = arith.constant 0 : index
    %230 = vector.load %arg4[%c26, %c0_230, %c0_231] : memref<34x2x2xf32, #tpu.memory_space<vmem>>, vector<1x2x2xf32>
    %231 = vector.shape_cast %230 : vector<1x2x2xf32> to vector<2x2xf32>
    %cst_232 = arith.constant dense<0.000000e+00> : vector<256x2xf32>
    %232 = tpu.matmul %229, %231, %cst_232 {dimension_numbers = #tpu.dot_dimension_numbers<[1], [0], [0], [1], [0, 0, 1, 1], [], []>} : vector<256x2xf32>, vector<2x2xf32>, vector<256x2xf32> -> vector<256x2xf32>
    %233 = arith.addf %227, %232 : vector<256x2xf32>
    %c3_233 = arith.constant 3 : index
    %c13_234 = arith.constant 13 : index
    %c0_235 = arith.constant 0 : index
    %234 = vector.load %arg8[%c3_233, %c13_234, %c0_235] : memref<32x32x2xf32, #tpu.memory_space<vmem>>, vector<16x16x2xf32>
    %235 = vector.shape_cast %234 : vector<16x16x2xf32> to vector<256x2xf32>
    %c27 = arith.constant 27 : index
    %c0_236 = arith.constant 0 : index
    %c0_237 = arith.constant 0 : index
    %236 = vector.load %arg4[%c27, %c0_236, %c0_237] : memref<34x2x2xf32, #tpu.memory_space<vmem>>, vector<1x2x2xf32>
    %237 = vector.shape_cast %236 : vector<1x2x2xf32> to vector<2x2xf32>
    %cst_238 = arith.constant dense<0.000000e+00> : vector<256x2xf32>
    %238 = tpu.matmul %235, %237, %cst_238 {dimension_numbers = #tpu.dot_dimension_numbers<[1], [0], [0], [1], [0, 0, 1, 1], [], []>} : vector<256x2xf32>, vector<2x2xf32>, vector<256x2xf32> -> vector<256x2xf32>
    %239 = arith.addf %233, %238 : vector<256x2xf32>
    %c8_239 = arith.constant 8 : index
    %c3_240 = arith.constant 3 : index
    %c0_241 = arith.constant 0 : index
    %240 = vector.load %arg8[%c8_239, %c3_240, %c0_241] : memref<32x32x2xf32, #tpu.memory_space<vmem>>, vector<16x16x2xf32>
    %241 = vector.shape_cast %240 : vector<16x16x2xf32> to vector<256x2xf32>
    %c28 = arith.constant 28 : index
    %c0_242 = arith.constant 0 : index
    %c0_243 = arith.constant 0 : index
    %242 = vector.load %arg4[%c28, %c0_242, %c0_243] : memref<34x2x2xf32, #tpu.memory_space<vmem>>, vector<1x2x2xf32>
    %243 = vector.shape_cast %242 : vector<1x2x2xf32> to vector<2x2xf32>
    %cst_244 = arith.constant dense<0.000000e+00> : vector<256x2xf32>
    %244 = tpu.matmul %241, %243, %cst_244 {dimension_numbers = #tpu.dot_dimension_numbers<[1], [0], [0], [1], [0, 0, 1, 1], [], []>} : vector<256x2xf32>, vector<2x2xf32>, vector<256x2xf32> -> vector<256x2xf32>
    %245 = arith.addf %239, %244 : vector<256x2xf32>
    %c8_245 = arith.constant 8 : index
    %c8_246 = arith.constant 8 : index
    %c0_247 = arith.constant 0 : index
    %246 = vector.load %arg8[%c8_245, %c8_246, %c0_247] : memref<32x32x2xf32, #tpu.memory_space<vmem>>, vector<16x16x2xf32>
    %247 = vector.shape_cast %246 : vector<16x16x2xf32> to vector<256x2xf32>
    %c29 = arith.constant 29 : index
    %c0_248 = arith.constant 0 : index
    %c0_249 = arith.constant 0 : index
    %248 = vector.load %arg4[%c29, %c0_248, %c0_249] : memref<34x2x2xf32, #tpu.memory_space<vmem>>, vector<1x2x2xf32>
    %249 = vector.shape_cast %248 : vector<1x2x2xf32> to vector<2x2xf32>
    %cst_250 = arith.constant dense<0.000000e+00> : vector<256x2xf32>
    %250 = tpu.matmul %247, %249, %cst_250 {dimension_numbers = #tpu.dot_dimension_numbers<[1], [0], [0], [1], [0, 0, 1, 1], [], []>} : vector<256x2xf32>, vector<2x2xf32>, vector<256x2xf32> -> vector<256x2xf32>
    %251 = arith.addf %245, %250 : vector<256x2xf32>
    %c8_251 = arith.constant 8 : index
    %c13_252 = arith.constant 13 : index
    %c0_253 = arith.constant 0 : index
    %252 = vector.load %arg8[%c8_251, %c13_252, %c0_253] : memref<32x32x2xf32, #tpu.memory_space<vmem>>, vector<16x16x2xf32>
    %253 = vector.shape_cast %252 : vector<16x16x2xf32> to vector<256x2xf32>
    %c30 = arith.constant 30 : index
    %c0_254 = arith.constant 0 : index
    %c0_255 = arith.constant 0 : index
    %254 = vector.load %arg4[%c30, %c0_254, %c0_255] : memref<34x2x2xf32, #tpu.memory_space<vmem>>, vector<1x2x2xf32>
    %255 = vector.shape_cast %254 : vector<1x2x2xf32> to vector<2x2xf32>
    %cst_256 = arith.constant dense<0.000000e+00> : vector<256x2xf32>
    %256 = tpu.matmul %253, %255, %cst_256 {dimension_numbers = #tpu.dot_dimension_numbers<[1], [0], [0], [1], [0, 0, 1, 1], [], []>} : vector<256x2xf32>, vector<2x2xf32>, vector<256x2xf32> -> vector<256x2xf32>
    %257 = arith.addf %251, %256 : vector<256x2xf32>
    %c13_257 = arith.constant 13 : index
    %c3_258 = arith.constant 3 : index
    %c0_259 = arith.constant 0 : index
    %258 = vector.load %arg8[%c13_257, %c3_258, %c0_259] : memref<32x32x2xf32, #tpu.memory_space<vmem>>, vector<16x16x2xf32>
    %259 = vector.shape_cast %258 : vector<16x16x2xf32> to vector<256x2xf32>
    %c31 = arith.constant 31 : index
    %c0_260 = arith.constant 0 : index
    %c0_261 = arith.constant 0 : index
    %260 = vector.load %arg4[%c31, %c0_260, %c0_261] : memref<34x2x2xf32, #tpu.memory_space<vmem>>, vector<1x2x2xf32>
    %261 = vector.shape_cast %260 : vector<1x2x2xf32> to vector<2x2xf32>
    %cst_262 = arith.constant dense<0.000000e+00> : vector<256x2xf32>
    %262 = tpu.matmul %259, %261, %cst_262 {dimension_numbers = #tpu.dot_dimension_numbers<[1], [0], [0], [1], [0, 0, 1, 1], [], []>} : vector<256x2xf32>, vector<2x2xf32>, vector<256x2xf32> -> vector<256x2xf32>
    %263 = arith.addf %257, %262 : vector<256x2xf32>
    %c13_263 = arith.constant 13 : index
    %c8_264 = arith.constant 8 : index
    %c0_265 = arith.constant 0 : index
    %264 = vector.load %arg8[%c13_263, %c8_264, %c0_265] : memref<32x32x2xf32, #tpu.memory_space<vmem>>, vector<16x16x2xf32>
    %265 = vector.shape_cast %264 : vector<16x16x2xf32> to vector<256x2xf32>
    %c32 = arith.constant 32 : index
    %c0_266 = arith.constant 0 : index
    %c0_267 = arith.constant 0 : index
    %266 = vector.load %arg4[%c32, %c0_266, %c0_267] : memref<34x2x2xf32, #tpu.memory_space<vmem>>, vector<1x2x2xf32>
    %267 = vector.shape_cast %266 : vector<1x2x2xf32> to vector<2x2xf32>
    %cst_268 = arith.constant dense<0.000000e+00> : vector<256x2xf32>
    %268 = tpu.matmul %265, %267, %cst_268 {dimension_numbers = #tpu.dot_dimension_numbers<[1], [0], [0], [1], [0, 0, 1, 1], [], []>} : vector<256x2xf32>, vector<2x2xf32>, vector<256x2xf32> -> vector<256x2xf32>
    %269 = arith.addf %263, %268 : vector<256x2xf32>
    %c13_269 = arith.constant 13 : index
    %c13_270 = arith.constant 13 : index
    %c0_271 = arith.constant 0 : index
    %270 = vector.load %arg8[%c13_269, %c13_270, %c0_271] : memref<32x32x2xf32, #tpu.memory_space<vmem>>, vector<16x16x2xf32>
    %271 = vector.shape_cast %270 : vector<16x16x2xf32> to vector<256x2xf32>
    %c33 = arith.constant 33 : index
    %c0_272 = arith.constant 0 : index
    %c0_273 = arith.constant 0 : index
    %272 = vector.load %arg4[%c33, %c0_272, %c0_273] : memref<34x2x2xf32, #tpu.memory_space<vmem>>, vector<1x2x2xf32>
    %273 = vector.shape_cast %272 : vector<1x2x2xf32> to vector<2x2xf32>
    %cst_274 = arith.constant dense<0.000000e+00> : vector<256x2xf32>
    %274 = tpu.matmul %271, %273, %cst_274 {dimension_numbers = #tpu.dot_dimension_numbers<[1], [0], [0], [1], [0, 0, 1, 1], [], []>} : vector<256x2xf32>, vector<2x2xf32>, vector<256x2xf32> -> vector<256x2xf32>
    %275 = arith.addf %269, %274 : vector<256x2xf32>
    %c5_275 = arith.constant 5 : index
    %c0_276 = arith.constant 0 : index
    %276 = vector.load %arg5[%c5_275, %c0_276] : memref<6x2xf32, #tpu.memory_space<vmem>>, vector<1x2xf32>
    %277 = vector.broadcast %276 : vector<1x2xf32> to vector<256x2xf32>
    %278 = arith.addf %275, %277 : vector<256x2xf32>
    %c2_277 = arith.constant 2 : index
    %c0_278 = arith.constant 0 : index
    %c0_279 = arith.constant 0 : index
    %279 = vector.load %arg6[%c2_277, %c0_278, %c0_279] : memref<3x2x16xf32, #tpu.memory_space<vmem>>, vector<1x2x16xf32>
    %280 = vector.shape_cast %279 : vector<1x2x16xf32> to vector<2x16xf32>
    %cst_280 = arith.constant dense<0.000000e+00> : vector<256x16xf32>
    %281 = tpu.matmul %278, %280, %cst_280 {dimension_numbers = #tpu.dot_dimension_numbers<[1], [0], [0], [1], [0, 0, 1, 1], [], []>} : vector<256x2xf32>, vector<2x16xf32>, vector<256x16xf32> -> vector<256x16xf32>
    %282 = arith.addf %141, %281 : vector<256x16xf32>
    %cst_281 = arith.constant 0.000000e+00 : f32
    %283 = vector.broadcast %cst_281 : f32 to vector<256x16xf32>
    %284 = arith.maximumf %282, %283 : vector<256x16xf32>
    %285 = vector.shape_cast %284 : vector<256x16xf32> to vector<1x16x16x16xf32>
    %c0_282 = arith.constant 0 : index
    %c0_283 = arith.constant 0 : index
    %c0_284 = arith.constant 0 : index
    %c0_285 = arith.constant 0 : index
    %286 = vector.load %arg7[%c0_282, %c0_283, %c0_284, %c0_285] : memref<1x16x16x16xf32, #tpu.memory_space<vmem>>, vector<1x16x16x16xf32>
    tpu.vector_store %arg7[%c0_282, %c0_283, %c0_284, %c0_285], %285 {strides = array<i32>} : memref<1x16x16x16xf32, #tpu.memory_space<vmem>>, vector<1x16x16x16xf32>,
    return
  }
  func.func @transform_0(%arg0: i32) -> (i32, i32, i32, i32) {
    %c0_i32 = arith.constant 0 : i32
    %c0_i32_0 = arith.constant 0 : i32
    %c0_i32_1 = arith.constant 0 : i32
    %c0_i32_2 = arith.constant 0 : i32
    return %arg0, %c0_i32, %c0_i32_0, %c0_i32_1 : i32, i32, i32, i32
  }
  func.func @transform_1(%arg0: i32) -> (i32, i32) {
    %c0_i32 = arith.constant 0 : i32
    %c0_i32_0 = arith.constant 0 : i32
    %c0_i32_1 = arith.constant 0 : i32
    return %c0_i32, %c0_i32_0 : i32, i32
  }
  func.func @transform_2(%arg0: i32) -> (i32, i32) {
    %c0_i32 = arith.constant 0 : i32
    %c0_i32_0 = arith.constant 0 : i32
    %c0_i32_1 = arith.constant 0 : i32
    return %c0_i32, %c0_i32_0 : i32, i32
  }
  func.func @transform_3(%arg0: i32) -> (i32, i32, i32) {
    %c0_i32 = arith.constant 0 : i32
    %c0_i32_0 = arith.constant 0 : i32
    %c0_i32_1 = arith.constant 0 : i32
    %c0_i32_2 = arith.constant 0 : i32
    return %c0_i32, %c0_i32_0, %c0_i32_1 : i32, i32, i32
  }
  func.func @transform_4(%arg0: i32) -> (i32, i32) {
    %c0_i32 = arith.constant 0 : i32
    %c0_i32_0 = arith.constant 0 : i32
    %c0_i32_1 = arith.constant 0 : i32
    return %c0_i32, %c0_i32_0 : i32, i32
  }
  func.func @transform_5(%arg0: i32) -> (i32, i32, i32) {
    %c0_i32 = arith.constant 0 : i32
    %c0_i32_0 = arith.constant 0 : i32
    %c0_i32_1 = arith.constant 0 : i32
    %c0_i32_2 = arith.constant 0 : i32
    return %c0_i32, %c0_i32_0, %c0_i32_1 : i32, i32, i32
  }
  func.func @transform_6(%arg0: i32) -> (i32, i32, i32, i32) {
    %c0_i32 = arith.constant 0 : i32
    %c0_i32_0 = arith.constant 0 : i32
    %c0_i32_1 = arith.constant 0 : i32
    %c0_i32_2 = arith.constant 0 : i32
    return %arg0, %c0_i32, %c0_i32_0, %c0_i32_1 : i32, i32, i32, i32
  }
}

</mosaic_0001>

<bundles_post_ra>
// kernel: basic_rfb_forward.1
= control target key start
LH: loop header
LB: loop body
LE: loop exit
PB: predicated region body
PF: predicated region fallthrough
CT: control target
= control target key end

     0   :  { %11 = vsyncpa [#allocation4], 0  ;;  %s18817_s0 = inlined_call_operand.vmem [shape: f32[2,16,16,8], index: 0, kind: input, shape index: {}]   ;;  %s18818_s1 = inlined_call_operand.vmem [shape: f32[8,22], index: 1, kind: input, shape index: {}]   ;;  %s18819_s2 = inlined_call_operand.vmem [shape: f32[1,22], index: 2, kind: input, shape index: {}]   ;;  %s18820_s3 = inlined_call_operand.vmem [shape: f32[34,2,2], index: 3, kind: input, shape index: {}]   ;;  %s18821_s4 = inlined_call_operand.vmem [shape: f32[6,2], index: 4, kind: input, shape index: {}]   ;;  %s18822_s5 = inlined_call_operand.vmem [shape: f32[3,2,16], index: 5, kind: input, shape index: {}]   ;;  %s18823_s6 = inlined_call_operand.hbm [shape: f32[2,16,16,16], index: 6, kind: output, shape index: {}]  }
   0x1   :  { %13 = vsyncpa [#allocation4 + $0x1], 0  ;;  %s12828_s21 = smov 0   ;;  %s12830_s22 = smov 0  }
   0x2   :  { %s12832_s23 = smov 0   ;;  %s12834_s24 = smov 0  }
   0x3 LB: > { %s12849_s25 = sadd.s32 4294967295, %s12785_s24   ;;  %s11364_s26 = sadd.s32 4294967294, %s12785_s24   ;;  %s12785_s24 = sphi %s12834_s24, %s19647_s24   ;;  %s12781_s23 = sphi %s12832_s23, %s19646_s23   ;;  %s12777_s22 = sphi %s12830_s22, %s19645_s22   ;;  %s12773_s21 = sphi %s12828_s21, %s19644_s21  }
   0x4   : > { %s12853_s27 = sadd.s32 1, %s12785_s24   ;;  %s157_s28 = sadd.s32 1, %s12781_s23 }
   0x5   : > { %s154_s29 = ssub.s32 %s12785_s24, %s12853_s27  ;;  %p167_p0 = scmp.ne.s32.totalorder %s12781_s23, %s12777_s22 }
   0x6   : > { %p155_p1 = scmp.eq.s32.totalorder %s154_s29, 0  ;;  %p168_p2 = scmp.eq.s32.totalorder %s12849_s25, 1 }
   0x7   : > { %p173_p3 = scmp.ne.s32.totalorder %s12777_s22, %s12773_s21  ;;  %p174_p4 = scmp.eq.s32.totalorder %s11364_s26, 1 }
   0x8   : > { %s12864_s30 = scalar_select %p155_p1, %s12781_s23, %s157_s28  }
   0x9   : > { %p12866_p5 = por %p168_p2, %p167_p0  ;;  %p12870_p6 = por %p174_p4, %p173_p3 }
   0xa   : > { %p11367_p7 = scmp.ge.s32.totalorder %s12785_s24, 1  ;;  %p215_p8 = scmp.lt.s32.totalorder %s12785_s24, 3 }
   0xc   : > { %p216_p9 = pnand %p11367_p7, %p215_p8 }
   0xe   : > { %219 = sbr.rel (%p216_p9) target bundleno = 3171 (0xc63), region = 44 }
  0x13   : > { %v381_v0 = vld [vmem:[%s18818_s1] sm:$0xff]  ;;  %p245_p10 = scmp.lt.s32.totalorder %s12849_s25, 1  ;;  %vm386_vm0 = vcmask 64512   ;;  %s12787_s18 = smov 112   ;;  %vm789_vm1 = vcmask 1041408   ;;  %vm250_vm2 = vcmask 15360  }
  0x14   : > { %12666 = vmatpush.msra.mxu2 %v381_v0  ;;  %498 = vmatpush.msra.mxu0 %v381_v0  ;;  %v12953_v33 = vld [vmem:[%s18819_s2] ss:$0 sm:$0xff]  ;;  %s12788_s26 = smov 110   ;;  %s242_s29 = sand.u32 1, %s12777_s22   ;;  %vm11253_vm3 = vcmask 130048  }
  0x15   : > { %s246_s11 = scalar_select %p245_p10, %s12849_s25, 1 }
  0x16   : > { %s11368_s9 = sshll.u32 %s242_s29, 8 }
  0x17   : > { %s12664_s12 = sshll.u32 %s246_s11, 8  ;;  %s18556_s10 = scalar_lea.vmem [#allocation3], %s11368_s9 }
  0x18   : > { %s12884_s15 = scalar_lea.vmem %s18817_s0, %s12664_s12  ;;  %s12665_s11 = sshll.u32 %s12849_s25, 8 }
  0x19   : > { %v365_v1 = vld [vmem:[%s12884_s15 + $0x80] sm:$0xff]  ;;  %v366_v3 = vld [vmem:[%s12884_s15 + $0x88] sm:$0xff]  ;;  %v367_v5 = vld [vmem:[%s12884_s15 + $0x90] sm:$0xff]  ;;  %s11298_s14 = scalar_lea.hbm %s18823_s6, %s12665_s11  ;;  %s11287_s25 = scalar_lea.sflag [#allocation4], %s242_s29 }
  0x1a   : > { %11387 = vmatmul.msk.f32.vlgmr.msra.gmra.mxu2 %vm386_vm0, %v365_v1  ;;  %v349_v2 = vld [vmem:[%s12884_s15] sm:$0xff]  ;;  %v350_v4 = vld [vmem:[%s12884_s15 + $0x8] sm:$0xff]  ;;  %v351_v6 = vld [vmem:[%s12884_s15 + $0x10] sm:$0xff]  ;;  %s11301_s16 = sshll.u32 %s11298_s14, 4  ;;  %s11302_s16 = int_to_ptr.hbm [resolvable:$true] %s11301_s16 }
  0x1b   : > { %11371 = vmatmul.msk.f32.vlgmr.msra.gmra.mxu0 %vm386_vm0, %v349_v2  ;;  %v368_v7 = vld [vmem:[%s12884_s15 + $0x98] sm:$0xff]  ;;  %v369_v9 = vld [vmem:[%s12884_s15 + $0xa0] sm:$0xff]  ;;  %v370_v11 = vld [vmem:[%s12884_s15 + $0xa8] sm:$0xff]  ;;  %s12737_s17 = sshra.s32 %s11302_s16, 4  ;;  %s12738_s17 = int_to_ptr.hbm [resolvable:$true] %s12737_s17 }
  0x1c   : > { %v352_v8 = vld [vmem:[%s12884_s15 + $0x18] sm:$0xff]  ;;  %v353_v10 = vld [vmem:[%s12884_s15 + $0x20] sm:$0xff]  ;;  %v354_v12 = vld [vmem:[%s12884_s15 + $0x28] sm:$0xff]  ;;  %p12744_p0 = scmp.lt.s32.totalorder %s12738_s17, %s18823_s6 }
  0x1d   : > { %v371_v13 = vld [vmem:[%s12884_s15 + $0xb0] sm:$0xff]  ;;  %v372_v15 = vld [vmem:[%s12884_s15 + $0xb8] sm:$0xff]  ;;  %v373_v17 = vld [vmem:[%s12884_s15 + $0xc0] sm:$0xff] }
  0x1e   : > { %v355_v14 = vld [vmem:[%s12884_s15 + $0x30] sm:$0xff]  ;;  %v356_v16 = vld [vmem:[%s12884_s15 + $0x38] sm:$0xff]  ;;  %v357_v18 = vld [vmem:[%s12884_s15 + $0x40] sm:$0xff] }
  0x1f   : > { %v374_v19 = vld [vmem:[%s12884_s15 + $0xc8] sm:$0xff]  ;;  %v375_v21 = vld [vmem:[%s12884_s15 + $0xd0] sm:$0xff]  ;;  %v376_v23 = vld [vmem:[%s12884_s15 + $0xd8] sm:$0xff] }
  0x20   : > { %v358_v20 = vld [vmem:[%s12884_s15 + $0x48] sm:$0xff]  ;;  %v359_v22 = vld [vmem:[%s12884_s15 + $0x50] sm:$0xff]  ;;  %v360_v24 = vld [vmem:[%s12884_s15 + $0x58] sm:$0xff] }
  0x21   : > { %v377_v25 = vld [vmem:[%s12884_s15 + $0xe0] sm:$0xff]  ;;  %v378_v26 = vld [vmem:[%s12884_s15 + $0xe8] sm:$0xff]  ;;  %v379_v28 = vld [vmem:[%s12884_s15 + $0xf0] sm:$0xff] }
  0x22   : > { %11388 = vmatmul.msk.f32.gmra.mxu2 %vm386_vm0, %v366_v3  ;;  %v361_v27 = vld [vmem:[%s12884_s15 + $0x60] sm:$0xff]  ;;  %v362_v29 = vld [vmem:[%s12884_s15 + $0x68] sm:$0xff]  ;;  %v380_v30 = vld [vmem:[%s12884_s15 + $0xf8] sm:$0xff] }
  0x23   : > { %11372 = vmatmul.msk.f32.gmra.mxu0 %vm386_vm0, %v350_v4  ;;  %v363_v31 = vld [vmem:[%s12884_s15 + $0x70] sm:$0xff]  ;;  %v364_v32 = vld [vmem:[%s12884_s15 + $0x78] sm:$0xff]  ;;  %v11436_v1 = vld [vmem:[%s18820_s3 + $0x2] sm:$0x3]  ;;  %s12790_s15 = smov 108  }
  0x24   : > { %11437 = vmatpush.msk.msrb.mxu2 %vm789_vm1, %v11436_v1 }
  0x2a   : > { %11389 = vmatmul.msk.f32.gmra.mxu2 %vm386_vm0, %v367_v5 }
  0x2b   : > { %11373 = vmatmul.msk.f32.gmra.mxu0 %vm386_vm0, %v351_v6 }
  0x32   : > { %11390 = vmatmul.msk.f32.gmra.mxu2 %vm386_vm0, %v368_v7 }
  0x33   : > { %11374 = vmatmul.msk.f32.gmra.mxu0 %vm386_vm0, %v352_v8 }
  0x3a   : > { %11391 = vmatmul.msk.f32.gmra.mxu2 %vm386_vm0, %v369_v9 }
  0x3b   : > { %11375 = vmatmul.msk.f32.gmra.mxu0 %vm386_vm0, %v353_v10 }
  0x42   : > { %11392 = vmatmul.msk.f32.gmra.mxu2 %vm386_vm0, %v370_v11 }
  0x43   : > { %11376 = vmatmul.msk.f32.gmra.mxu0 %vm386_vm0, %v354_v12 }
  0x4a   : > { %11393 = vmatmul.msk.f32.gmra.mxu2 %vm386_vm0, %v371_v13 }
  0x4b   : > { %11377 = vmatmul.msk.f32.gmra.mxu0 %vm386_vm0, %v355_v14 }
  0x52   : > { %11394 = vmatmul.msk.f32.gmra.mxu2 %vm386_vm0, %v372_v15  ;;  %v628_v15 = vld [vmem:[%s18822_s5] sm:$0x3] }
  0x53   : > { %11378 = vmatmul.msk.f32.gmra.mxu0 %vm386_vm0, %v356_v16  ;;  %12667 = vmatpush.msk.msra.mxu3 %vm789_vm1, %v628_v15 }
  0x54   : > { %11403 = vmatpush.msk.msra.mxu1 %vm789_vm1, %v628_v15 }
  0x5a   : > { %11395 = vmatmul.msk.f32.gmra.mxu2 %vm386_vm0, %v373_v17 }
  0x5b   : > { %11379 = vmatmul.msk.f32.gmra.mxu0 %vm386_vm0, %v357_v18 }
  0x62   : > { %11396 = vmatmul.msk.f32.gmra.mxu2 %vm386_vm0, %v374_v19 }
  0x63   : > { %11380 = vmatmul.msk.f32.gmra.mxu0 %vm386_vm0, %v358_v20  ;;  %v1098_v20 = vld [vmem:[%s18820_s3] sm:$0x3] }
  0x64   : > { %11470 = vmatpush.msk.msrb.mxu3 %vm789_vm1, %v1098_v20 }
  0x6a   : > { %11397 = vmatmul.msk.f32.gmra.mxu2 %vm386_vm0, %v375_v21 }
  0x6b   : > { %11381 = vmatmul.msk.f32.gmra.mxu0 %vm386_vm0, %v359_v22 }
  0x72   : > { %11398 = vmatmul.msk.f32.gmra.mxu2 %vm386_vm0, %v376_v23 }
  0x73   : > { %11382 = vmatmul.msk.f32.gmra.mxu0 %vm386_vm0, %v360_v24 }
  0x7a   : > { %11399 = vmatmul.msk.f32.gmra.mxu2 %vm386_vm0, %v377_v25 }
  0x7b   : > { %11383 = vmatmul.msk.f32.gmra.mxu0 %vm386_vm0, %v361_v27 }
  0x82   : > { %11400 = vmatmul.msk.f32.gmra.mxu2 %vm386_vm0, %v378_v26 }
  0x83   : > { %11384 = vmatmul.msk.f32.gmra.mxu0 %vm386_vm0, %v362_v29 }
  0x8a   : > { %11401 = vmatmul.msk.f32.gmra.mxu2 %vm386_vm0, %v379_v28 }
  0x8b   : > { %11385 = vmatmul.msk.f32.gmra.mxu0 %vm386_vm0, %v363_v31 }
  0x92   : > { %11402 = vmatmul.msk.f32.gmra.mxu2 %vm386_vm0, %v380_v30 }
  0x93   : > { %11386 = vmatmul.msk.f32.gmra.mxu0 %vm386_vm0, %v364_v32 }
  0x98   : > { %v500_v34 = vpop.f32.mrf.mxu0 }
  0x99   : > { %v13050_v10 = vadd.f32 %v12953_v33, %v500_v34 }
  0x9b   : > { %18954 = vst [vmem:[#allocation16_spill] sm:$0xff] %v13050_v10  ;;  %v13055_v12 = vmax.f32 %v13050_v10, 0.0 }
  0x9d   : > { %v548_v35 = vpop.f32.mrf.mxu2 }
  0x9e   : > { %v12956_v36 = vadd.f32 %v12953_v33, %v548_v35 }
  0xa0   : > { %18944 = vst [vmem:[#allocation6_spill] sm:$0xff] %v12956_v36  ;;  %v12959_v37 = vmax.f32 %v12956_v36, 0.0  ;;  %v12963_v38 = vpop.f32.mrf.mxu0 }
  0xa1   : > { %v13084_v21 = vadd.f32 %v12953_v33, %v12963_v38 }
  0xa2   : > { %693 = vrot.lane.b32.xlu0 %v12959_v37, %s12787_s18 }
  0xa3   : > { %18957 = vst [vmem:[#allocation19_spill] sm:$0xff] %v13084_v21  ;;  %v13089_v24 = vmax.f32 %v13084_v21, 0.0 }
  0xa5   : > { %v551_v39 = vpop.f32.mrf.mxu2 }
  0xa6   : > { %v12966_v40 = vadd.f32 %v12953_v33, %v551_v39 }
  0xa8   : > { %18945 = vst [vmem:[#allocation7_spill] sm:$0xff] %v12966_v40  ;;  %v12969_v41 = vmax.f32 %v12966_v40, 0.0  ;;  %v12973_v43 = vpop.f32.mrf.mxu0 }
  0xa9   : > { %v13099_v27 = vadd.f32 %v12953_v33, %v12973_v43 }
  0xaa   : > { %695 = vrot.lane.b32.xlu0 %v12969_v41, %s12787_s18 }
  0xab   : > { %18959 = vst [vmem:[#allocation21_spill] sm:$0xff] %v13099_v27  ;;  %v13106_v29 = vmax.f32 %v13099_v27, 0.0 }
  0xad   : > { %v554_v42 = vpop.f32.mrf.mxu2 }
  0xae   : > { %v12976_v44 = vadd.f32 %v12953_v33, %v554_v42 }
  0xb0   : > { %18946 = vst [vmem:[#allocation8_spill] sm:$0xff] %v12976_v44  ;;  %v12979_v45 = vmax.f32 %v12976_v44, 0.0  ;;  %v12986_v48 = vpop.f32.mrf.mxu0 }
  0xb1   : > { %v13116_v34 = vadd.f32 %v12953_v33, %v12986_v48 }
  0xb2   : > { %697 = vrot.lane.b32.xlu1 %v12979_v45, %s12787_s18 }
  0xb3   : > { %18961 = vst [vmem:[#allocation23_spill] sm:$0xff] %v13116_v34  ;;  %v13123_v38 = vmax.f32 %v13116_v34, 0.0 }
  0xb5   : > { %v557_v46 = vpop.f32.mrf.mxu2 }
  0xb6   : > { %v12984_v47 = vadd.f32 %v12953_v33, %v557_v46 }
  0xb8   : > { %18947 = vst [vmem:[#allocation9_spill] sm:$0xff] %v12984_v47  ;;  %v12989_v49 = vmax.f32 %v12984_v47, 0.0  ;;  %v12999_v53 = vpop.f32.mrf.mxu0 }
  0xb9   : > { %v13133_v46 = vadd.f32 %v12953_v33, %v12999_v53 }
  0xba   : > { %699 = vrot.lane.b32.xlu1 %v12989_v49, %s12787_s18 }
  0xbb   : > { %18963 = vst [vmem:[#allocation25_spill] sm:$0xff] %v13133_v46 }
  0xbd   : > { %v560_v50 = vpop.f32.mrf.mxu2 }
  0xbe   : > { %v12994_v51 = vadd.f32 %v12953_v33, %v560_v50 }
  0xc0   : > { %18948 = vst [vmem:[#allocation10_spill] sm:$0xff] %v12994_v51  ;;  %v12997_v52 = vmax.f32 %v12994_v51, 0.0  ;;  %v13011_v57 = vpop.f32.mrf.mxu0 }
  0xc1   : > { %v13141_v48 = vadd.f32 %v12953_v33, %v13011_v57 }
  0xc2   : > { %701 = vrot.lane.b32.xlu2 %v12997_v52, %s12787_s18 }
  0xc3   : > { %18964 = vst [vmem:[#allocation26_spill] sm:$0xff] %v13141_v48 }
  0xc5   : > { %v563_v54 = vpop.f32.mrf.mxu2 }
  0xc6   : > { %v13004_v55 = vadd.f32 %v12953_v33, %v563_v54 }
  0xc8   : > { %18949 = vst [vmem:[#allocation11_spill] sm:$0xff] %v13004_v55  ;;  %v13007_v56 = vmax.f32 %v13004_v55, 0.0  ;;  %v13021_v62 = vpop.f32.mrf.mxu0 }
  0xc9   : > { %v13158_v57 = vadd.f32 %v12953_v33, %v13021_v62 }
  0xca   : > { %703 = vrot.lane.b32.xlu2 %v13007_v56, %s12787_s18 }
  0xcb   : > { %18966 = vst [vmem:[#allocation28_spill] sm:$0xff] %v13158_v57  ;;  %v13174_v62 = vmax.f32 %v13158_v57, 0.0 }
  0xcd   : > { %v566_v58 = vpop.f32.mrf.mxu2 }
  0xce   : > { %v13014_v59 = vadd.f32 %v12953_v33, %v566_v58  ;;  %v13145_v58 = vmax.f32 %v13133_v46, 0.0 }
  0xd0   : > { %18950 = vst [vmem:[#allocation12_spill] sm:$0xff] %v13014_v59  ;;  %v13017_v60 = vmax.f32 %v13014_v59, 0.0  ;;  %v521_v4 = vpop.f32.mrf.mxu0 }
  0xd2   : > { %705 = vrot.lane.b32.xlu0 %v13017_v60, %s12787_s18 }
  0xd5   : > { %v569_v61 = vpop.f32.mrf.mxu2 }
  0xd6   : > { %v13024_v63 = vadd.f32 %v12953_v33, %v569_v61  ;;  %v13151_v61 = vmax.f32 %v13141_v48, 0.0 }
  0xd8   : > { %18951 = vst [vmem:[#allocation13_spill] sm:$0xff] %v13024_v63  ;;  %v13027_v0 = vmax.f32 %v13024_v63, 0.0  ;;  %v524_v9 = vpop.f32.mrf.mxu0 }
  0xda   : > { %707 = vrot.lane.b32.xlu1 %v13027_v0, %s12787_s18 }
  0xdd   : > { %v572_v2 = vpop.f32.mrf.mxu2 }
  0xde   : > { %v13036_v3 = vadd.f32 %v12953_v33, %v572_v2  ;;  %v13161_v2 = vadd.f32 %v12953_v33, %v521_v4 }
  0xe0   : > { %18952 = vst [vmem:[#allocation14_spill] sm:$0xff] %v13036_v3  ;;  %v13039_v5 = vmax.f32 %v13036_v3, 0.0  ;;  %v527_v16 = vpop.f32.mrf.mxu0  ;;  %v13177_v4 = vmax.f32 %v13161_v2, 0.0 }
  0xe1   : > { %18967 = vst [vmem:[#allocation29_spill] sm:$0xff] %v13161_v2  ;;  %v13183_v20 = vadd.f32 %v12953_v33, %v527_v16 }
  0xe2   : > { %709 = vrot.lane.b32.xlu2 %v13039_v5, %s12787_s18 }
  0xe3   : > { %18969 = vst [vmem:[#allocation31_spill] sm:$0xff] %v13183_v20 }
  0xe5   : > { %v575_v6 = vpop.f32.mrf.mxu2 }
  0xe6   : > { %v13044_v7 = vadd.f32 %v12953_v33, %v575_v6  ;;  %v13168_v6 = vadd.f32 %v12953_v33, %v524_v9 }
  0xe8   : > { %18953 = vst [vmem:[#allocation15_spill] sm:$0xff] %v13044_v7  ;;  %v13047_v8 = vmax.f32 %v13044_v7, 0.0  ;;  %v530_v23 = vpop.f32.mrf.mxu0 }
  0xe9   : > { %18968 = vst [vmem:[#allocation30_spill] sm:$0xff] %v13168_v6  ;;  %v13186_v9 = vadd.f32 %v12953_v33, %v530_v23 }
  0xea   : > { %711 = vrot.lane.b32.xlu0 %v13047_v8, %s12787_s18 }
  0xeb   : > { %18970 = vst [vmem:[#allocation32_spill] sm:$0xff] %v13186_v9  ;;  %v13202_v23 = vmax.f32 %v13186_v9, 0.0 }
  0xed   : > { %v578_v11 = vpop.f32.mrf.mxu2 }
  0xee   : > { %v13058_v13 = vadd.f32 %v12953_v33, %v578_v11 }
  0xf0   : > { %18955 = vst [vmem:[#allocation17_spill] sm:$0xff] %v13058_v13  ;;  %v13061_v14 = vmax.f32 %v13058_v13, 0.0  ;;  %v533_v31 = vpop.f32.mrf.mxu0 }
  0xf2   : > { %713 = vrot.lane.b32.xlu1 %v13061_v14, %s12787_s18  ;;  %938 = vrot.lane.b32.xlu0 %v13055_v12, %s12788_s26 }
  0xf5   : > { %v581_v17 = vpop.f32.mrf.mxu2 }
  0xf6   : > { %v13073_v18 = vadd.f32 %v12953_v33, %v581_v17  ;;  %v13180_v17 = vmax.f32 %v13168_v6, 0.0 }
  0xf8   : > { %18956 = vst [vmem:[#allocation18_spill] sm:$0xff] %v13073_v18  ;;  %v13076_v19 = vmax.f32 %v13073_v18, 0.0  ;;  %v536_v43 = vpop.f32.mrf.mxu0 }
  0xfa   : > { %715 = vrot.lane.b32.xlu2 %v13076_v19, %s12787_s18 }
  0xfd   : > { %v584_v22 = vpop.f32.mrf.mxu2 }
  0xfe   : > { %v13092_v25 = vadd.f32 %v12953_v33, %v584_v22  ;;  %v13193_v22 = vadd.f32 %v12953_v33, %v533_v31 }
 0x100   : > { %18958 = vst [vmem:[#allocation20_spill] sm:$0xff] %v13092_v25  ;;  %v13095_v26 = vmax.f32 %v13092_v25, 0.0  ;;  %v539_v11 = vpop.f32.mrf.mxu0 }
 0x101   : > { %18971 = vst [vmem:[#allocation33_spill] sm:$0xff] %v13193_v22  ;;  %v13211_v31 = vadd.f32 %v12953_v33, %v539_v11 }
 0x102   : > { %717 = vrot.lane.b32.xlu1 %v13095_v26, %s12787_s18  ;;  %940 = vrot.lane.b32.xlu2 %v13089_v24, %s12788_s26 }
 0x103   : > { %18973 = vst [vmem:[#allocation35_spill] sm:$0xff] %v13211_v31  ;;  %v13227_v11 = vmax.f32 %v13211_v31, 0.0 }
 0x105   : > { %v587_v28 = vpop.f32.mrf.mxu2 }
 0x106   : > { %v13109_v30 = vadd.f32 %v12953_v33, %v587_v28 }
 0x108   : > { %18960 = vst [vmem:[#allocation22_spill] sm:$0xff] %v13109_v30  ;;  %v13112_v32 = vmax.f32 %v13109_v30, 0.0  ;;  %v542_v16 = vpop.f32.mrf.mxu0 }
 0x10a   : > { %942 = vrot.lane.b32.xlu1 %v13106_v29, %s12788_s26  ;;  %719 = vrot.lane.b32.xlu0 %v13112_v32, %s12787_s18 }
 0x10d   : > { %v590_v35 = vpop.f32.mrf.mxu2 }
 0x10e   : > { %v13126_v39 = vadd.f32 %v12953_v33, %v590_v35  ;;  %v13199_v35 = vmax.f32 %v13183_v20, 0.0 }
 0x110   : > { %18962 = vst [vmem:[#allocation24_spill] sm:$0xff] %v13126_v39  ;;  %v13129_v42 = vmax.f32 %v13126_v39, 0.0  ;;  %v545_v39 = vpop.f32.mrf.mxu0 }
 0x112   : > { %721 = vrot.lane.b32.xlu2 %v13129_v42, %s12787_s18  ;;  %944 = vrot.lane.b32.xlu0 %v13123_v38, %s12788_s26 }
 0x114   : > { %v694_v50 = vpop.permute.xlu0 %693 }
 0x115   : > { %v593_v54 = vpop.f32.mrf.mxu2  ;;  %11420 = vmatmul.msk.f32.vlgmr.msra.gmra.mxu3 %vm250_vm2, %v694_v50  ;;  %v13205_v50 = vmax.f32 %v13193_v22, 0.0 }
 0x116   : > { %v13148_v53 = vadd.f32 %v12953_v33, %v593_v54  ;;  %v13208_v54 = vadd.f32 %v12953_v33, %v536_v43 }
 0x118   : > { %18965 = vst [vmem:[#allocation27_spill] sm:$0xff] %v13148_v53  ;;  %v13154_v1 = vmax.f32 %v13148_v53, 0.0  ;;  %v13224_v43 = vmax.f32 %v13208_v54, 0.0 }
 0x119   : > { %18972 = vst [vmem:[#allocation34_spill] sm:$0xff] %v13208_v54 }
 0x11a   : > { %723 = vrot.lane.b32.xlu1 %v13154_v1, %s12787_s18  ;;  %946 = vrot.lane.b32.xlu2 %v13145_v58, %s12788_s26 }
 0x11b   : > { %948 = vrot.lane.b32.xlu0 %v13151_v61, %s12788_s26 }
 0x11c   : > { %v696_v15 = vpop.permute.xlu0 %695  ;;  %v702_v30 = vpop.permute.xlu2 %701 }
 0x11d   : > { %11421 = vmatmul.msk.f32.gmra.mxu3 %vm250_vm2, %v696_v15  ;;  %v13220_v15 = vadd.f32 %v12953_v33, %v542_v16  ;;  %v13237_v16 = vadd.f32 %v12953_v33, %v545_v39  ;;  %v18830_v33 = vmov 0.0  }
 0x11e   : > { %333 = vst.msk [vmem:[#allocation2 + $0x118] sm:$0xff] %vm250_vm2, %v18830_v33 }
 0x11f   : > { %18974 = vst [vmem:[#allocation36_spill] sm:$0xff] %v13220_v15  ;;  %v13230_v53 = vmax.f32 %v13220_v15, 0.0 }
 0x120   : > { %18975 = vst [vmem:[#allocation37_spill] sm:$0xff] %v13237_v16 }
 0x121   : > { %263 = vst.msk [vmem:[#allocation2 + $0x60] sm:$0xff] %vm250_vm2, %v18830_v33 }
 0x122   : > { %950 = vrot.lane.b32.xlu1 %v13174_v62, %s12788_s26  ;;  %952 = vrot.lane.b32.xlu2 %v13177_v4, %s12788_s26  ;;  %264 = vst.msk [vmem:[#allocation2 + $0x68] sm:$0xff] %vm250_vm2, %v18830_v33 }
 0x123   : > { %954 = vrot.lane.b32.xlu0 %v13180_v17, %s12788_s26  ;;  %265 = vst.msk [vmem:[#allocation2 + $0x70] sm:$0xff] %vm250_vm2, %v18830_v33 }
 0x124   : > { %v698_v28 = vpop.permute.xlu1 %697  ;;  %v704_v25 = vpop.permute.xlu2 %703  ;;  %266 = vst.msk [vmem:[#allocation2 + $0x78] sm:$0xff] %vm250_vm2, %v18830_v33 }
 0x125   : > { %11422 = vmatmul.msk.f32.gmra.mxu3 %vm250_vm2, %v698_v28  ;;  %267 = vst.msk [vmem:[#allocation2 + $0x80] sm:$0xff] %vm250_vm2, %v18830_v33 }
 0x126   : > { %268 = vst.msk [vmem:[#allocation2 + $0x88] sm:$0xff] %vm250_vm2, %v18830_v33 }
 0x127   : > { %269 = vst.msk [vmem:[#allocation2 + $0x90] sm:$0xff] %vm250_vm2, %v18830_v33 }
 0x128   : > { %270 = vst.msk [vmem:[#allocation2 + $0x98] sm:$0xff] %vm250_vm2, %v18830_v33 }
 0x129   : > { %271 = vst.msk [vmem:[#allocation2 + $0xa0] sm:$0xff] %vm250_vm2, %v18830_v33 }
 0x12a   : > { %956 = vrot.lane.b32.xlu1 %v13199_v35, %s12788_s26  ;;  %958 = vrot.lane.b32.xlu2 %v13202_v23, %s12788_s26  ;;  %272 = vst.msk [vmem:[#allocation2 + $0xa8] sm:$0xff] %vm250_vm2, %v18830_v33 }
 0x12b   : > { %960 = vrot.lane.b32.xlu0 %v13205_v50, %s12788_s26  ;;  %273 = vst.msk [vmem:[#allocation2 + $0xb0] sm:$0xff] %vm250_vm2, %v18830_v33 }
 0x12c   : > { %v700_v28 = vpop.permute.xlu1 %699  ;;  %274 = vst.msk [vmem:[#allocation2 + $0xb8] sm:$0xff] %vm250_vm2, %v18830_v33 }
 0x12d   : > { %11423 = vmatmul.msk.f32.gmra.mxu3 %vm250_vm2, %v700_v28  ;;  %v13243_v28 = vmax.f32 %v13237_v16, 0.0  ;;  %275 = vst.msk [vmem:[#allocation2 + $0xc0] sm:$0xff] %vm250_vm2, %v18830_v33 }
 0x12e   : > { %276 = vst.msk [vmem:[#allocation2 + $0xc8] sm:$0xff] %vm250_vm2, %v18830_v33 }
 0x12f   : > { %277 = vst.msk [vmem:[#allocation2 + $0xd0] sm:$0xff] %vm250_vm2, %v18830_v33 }
 0x130   : > { %278 = vst.msk [vmem:[#allocation2 + $0xd8] sm:$0xff] %vm250_vm2, %v18830_v33 }
 0x131   : > { %279 = vst.msk [vmem:[#allocation2 + $0xe0] sm:$0xff] %vm250_vm2, %v18830_v33 }
 0x132   : > { %962 = vrot.lane.b32.xlu1 %v13224_v43, %s12788_s26  ;;  %964 = vrot.lane.b32.xlu2 %v13227_v11, %s12788_s26  ;;  %280 = vst.msk [vmem:[#allocation2 + $0xe8] sm:$0xff] %vm250_vm2, %v18830_v33 }
 0x133   : > { %966 = vrot.lane.b32.xlu0 %v13230_v53, %s12788_s26  ;;  %281 = vst.msk [vmem:[#allocation2 + $0xf0] sm:$0xff] %vm250_vm2, %v18830_v33 }
 0x134   : > { %282 = vst.msk [vmem:[#allocation2 + $0xf8] sm:$0xff] %vm250_vm2, %v18830_v33 }
 0x135   : > { %11424 = vmatmul.msk.f32.gmra.mxu3 %vm250_vm2, %v702_v30  ;;  %284 = vst.msk [vmem:[#allocation2 + $0x300] sm:$0xff] %vm250_vm2, %v18830_v33 }
 0x136   : > { %285 = vst.msk [vmem:[#allocation2 + $0x308] sm:$0xff] %vm250_vm2, %v18830_v33 }
 0x137   : > { %286 = vst.msk [vmem:[#allocation2 + $0x310] sm:$0xff] %vm250_vm2, %v18830_v33 }
 0x138   : > { %287 = vst.msk [vmem:[#allocation2 + $0x318] sm:$0xff] %vm250_vm2, %v18830_v33 }
 0x139   : > { %288 = vst.msk [vmem:[#allocation2 + $0x320] sm:$0xff] %vm250_vm2, %v18830_v33 }
 0x13a   : > { %968 = vrot.lane.b32.xlu1 %v13243_v28, %s12788_s26  ;;  %970 = vrot.lane.b32.xlu2 %v12959_v37, %s12788_s26  ;;  %289 = vst.msk [vmem:[#allocation2 + $0x328] sm:$0xff] %vm250_vm2, %v18830_v33 }
 0x13b   : > { %972 = vrot.lane.b32.xlu0 %v12969_v41, %s12788_s26  ;;  %290 = vst.msk [vmem:[#allocation2 + $0x330] sm:$0xff] %vm250_vm2, %v18830_v33 }
 0x13c   : > { %v710_v39 = vpop.permute.xlu2 %709  ;;  %291 = vst.msk [vmem:[#allocation2 + $0x338] sm:$0xff] %vm250_vm2, %v18830_v33 }
 0x13d   : > { %11425 = vmatmul.msk.f32.gmra.mxu3 %vm250_vm2, %v704_v25  ;;  %v11503_v25 = vld [vmem:[%s18820_s3 + $0x4] sm:$0x3]  ;;  %292 = vst.msk [vmem:[#allocation2 + $0x340] sm:$0xff] %vm250_vm2, %v18830_v33 }
 0x13e   : > { %11504 = vmatpush.msk.msrb.mxu0 %vm789_vm1, %v11503_v25  ;;  %293 = vst.msk [vmem:[#allocation2 + $0x348] sm:$0xff] %vm250_vm2, %v18830_v33 }
 0x13f   : > { %294 = vst.msk [vmem:[#allocation2 + $0x350] sm:$0xff] %vm250_vm2, %v18830_v33 }
 0x140   : > { %295 = vst.msk [vmem:[#allocation2 + $0x358] sm:$0xff] %vm250_vm2, %v18830_v33 }
 0x141   : > { %296 = vst.msk [vmem:[#allocation2 + $0x360] sm:$0xff] %vm250_vm2, %v18830_v33 }
 0x142   : > { %974 = vrot.lane.b32.xlu2 %v12979_v45, %s12788_s26  ;;  %661 = vrot.lane.b32.xlu1 %v13055_v12, %s12787_s18  ;;  %297 = vst.msk [vmem:[#allocation2 + $0x368] sm:$0xff] %vm250_vm2, %v18830_v33 }
 0x143   : > { %663 = vrot.lane.b32.xlu0 %v13089_v24, %s12787_s18  ;;  %298 = vst.msk [vmem:[#allocation2 + $0x370] sm:$0xff] %vm250_vm2, %v18830_v33 }
 0x144   : > { %v706_v30 = vpop.permute.xlu0 %705  ;;  %299 = vst.msk [vmem:[#allocation2 + $0x378] sm:$0xff] %vm250_vm2, %v18830_v33 }
 0x145   : > { %11426 = vmatmul.msk.f32.gmra.mxu3 %vm250_vm2, %v706_v30  ;;  %300 = vst.msk [vmem:[#allocation2 + $0x380] sm:$0xff] %vm250_vm2, %v18830_v33 }
 0x146   : > { %301 = vst.msk [vmem:[#allocation2 + $0x388] sm:$0xff] %vm250_vm2, %v18830_v33 }
 0x147   : > { %302 = vst.msk [vmem:[#allocation2 + $0x390] sm:$0xff] %vm250_vm2, %v18830_v33 }
 0x148   : > { %303 = vst.msk [vmem:[#allocation2 + $0x398] sm:$0xff] %vm250_vm2, %v18830_v33 }
 0x14a   : > { %665 = vrot.lane.b32.xlu2 %v13106_v29, %s12787_s18  ;;  %976 = vrot.lane.b32.xlu1 %v12989_v49, %s12788_s26 }
 0x14b   : > { %978 = vrot.lane.b32.xlu0 %v12997_v52, %s12788_s26 }
 0x14c   : > { %v708_v18 = vpop.permute.xlu1 %707 }
 0x14d   : > { %11427 = vmatmul.msk.f32.gmra.mxu3 %vm250_vm2, %v708_v18 }
 0x152   : > { %980 = vrot.lane.b32.xlu2 %v13007_v56, %s12788_s26  ;;  %667 = vrot.lane.b32.xlu1 %v13123_v38, %s12787_s18 }
 0x153   : > { %669 = vrot.lane.b32.xlu0 %v13145_v58, %s12787_s18 }
 0x154   : > { %v716_v18 = vpop.permute.xlu2 %715 }
 0x155   : > { %11428 = vmatmul.msk.f32.gmra.mxu3 %vm250_vm2, %v710_v39 }
 0x15a   : > { %671 = vrot.lane.b32.xlu2 %v13151_v61, %s12787_s18  ;;  %982 = vrot.lane.b32.xlu1 %v13017_v60, %s12788_s26 }
 0x15b   : > { %984 = vrot.lane.b32.xlu0 %v13027_v0, %s12788_s26 }
 0x15c   : > { %v712_v30 = vpop.permute.xlu0 %711  ;;  %v941_v25 = vpop.permute.xlu2 %940 }
 0x15d   : > { %1035 = vst.msk [vmem:[#allocation2 + $0x110] sm:$0xff] %vm250_vm2, %v941_v25  ;;  %11429 = vmatmul.msk.f32.gmra.mxu3 %vm250_vm2, %v712_v30 }
 0x162   : > { %986 = vrot.lane.b32.xlu2 %v13039_v5, %s12788_s26  ;;  %673 = vrot.lane.b32.xlu1 %v13174_v62, %s12787_s18 }
 0x163   : > { %675 = vrot.lane.b32.xlu0 %v13177_v4, %s12787_s18 }
 0x164   : > { %v714_v39 = vpop.permute.xlu1 %713  ;;  %v939_v30 = vpop.permute.xlu0 %938  ;;  %v1558_v13 = vld [vmem:[#allocation2 + $0x111] sm:$0xff] }
 0x165   : > { %1034 = vst.msk [vmem:[#allocation2 + $0x108] sm:$0xff] %vm250_vm2, %v939_v30  ;;  %11430 = vmatmul.msk.f32.gmra.mxu3 %vm250_vm2, %v714_v39 }
 0x16a   : > { %677 = vrot.lane.b32.xlu2 %v13180_v17, %s12787_s18  ;;  %988 = vrot.lane.b32.xlu1 %v13047_v8, %s12788_s26 }
 0x16b   : > { %990 = vrot.lane.b32.xlu0 %v13061_v14, %s12788_s26 }
 0x16c   : > { %v722_v25 = vpop.permute.xlu2 %721  ;;  %v1099_v39 = vld [vmem:[#allocation2 + $0x108] sm:$0xff] }
 0x16d   : > { %v1557_v30 = vld [vmem:[#allocation2 + $0x109] sm:$0xff]  ;;  %11431 = vmatmul.msk.f32.gmra.mxu3 %vm250_vm2, %v716_v18  ;;  %11438 = vmatmul.msk.f32.vlgmr.msrb.gmra.mxu2 %vm250_vm2, %v1099_v39 }
 0x16e   : > { %11505 = vmatmul.msk.f32.vlgmr.msrb.gmra.mxu0 %vm250_vm2, %v1557_v30  ;;  %v1100_v30 = vld [vmem:[#allocation2 + $0x110] sm:$0xff] }
 0x172   : > { %992 = vrot.lane.b32.xlu2 %v13076_v19, %s12788_s26  ;;  %679 = vrot.lane.b32.xlu1 %v13199_v35, %s12787_s18 }
 0x173   : > { %681 = vrot.lane.b32.xlu0 %v13202_v23, %s12787_s18 }
 0x174   : > { %v718_v18 = vpop.permute.xlu1 %717  ;;  %v947_v39 = vpop.permute.xlu2 %946 }
 0x175   : > { %1038 = vst.msk [vmem:[#allocation2 + $0x148] sm:$0xff] %vm250_vm2, %v947_v39  ;;  %11432 = vmatmul.msk.f32.gmra.mxu3 %vm250_vm2, %v718_v18  ;;  %11439 = vmatmul.msk.f32.gmra.mxu2 %vm250_vm2, %v1100_v30  ;;  %v11537_v39 = vld [vmem:[%s18820_s3 + $0x6] sm:$0x3] }
 0x176   : > { %11506 = vmatmul.msk.f32.gmra.mxu0 %vm250_vm2, %v1558_v13  ;;  %11572 = vmatpush.msk.msra.mxu2 %vm789_vm1, %v11537_v39  ;;  %v18976_v13 = vmov 0.0  }
 0x177   : > { %317 = vst.msk [vmem:[#allocation2 + $0x100] sm:$0xff] %vm250_vm2, %v18976_v13 }
 0x178   : > { %318 = vst.msk [vmem:[#allocation2 + $0x120] sm:$0xff] %vm250_vm2, %v18976_v13 }
 0x179   : > { %319 = vst.msk [vmem:[#allocation2 + $0x140] sm:$0xff] %vm250_vm2, %v18976_v13 }
 0x17a   : > { %683 = vrot.lane.b32.xlu2 %v13205_v50, %s12787_s18  ;;  %994 = vrot.lane.b32.xlu1 %v13095_v26, %s12788_s26  ;;  %320 = vst.msk [vmem:[#allocation2 + $0x160] sm:$0xff] %vm250_vm2, %v18976_v13 }
 0x17b   : > { %996 = vrot.lane.b32.xlu0 %v13112_v32, %s12788_s26  ;;  %321 = vst.msk [vmem:[#allocation2 + $0x180] sm:$0xff] %vm250_vm2, %v18976_v13 }
 0x17c   : > { %v13403_v33 = vpop.permute.xlu2 %952  ;;  %v720_v18 = vpop.permute.xlu0 %719  ;;  %322 = vst.msk [vmem:[#allocation2 + $0x1a0] sm:$0xff] %vm250_vm2, %v18976_v13 }
 0x17d   : > { %11433 = vmatmul.msk.f32.gmra.mxu3 %vm250_vm2, %v720_v18  ;;  %v943_v30 = vpop.permute.xlu1 %942  ;;  %323 = vst.msk [vmem:[#allocation2 + $0x1c0] sm:$0xff] %vm250_vm2, %v18976_v13 }
 0x17e   : > { %324 = vst.msk [vmem:[#allocation2 + $0x1e0] sm:$0xff] %vm250_vm2, %v18976_v13  ;;  %v1066_v63 = vld [vmem:[#allocation2 + $0x107] sm:$0xff] }
 0x17f   : > { %325 = vst.msk [vmem:[#allocation2 + $0x200] sm:$0xff] %vm250_vm2, %v18976_v13 }
 0x180   : > { %326 = vst.msk [vmem:[#allocation2 + $0x220] sm:$0xff] %vm250_vm2, %v18976_v13 }
 0x181   : > { %327 = vst.msk [vmem:[#allocation2 + $0x240] sm:$0xff] %vm250_vm2, %v18976_v13 }
 0x182   : > { %998 = vrot.lane.b32.xlu2 %v13129_v42, %s12788_s26  ;;  %685 = vrot.lane.b32.xlu1 %v13224_v43, %s12787_s18  ;;  %328 = vst.msk [vmem:[#allocation2 + $0x260] sm:$0xff] %vm250_vm2, %v18976_v13 }
 0x183   : > { %687 = vrot.lane.b32.xlu0 %v13227_v11, %s12787_s18  ;;  %329 = vst.msk [vmem:[#allocation2 + $0x280] sm:$0xff] %vm250_vm2, %v18976_v13 }
 0x184   : > { %v959_v39 = vpop.permute.xlu2 %958  ;;  %v945_v18 = vpop.permute.xlu0 %944  ;;  %330 = vst.msk [vmem:[#allocation2 + $0x2a0] sm:$0xff] %vm250_vm2, %v18976_v13 }
 0x185   : > { %11434 = vmatmul.msk.f32.gmra.mxu3 %vm250_vm2, %v722_v25  ;;  %331 = vst.msk [vmem:[#allocation2 + $0x2c0] sm:$0xff] %vm250_vm2, %v18976_v13 }
 0x186   : > { %332 = vst.msk [vmem:[#allocation2 + $0x2e0] sm:$0xff] %vm250_vm2, %v18976_v13 }
 0x187   : > { %334 = vst.msk [vmem:[#allocation2 + $0x138] sm:$0xff] %vm250_vm2, %v18976_v13 }
 0x188   : > { %335 = vst.msk [vmem:[#allocation2 + $0x158] sm:$0xff] %vm250_vm2, %v18976_v13 }
 0x189   : > { %336 = vst.msk [vmem:[#allocation2 + $0x178] sm:$0xff] %vm250_vm2, %v18976_v13 }
 0x18a   : > { %689 = vrot.lane.b32.xlu2 %v13230_v53, %s12787_s18  ;;  %1000 = vrot.lane.b32.xlu1 %v13154_v1, %s12788_s26  ;;  %337 = vst.msk [vmem:[#allocation2 + $0x198] sm:$0xff] %vm250_vm2, %v18976_v13  ;;  %s12743_s26 = scalar_lea.hbm %s18823_s6, 512 }
 0x18b   : > { %691 = vrot.lane.b32.xlu0 %v13243_v28, %s12787_s18  ;;  %338 = vst.msk [vmem:[#allocation2 + $0x1b8] sm:$0xff] %vm250_vm2, %v18976_v13  ;;  %s12739_s18 = scalar_lea.hbm %s12738_s17, 256 }
 0x18c   : > { %v724_v7 = vpop.permute.xlu1 %723  ;;  %v965_v25 = vpop.permute.xlu2 %964  ;;  %339 = vst.msk [vmem:[#allocation2 + $0x1d8] sm:$0xff] %vm250_vm2, %v18976_v13  ;;  %p12740_p11 = scmp.ne.s32.totalorder %s12738_s17, %s12739_s18  ;;  %p12745_p1 = scmp.lt.s32.totalorder %s12743_s26, %s12739_s18 }
 0x18d   : > { %v949_v3 = vpop.permute.xlu0 %948  ;;  %11435 = vmatmul.msk.f32.gmra.mxu3 %vm250_vm2, %v724_v7  ;;  %340 = vst.msk [vmem:[#allocation2 + $0x1f8] sm:$0xff] %vm250_vm2, %v18976_v13 }
 0x18e   : > { %341 = vst.msk [vmem:[#allocation2 + $0x218] sm:$0xff] %vm250_vm2, %v18976_v13  ;;  %p12741_p12 = pnand %p12740_p11, %p12866_p5  ;;  %p12746_p2 = por %p12745_p1, %p12744_p0 }
 0x18f   : > { %342 = vst.msk [vmem:[#allocation2 + $0x238] sm:$0xff] %vm250_vm2, %v18976_v13 }
 0x190   : > { %343 = vst.msk [vmem:[#allocation2 + $0x258] sm:$0xff] %vm250_vm2, %v18976_v13  ;;  %p12742_p13 = pneg %p12741_p12 }
 0x191   : > { %344 = vst.msk [vmem:[#allocation2 + $0x278] sm:$0xff] %vm250_vm2, %v18976_v13 }
 0x192   : > { %5525 = vrot.lane.b32.xlu2 %v13089_v24, %s12790_s15  ;;  %5523 = vrot.lane.b32.xlu1 %v13055_v12, %s12790_s15  ;;  %345 = vst.msk [vmem:[#allocation2 + $0x298] sm:$0xff] %vm250_vm2, %v18976_v13  ;;  %p12747_p3 = pnand %p12746_p2, %p12742_p13 }
 0x193   : > { %5527 = vrot.lane.b32.xlu0 %v13106_v29, %s12790_s15  ;;  %v11605_v29 = vld [vmem:[%s18820_s3 + $0xa] sm:$0x3]  ;;  %346 = vst.msk [vmem:[#allocation2 + $0x2b8] sm:$0xff] %vm250_vm2, %v18976_v13 }
 0x194   : > { %v951_v7 = vpop.permute.xlu1 %950  ;;  %v971_v12 = vpop.permute.xlu2 %970  ;;  %11606 = vmatpush.msk.msra.mxu3 %vm789_vm1, %v11605_v29  ;;  %347 = vst.msk [vmem:[#allocation2 + $0x2d8] sm:$0xff] %vm250_vm2, %v18976_v13  ;;  %v1067_v29 = vld [vmem:[#allocation2 + $0x10f] sm:$0xff] }
 0x195   : > { %v955_v24 = vpop.permute.xlu0 %954  ;;  %11471 = vmatmul.msk.f32.vlgmr.msrb.gmra.mxu3 %vm250_vm2, %v1066_v63  ;;  %348 = vst.msk [vmem:[#allocation2 + $0x2f8] sm:$0xff] %vm250_vm2, %v18976_v13 }
 0x196   : > { %1036 = vst.msk [vmem:[#allocation2 + $0x128] sm:$0xff] %vm250_vm2, %v943_v30 }
 0x197   : > { %1041 = vst.msk [vmem:[#allocation2 + $0x170] sm:$0xff] %vm250_vm2, %v13403_v33 }
 0x198   : > { %v13479_v59 = vpop.f32.mrf.mxu3  ;;  %1044 = vst.msk [vmem:[#allocation2 + $0x1a8] sm:$0xff] %vm250_vm2, %v959_v39 }
 0x199   : > { %18977 = vst [vmem:[#allocation38_spill] sm:$0xff] %v13479_v59 }
 0x19a   : > { %5531 = vrot.lane.b32.xlu2 %v13145_v58, %s12790_s15  ;;  %5529 = vrot.lane.b32.xlu1 %v13123_v38, %s12790_s15  ;;  %1037 = vst.msk [vmem:[#allocation2 + $0x130] sm:$0xff] %vm250_vm2, %v945_v18 }
 0x19b   : > { %5533 = vrot.lane.b32.xlu0 %v13151_v61, %s12790_s15  ;;  %1047 = vst.msk [vmem:[#allocation2 + $0x1d0] sm:$0xff] %vm250_vm2, %v965_v25 }
 0x19c   : > { %v957_v63 = vpop.permute.xlu1 %956  ;;  %v975_v38 = vpop.permute.xlu2 %974  ;;  %1039 = vst.msk [vmem:[#allocation2 + $0x150] sm:$0xff] %vm250_vm2, %v949_v3 }
 0x19d   : > { %v961_v58 = vpop.permute.xlu0 %960  ;;  %11472 = vmatmul.msk.f32.gmra.mxu3 %vm250_vm2, %v1067_v29  ;;  %1040 = vst.msk [vmem:[#allocation2 + $0x168] sm:$0xff] %vm250_vm2, %v951_v7  ;;  %v1101_v33 = vld [vmem:[#allocation2 + $0x128] sm:$0xff] }
 0x19e   : > { %1050 = vst.msk [vmem:[#allocation2 + $0x208] sm:$0xff] %vm250_vm2, %v971_v12  ;;  %v1068_v39 = vld [vmem:[#allocation2 + $0x127] sm:$0xff]  ;;  %11440 = vmatmul.msk.f32.gmra.mxu2 %vm250_vm2, %v1101_v33 }
 0x19f   : > { %1042 = vst.msk [vmem:[#allocation2 + $0x188] sm:$0xff] %vm250_vm2, %v955_v24  ;;  %v1103_v24 = vld [vmem:[#allocation2 + $0x148] sm:$0xff] }
 0x1a0   : > { %v13504_v61 = vpop.f32.mrf.mxu3  ;;  %1043 = vst.msk [vmem:[#allocation2 + $0x190] sm:$0xff] %vm250_vm2, %v957_v63 }
 0x1a1   : > { %18978 = vst [vmem:[#allocation39_spill] sm:$0xff] %v13504_v61  ;;  %v1559_v3 = vld [vmem:[#allocation2 + $0x129] sm:$0xff] }
 0x1a2   : > { %5537 = vrot.lane.b32.xlu2 %v13177_v4, %s12790_s15  ;;  %5535 = vrot.lane.b32.xlu1 %v13174_v62, %s12790_s15  ;;  %1052 = vst.msk [vmem:[#allocation2 + $0x228] sm:$0xff] %vm250_vm2, %v975_v38  ;;  %v1102_v18 = vld [vmem:[#allocation2 + $0x130] sm:$0xff] }
 0x1a3   : > { %5539 = vrot.lane.b32.xlu0 %v13180_v17, %s12790_s15  ;;  %11507 = vmatmul.msk.f32.gmra.mxu0 %vm250_vm2, %v1559_v3  ;;  %1045 = vst.msk [vmem:[#allocation2 + $0x1b0] sm:$0xff] %vm250_vm2, %v961_v58  ;;  %v1069_v7 = vld [vmem:[#allocation2 + $0x12f] sm:$0xff]  ;;  %v1070_v58 = vld [vmem:[#allocation2 + $0x147] sm:$0xff] }
 0x1a4   : > { %v963_v13 = vpop.permute.xlu1 %962  ;;  %v13520_v4 = vpop.permute.xlu2 %665  ;;  %v1104_v29 = vld [vmem:[#allocation2 + $0x150] sm:$0xff] }
 0x1a5   : > { %v967_v30 = vpop.permute.xlu0 %966  ;;  %11473 = vmatmul.msk.f32.gmra.mxu3 %vm250_vm2, %v1068_v39  ;;  %1046 = vst.msk [vmem:[#allocation2 + $0x1c8] sm:$0xff] %vm250_vm2, %v963_v13  ;;  %v1105_v39 = vld [vmem:[#allocation2 + $0x168] sm:$0xff] }
 0x1a6   : > { %1048 = vst.msk [vmem:[#allocation2 + $0x1e8] sm:$0xff] %vm250_vm2, %v967_v30  ;;  %11441 = vmatmul.msk.f32.gmra.mxu2 %vm250_vm2, %v1102_v18  ;;  %v1071_v30 = vld [vmem:[#allocation2 + $0x14f] sm:$0xff]  ;;  %v1072_v18 = vld [vmem:[#allocation2 + $0x167] sm:$0xff] }
 0x1a8   : > { %v13525_v62 = vpop.f32.mrf.mxu3 }
 0x1a9   : > { %18979 = vst [vmem:[#allocation40_spill] sm:$0xff] %v13525_v62 }
 0x1aa   : > { %5543 = vrot.lane.b32.xlu2 %v13202_v23, %s12790_s15  ;;  %5541 = vrot.lane.b32.xlu1 %v13199_v35, %s12790_s15 }
 0x1ab   : > { %5545 = vrot.lane.b32.xlu0 %v13205_v50, %s12790_s15  ;;  %v1560_v50 = vld [vmem:[#allocation2 + $0x131] sm:$0xff] }
 0x1ac   : > { %v969_v17 = vpop.permute.xlu1 %968  ;;  %v981_v23 = vpop.permute.xlu2 %980  ;;  %11508 = vmatmul.msk.f32.gmra.mxu0 %vm250_vm2, %v1560_v50  ;;  %v1107_v50 = vld [vmem:[#allocation2 + $0x188] sm:$0xff] }
 0x1ad   : > { %1049 = vst.msk [vmem:[#allocation2 + $0x1f0] sm:$0xff] %vm250_vm2, %v969_v17  ;;  %v973_v25 = vpop.permute.xlu0 %972  ;;  %11474 = vmatmul.msk.f32.gmra.mxu3 %vm250_vm2, %v1069_v7  ;;  %v1073_v7 = vld [vmem:[#allocation2 + $0x16f] sm:$0xff] }
 0x1ae   : > { %1055 = vst.msk [vmem:[#allocation2 + $0x250] sm:$0xff] %vm250_vm2, %v981_v23  ;;  %11442 = vmatmul.msk.f32.gmra.mxu2 %vm250_vm2, %v1103_v24 }
 0x1af   : > { %1051 = vst.msk [vmem:[#allocation2 + $0x210] sm:$0xff] %vm250_vm2, %v973_v25 }
 0x1b0   : > { %v13543_v35 = vpop.f32.mrf.mxu3 }
 0x1b1   : > { %18980 = vst [vmem:[#allocation41_spill] sm:$0xff] %v13543_v35 }
 0x1b2   : > { %5549 = vrot.lane.b32.xlu2 %v13227_v11, %s12790_s15  ;;  %5547 = vrot.lane.b32.xlu1 %v13224_v43, %s12790_s15 }
 0x1b3   : > { %5551 = vrot.lane.b32.xlu0 %v13230_v53, %s12790_s15  ;;  %v1561_v53 = vld [vmem:[#allocation2 + $0x149] sm:$0xff] }
 0x1b4   : > { %v662_v12 = vpop.permute.xlu1 %661  ;;  %v13554_v63 = vpop.permute.xlu2 %671  ;;  %11509 = vmatmul.msk.f32.gmra.mxu0 %vm250_vm2, %v1561_v53 }
 0x1b5   : > { %11404 = vmatmul.msk.f32.vlgmr.msra.gmra.mxu1 %vm250_vm2, %v662_v12  ;;  %v664_v38 = vpop.permute.xlu0 %663  ;;  %11475 = vmatmul.msk.f32.gmra.mxu3 %vm250_vm2, %v1070_v58  ;;  %v1108_v58 = vld [vmem:[#allocation2 + $0x190] sm:$0xff] }
 0x1b6   : > { %11443 = vmatmul.msk.f32.gmra.mxu2 %vm250_vm2, %v1104_v29  ;;  %v1075_v29 = vld [vmem:[#allocation2 + $0x18f] sm:$0xff] }
 0x1b8   : > { %v13558_v11 = vpop.f32.mrf.mxu3 }
 0x1b9   : > { %18981 = vst [vmem:[#allocation42_spill] sm:$0xff] %v13558_v11 }
 0x1ba   : > { %5555 = vrot.lane.b32.xlu2 %v12959_v37, %s12790_s15  ;;  %5553 = vrot.lane.b32.xlu1 %v13243_v28, %s12790_s15 }
 0x1bb   : > { %5557 = vrot.lane.b32.xlu0 %v12969_v41, %s12790_s15  ;;  %v1562_v41 = vld [vmem:[#allocation2 + $0x151] sm:$0xff] }
 0x1bc   : > { %v977_v43 = vpop.permute.xlu1 %976  ;;  %v987_v13 = vpop.permute.xlu2 %986  ;;  %11510 = vmatmul.msk.f32.gmra.mxu0 %vm250_vm2, %v1562_v41  ;;  %v1567_v41 = vld [vmem:[#allocation2 + $0x1a9] sm:$0xff] }
 0x1bd   : > { %1053 = vst.msk [vmem:[#allocation2 + $0x230] sm:$0xff] %vm250_vm2, %v977_v43  ;;  %11405 = vmatmul.msk.f32.gmra.mxu1 %vm250_vm2, %v664_v38  ;;  %v979_v33 = vpop.permute.xlu0 %978  ;;  %11476 = vmatmul.msk.f32.gmra.mxu3 %vm250_vm2, %v1071_v30  ;;  %v1074_v38 = vld [vmem:[#allocation2 + $0x187] sm:$0xff] }
 0x1be   : > { %1058 = vst.msk [vmem:[#allocation2 + $0x288] sm:$0xff] %vm250_vm2, %v987_v13  ;;  %11444 = vmatmul.msk.f32.gmra.mxu2 %vm250_vm2, %v1105_v39  ;;  %v1077_v39 = vld [vmem:[#allocation2 + $0x1af] sm:$0xff] }
 0x1bf   : > { %1054 = vst.msk [vmem:[#allocation2 + $0x248] sm:$0xff] %vm250_vm2, %v979_v33  ;;  %v1076_v33 = vld [vmem:[#allocation2 + $0x1a7] sm:$0xff] }
 0x1c0   : > { %v13572_v37 = vpop.f32.mrf.mxu3 }
 0x1c1   : > { %18982 = vst [vmem:[#allocation43_spill] sm:$0xff] %v13572_v37 }
 0x1c2   : > { %5561 = vrot.lane.b32.xlu2 %v12989_v49, %s12790_s15  ;;  %5559 = vrot.lane.b32.xlu1 %v12979_v45, %s12790_s15  ;;  %v1563_v45 = vld [vmem:[#allocation2 + $0x169] sm:$0xff] }
 0x1c3   : > { %5563 = vrot.lane.b32.xlu0 %v12997_v52, %s12790_s15 }
 0x1c4   : > { %v668_v28 = vpop.permute.xlu1 %667  ;;  %v13584_v3 = vpop.permute.xlu2 %677  ;;  %11511 = vmatmul.msk.f32.gmra.mxu0 %vm250_vm2, %v1563_v45 }
 0x1c5   : > { %11406 = vmatmul.msk.f32.gmra.mxu1 %vm250_vm2, %v13520_v4  ;;  %v670_v17 = vpop.permute.xlu0 %669  ;;  %11477 = vmatmul.msk.f32.gmra.mxu3 %vm250_vm2, %v1072_v18  ;;  %v1106_v4 = vld [vmem:[#allocation2 + $0x170] sm:$0xff] }
 0x1c6   : > { %11445 = vmatmul.msk.f32.gmra.mxu2 %vm250_vm2, %v1106_v4  ;;  %v1568_v18 = vld [vmem:[#allocation2 + $0x1b1] sm:$0xff]  ;;  %v1078_v4 = vld [vmem:[#allocation2 + $0x1c7] sm:$0xff] }
 0x1c8   : > { %v13588_v49 = vpop.f32.mrf.mxu3 }
 0x1c9   : > { %18983 = vst [vmem:[#allocation44_spill] sm:$0xff] %v13588_v49 }
 0x1ca   : > { %5567 = vrot.lane.b32.xlu2 %v13017_v60, %s12790_s15  ;;  %5565 = vrot.lane.b32.xlu1 %v13007_v56, %s12790_s15  ;;  %v1564_v60 = vld [vmem:[#allocation2 + $0x171] sm:$0xff] }
 0x1cb   : > { %5569 = vrot.lane.b32.xlu0 %v13027_v0, %s12790_s15 }
 0x1cc   : > { %v983_v52 = vpop.permute.xlu1 %982  ;;  %v993_v23 = vpop.permute.xlu2 %992  ;;  %11512 = vmatmul.msk.f32.gmra.mxu0 %vm250_vm2, %v1564_v60 }
 0x1cd   : > { %1056 = vst.msk [vmem:[#allocation2 + $0x268] sm:$0xff] %vm250_vm2, %v983_v52  ;;  %11407 = vmatmul.msk.f32.gmra.mxu1 %vm250_vm2, %v668_v28  ;;  %v985_v25 = vpop.permute.xlu0 %984  ;;  %11478 = vmatmul.msk.f32.gmra.mxu3 %vm250_vm2, %v1073_v7  ;;  %v1111_v52 = vld [vmem:[#allocation2 + $0x1c8] sm:$0xff] }
 0x1ce   : > { %1061 = vst.msk [vmem:[#allocation2 + $0x2b0] sm:$0xff] %vm250_vm2, %v993_v23  ;;  %11446 = vmatmul.msk.f32.gmra.mxu2 %vm250_vm2, %v1107_v50  ;;  %v11640_v23 = vld [vmem:[%s18820_s3 + $0xe] sm:$0x3] }
 0x1cf   : > { %1057 = vst.msk [vmem:[#allocation2 + $0x270] sm:$0xff] %vm250_vm2, %v985_v25  ;;  %v11538_v25 = vld [vmem:[%s18820_s3 + $0x8] sm:$0x3]  ;;  %11641 = vmatpush.msk.msra.mxu0 %vm789_vm1, %v11640_v23  ;;  %v1079_v50 = vld [vmem:[#allocation2 + $0x1cf] sm:$0xff] }
 0x1d0   : > { %v13602_v56 = vpop.f32.mrf.mxu3  ;;  %11539 = vmatpush.msk.msrb.mxu1 %vm789_vm1, %v11538_v25 }
 0x1d1   : > { %18984 = vst [vmem:[#allocation45_spill] sm:$0xff] %v13602_v56 }
 0x1d2   : > { %5573 = vrot.lane.b32.xlu2 %v13047_v8, %s12790_s15  ;;  %5571 = vrot.lane.b32.xlu1 %v13039_v5, %s12790_s15  ;;  %v1565_v5 = vld [vmem:[#allocation2 + $0x189] sm:$0xff] }
 0x1d3   : > { %5575 = vrot.lane.b32.xlu0 %v13061_v14, %s12790_s15 }
 0x1d4   : > { %v674_v0 = vpop.permute.xlu1 %673  ;;  %v13613_v12 = vpop.permute.xlu2 %683  ;;  %11513 = vmatmul.msk.f32.gmra.mxu0 %vm250_vm2, %v1565_v5  ;;  %v1113_v5 = vld [vmem:[#allocation2 + $0x1e8] sm:$0xff] }
 0x1d5   : > { %11408 = vmatmul.msk.f32.gmra.mxu1 %vm250_vm2, %v670_v17  ;;  %v676_v24 = vpop.permute.xlu0 %675  ;;  %11479 = vmatmul.msk.f32.gmra.mxu3 %vm250_vm2, %v1074_v38 }
 0x1d6   : > { %11447 = vmatmul.msk.f32.gmra.mxu2 %vm250_vm2, %v1108_v58  ;;  %v1571_v58 = vld [vmem:[#allocation2 + $0x1e9] sm:$0xff] }
 0x1d8   : > { %v13617_v8 = vpop.f32.mrf.mxu3 }
 0x1d9   : > { %18985 = vst [vmem:[#allocation46_spill] sm:$0xff] %v13617_v8 }
 0x1da   : > { %5579 = vrot.lane.b32.xlu2 %v13095_v26, %s12790_s15  ;;  %5577 = vrot.lane.b32.xlu1 %v13076_v19, %s12790_s15  ;;  %v1566_v26 = vld [vmem:[#allocation2 + $0x191] sm:$0xff] }
 0x1db   : > { %5581 = vrot.lane.b32.xlu0 %v13112_v32, %s12790_s15 }
 0x1dc   : > { %v989_v14 = vpop.permute.xlu1 %988  ;;  %v999_v53 = vpop.permute.xlu2 %998  ;;  %11514 = vmatmul.msk.f32.gmra.mxu0 %vm250_vm2, %v1566_v26  ;;  %v1572_v26 = vld [vmem:[#allocation2 + $0x1f1] sm:$0xff] }
 0x1dd   : > { %1059 = vst.msk [vmem:[#allocation2 + $0x290] sm:$0xff] %vm250_vm2, %v989_v14  ;;  %11409 = vmatmul.msk.f32.gmra.mxu1 %vm250_vm2, %v13554_v63  ;;  %v991_v43 = vpop.permute.xlu0 %990  ;;  %11480 = vmatmul.msk.f32.gmra.mxu3 %vm250_vm2, %v1075_v29  ;;  %v1109_v63 = vld [vmem:[#allocation2 + $0x1a8] sm:$0xff] }
 0x1de   : > { %1064 = vst.msk [vmem:[#allocation2 + $0x2e8] sm:$0xff] %vm250_vm2, %v999_v53  ;;  %11448 = vmatmul.msk.f32.gmra.mxu2 %vm250_vm2, %v1109_v63  ;;  %v1080_v14 = vld [vmem:[#allocation2 + $0x1e7] sm:$0xff]  ;;  %v1081_v29 = vld [vmem:[#allocation2 + $0x1ef] sm:$0xff] }
 0x1df   : > { %1060 = vst.msk [vmem:[#allocation2 + $0x2a8] sm:$0xff] %vm250_vm2, %v991_v43  ;;  %v1114_v43 = vld [vmem:[#allocation2 + $0x1f0] sm:$0xff] }
 0x1e0   : > { %v13632_v19 = vpop.f32.mrf.mxu3 }
 0x1e1   : > { %18986 = vst [vmem:[#allocation47_spill] sm:$0xff] %v13632_v19 }
 0x1e2   : > { %5585 = vrot.lane.b32.xlu2 %v13154_v1, %s12790_s15  ;;  %5583 = vrot.lane.b32.xlu1 %v13129_v42, %s12790_s15  ;;  %v1110_v42 = vld [vmem:[#allocation2 + $0x1b0] sm:$0xff]  ;;  %s11299_s15 = sshll.u32 %s18556_s10, 4  ;;  %s11300_s15 = int_to_ptr.vmem [resolvable:$true] %s11299_s15 }
 0x1e4   : > { %v680_v32 = vpop.permute.xlu1 %679  ;;  %11515 = vmatmul.msk.f32.gmra.mxu0 %vm250_vm2, %v1567_v41  ;;  %v1573_v41 = vld [vmem:[#allocation2 + $0x209] sm:$0xff]  ;;  %v690_v25 = vpop.permute.xlu2 %689 }
 0x1e5   : > { %11410 = vmatmul.msk.f32.gmra.mxu1 %vm250_vm2, %v674_v0  ;;  %v682_v13 = vpop.permute.xlu0 %681  ;;  %11481 = vmatmul.msk.f32.gmra.mxu3 %vm250_vm2, %v1076_v33  ;;  %v1112_v0 = vld [vmem:[#allocation2 + $0x1d0] sm:$0xff]  ;;  %v1082_v33 = vld [vmem:[#allocation2 + $0x207] sm:$0xff] }
 0x1e6   : > { %11449 = vmatmul.msk.f32.gmra.mxu2 %vm250_vm2, %v1110_v42 }
 0x1e8   : > { %v13643_v30 = vpop.f32.mrf.mxu3 }
 0x1e9   : > { %18987 = vst [vmem:[#allocation48_spill] sm:$0xff] %v13643_v30 }
 0x1eb   : > { %v1707_v63 = vpop.f32.mrf.mxu0 }
 0x1ec   : > { %v995_v1 = vpop.permute.xlu1 %994  ;;  %11516 = vmatmul.msk.f32.gmra.mxu0 %vm250_vm2, %v1568_v18 }
 0x1ed   : > { %1062 = vst.msk [vmem:[#allocation2 + $0x2c8] sm:$0xff] %vm250_vm2, %v995_v1  ;;  %11411 = vmatmul.msk.f32.gmra.mxu1 %vm250_vm2, %v676_v24  ;;  %v997_v28 = vpop.permute.xlu0 %996  ;;  %11482 = vmatmul.msk.f32.gmra.mxu3 %vm250_vm2, %v1077_v39  ;;  %v1570_v24 = vld [vmem:[#allocation2 + $0x1d1] sm:$0xff]  ;;  %v13696_v39 = vld [vmem:[%s18821_s4] ss:$0 sm:$0xff] }
 0x1ee   : > { %1063 = vst.msk [vmem:[#allocation2 + $0x2d0] sm:$0xff] %vm250_vm2, %v997_v28  ;;  %11450 = vmatmul.msk.f32.gmra.mxu2 %vm250_vm2, %v1111_v52  ;;  %v1083_v52 = vld [vmem:[#allocation2 + $0x20f] sm:$0xff] }
 0x1f0   : > { %v13651_v17 = vpop.f32.mrf.mxu3 }
 0x1f1   : > { %18988 = vst [vmem:[#allocation49_spill] sm:$0xff] %v13651_v17 }
 0x1f4   : > { %v686_v45 = vpop.permute.xlu1 %685 }
 0x1f5   : > { %11412 = vmatmul.msk.f32.gmra.mxu1 %vm250_vm2, %v13584_v3  ;;  %11483 = vmatmul.msk.f32.gmra.mxu3 %vm250_vm2, %v1078_v4  ;;  %v1569_v3 = vld [vmem:[#allocation2 + $0x1c9] sm:$0xff]  ;;  %v688_v1 = vpop.permute.xlu0 %687  ;;  %v1710_v4 = vpop.f32.mrf.mxu0 }
 0x1f6   : > { %11517 = vmatmul.msk.f32.gmra.mxu0 %vm250_vm2, %v1569_v3  ;;  %11451 = vmatmul.msk.f32.gmra.mxu2 %vm250_vm2, %v1112_v0  ;;  %v1574_v3 = vld [vmem:[#allocation2 + $0x211] sm:$0xff] }
 0x1f8   : > { %v13665_v7 = vpop.f32.mrf.mxu3 }
 0x1f9   : > { %18989 = vst [vmem:[#allocation50_spill] sm:$0xff] %v13665_v7 }
 0x1fc   : > { %v1001_v60 = vpop.permute.xlu1 %1000 }
 0x1fd   : > { %1065 = vst.msk [vmem:[#allocation2 + $0x2f0] sm:$0xff] %vm250_vm2, %v1001_v60  ;;  %11413 = vmatmul.msk.f32.gmra.mxu1 %vm250_vm2, %v680_v32  ;;  %11484 = vmatmul.msk.f32.gmra.mxu3 %vm250_vm2, %v1079_v50 }
 0x1fe   : > { %11518 = vmatmul.msk.f32.gmra.mxu0 %vm250_vm2, %v1570_v24  ;;  %11452 = vmatmul.msk.f32.gmra.mxu2 %vm250_vm2, %v1113_v5 }
 0x200   : > { %v13674_v38 = vpop.f32.mrf.mxu3 }
 0x201   : > { %18990 = vst [vmem:[#allocation51_spill] sm:$0xff] %v13674_v38 }
 0x205   : > { %11414 = vmatmul.msk.f32.gmra.mxu1 %vm250_vm2, %v682_v13  ;;  %11485 = vmatmul.msk.f32.gmra.mxu3 %vm250_vm2, %v1080_v14  ;;  %v1115_v13 = vld [vmem:[#allocation2 + $0x208] sm:$0xff] }
 0x206   : > { %11519 = vmatmul.msk.f32.gmra.mxu0 %vm250_vm2, %v1571_v58  ;;  %11453 = vmatmul.msk.f32.gmra.mxu2 %vm250_vm2, %v1114_v43  ;;  %v1117_v14 = vld [vmem:[#allocation2 + $0x228] sm:$0xff] }
 0x207   : > { %v1084_v58 = vld [vmem:[#allocation2 + $0x227] sm:$0xff] }
 0x208   : > { %v13680_v53 = vpop.f32.mrf.mxu3 }
 0x209   : > { %18991 = vst [vmem:[#allocation52_spill] sm:$0xff] %v13680_v53 }
 0x20d   : > { %11415 = vmatmul.msk.f32.gmra.mxu1 %vm250_vm2, %v13613_v12  ;;  %11486 = vmatmul.msk.f32.gmra.mxu3 %vm250_vm2, %v1081_v29  ;;  %v1249_v12 = vpop.f32.mrf.mxu2 }
 0x20e   : > { %11520 = vmatmul.msk.f32.gmra.mxu0 %vm250_vm2, %v1572_v26  ;;  %11454 = vmatmul.msk.f32.gmra.mxu2 %vm250_vm2, %v1115_v13  ;;  %v692_v26 = vpop.permute.xlu0 %691 }
 0x210   : > { %v13687_v32 = vpop.f32.mrf.mxu3 }
 0x211   : > { %18992 = vst [vmem:[#allocation53_spill] sm:$0xff] %v13687_v32 }
 0x215   : > { %11416 = vmatmul.msk.f32.gmra.mxu1 %vm250_vm2, %v686_v45  ;;  %11487 = vmatmul.msk.f32.gmra.mxu3 %vm250_vm2, %v1082_v33  ;;  %v1116_v45 = vld [vmem:[#allocation2 + $0x210] sm:$0xff]  ;;  %v1252_v0 = vpop.f32.mrf.mxu2 }
 0x216   : > { %11521 = vmatmul.msk.f32.gmra.mxu0 %vm250_vm2, %v1573_v41  ;;  %11455 = vmatmul.msk.f32.gmra.mxu2 %vm250_vm2, %v1116_v45 }
 0x218   : > { %v1461_v42 = vpop.f32.mrf.mxu3 }
 0x219   : > { %v1462_v28 = vadd.f32 %v1461_v42, %v1249_v12  ;;  %v1118_v42 = vld [vmem:[#allocation2 + $0x230] sm:$0xff] }
 0x21b   : > { %v1803_v18 = vadd.f32 %v1707_v63, %v1462_v28  ;;  %v1575_v63 = vld [vmem:[#allocation2 + $0x229] sm:$0xff] }
 0x21c   : > { %v1085_v28 = vld [vmem:[#allocation2 + $0x22f] sm:$0xff] }
 0x21d   : > { %11417 = vmatmul.msk.f32.gmra.mxu1 %vm250_vm2, %v688_v1  ;;  %v1837_v23 = vadd.f32 %v13696_v39, %v1803_v18  ;;  %11488 = vmatmul.msk.f32.gmra.mxu3 %vm250_vm2, %v1083_v52  ;;  %v1576_v52 = vld [vmem:[#allocation2 + $0x231] sm:$0xff] }
 0x21e   : > { %11522 = vmatmul.msk.f32.gmra.mxu0 %vm250_vm2, %v1574_v3  ;;  %11456 = vmatmul.msk.f32.gmra.mxu2 %vm250_vm2, %v1117_v14 }
 0x21f   : > { %v1869_v60 = vmax.f32 %v1837_v23, 0.0 }
 0x220   : > { %v1464_v50 = vpop.f32.mrf.mxu3  ;;  %v1713_v43 = vpop.f32.mrf.mxu0 }
 0x221   : > { %1901 = vst.msk [vmem:[#allocation2 + $0x108] sm:$0xff] %vm250_vm2, %v1869_v60  ;;  %v1465_v24 = vadd.f32 %v1464_v50, %v1252_v0  ;;  %v1255_v33 = vpop.f32.mrf.mxu2 }
 0x223   : > { %v1804_v5 = vadd.f32 %v1710_v4, %v1465_v24  ;;  %v1119_v24 = vld [vmem:[#allocation2 + $0x248] sm:$0xff] }
 0x225   : > { %11418 = vmatmul.msk.f32.gmra.mxu1 %vm250_vm2, %v690_v25  ;;  %v1838_v29 = vadd.f32 %v13696_v39, %v1804_v5  ;;  %11489 = vmatmul.msk.f32.gmra.mxu3 %vm250_vm2, %v1084_v58  ;;  %v1086_v5 = vld [vmem:[#allocation2 + $0x247] sm:$0xff] }
 0x226   : > { %11523 = vmatmul.msk.f32.gmra.mxu0 %vm250_vm2, %v1575_v63  ;;  %11457 = vmatmul.msk.f32.gmra.mxu2 %vm250_vm2, %v1118_v42  ;;  %v1087_v42 = vld [vmem:[#allocation2 + $0x24f] sm:$0xff] }
 0x227   : > { %v1870_v13 = vmax.f32 %v1838_v29, 0.0 }
 0x228   : > { %v1467_v12 = vpop.f32.mrf.mxu3  ;;  %v13715_v3 = vld [vmem:[#allocation2 + $0x108] sm:$0xff] }
 0x229   : > { %1902 = vst.msk [vmem:[#allocation2 + $0x110] sm:$0xff] %vm250_vm2, %v1870_v13  ;;  %v1468_v41 = vadd.f32 %v1467_v12, %v1255_v33  ;;  %v1716_v18 = vpop.f32.mrf.mxu0  ;;  %v1258_v23 = vpop.f32.mrf.mxu2 }
 0x22b   : > { %v1805_v1 = vadd.f32 %v1713_v43, %v1468_v41  ;;  %v1577_v43 = vld [vmem:[#allocation2 + $0x249] sm:$0xff] }
 0x22d   : > { %11419 = vmatmul.msk.f32.gmra.mxu1 %vm250_vm2, %v692_v26  ;;  %v1839_v45 = vadd.f32 %v13696_v39, %v1805_v1  ;;  %11490 = vmatmul.msk.f32.gmra.mxu3 %vm250_vm2, %v1085_v28  ;;  %v1120_v1 = vld [vmem:[#allocation2 + $0x250] sm:$0xff] }
 0x22e   : > { %11524 = vmatmul.msk.f32.gmra.mxu0 %vm250_vm2, %v1576_v52  ;;  %11458 = vmatmul.msk.f32.gmra.mxu2 %vm250_vm2, %v1119_v24 }
 0x22f   : > { %v1871_v4 = vmax.f32 %v1839_v45, 0.0  ;;  %v1578_v45 = vld [vmem:[#allocation2 + $0x251] sm:$0xff] }
 0x230   : > { %v1470_v25 = vpop.f32.mrf.mxu3  ;;  %v13726_v13 = vld [vmem:[#allocation2 + $0x110] sm:$0xff] }
 0x231   : > { %1903 = vst.msk [vmem:[#allocation2 + $0x128] sm:$0xff] %vm250_vm2, %v1871_v4  ;;  %v1471_v60 = vadd.f32 %v1470_v25, %v1258_v23  ;;  %v1719_v14 = vpop.f32.mrf.mxu0  ;;  %v1261_v26 = vpop.f32.mrf.mxu2 }
 0x232   : > { %v13718_v0 = vpop.f32.mrf.mxu1 }
 0x233   : > { %18993 = vst [vmem:[#allocation54_spill] sm:$0xff] %v13718_v0  ;;  %v1806_v50 = vadd.f32 %v1716_v18, %v1471_v60 }
 0x235   : > { %11540 = vmatmul.msk.f32.vlgmr.msrb.gmra.mxu1 %vm250_vm2, %v13715_v3  ;;  %v1840_v58 = vadd.f32 %v13696_v39, %v1806_v50  ;;  %11491 = vmatmul.msk.f32.gmra.mxu3 %vm250_vm2, %v1086_v5  ;;  %v1121_v5 = vld [vmem:[#allocation2 + $0x268] sm:$0xff] }
 0x236   : > { %11525 = vmatmul.msk.f32.gmra.mxu0 %vm250_vm2, %v1577_v43  ;;  %11459 = vmatmul.msk.f32.gmra.mxu2 %vm250_vm2, %v1120_v1 }
 0x237   : > { %v1872_v29 = vmax.f32 %v1840_v58, 0.0 }
 0x238   : > { %v1473_v63 = vpop.f32.mrf.mxu3  ;;  %v13737_v25 = vld [vmem:[#allocation2 + $0x128] sm:$0xff] }
 0x239   : > { %1904 = vst.msk [vmem:[#allocation2 + $0x130] sm:$0xff] %vm250_vm2, %v1872_v29  ;;  %v1474_v33 = vadd.f32 %v1473_v63, %v1261_v26  ;;  %v1722_v28 = vpop.f32.mrf.mxu0  ;;  %v1264_v4 = vpop.f32.mrf.mxu2  ;;  %v1579_v29 = vld [vmem:[#allocation2 + $0x269] sm:$0xff] }
 0x23a   : > { %v13729_v12 = vpop.f32.mrf.mxu1 }
 0x23b   : > { %18994 = vst [vmem:[#allocation55_spill] sm:$0xff] %v13729_v12  ;;  %v1807_v41 = vadd.f32 %v1719_v14, %v1474_v33  ;;  %v1088_v14 = vld [vmem:[#allocation2 + $0x267] sm:$0xff] }
 0x23d   : > { %11541 = vmatmul.msk.f32.gmra.mxu1 %vm250_vm2, %v13726_v13  ;;  %v1841_v18 = vadd.f32 %v13696_v39, %v1807_v41  ;;  %11492 = vmatmul.msk.f32.gmra.mxu3 %vm250_vm2, %v1087_v42 }
 0x23e   : > { %11526 = vmatmul.msk.f32.gmra.mxu0 %vm250_vm2, %v1578_v45  ;;  %11460 = vmatmul.msk.f32.gmra.mxu2 %vm250_vm2, %v1121_v5  ;;  %v1089_v45 = vld [vmem:[#allocation2 + $0x26f] sm:$0xff] }
 0x23f   : > { %v1873_v52 = vmax.f32 %v1841_v18, 0.0  ;;  %v1122_v18 = vld [vmem:[#allocation2 + $0x270] sm:$0xff] }
 0x240   : > { %v1476_v23 = vpop.f32.mrf.mxu3  ;;  %v13748_v41 = vld [vmem:[#allocation2 + $0x130] sm:$0xff] }
 0x241   : > { %1905 = vst.msk [vmem:[#allocation2 + $0x148] sm:$0xff] %vm250_vm2, %v1873_v52  ;;  %v1477_v60 = vadd.f32 %v1476_v23, %v1264_v4  ;;  %v1725_v58 = vpop.f32.mrf.mxu0  ;;  %v1267_v63 = vpop.f32.mrf.mxu2  ;;  %v1580_v23 = vld [vmem:[#allocation2 + $0x271] sm:$0xff] }
 0x242   : > { %v13740_v50 = vpop.f32.mrf.mxu1 }
 0x243   : > { %18995 = vst [vmem:[#allocation56_spill] sm:$0xff] %v13740_v50  ;;  %v1808_v24 = vadd.f32 %v1722_v28, %v1477_v60 }
 0x245   : > { %11542 = vmatmul.msk.f32.gmra.mxu1 %vm250_vm2, %v13737_v25  ;;  %v1842_v43 = vadd.f32 %v13696_v39, %v1808_v24  ;;  %11493 = vmatmul.msk.f32.gmra.mxu3 %vm250_vm2, %v1088_v14 }
 0x246   : > { %11527 = vmatmul.msk.f32.gmra.mxu0 %vm250_vm2, %v1579_v29  ;;  %11461 = vmatmul.msk.f32.gmra.mxu2 %vm250_vm2, %v1122_v18 }
 0x247   : > { %v1874_v26 = vmax.f32 %v1842_v43, 0.0 }
 0x248   : > { %v1479_v33 = vpop.f32.mrf.mxu3  ;;  %v13759_v14 = vld [vmem:[#allocation2 + $0x148] sm:$0xff] }
 0x249   : > { %1906 = vst.msk [vmem:[#allocation2 + $0x150] sm:$0xff] %vm250_vm2, %v1874_v26  ;;  %v1480_v1 = vadd.f32 %v1479_v33, %v1267_v63  ;;  %v1728_v52 = vpop.f32.mrf.mxu0  ;;  %v1270_v24 = vpop.f32.mrf.mxu2  ;;  %v1123_v26 = vld [vmem:[#allocation2 + $0x288] sm:$0xff] }
 0x24a   : > { %v13751_v42 = vpop.f32.mrf.mxu1  ;;  %v1090_v63 = vld [vmem:[#allocation2 + $0x287] sm:$0xff] }
 0x24b   : > { %18996 = vst [vmem:[#allocation57_spill] sm:$0xff] %v13751_v42  ;;  %v1809_v28 = vadd.f32 %v1725_v58, %v1480_v1 }
 0x24d   : > { %11543 = vmatmul.msk.f32.gmra.mxu1 %vm250_vm2, %v13748_v41  ;;  %v1843_v4 = vadd.f32 %v13696_v39, %v1809_v28  ;;  %11494 = vmatmul.msk.f32.gmra.mxu3 %vm250_vm2, %v1089_v45  ;;  %v1581_v28 = vld [vmem:[#allocation2 + $0x289] sm:$0xff] }
 0x24e   : > { %11528 = vmatmul.msk.f32.gmra.mxu0 %vm250_vm2, %v1580_v23  ;;  %11462 = vmatmul.msk.f32.gmra.mxu2 %vm250_vm2, %v1123_v26 }
 0x24f   : > { %v1875_v60 = vmax.f32 %v1843_v4, 0.0 }
 0x250   : > { %v1482_v5 = vpop.f32.mrf.mxu3  ;;  %v13770_v23 = vld [vmem:[#allocation2 + $0x150] sm:$0xff] }
 0x251   : > { %1907 = vst.msk [vmem:[#allocation2 + $0x168] sm:$0xff] %vm250_vm2, %v1875_v60  ;;  %v1483_v58 = vadd.f32 %v1482_v5, %v1270_v24  ;;  %v1731_v33 = vpop.f32.mrf.mxu0  ;;  %v1273_v45 = vpop.f32.mrf.mxu2  ;;  %v1124_v5 = vld [vmem:[#allocation2 + $0x290] sm:$0xff] }
 0x252   : > { %v13762_v43 = vpop.f32.mrf.mxu1 }
 0x253   : > { %18997 = vst [vmem:[#allocation58_spill] sm:$0xff] %v13762_v43  ;;  %v1810_v29 = vadd.f32 %v1728_v52, %v1483_v58  ;;  %v1091_v58 = vld [vmem:[#allocation2 + $0x28f] sm:$0xff] }
 0x255   : > { %11544 = vmatmul.msk.f32.gmra.mxu1 %vm250_vm2, %v13759_v14  ;;  %v1844_v1 = vadd.f32 %v13696_v39, %v1810_v29  ;;  %11495 = vmatmul.msk.f32.gmra.mxu3 %vm250_vm2, %v1090_v63  ;;  %v1582_v63 = vld [vmem:[#allocation2 + $0x291] sm:$0xff] }
 0x256   : > { %11529 = vmatmul.msk.f32.gmra.mxu0 %vm250_vm2, %v1581_v28  ;;  %11463 = vmatmul.msk.f32.gmra.mxu2 %vm250_vm2, %v1124_v5  ;;  %v1092_v5 = vld [vmem:[#allocation2 + $0x2a7] sm:$0xff] }
 0x257   : > { %v1876_v18 = vmax.f32 %v1844_v1, 0.0 }
 0x258   : > { %v1485_v4 = vpop.f32.mrf.mxu3 }
 0x259   : > { %1908 = vst.msk [vmem:[#allocation2 + $0x170] sm:$0xff] %vm250_vm2, %v1876_v18  ;;  %v1486_v52 = vadd.f32 %v1485_v4, %v1273_v45  ;;  %v1734_v29 = vpop.f32.mrf.mxu0  ;;  %v1276_v28 = vpop.f32.mrf.mxu2  ;;  %v13781_v45 = vld [vmem:[#allocation2 + $0x168] sm:$0xff] }
 0x25a   : > { %v13773_v60 = vpop.f32.mrf.mxu1 }
 0x25b   : > { %18998 = vst [vmem:[#allocation59_spill] sm:$0xff] %v13773_v60  ;;  %v1811_v24 = vadd.f32 %v1731_v33, %v1486_v52 }
 0x25d   : > { %11545 = vmatmul.msk.f32.gmra.mxu1 %vm250_vm2, %v13770_v23  ;;  %v1845_v26 = vadd.f32 %v13696_v39, %v1811_v24  ;;  %11496 = vmatmul.msk.f32.gmra.mxu3 %vm250_vm2, %v1091_v58  ;;  %v1125_v24 = vld [vmem:[#allocation2 + $0x2a8] sm:$0xff] }
 0x25e   : > { %11530 = vmatmul.msk.f32.gmra.mxu0 %vm250_vm2, %v1582_v63  ;;  %11464 = vmatmul.msk.f32.gmra.mxu2 %vm250_vm2, %v1125_v24  ;;  %v1583_v63 = vld [vmem:[#allocation2 + $0x2a9] sm:$0xff] }
 0x25f   : > { %v1877_v1 = vmax.f32 %v1845_v26, 0.0  ;;  %v1093_v24 = vld [vmem:[#allocation2 + $0x2af] sm:$0xff] }
 0x260   : > { %v1488_v18 = vpop.f32.mrf.mxu3 }
 0x261   : > { %1909 = vst.msk [vmem:[#allocation2 + $0x188] sm:$0xff] %vm250_vm2, %v1877_v1  ;;  %v1489_v33 = vadd.f32 %v1488_v18, %v1276_v28  ;;  %v1737_v58 = vpop.f32.mrf.mxu0  ;;  %v1279_v53 = vpop.f32.mrf.mxu2  ;;  %v13792_v28 = vld [vmem:[#allocation2 + $0x170] sm:$0xff] }
 0x262   : > { %v13784_v4 = vpop.f32.mrf.mxu1 }
 0x263   : > { %18999 = vst [vmem:[#allocation60_spill] sm:$0xff] %v13784_v4  ;;  %v1812_v52 = vadd.f32 %v1734_v29, %v1489_v33  ;;  %v2808_v4 = vld [vmem:[#allocation2 + $0xe5] sm:$0xff] }
 0x265   : > { %11546 = vmatmul.msk.f32.gmra.mxu1 %vm250_vm2, %v13781_v45  ;;  %v1846_v26 = vadd.f32 %v13696_v39, %v1812_v52  ;;  %11497 = vmatmul.msk.f32.gmra.mxu3 %vm250_vm2, %v1092_v5  ;;  %v1126_v52 = vld [vmem:[#allocation2 + $0x2b0] sm:$0xff] }
 0x266   : > { %11531 = vmatmul.msk.f32.gmra.mxu0 %vm250_vm2, %v1583_v63  ;;  %11465 = vmatmul.msk.f32.gmra.mxu2 %vm250_vm2, %v1126_v52  ;;  %v1584_v63 = vld [vmem:[#allocation2 + $0x2b1] sm:$0xff]  ;;  %v1094_v52 = vld [vmem:[#allocation2 + $0x2c7] sm:$0xff] }
 0x267   : > { %v1878_v32 = vmax.f32 %v1846_v26, 0.0 }
 0x268   : > { %v1491_v1 = vpop.f32.mrf.mxu3 }
 0x269   : > { %1910 = vst.msk [vmem:[#allocation2 + $0x190] sm:$0xff] %vm250_vm2, %v1878_v32  ;;  %v1492_v29 = vadd.f32 %v1491_v1, %v1279_v53  ;;  %v1740_v5 = vpop.f32.mrf.mxu0  ;;  %v1282_v7 = vpop.f32.mrf.mxu2  ;;  %v13803_v32 = vld [vmem:[#allocation2 + $0x188] sm:$0xff] }
 0x26a   : > { %v13795_v18 = vpop.f32.mrf.mxu1 }
 0x26b   : > { %19000 = vst [vmem:[#allocation61_spill] sm:$0xff] %v13795_v18  ;;  %v1813_v33 = vadd.f32 %v1737_v58, %v1492_v29 }
 0x26d   : > { %11547 = vmatmul.msk.f32.gmra.mxu1 %vm250_vm2, %v13792_v28  ;;  %v1847_v26 = vadd.f32 %v13696_v39, %v1813_v33  ;;  %11498 = vmatmul.msk.f32.gmra.mxu3 %vm250_vm2, %v1093_v24  ;;  %v1127_v33 = vld [vmem:[#allocation2 + $0x2c8] sm:$0xff] }
 0x26e   : > { %11532 = vmatmul.msk.f32.gmra.mxu0 %vm250_vm2, %v1584_v63  ;;  %11466 = vmatmul.msk.f32.gmra.mxu2 %vm250_vm2, %v1127_v33 }
 0x26f   : > { %v1879_v38 = vmax.f32 %v1847_v26, 0.0 }
 0x270   : > { %v1494_v53 = vpop.f32.mrf.mxu3 }
 0x271   : > { %1911 = vst.msk [vmem:[#allocation2 + $0x1a8] sm:$0xff] %vm250_vm2, %v1879_v38  ;;  %v1495_v58 = vadd.f32 %v1494_v53, %v1282_v7  ;;  %v11707_v38 = vld [vmem:[%s18820_s3 + $0x10] sm:$0x3]  ;;  %v1285_v53 = vpop.f32.mrf.mxu2 }
 0x272   : > { %v13806_v1 = vpop.f32.mrf.mxu1  ;;  %11708 = vmatpush.msk.msrb.mxu2 %vm789_vm1, %v11707_v38  ;;  %v1585_v7 = vld [vmem:[#allocation2 + $0x2c9] sm:$0xff] }
 0x273   : > { %19001 = vst [vmem:[#allocation62_spill] sm:$0xff] %v13806_v1  ;;  %v1814_v29 = vadd.f32 %v1740_v5, %v1495_v58  ;;  %v1743_v24 = vpop.f32.mrf.mxu0  ;;  %v11639_v58 = vld [vmem:[%s18820_s3 + $0xc] sm:$0x3]  ;;  %v1128_v38 = vld [vmem:[#allocation2 + $0x2d0] sm:$0xff] }
 0x274   : > { %11674 = vmatpush.msk.msra.mxu1 %vm789_vm1, %v11639_v58  ;;  %v2806_v1 = vld [vmem:[#allocation2 + $0xc5] sm:$0xff] }
 0x275   : > { %11548 = vmatmul.msk.f32.gmra.mxu1 %vm250_vm2, %v13803_v32  ;;  %v1848_v26 = vadd.f32 %v13696_v39, %v1814_v29  ;;  %11499 = vmatmul.msk.f32.gmra.mxu3 %vm250_vm2, %v1094_v52  ;;  %v13825_v52 = vld [vmem:[#allocation2 + $0x190] sm:$0xff] }
 0x276   : > { %11533 = vmatmul.msk.f32.gmra.mxu0 %vm250_vm2, %v1585_v7  ;;  %v1095_v7 = vld [vmem:[#allocation2 + $0x2cf] sm:$0xff]  ;;  %11467 = vmatmul.msk.f32.gmra.mxu2 %vm250_vm2, %v1128_v38  ;;  %v1096_v38 = vld [vmem:[#allocation2 + $0x2e7] sm:$0xff] }
 0x277   : > { %v1880_v63 = vmax.f32 %v1848_v26, 0.0 }
 0x278   : > { %v1497_v5 = vpop.f32.mrf.mxu3 }
 0x279   : > { %1912 = vst.msk [vmem:[#allocation2 + $0x1b0] sm:$0xff] %vm250_vm2, %v1880_v63  ;;  %v1498_v29 = vadd.f32 %v1497_v5, %v1285_v53  ;;  %v1586_v63 = vld [vmem:[#allocation2 + $0x2d1] sm:$0xff]  ;;  %v1288_v5 = vpop.f32.mrf.mxu2 }
 0x27a   : > { %v13823_v33 = vpop.f32.mrf.mxu1 }
 0x27b   : > { %19002 = vst [vmem:[#allocation63_spill] sm:$0xff] %v13823_v33  ;;  %v1815_v26 = vadd.f32 %v1743_v24, %v1498_v29  ;;  %v1746_v17 = vpop.f32.mrf.mxu0  ;;  %v13836_v24 = vld [vmem:[#allocation2 + $0x1a8] sm:$0xff] }
 0x27d   : > { %11549 = vmatmul.msk.f32.gmra.mxu1 %vm250_vm2, %v13825_v52  ;;  %v1849_v30 = vadd.f32 %v13696_v39, %v1815_v26  ;;  %11500 = vmatmul.msk.f32.gmra.mxu3 %vm250_vm2, %v1095_v7  ;;  %v1129_v26 = vld [vmem:[#allocation2 + $0x2e8] sm:$0xff] }
 0x27e   : > { %11534 = vmatmul.msk.f32.gmra.mxu0 %vm250_vm2, %v1586_v63  ;;  %11468 = vmatmul.msk.f32.gmra.mxu2 %vm250_vm2, %v1129_v26  ;;  %v1587_v63 = vld [vmem:[#allocation2 + $0x2e9] sm:$0xff] }
 0x27f   : > { %v1881_v53 = vmax.f32 %v1849_v30, 0.0  ;;  %v1097_v26 = vld [vmem:[#allocation2 + $0x2ef] sm:$0xff] }
 0x280   : > { %v1500_v58 = vpop.f32.mrf.mxu3 }
 0x281   : > { %1913 = vst.msk [vmem:[#allocation2 + $0x1c8] sm:$0xff] %vm250_vm2, %v1881_v53  ;;  %v1501_v19 = vadd.f32 %v1500_v58, %v1288_v5  ;;  %v1291_v5 = vpop.f32.mrf.mxu2 }
 0x282   : > { %v13834_v8 = vpop.f32.mrf.mxu1 }
 0x283   : > { %19003 = vst [vmem:[#allocation64_spill] sm:$0xff] %v13834_v8  ;;  %v1816_v29 = vadd.f32 %v1746_v17, %v1501_v19  ;;  %v1749_v30 = vpop.f32.mrf.mxu0  ;;  %v13847_v19 = vld [vmem:[#allocation2 + $0x1b0] sm:$0xff]  ;;  %v2804_v8 = vld [vmem:[#allocation2 + $0xa5] sm:$0xff] }
 0x285   : > { %11550 = vmatmul.msk.f32.gmra.mxu1 %vm250_vm2, %v13836_v24  ;;  %v1850_v7 = vadd.f32 %v13696_v39, %v1816_v29  ;;  %11501 = vmatmul.msk.f32.gmra.mxu3 %vm250_vm2, %v1096_v38  ;;  %v1130_v29 = vld [vmem:[#allocation2 + $0x2f0] sm:$0xff] }
 0x286   : > { %11535 = vmatmul.msk.f32.gmra.mxu0 %vm250_vm2, %v1587_v63  ;;  %11469 = vmatmul.msk.f32.gmra.mxu2 %vm250_vm2, %v1130_v29  ;;  %v1588_v63 = vld [vmem:[#allocation2 + $0x2f1] sm:$0xff] }
 0x287   : > { %v1882_v53 = vmax.f32 %v1850_v7, 0.0 }
 0x288   : > { %v1503_v58 = vpop.f32.mrf.mxu3 }
 0x289   : > { %1914 = vst.msk [vmem:[#allocation2 + $0x1d0] sm:$0xff] %vm250_vm2, %v1882_v53  ;;  %v1504_v56 = vadd.f32 %v1503_v58, %v1291_v5  ;;  %v1294_v5 = vpop.f32.mrf.mxu2 }
 0x28a   : > { %v13845_v49 = vpop.f32.mrf.mxu1 }
 0x28b   : > { %19004 = vst [vmem:[#allocation65_spill] sm:$0xff] %v13845_v49  ;;  %v1817_v17 = vadd.f32 %v1749_v30, %v1504_v56  ;;  %v1752_v38 = vpop.f32.mrf.mxu0  ;;  %v13858_v56 = vld [vmem:[#allocation2 + $0x1c8] sm:$0xff]  ;;  %v5524_v49 = vpop.permute.xlu1 %5523 }
 0x28c   : > { %v13860_v30 = vld [vmem:[#allocation2 + $0xe8] sm:$0xff] }
 0x28d   : > { %11551 = vmatmul.msk.f32.gmra.mxu1 %vm250_vm2, %v13847_v19  ;;  %v1851_v7 = vadd.f32 %v13696_v39, %v1817_v17  ;;  %11502 = vmatmul.msk.f32.gmra.mxu3 %vm250_vm2, %v1097_v26 }
 0x28e   : > { %11536 = vmatmul.msk.f32.gmra.mxu0 %vm250_vm2, %v1588_v63  ;;  %11573 = vmatmul.msk.f32.vlgmr.msra.gmra.mxu2 %vm250_vm2, %v13860_v30 }
 0x28f   : > { %v1883_v53 = vmax.f32 %v1851_v7, 0.0 }
 0x290   : > { %v1506_v58 = vpop.f32.mrf.mxu3  ;;  %v13872_v11 = vld [vmem:[#allocation2 + $0x1d0] sm:$0xff] }
 0x291   : > { %1915 = vst.msk [vmem:[#allocation2 + $0x1e8] sm:$0xff] %vm250_vm2, %v1883_v53  ;;  %v1507_v37 = vadd.f32 %v1506_v58, %v1294_v5  ;;  %v1297_v63 = vpop.f32.mrf.mxu2 }
 0x292   : > { %v13856_v55 = vpop.f32.mrf.mxu1 }
 0x293   : > { %19005 = vst [vmem:[#allocation66_spill] sm:$0xff] %v13856_v55  ;;  %v1818_v17 = vadd.f32 %v1752_v38, %v1507_v37  ;;  %v1755_v29 = vpop.f32.mrf.mxu0  ;;  %v13874_v37 = vld [vmem:[#allocation2 + $0xf0] sm:$0xff] }
 0x295   : > { %11552 = vmatmul.msk.f32.gmra.mxu1 %vm250_vm2, %v13858_v56  ;;  %v1852_v26 = vadd.f32 %v13696_v39, %v1818_v17  ;;  %11607 = vmatmul.msk.f32.vlgmr.msra.gmra.mxu3 %vm250_vm2, %v13737_v25 }
 0x296   : > { %11574 = vmatmul.msk.f32.gmra.mxu2 %vm250_vm2, %v13874_v37 }
 0x297   : > { %v1884_v7 = vmax.f32 %v1852_v26, 0.0 }
 0x298   : > { %v1509_v53 = vpop.f32.mrf.mxu3  ;;  %v13886_v47 = vld [vmem:[#allocation2 + $0x1e8] sm:$0xff] }
 0x299   : > { %1916 = vst.msk [vmem:[#allocation2 + $0x1f0] sm:$0xff] %vm250_vm2, %v1884_v7  ;;  %v1510_v5 = vadd.f32 %v1509_v53, %v1297_v63  ;;  %v1300_v63 = vpop.f32.mrf.mxu2 }
 0x29a   : > { %v13870_v58 = vpop.f32.mrf.mxu1 }
 0x29b   : > { %19006 = vst [vmem:[#allocation67_spill] sm:$0xff] %v13870_v58  ;;  %v1819_v38 = vadd.f32 %v1755_v29, %v1510_v5  ;;  %v1758_v17 = vpop.f32.mrf.mxu0 }
 0x29d   : > { %11553 = vmatmul.msk.f32.gmra.mxu1 %vm250_vm2, %v13872_v11  ;;  %v1853_v26 = vadd.f32 %v13696_v39, %v1819_v38  ;;  %11608 = vmatmul.msk.f32.gmra.mxu3 %vm250_vm2, %v13748_v41 }
 0x29e   : > { %11575 = vmatmul.msk.f32.gmra.mxu2 %vm250_vm2, %v13715_v3 }
 0x29f   : > { %v1885_v7 = vmax.f32 %v1853_v26, 0.0 }
 0x2a0   : > { %v1512_v53 = vpop.f32.mrf.mxu3  ;;  %v13898_v44 = vld [vmem:[#allocation2 + $0x1f0] sm:$0xff] }
 0x2a1   : > { %1917 = vst.msk [vmem:[#allocation2 + $0x208] sm:$0xff] %vm250_vm2, %v1885_v7  ;;  %v1513_v51 = vadd.f32 %v1512_v53, %v1300_v63  ;;  %v1303_v7 = vpop.f32.mrf.mxu2 }
 0x2a2   : > { %v13884_v35 = vpop.f32.mrf.mxu1 }
 0x2a3   : > { %19007 = vst [vmem:[#allocation68_spill] sm:$0xff] %v13884_v35  ;;  %v1820_v29 = vadd.f32 %v1758_v17, %v1513_v51  ;;  %v1761_v5 = vpop.f32.mrf.mxu0 }
 0x2a5   : > { %11554 = vmatmul.msk.f32.gmra.mxu1 %vm250_vm2, %v13886_v47  ;;  %v1854_v38 = vadd.f32 %v13696_v39, %v1820_v29  ;;  %11609 = vmatmul.msk.f32.gmra.mxu3 %vm250_vm2, %v13759_v14 }
 0x2a6   : > { %11576 = vmatmul.msk.f32.gmra.mxu2 %vm250_vm2, %v13726_v13 }
 0x2a7   : > { %v1886_v26 = vmax.f32 %v1854_v38, 0.0 }
 0x2a8   : > { %v1515_v63 = vpop.f32.mrf.mxu3  ;;  %v13910_v61 = vld [vmem:[#allocation2 + $0x208] sm:$0xff] }
 0x2a9   : > { %1918 = vst.msk [vmem:[#allocation2 + $0x210] sm:$0xff] %vm250_vm2, %v1886_v26  ;;  %v1516_v53 = vadd.f32 %v1515_v63, %v1303_v7  ;;  %v1306_v38 = vpop.f32.mrf.mxu2 }
 0x2aa   : > { %v13896_v62 = vpop.f32.mrf.mxu1 }
 0x2ab   : > { %19008 = vst [vmem:[#allocation69_spill] sm:$0xff] %v13896_v62  ;;  %v1821_v51 = vadd.f32 %v1761_v5, %v1516_v53  ;;  %v1764_v3 = vpop.f32.mrf.mxu0 }
 0x2ad   : > { %11555 = vmatmul.msk.f32.gmra.mxu1 %vm250_vm2, %v13898_v44  ;;  %v1855_v17 = vadd.f32 %v13696_v39, %v1821_v51  ;;  %11610 = vmatmul.msk.f32.gmra.mxu3 %vm250_vm2, %v13770_v23 }
 0x2ae   : > { %11577 = vmatmul.msk.f32.gmra.mxu2 %vm250_vm2, %v13737_v25 }
 0x2af   : > { %v1887_v29 = vmax.f32 %v1855_v17, 0.0 }
 0x2b0   : > { %v1518_v26 = vpop.f32.mrf.mxu3  ;;  %v13922_v40 = vld [vmem:[#allocation2 + $0x210] sm:$0xff] }
 0x2b1   : > { %1919 = vst.msk [vmem:[#allocation2 + $0x228] sm:$0xff] %vm250_vm2, %v1887_v29  ;;  %v1519_v7 = vadd.f32 %v1518_v26, %v1306_v38  ;;  %v1309_v17 = vpop.f32.mrf.mxu2 }
 0x2b2   : > { %v13908_v63 = vpop.f32.mrf.mxu1 }
 0x2b3   : > { %v1822_v13 = vadd.f32 %v1764_v3, %v1519_v7  ;;  %v1767_v5 = vpop.f32.mrf.mxu0 }
 0x2b5   : > { %11556 = vmatmul.msk.f32.gmra.mxu1 %vm250_vm2, %v13910_v61  ;;  %v1856_v53 = vadd.f32 %v13696_v39, %v1822_v13  ;;  %11611 = vmatmul.msk.f32.gmra.mxu3 %vm250_vm2, %v13781_v45 }
 0x2b6   : > { %11578 = vmatmul.msk.f32.gmra.mxu2 %vm250_vm2, %v13748_v41 }
 0x2b7   : > { %v1888_v51 = vmax.f32 %v1856_v53, 0.0 }
 0x2b8   : > { %v1521_v29 = vpop.f32.mrf.mxu3  ;;  %v13934_v59 = vld [vmem:[#allocation2 + $0x228] sm:$0xff] }
 0x2b9   : > { %1920 = vst.msk [vmem:[#allocation2 + $0x230] sm:$0xff] %vm250_vm2, %v1888_v51  ;;  %v1522_v38 = vadd.f32 %v1521_v29, %v1309_v17  ;;  %v1312_v53 = vpop.f32.mrf.mxu2 }
 0x2ba   : > { %v13920_v26 = vpop.f32.mrf.mxu1 }
 0x2bb   : > { %v1823_v25 = vadd.f32 %v1767_v5, %v1522_v38  ;;  %v1770_v3 = vpop.f32.mrf.mxu0 }
 0x2bd   : > { %11557 = vmatmul.msk.f32.gmra.mxu1 %vm250_vm2, %v13922_v40  ;;  %v1857_v7 = vadd.f32 %v13696_v39, %v1823_v25  ;;  %11612 = vmatmul.msk.f32.gmra.mxu3 %vm250_vm2, %v13792_v28 }
 0x2be   : > { %11579 = vmatmul.msk.f32.gmra.mxu2 %vm250_vm2, %v13759_v14 }
 0x2bf   : > { %v1889_v13 = vmax.f32 %v1857_v7, 0.0 }
 0x2c0   : > { %v1524_v51 = vpop.f32.mrf.mxu3  ;;  %v13946_v36 = vld [vmem:[#allocation2 + $0x230] sm:$0xff] }
 0x2c1   : > { %1921 = vst.msk [vmem:[#allocation2 + $0x248] sm:$0xff] %vm250_vm2, %v1889_v13  ;;  %v1525_v17 = vadd.f32 %v1524_v51, %v1312_v53  ;;  %v1315_v7 = vpop.f32.mrf.mxu2 }
 0x2c2   : > { %v13932_v29 = vpop.f32.mrf.mxu1 }
 0x2c3   : > { %v1824_v41 = vadd.f32 %v1770_v3, %v1525_v17  ;;  %v1773_v5 = vpop.f32.mrf.mxu0 }
 0x2c5   : > { %11558 = vmatmul.msk.f32.gmra.mxu1 %vm250_vm2, %v13934_v59  ;;  %v1858_v38 = vadd.f32 %v13696_v39, %v1824_v41  ;;  %11613 = vmatmul.msk.f32.gmra.mxu3 %vm250_vm2, %v13803_v32 }
 0x2c6   : > { %11580 = vmatmul.msk.f32.gmra.mxu2 %vm250_vm2, %v13770_v23 }
 0x2c7   : > { %v1890_v25 = vmax.f32 %v1858_v38, 0.0 }
 0x2c8   : > { %v1527_v13 = vpop.f32.mrf.mxu3  ;;  %v13958_v62 = vld [vmem:[#allocation2 + $0x248] sm:$0xff] }
 0x2c9   : > { %1922 = vst.msk [vmem:[#allocation2 + $0x250] sm:$0xff] %vm250_vm2, %v1890_v25  ;;  %v1528_v53 = vadd.f32 %v1527_v13, %v1315_v7  ;;  %v1318_v38 = vpop.f32.mrf.mxu2 }
 0x2ca   : > { %v13944_v51 = vpop.f32.mrf.mxu1 }
 0x2cb   : > { %v1825_v14 = vadd.f32 %v1773_v5, %v1528_v53  ;;  %v1776_v3 = vpop.f32.mrf.mxu0 }
 0x2cd   : > { %11559 = vmatmul.msk.f32.gmra.mxu1 %vm250_vm2, %v13946_v36  ;;  %v1859_v17 = vadd.f32 %v13696_v39, %v1825_v14  ;;  %11614 = vmatmul.msk.f32.gmra.mxu3 %vm250_vm2, %v13825_v52 }
 0x2ce   : > { %11581 = vmatmul.msk.f32.gmra.mxu2 %vm250_vm2, %v13781_v45 }
 0x2cf   : > { %v1891_v41 = vmax.f32 %v1859_v17, 0.0 }
 0x2d0   : > { %v1530_v25 = vpop.f32.mrf.mxu3  ;;  %v13970_v16 = vld [vmem:[#allocation2 + $0x250] sm:$0xff] }
 0x2d1   : > { %1923 = vst.msk [vmem:[#allocation2 + $0x268] sm:$0xff] %vm250_vm2, %v1891_v41  ;;  %v1531_v7 = vadd.f32 %v1530_v25, %v1318_v38  ;;  %v1321_v17 = vpop.f32.mrf.mxu2 }
 0x2d2   : > { %v13956_v13 = vpop.f32.mrf.mxu1 }
 0x2d3   : > { %v1826_v23 = vadd.f32 %v1776_v3, %v1531_v7  ;;  %v1779_v5 = vpop.f32.mrf.mxu0 }
 0x2d5   : > { %11560 = vmatmul.msk.f32.gmra.mxu1 %vm250_vm2, %v13958_v62  ;;  %v1860_v53 = vadd.f32 %v13696_v39, %v1826_v23  ;;  %11615 = vmatmul.msk.f32.gmra.mxu3 %vm250_vm2, %v13836_v24 }
 0x2d6   : > { %11582 = vmatmul.msk.f32.gmra.mxu2 %vm250_vm2, %v13792_v28 }
 0x2d7   : > { %v1892_v14 = vmax.f32 %v1860_v53, 0.0 }
 0x2d8   : > { %v1533_v41 = vpop.f32.mrf.mxu3  ;;  %v13982_v35 = vld [vmem:[#allocation2 + $0x268] sm:$0xff] }
 0x2d9   : > { %1924 = vst.msk [vmem:[#allocation2 + $0x270] sm:$0xff] %vm250_vm2, %v1892_v14  ;;  %v1534_v38 = vadd.f32 %v1533_v41, %v1321_v17  ;;  %v1324_v53 = vpop.f32.mrf.mxu2 }
 0x2da   : > { %v13968_v25 = vpop.f32.mrf.mxu1 }
 0x2db   : > { %v1827_v45 = vadd.f32 %v1779_v5, %v1534_v38  ;;  %v1782_v3 = vpop.f32.mrf.mxu0 }
 0x2dd   : > { %11561 = vmatmul.msk.f32.gmra.mxu1 %vm250_vm2, %v13970_v16  ;;  %v1861_v7 = vadd.f32 %v13696_v39, %v1827_v45  ;;  %11616 = vmatmul.msk.f32.gmra.mxu3 %vm250_vm2, %v13847_v19 }
 0x2de   : > { %11583 = vmatmul.msk.f32.gmra.mxu2 %vm250_vm2, %v13803_v32 }
 0x2df   : > { %v1893_v23 = vmax.f32 %v1861_v7, 0.0 }
 0x2e0   : > { %v1536_v14 = vpop.f32.mrf.mxu3  ;;  %v13994_v15 = vld [vmem:[#allocation2 + $0x270] sm:$0xff] }
 0x2e1   : > { %1925 = vst.msk [vmem:[#allocation2 + $0x288] sm:$0xff] %vm250_vm2, %v1893_v23  ;;  %v1537_v17 = vadd.f32 %v1536_v14, %v1324_v53  ;;  %v1327_v7 = vpop.f32.mrf.mxu2 }
 0x2e2   : > { %v13980_v41 = vpop.f32.mrf.mxu1 }
 0x2e3   : > { %v1828_v28 = vadd.f32 %v1782_v3, %v1537_v17  ;;  %v1785_v5 = vpop.f32.mrf.mxu0 }
 0x2e5   : > { %11562 = vmatmul.msk.f32.gmra.mxu1 %vm250_vm2, %v13982_v35  ;;  %v1862_v38 = vadd.f32 %v13696_v39, %v1828_v28  ;;  %11617 = vmatmul.msk.f32.gmra.mxu3 %vm250_vm2, %v13858_v56  ;;  %v11741_v28 = vld [vmem:[%s18820_s3 + $0x12] sm:$0x3] }
 0x2e6   : > { %11584 = vmatmul.msk.f32.gmra.mxu2 %vm250_vm2, %v13825_v52  ;;  %11742 = vmatpush.msk.msrb.mxu3 %vm789_vm1, %v11741_v28 }
 0x2e7   : > { %v1894_v45 = vmax.f32 %v1862_v38, 0.0 }
 0x2e8   : > { %v1539_v23 = vpop.f32.mrf.mxu3  ;;  %v14010_v52 = vld [vmem:[#allocation2 + $0x288] sm:$0xff] }
 0x2e9   : > { %1926 = vst.msk [vmem:[#allocation2 + $0x290] sm:$0xff] %vm250_vm2, %v1894_v45  ;;  %v1540_v53 = vadd.f32 %v1539_v23, %v1327_v7  ;;  %v1330_v45 = vpop.f32.mrf.mxu2 }
 0x2ea   : > { %v13992_v14 = vpop.f32.mrf.mxu1 }
 0x2eb   : > { %v1829_v32 = vadd.f32 %v1785_v5, %v1540_v53  ;;  %v1788_v3 = vpop.f32.mrf.mxu0 }
 0x2ed   : > { %11563 = vmatmul.msk.f32.gmra.mxu1 %vm250_vm2, %v13994_v15  ;;  %v1863_v17 = vadd.f32 %v13696_v39, %v1829_v32  ;;  %11618 = vmatmul.msk.f32.gmra.mxu3 %vm250_vm2, %v13872_v11 }
 0x2ee   : > { %11585 = vmatmul.msk.f32.gmra.mxu2 %vm250_vm2, %v13836_v24 }
 0x2ef   : > { %v1895_v38 = vmax.f32 %v1863_v17, 0.0  ;;  %v2838_v17 = vld [vmem:[#allocation2 + $0xa8] sm:$0xff] }
 0x2f0   : > { %v1542_v7 = vpop.f32.mrf.mxu3  ;;  %11642 = vmatmul.msk.f32.vlgmr.msra.gmra.mxu0 %vm250_vm2, %v2838_v17 }
 0x2f1   : > { %1927 = vst.msk [vmem:[#allocation2 + $0x2a8] sm:$0xff] %vm250_vm2, %v1895_v38  ;;  %v1543_v5 = vadd.f32 %v1542_v7, %v1330_v45  ;;  %v11775_v38 = vld [vmem:[%s18820_s3 + $0x14] sm:$0x3] }
 0x2f2   : > { %v14008_v23 = vpop.f32.mrf.mxu1  ;;  %11776 = vmatpush.msk.msrb.mxu0 %vm789_vm1, %v11775_v38  ;;  %v2839_v38 = vld [vmem:[#allocation2 + $0xb0] sm:$0xff] }
 0x2f3   : > { %v1830_v53 = vadd.f32 %v1788_v3, %v1543_v5  ;;  %v1791_v32 = vpop.f32.mrf.mxu0  ;;  %v1333_v3 = vpop.f32.mrf.mxu2 }
 0x2f5   : > { %11564 = vmatmul.msk.f32.gmra.mxu1 %vm250_vm2, %v14010_v52  ;;  %v1864_v28 = vadd.f32 %v13696_v39, %v1830_v53  ;;  %11619 = vmatmul.msk.f32.gmra.mxu3 %vm250_vm2, %v13886_v47  ;;  %v14027_v53 = vld [vmem:[#allocation2 + $0x290] sm:$0xff] }
 0x2f6   : > { %11586 = vmatmul.msk.f32.gmra.mxu2 %vm250_vm2, %v13847_v19 }
 0x2f7   : > { %v1896_v45 = vmax.f32 %v1864_v28, 0.0 }
 0x2f8   : > { %v1545_v7 = vpop.f32.mrf.mxu3  ;;  %11643 = vmatmul.msk.f32.gmra.mxu0 %vm250_vm2, %v2839_v38 }
 0x2f9   : > { %1928 = vst.msk [vmem:[#allocation2 + $0x2b0] sm:$0xff] %vm250_vm2, %v1896_v45  ;;  %v1546_v24 = vadd.f32 %v1545_v7, %v1333_v3 }
 0x2fa   : > { %v14025_v5 = vpop.f32.mrf.mxu1 }
 0x2fb   : > { %v1831_v58 = vadd.f32 %v1791_v32, %v1546_v24  ;;  %v1794_v17 = vpop.f32.mrf.mxu0  ;;  %v1336_v3 = vpop.f32.mrf.mxu2  ;;  %v14040_v32 = vld [vmem:[#allocation2 + $0x2a8] sm:$0xff] }
 0x2fc   : > { %v2840_v24 = vld [vmem:[#allocation2 + $0xc8] sm:$0xff] }
 0x2fd   : > { %11565 = vmatmul.msk.f32.gmra.mxu1 %vm250_vm2, %v14027_v53  ;;  %v1865_v28 = vadd.f32 %v13696_v39, %v1831_v58  ;;  %11620 = vmatmul.msk.f32.gmra.mxu3 %vm250_vm2, %v13898_v44 }
 0x2fe   : > { %11587 = vmatmul.msk.f32.gmra.mxu2 %vm250_vm2, %v13858_v56 }
 0x2ff   : > { %v1897_v45 = vmax.f32 %v1865_v28, 0.0 }
 0x300   : > { %v1548_v7 = vpop.f32.mrf.mxu3  ;;  %11644 = vmatmul.msk.f32.gmra.mxu0 %vm250_vm2, %v2840_v24 }
 0x301   : > { %1929 = vst.msk [vmem:[#allocation2 + $0x2c8] sm:$0xff] %vm250_vm2, %v1897_v45  ;;  %v1549_v31 = vadd.f32 %v1548_v7, %v1336_v3 }
 0x302   : > { %v14038_v55 = vpop.f32.mrf.mxu1 }
 0x303   : > { %v1832_v19 = vadd.f32 %v1794_v17, %v1549_v31  ;;  %v1797_v28 = vpop.f32.mrf.mxu0  ;;  %v1339_v45 = vpop.f32.mrf.mxu2  ;;  %v14053_v31 = vld [vmem:[#allocation2 + $0x2b0] sm:$0xff] }
 0x305   : > { %11566 = vmatmul.msk.f32.gmra.mxu1 %vm250_vm2, %v14040_v32  ;;  %v1866_v58 = vadd.f32 %v13696_v39, %v1832_v19  ;;  %11621 = vmatmul.msk.f32.gmra.mxu3 %vm250_vm2, %v13910_v61  ;;  %v2841_v19 = vld [vmem:[#allocation2 + $0xd0] sm:$0xff] }
 0x306   : > { %11588 = vmatmul.msk.f32.gmra.mxu2 %vm250_vm2, %v13872_v11 }
 0x307   : > { %v1898_v38 = vmax.f32 %v1866_v58, 0.0 }
 0x308   : > { %v1551_v3 = vpop.f32.mrf.mxu3  ;;  %11645 = vmatmul.msk.f32.gmra.mxu0 %vm250_vm2, %v2841_v19 }
 0x309   : > { %1930 = vst.msk [vmem:[#allocation2 + $0x2d0] sm:$0xff] %vm250_vm2, %v1898_v38  ;;  %v1552_v7 = vadd.f32 %v1551_v3, %v1339_v45 }
 0x30a   : > { %v14051_v54 = vpop.f32.mrf.mxu1 }
 0x30b   : > { %v1833_v56 = vadd.f32 %v1797_v28, %v1552_v7  ;;  %v1342_v24 = vpop.f32.mrf.mxu2  ;;  %v14066_v28 = vld [vmem:[#allocation2 + $0x2c8] sm:$0xff]  ;;  %v1800_v7 = vpop.f32.mrf.mxu0 }
 0x30d   : > { %11567 = vmatmul.msk.f32.gmra.mxu1 %vm250_vm2, %v14053_v31  ;;  %v1867_v17 = vadd.f32 %v13696_v39, %v1833_v56  ;;  %11622 = vmatmul.msk.f32.gmra.mxu3 %vm250_vm2, %v13922_v40 }
 0x30e   : > { %11589 = vmatmul.msk.f32.gmra.mxu2 %vm250_vm2, %v13886_v47 }
 0x30f   : > { %v1899_v58 = vmax.f32 %v1867_v17, 0.0 }
 0x310   : > { %v1554_v38 = vpop.f32.mrf.mxu3  ;;  %11646 = vmatmul.msk.f32.gmra.mxu0 %vm250_vm2, %v13860_v30 }
 0x311   : > { %1931 = vst.msk [vmem:[#allocation2 + $0x2e8] sm:$0xff] %vm250_vm2, %v1899_v58  ;;  %v1555_v45 = vadd.f32 %v1554_v38, %v1342_v24  ;;  %v14082_v38 = vld [vmem:[%s18821_s4 + $0x1] ss:$0 sm:$0xff] }
 0x312   : > { %v14064_v3 = vpop.f32.mrf.mxu1 }
 0x313   : > { %v1834_v11 = vadd.f32 %v1800_v7, %v1555_v45  ;;  %v2330_v19 = vpop.f32.mrf.mxu2 }
 0x314   : > { %v2331_v24 = vadd.f32 %v2330_v19, %v13908_v63 }
 0x315   : > { %11568 = vmatmul.msk.f32.gmra.mxu1 %vm250_vm2, %v14066_v28  ;;  %v1868_v56 = vadd.f32 %v13696_v39, %v1834_v11  ;;  %11623 = vmatmul.msk.f32.gmra.mxu3 %vm250_vm2, %v13934_v59  ;;  %v14086_v39 = vld [vmem:[#allocation2 + $0x2d0] sm:$0xff] }
 0x316   : > { %11590 = vmatmul.msk.f32.gmra.mxu2 %vm250_vm2, %v13898_v44 }
 0x317   : > { %v1900_v17 = vmax.f32 %v1868_v56, 0.0 }
 0x318   : > { %v2577_v58 = vpop.f32.mrf.mxu3  ;;  %11647 = vmatmul.msk.f32.gmra.mxu0 %vm250_vm2, %v13874_v37  ;;  %v14101_v19 = vld [vmem:[#allocation2 + $0x2e8] sm:$0xff] }
 0x319   : > { %1932 = vst.msk [vmem:[#allocation2 + $0x2f0] sm:$0xff] %vm250_vm2, %v1900_v17  ;;  %v2673_v30 = vadd.f32 %v2577_v58, %v2331_v24 }
 0x31a   : > { %v14084_v47 = vpop.f32.mrf.mxu1 }
 0x31b   : > { %v2707_v63 = vadd.f32 %v14082_v38, %v2673_v30  ;;  %v2333_v7 = vpop.f32.mrf.mxu2 }
 0x31c   : > { %v2334_v56 = vadd.f32 %v2333_v7, %v13920_v26 }
 0x31d   : > { %11569 = vmatmul.msk.f32.gmra.mxu1 %vm250_vm2, %v14086_v39  ;;  %11624 = vmatmul.msk.f32.gmra.mxu3 %vm250_vm2, %v13946_v36  ;;  %v2739_v45 = vmax.f32 %v2707_v63, 0.0 }
 0x31e   : > { %11591 = vmatmul.msk.f32.gmra.mxu2 %vm250_vm2, %v13910_v61 }
 0x31f   : > { %2771 = vst.msk [vmem:[#allocation2 + $0x108] sm:$0xff] %vm250_vm2, %v2739_v45 }
 0x320   : > { %v2580_v11 = vpop.f32.mrf.mxu3  ;;  %v14118_v61 = vld [vmem:[#allocation2 + $0x2f0] sm:$0xff] }
 0x321   : > { %v2674_v44 = vadd.f32 %v2580_v11, %v2334_v56 }
 0x322   : > { %v14099_v17 = vpop.f32.mrf.mxu1 }
 0x323   : > { %v2708_v37 = vadd.f32 %v14082_v38, %v2674_v44  ;;  %v2336_v26 = vpop.f32.mrf.mxu2 }
 0x324   : > { %v2337_v63 = vadd.f32 %v2336_v26, %v13932_v29 }
 0x325   : > { %11570 = vmatmul.msk.f32.gmra.mxu1 %vm250_vm2, %v14101_v19  ;;  %11625 = vmatmul.msk.f32.gmra.mxu3 %vm250_vm2, %v13958_v62  ;;  %v2740_v58 = vmax.f32 %v2708_v37, 0.0 }
 0x326   : > { %v14110_v24 = vld [vmem:[#allocation2 + $0x108] sm:$0xff]  ;;  %11592 = vmatmul.msk.f32.gmra.mxu2 %vm250_vm2, %v13922_v40 }
 0x327   : > { %2772 = vst.msk [vmem:[#allocation2 + $0x110] sm:$0xff] %vm250_vm2, %v2740_v58  ;;  %11648 = vmatmul.msk.f32.gmra.mxu0 %vm250_vm2, %v14110_v24 }
 0x328   : > { %v2583_v30 = vpop.f32.mrf.mxu3 }
 0x329   : > { %v2675_v7 = vadd.f32 %v2583_v30, %v2337_v63  ;;  %v14139_v63 = vld [vmem:[#allocation2 + $0x105] sm:$0xff] }
 0x32a   : > { %v14116_v45 = vpop.f32.mrf.mxu1 }
 0x32b   : > { %v2709_v11 = vadd.f32 %v14082_v38, %v2675_v7  ;;  %v2339_v56 = vpop.f32.mrf.mxu2 }
 0x32c   : > { %v2340_v30 = vadd.f32 %v2339_v56, %v13944_v51 }
 0x32d   : > { %11571 = vmatmul.msk.f32.gmra.mxu1 %vm250_vm2, %v14118_v61  ;;  %11626 = vmatmul.msk.f32.gmra.mxu3 %vm250_vm2, %v13970_v16  ;;  %v2741_v29 = vmax.f32 %v2709_v11, 0.0  ;;  %v5526_v11 = vpop.permute.xlu2 %5525 }
 0x32e   : > { %v14127_v44 = vld [vmem:[#allocation2 + $0x110] sm:$0xff]  ;;  %11593 = vmatmul.msk.f32.gmra.mxu2 %vm250_vm2, %v13934_v59 }
 0x32f   : > { %v14129_v58 = vld [vmem:[#allocation2 + $0x10d] sm:$0xff]  ;;  %2773 = vst.msk [vmem:[#allocation2 + $0x128] sm:$0xff] %vm250_vm2, %v2741_v29  ;;  %11649 = vmatmul.msk.f32.gmra.mxu0 %vm250_vm2, %v14127_v44 }
 0x330   : > { %v2586_v37 = vpop.f32.mrf.mxu3  ;;  %v14131_v26 = vld [vmem:[#allocation2 + $0x10b] sm:$0xff]  ;;  %v14141_v7 = vld [vmem:[#allocation2 + $0x113] sm:$0xff] }
 0x331   : > { %5619 = vst.msk [vmem:[#allocation2 + $0x108] sm:$0xff] %vm250_vm2, %v5524_v49  ;;  %v2676_v22 = vadd.f32 %v2586_v37, %v2340_v30  ;;  %v2805_v37 = vld [vmem:[#allocation2 + $0xad] sm:$0xff] }
 0x332   : > { %v14137_v40 = vpop.f32.mrf.mxu1  ;;  %5620 = vst.msk [vmem:[#allocation2 + $0x110] sm:$0xff] %vm250_vm2, %v5526_v11 }
 0x333   : > { %v2710_v51 = vadd.f32 %v14082_v38, %v2676_v22  ;;  %v2342_v56 = vpop.f32.mrf.mxu2 }
 0x334   : > { %v2343_v49 = vadd.f32 %v2342_v56, %v13956_v13 }
 0x335   : > { %11627 = vmatmul.msk.f32.gmra.mxu3 %vm250_vm2, %v13982_v35  ;;  %11675 = vmatmul.msk.f32.vlgmr.msra.gmra.mxu1 %vm250_vm2, %v2804_v8  ;;  %v2742_v29 = vmax.f32 %v2710_v51, 0.0 }
 0x336   : > { %v14151_v9 = vld [vmem:[#allocation2 + $0x128] sm:$0xff]  ;;  %11594 = vmatmul.msk.f32.gmra.mxu2 %vm250_vm2, %v13946_v36 }
 0x337   : > { %2774 = vst.msk [vmem:[#allocation2 + $0x130] sm:$0xff] %vm250_vm2, %v2742_v29  ;;  %11650 = vmatmul.msk.f32.gmra.mxu0 %vm250_vm2, %v14151_v9 }
 0x338   : > { %v2589_v33 = vpop.f32.mrf.mxu3 }
 0x339   : > { %v2677_v22 = vadd.f32 %v2589_v33, %v2343_v49  ;;  %v5528_v33 = vpop.permute.xlu0 %5527 }
 0x33a   : > { %v14157_v59 = vpop.f32.mrf.mxu1 }
 0x33b   : > { %v2711_v8 = vadd.f32 %v14082_v38, %v2677_v22  ;;  %v2345_v30 = vpop.f32.mrf.mxu2  ;;  %v14177_v22 = vld [vmem:[#allocation2 + $0x125] sm:$0xff] }
 0x33c   : > { %v2346_v49 = vadd.f32 %v2345_v30, %v13968_v25 }
 0x33d   : > { %11628 = vmatmul.msk.f32.gmra.mxu3 %vm250_vm2, %v13994_v15  ;;  %11676 = vmatmul.msk.f32.gmra.mxu1 %vm250_vm2, %v2805_v37  ;;  %v2743_v13 = vmax.f32 %v2711_v8, 0.0  ;;  %v5530_v8 = vpop.permute.xlu1 %5529 }
 0x33e   : > { %v14165_v11 = vld [vmem:[#allocation2 + $0x130] sm:$0xff]  ;;  %11595 = vmatmul.msk.f32.gmra.mxu2 %vm250_vm2, %v13958_v62 }
 0x33f   : > { %v14167_v29 = vld [vmem:[#allocation2 + $0x12d] sm:$0xff]  ;;  %2775 = vst.msk [vmem:[#allocation2 + $0x148] sm:$0xff] %vm250_vm2, %v2743_v13  ;;  %11651 = vmatmul.msk.f32.gmra.mxu0 %vm250_vm2, %v14165_v11 }
 0x340   : > { %v2592_v51 = vpop.f32.mrf.mxu3  ;;  %v14169_v56 = vld [vmem:[#allocation2 + $0x12b] sm:$0xff]  ;;  %v14179_v37 = vld [vmem:[#allocation2 + $0x133] sm:$0xff] }
 0x341   : > { %5621 = vst.msk [vmem:[#allocation2 + $0x128] sm:$0xff] %vm250_vm2, %v5528_v33  ;;  %v2678_v20 = vadd.f32 %v2592_v51, %v2346_v49  ;;  %v2807_v33 = vld [vmem:[#allocation2 + $0xcd] sm:$0xff] }
 0x342   : > { %v14175_v36 = vpop.f32.mrf.mxu1  ;;  %5622 = vst.msk [vmem:[#allocation2 + $0x130] sm:$0xff] %vm250_vm2, %v5530_v8 }
 0x343   : > { %v2712_v25 = vadd.f32 %v14082_v38, %v2678_v20  ;;  %v2348_v30 = vpop.f32.mrf.mxu2 }
 0x344   : > { %v2349_v51 = vadd.f32 %v2348_v30, %v13980_v41 }
 0x345   : > { %11629 = vmatmul.msk.f32.gmra.mxu3 %vm250_vm2, %v14010_v52  ;;  %11677 = vmatmul.msk.f32.gmra.mxu1 %vm250_vm2, %v2806_v1  ;;  %v2744_v13 = vmax.f32 %v2712_v25, 0.0 }
 0x346   : > { %v14189_v6 = vld [vmem:[#allocation2 + $0x148] sm:$0xff]  ;;  %11596 = vmatmul.msk.f32.gmra.mxu2 %vm250_vm2, %v13970_v16 }
 0x347   : > { %2776 = vst.msk [vmem:[#allocation2 + $0x150] sm:$0xff] %vm250_vm2, %v2744_v13  ;;  %11652 = vmatmul.msk.f32.gmra.mxu0 %vm250_vm2, %v14189_v6 }
 0x348   : > { %v2595_v18 = vpop.f32.mrf.mxu3 }
 0x349   : > { %v2679_v20 = vadd.f32 %v2595_v18, %v2349_v51  ;;  %v5532_v18 = vpop.permute.xlu2 %5531 }
 0x34a   : > { %v14195_v62 = vpop.f32.mrf.mxu1 }
 0x34b   : > { %v2713_v1 = vadd.f32 %v14082_v38, %v2679_v20  ;;  %v2351_v49 = vpop.f32.mrf.mxu2  ;;  %v14215_v20 = vld [vmem:[#allocation2 + $0x145] sm:$0xff] }
 0x34c   : > { %v2352_v51 = vadd.f32 %v2351_v49, %v13992_v14 }
 0x34d   : > { %11630 = vmatmul.msk.f32.gmra.mxu3 %vm250_vm2, %v14027_v53  ;;  %11678 = vmatmul.msk.f32.gmra.mxu1 %vm250_vm2, %v2807_v33  ;;  %v2745_v41 = vmax.f32 %v2713_v1, 0.0  ;;  %v5534_v1 = vpop.permute.xlu0 %5533 }
 0x34e   : > { %v14203_v8 = vld [vmem:[#allocation2 + $0x150] sm:$0xff]  ;;  %11597 = vmatmul.msk.f32.gmra.mxu2 %vm250_vm2, %v13982_v35 }
 0x34f   : > { %v14205_v13 = vld [vmem:[#allocation2 + $0x14d] sm:$0xff]  ;;  %2777 = vst.msk [vmem:[#allocation2 + $0x168] sm:$0xff] %vm250_vm2, %v2745_v41  ;;  %11653 = vmatmul.msk.f32.gmra.mxu0 %vm250_vm2, %v14203_v8 }
 0x350   : > { %v2598_v25 = vpop.f32.mrf.mxu3  ;;  %v14207_v30 = vld [vmem:[#allocation2 + $0x14b] sm:$0xff]  ;;  %v14217_v33 = vld [vmem:[#allocation2 + $0x153] sm:$0xff] }
 0x351   : > { %5623 = vst.msk [vmem:[#allocation2 + $0x148] sm:$0xff] %vm250_vm2, %v5532_v18  ;;  %v2680_v2 = vadd.f32 %v2598_v25, %v2352_v51  ;;  %v2809_v18 = vld [vmem:[#allocation2 + $0xed] sm:$0xff]  ;;  %v5538_v46 = vpop.permute.xlu2 %5537 }
 0x352   : > { %v14213_v16 = vpop.f32.mrf.mxu1  ;;  %5624 = vst.msk [vmem:[#allocation2 + $0x150] sm:$0xff] %vm250_vm2, %v5534_v1 }
 0x353   : > { %v2714_v14 = vadd.f32 %v14082_v38, %v2680_v2  ;;  %v2354_v49 = vpop.f32.mrf.mxu2 }
 0x354   : > { %v2355_v25 = vadd.f32 %v2354_v49, %v14008_v23 }
 0x355   : > { %11631 = vmatmul.msk.f32.gmra.mxu3 %vm250_vm2, %v14040_v32  ;;  %11679 = vmatmul.msk.f32.gmra.mxu1 %vm250_vm2, %v2808_v4  ;;  %v2746_v41 = vmax.f32 %v2714_v14, 0.0  ;;  %v5540_v12 = vpop.permute.xlu0 %5539 }
 0x356   : > { %v14227_v57 = vld [vmem:[#allocation2 + $0x168] sm:$0xff]  ;;  %11598 = vmatmul.msk.f32.gmra.mxu2 %vm250_vm2, %v13994_v15  ;;  %v5536_v15 = vpop.permute.xlu1 %5535 }
 0x357   : > { %19009 = vst [vmem:[#allocation70_spill] sm:$0xff] %v14227_v57  ;;  %11654 = vmatmul.msk.f32.gmra.mxu0 %vm250_vm2, %v14227_v57  ;;  %v14241_v51 = vld [vmem:[#allocation2 + $0x165] sm:$0xff] }
 0x358   : > { %v2601_v60 = vpop.f32.mrf.mxu3  ;;  %2778 = vst.msk [vmem:[#allocation2 + $0x170] sm:$0xff] %vm250_vm2, %v2746_v41  ;;  %v14243_v1 = vld [vmem:[#allocation2 + $0x168] sm:$0xff] }
 0x359   : > { %v2681_v2 = vadd.f32 %v2601_v60, %v2355_v25  ;;  %19010 = vst [vmem:[#allocation71_spill] sm:$0xff] %v14241_v51 }
 0x35a   : > { %v14233_v35 = vpop.f32.mrf.mxu1  ;;  %19011 = vst [vmem:[#allocation72_spill] sm:$0xff] %v14243_v1 }
 0x35b   : > { %v2715_v4 = vadd.f32 %v14082_v38, %v2681_v2  ;;  %v2357_v14 = vpop.f32.mrf.mxu2 }
 0x35c   : > { %v2358_v2 = vadd.f32 %v2357_v14, %v14025_v5 }
 0x35d   : > { %11632 = vmatmul.msk.f32.gmra.mxu3 %vm250_vm2, %v14053_v31  ;;  %11680 = vmatmul.msk.f32.gmra.mxu1 %vm250_vm2, %v2809_v18  ;;  %v2747_v23 = vmax.f32 %v2715_v4, 0.0 }
 0x35e   : > { %11599 = vmatmul.msk.f32.gmra.mxu2 %vm250_vm2, %v14010_v52 }
 0x35f   : > { %v14245_v41 = vld [vmem:[#allocation2 + $0x170] sm:$0xff]  ;;  %2779 = vst.msk [vmem:[#allocation2 + $0x188] sm:$0xff] %vm250_vm2, %v2747_v23 }
 0x360   : > { %19012 = vst [vmem:[#allocation73_spill] sm:$0xff] %v14245_v41  ;;  %v2604_v60 = vpop.f32.mrf.mxu3  ;;  %v14247_v49 = vld [vmem:[#allocation2 + $0x16d] sm:$0xff]  ;;  %11655 = vmatmul.msk.f32.gmra.mxu0 %vm250_vm2, %v14245_v41 }
 0x361   : > { %19013 = vst [vmem:[#allocation74_spill] sm:$0xff] %v14247_v49  ;;  %v14249_v25 = vld [vmem:[#allocation2 + $0x16b] sm:$0xff]  ;;  %v14257_v4 = vld [vmem:[#allocation2 + $0x173] sm:$0xff]  ;;  %v2682_v34 = vadd.f32 %v2604_v60, %v2358_v2 }
 0x362   : > { %v14255_v18 = vpop.f32.mrf.mxu1  ;;  %v14259_v48 = vld [vmem:[#allocation2 + $0x170] sm:$0xff] }
 0x363   : > { %19014 = vst [vmem:[#allocation75_spill] sm:$0xff] %v14259_v48  ;;  %v14261_v43 = vld [vmem:[#allocation2 + $0x16b] sm:$0xff]  ;;  %v14264_v42 = vld [vmem:[#allocation2 + $0x173] sm:$0xff]  ;;  %v2716_v5 = vadd.f32 %v14082_v38, %v2682_v34  ;;  %v2360_v14 = vpop.f32.mrf.mxu2 }
 0x364   : > { %19015 = vst [vmem:[#allocation76_spill] sm:$0xff] %v14261_v43  ;;  %v2361_v60 = vadd.f32 %v2360_v14, %v14038_v55 }
 0x365   : > { %5625 = vst.msk [vmem:[#allocation2 + $0x168] sm:$0xff] %vm250_vm2, %v5536_v15  ;;  %11633 = vmatmul.msk.f32.gmra.mxu3 %vm250_vm2, %v14066_v28  ;;  %11681 = vmatmul.msk.f32.gmra.mxu1 %vm250_vm2, %v14139_v63  ;;  %v2748_v23 = vmax.f32 %v2716_v5, 0.0 }
 0x366   : > { %19016 = vst [vmem:[#allocation77_spill] sm:$0xff] %v14264_v42  ;;  %v14274_v50 = vld [vmem:[#allocation2 + $0x188] sm:$0xff]  ;;  %11600 = vmatmul.msk.f32.gmra.mxu2 %vm250_vm2, %v14027_v53 }
 0x367   : > { %5626 = vst.msk [vmem:[#allocation2 + $0x170] sm:$0xff] %vm250_vm2, %v5538_v46  ;;  %v14307_v21 = vld [vmem:[#allocation2 + $0x188] sm:$0xff] }
 0x368   : > { %19017 = vst [vmem:[#allocation78_spill] sm:$0xff] %v14274_v50  ;;  %v2607_v15 = vpop.f32.mrf.mxu3  ;;  %11656 = vmatmul.msk.f32.gmra.mxu0 %vm250_vm2, %v14274_v50 }
 0x369   : > { %2780 = vst.msk [vmem:[#allocation2 + $0x190] sm:$0xff] %vm250_vm2, %v2748_v23  ;;  %v2683_v34 = vadd.f32 %v2607_v15, %v2361_v60  ;;  %v14301_v60 = vld [vmem:[#allocation2 + $0x185] sm:$0xff] }
 0x36a   : > { %v14280_v46 = vpop.f32.mrf.mxu1  ;;  %19020 = vst [vmem:[#allocation81_spill] sm:$0xff] %v14301_v60 }
 0x36b   : > { %v2717_v52 = vadd.f32 %v14082_v38, %v2683_v34  ;;  %v2363_v2 = vpop.f32.mrf.mxu2  ;;  %19022 = vst [vmem:[#allocation83_spill] sm:$0xff] %v14307_v21  ;;  %v5544_v21 = vpop.permute.xlu2 %5543 }
 0x36c   : > { %v2364_v15 = vadd.f32 %v2363_v2, %v14051_v54  ;;  %v5542_v54 = vpop.permute.xlu1 %5541 }
 0x36d   : > { %11634 = vmatmul.msk.f32.gmra.mxu3 %vm250_vm2, %v14086_v39  ;;  %11682 = vmatmul.msk.f32.gmra.mxu1 %vm250_vm2, %v14129_v58  ;;  %v2749_v55 = vmax.f32 %v2717_v52, 0.0  ;;  %v14313_v2 = vpop.f32.mrf.mxu0 }
 0x36e   : > { %11601 = vmatmul.msk.f32.gmra.mxu2 %vm250_vm2, %v14040_v32 }
 0x36f   : > { %2781 = vst.msk [vmem:[#allocation2 + $0x1a8] sm:$0xff] %vm250_vm2, %v2749_v55 }
 0x370   : > { %v14289_v5 = vld [vmem:[#allocation2 + $0x190] sm:$0xff]  ;;  %v2610_v23 = vpop.f32.mrf.mxu3 }
 0x371   : > { %19018 = vst [vmem:[#allocation79_spill] sm:$0xff] %v14289_v5  ;;  %v14291_v14 = vld [vmem:[#allocation2 + $0x18d] sm:$0xff]  ;;  %11657 = vmatmul.msk.f32.gmra.mxu0 %vm250_vm2, %v14289_v5  ;;  %v2684_v55 = vadd.f32 %v2610_v23, %v2364_v15 }
 0x372   : > { %19019 = vst [vmem:[#allocation80_spill] sm:$0xff] %v14291_v14  ;;  %v14293_v27 = vld [vmem:[#allocation2 + $0x18b] sm:$0xff]  ;;  %v14299_v53 = vpop.f32.mrf.mxu1  ;;  %v14303_v34 = vld [vmem:[#allocation2 + $0x193] sm:$0xff] }
 0x373   : > { %v14305_v52 = vld [vmem:[#allocation2 + $0x190] sm:$0xff]  ;;  %v2718_v42 = vadd.f32 %v14082_v38, %v2684_v55  ;;  %v2366_v23 = vpop.f32.mrf.mxu2 }
 0x374   : > { %19021 = vst [vmem:[#allocation82_spill] sm:$0xff] %v14305_v52  ;;  %v14309_v0 = vld [vmem:[#allocation2 + $0x18b] sm:$0xff]  ;;  %v14311_v10 = vld [vmem:[#allocation2 + $0x193] sm:$0xff]  ;;  %v2367_v32 = vadd.f32 %v2366_v23, %v14064_v3  ;;  %v5548_v5 = vpop.permute.xlu1 %5547 }
 0x375   : > { %19023 = vst [vmem:[#allocation84_spill] sm:$0xff] %v14309_v0  ;;  %11635 = vmatmul.msk.f32.gmra.mxu3 %vm250_vm2, %v14101_v19  ;;  %11683 = vmatmul.msk.f32.gmra.mxu1 %vm250_vm2, %v14177_v22  ;;  %v11809_v19 = vld [vmem:[%s18820_s3 + $0x16] sm:$0x3] }
 0x376   : > { %19024 = vst [vmem:[#allocation85_spill] sm:$0xff] %v14311_v10  ;;  %v11843_v10 = vld [vmem:[%s18820_s3 + $0x18] sm:$0x3]  ;;  %v14328_v15 = vld [vmem:[#allocation2 + $0x1a8] sm:$0xff]  ;;  %11810 = vmatpush.msk.msrb.mxu1 %vm789_vm1, %v11809_v19  ;;  %11602 = vmatmul.msk.f32.gmra.mxu2 %vm250_vm2, %v14053_v31 }
 0x377   : > { %5627 = vst.msk [vmem:[#allocation2 + $0x188] sm:$0xff] %vm250_vm2, %v5540_v12  ;;  %11844 = vmatpush.msk.msra.mxu2 %vm789_vm1, %v11843_v10  ;;  %v2750_v12 = vmax.f32 %v2718_v42, 0.0  ;;  %v14340_v42 = vpop.f32.mrf.mxu0  ;;  %v14351_v19 = vld [vmem:[#allocation2 + $0x1a5] sm:$0xff] }
 0x378   : > { %5628 = vst.msk [vmem:[#allocation2 + $0x190] sm:$0xff] %vm250_vm2, %v5542_v54  ;;  %v2613_v54 = vpop.f32.mrf.mxu3  ;;  %v14365_v52 = vld [vmem:[#allocation2 + $0x1a8] sm:$0xff] }
 0x379   : > { %19025 = vst [vmem:[#allocation86_spill] sm:$0xff] %v14328_v15  ;;  %11658 = vmatmul.msk.f32.gmra.mxu0 %vm250_vm2, %v14328_v15  ;;  %v2685_v10 = vadd.f32 %v2613_v54, %v2367_v32 }
 0x37a   : > { %2782 = vst.msk [vmem:[#allocation2 + $0x1b0] sm:$0xff] %vm250_vm2, %v2750_v12  ;;  %v14337_v55 = vpop.f32.mrf.mxu1 }
 0x37b   : > { %v2719_v3 = vadd.f32 %v14082_v38, %v2685_v10  ;;  %v2369_v23 = vpop.f32.mrf.mxu2  ;;  %19027 = vst [vmem:[#allocation88_spill] sm:$0xff] %v14351_v19  ;;  %v2457_v10 = vld [vmem:[#allocation2 + $0x308] sm:$0xff] }
 0x37c   : > { %v2370_v31 = vadd.f32 %v2369_v23, %v14084_v47  ;;  %19029 = vst [vmem:[#allocation90_spill] sm:$0xff] %v14365_v52  ;;  %v5546_v47 = vpop.permute.xlu0 %5545 }
 0x37d   : > { %11636 = vmatmul.msk.f32.gmra.mxu3 %vm250_vm2, %v14118_v61  ;;  %11684 = vmatmul.msk.f32.gmra.mxu1 %vm250_vm2, %v14167_v29  ;;  %v2751_v12 = vmax.f32 %v2719_v3, 0.0 }
 0x37e   : > { %11603 = vmatmul.msk.f32.gmra.mxu2 %vm250_vm2, %v14066_v28  ;;  %v2458_v28 = vld [vmem:[#allocation2 + $0x310] sm:$0xff] }
 0x37f   : > { %2783 = vst.msk [vmem:[#allocation2 + $0x1c8] sm:$0xff] %vm250_vm2, %v2751_v12  ;;  %v14373_v12 = vpop.f32.mrf.mxu0 }
 0x380   : > { %v2616_v43 = vpop.f32.mrf.mxu3 }
 0x381   : > { %v14349_v0 = vld [vmem:[#allocation2 + $0x1b0] sm:$0xff]  ;;  %v2686_v23 = vadd.f32 %v2616_v43, %v2370_v31 }
 0x382   : > { %19026 = vst [vmem:[#allocation87_spill] sm:$0xff] %v14349_v0  ;;  %v14353_v54 = vld [vmem:[#allocation2 + $0x1ad] sm:$0xff]  ;;  %11659 = vmatmul.msk.f32.gmra.mxu0 %vm250_vm2, %v14349_v0  ;;  %v14361_v61 = vpop.f32.mrf.mxu1 }
 0x383   : > { %19028 = vst [vmem:[#allocation89_spill] sm:$0xff] %v14353_v54  ;;  %v14355_v32 = vld [vmem:[#allocation2 + $0x1ab] sm:$0xff]  ;;  %v14363_v3 = vld [vmem:[#allocation2 + $0x1b3] sm:$0xff]  ;;  %v2720_v52 = vadd.f32 %v14082_v38, %v2686_v23 }
 0x384   : > { %v14367_v48 = vld [vmem:[#allocation2 + $0x1b0] sm:$0xff] }
 0x385   : > { %19030 = vst [vmem:[#allocation91_spill] sm:$0xff] %v14367_v48  ;;  %v14369_v1 = vld [vmem:[#allocation2 + $0x1ab] sm:$0xff]  ;;  %v14371_v15 = vld [vmem:[#allocation2 + $0x1b3] sm:$0xff]  ;;  %11637 = vmatmul.msk.f32.gmra.mxu3 %vm250_vm2, %v2457_v10  ;;  %11685 = vmatmul.msk.f32.gmra.mxu1 %vm250_vm2, %v14215_v20 }
 0x386   : > { %19031 = vst [vmem:[#allocation92_spill] sm:$0xff] %v14369_v1  ;;  %v2752_v1 = vmax.f32 %v2720_v52, 0.0  ;;  %v14383_v48 = vld [vmem:[#allocation2 + $0x1c8] sm:$0xff]  ;;  %11604 = vmatmul.msk.f32.gmra.mxu2 %vm250_vm2, %v14086_v39 }
 0x387   : > { %19032 = vst [vmem:[#allocation93_spill] sm:$0xff] %v14371_v15  ;;  %v2372_v15 = vpop.f32.mrf.mxu2  ;;  %v14391_v10 = vpop.f32.mrf.mxu0  ;;  %v14417_v50 = vld [vmem:[#allocation2 + $0x1c8] sm:$0xff] }
 0x388   : > { %5629 = vst.msk [vmem:[#allocation2 + $0x1a8] sm:$0xff] %vm250_vm2, %v5544_v21  ;;  %v2619_v43 = vpop.f32.mrf.mxu3  ;;  %v2373_v31 = vadd.f32 %v2372_v15, %v14099_v17  ;;  %v3296_v15 = vld [vmem:[#allocation2 + $0xab] sm:$0xff] }
 0x389   : > { %5630 = vst.msk [vmem:[#allocation2 + $0x1b0] sm:$0xff] %vm250_vm2, %v5546_v47 }
 0x38a   : > { %19033 = vst [vmem:[#allocation94_spill] sm:$0xff] %v14383_v48  ;;  %11660 = vmatmul.msk.f32.gmra.mxu0 %vm250_vm2, %v14383_v48  ;;  %v14389_v21 = vpop.f32.mrf.mxu1  ;;  %v2687_v47 = vadd.f32 %v2619_v43, %v2373_v31 }
 0x38b   : > { %2784 = vst.msk [vmem:[#allocation2 + $0x1d0] sm:$0xff] %vm250_vm2, %v2752_v1 }
 0x38c   : > { %19034 = vst [vmem:[#allocation95_spill] sm:$0xff] %v14391_v10  ;;  %v2721_v52 = vadd.f32 %v14082_v38, %v2687_v47 }
 0x38d   : > { %11638 = vmatmul.msk.f32.gmra.mxu3 %vm250_vm2, %v2458_v28  ;;  %11686 = vmatmul.msk.f32.gmra.mxu1 %vm250_vm2, %v14205_v13  ;;  %v14411_v28 = vld [vmem:[#allocation2 + $0x1c5] sm:$0xff]  ;;  %19040 = vst [vmem:[#allocation101_spill] sm:$0xff] %v14417_v50 }
 0x38e   : > { %v2753_v17 = vmax.f32 %v2721_v52, 0.0  ;;  %19037 = vst [vmem:[#allocation98_spill] sm:$0xff] %v14411_v28  ;;  %11709 = vmatmul.msk.f32.vlgmr.msrb.gmra.mxu2 %vm250_vm2, %v3296_v15  ;;  %v3297_v15 = vld [vmem:[#allocation2 + $0xb3] sm:$0xff] }
 0x38f   : > { %v2375_v1 = vpop.f32.mrf.mxu2 }
 0x390   : > { %v2622_v48 = vpop.f32.mrf.mxu3  ;;  %v2376_v31 = vadd.f32 %v2375_v1, %v14116_v45  ;;  %2785 = vst.msk [vmem:[#allocation2 + $0x1e8] sm:$0xff] %vm250_vm2, %v2753_v17  ;;  %v5550_v45 = vpop.permute.xlu2 %5549 }
 0x391   : > { %v14423_v1 = vpop.f32.mrf.mxu0 }
 0x392   : > { %v14399_v23 = vld [vmem:[#allocation2 + $0x1d0] sm:$0xff]  ;;  %v14409_v39 = vpop.f32.mrf.mxu1  ;;  %v2688_v17 = vadd.f32 %v2622_v48, %v2376_v31  ;;  %19043 = vst [vmem:[#allocation104_spill] sm:$0xff] %v14423_v1  ;;  %v5554_v1 = vpop.permute.xlu1 %5553 }
 0x393   : > { %19035 = vst [vmem:[#allocation96_spill] sm:$0xff] %v14399_v23  ;;  %v14401_v0 = vld [vmem:[#allocation2 + $0x1cd] sm:$0xff]  ;;  %11661 = vmatmul.msk.f32.gmra.mxu0 %vm250_vm2, %v14399_v23 }
 0x394   : > { %19036 = vst [vmem:[#allocation97_spill] sm:$0xff] %v14401_v0  ;;  %v14403_v43 = vld [vmem:[#allocation2 + $0x1cb] sm:$0xff]  ;;  %v14413_v47 = vld [vmem:[#allocation2 + $0x1d3] sm:$0xff]  ;;  %v2722_v23 = vadd.f32 %v14082_v38, %v2688_v17 }
 0x395   : > { %19038 = vst [vmem:[#allocation99_spill] sm:$0xff] %v14413_v47  ;;  %v14415_v52 = vld [vmem:[#allocation2 + $0x1d0] sm:$0xff]  ;;  %11743 = vmatmul.msk.f32.vlgmr.msrb.gmra.mxu3 %vm250_vm2, %v14139_v63  ;;  %11687 = vmatmul.msk.f32.gmra.mxu1 %vm250_vm2, %v14241_v51 }
 0x396   : > { %19039 = vst [vmem:[#allocation100_spill] sm:$0xff] %v14415_v52  ;;  %v14419_v41 = vld [vmem:[#allocation2 + $0x1cb] sm:$0xff]  ;;  %v14421_v10 = vld [vmem:[#allocation2 + $0x1d3] sm:$0xff]  ;;  %11710 = vmatmul.msk.f32.gmra.mxu2 %vm250_vm2, %v3297_v15 }
 0x397   : > { %19041 = vst [vmem:[#allocation102_spill] sm:$0xff] %v14419_v41  ;;  %v2754_v41 = vmax.f32 %v2722_v23, 0.0  ;;  %v14433_v52 = vld [vmem:[#allocation2 + $0x1e8] sm:$0xff] }
 0x398   : > { %19042 = vst [vmem:[#allocation103_spill] sm:$0xff] %v14421_v10  ;;  %v2378_v10 = vpop.f32.mrf.mxu2  ;;  %v2625_v48 = vpop.f32.mrf.mxu3  ;;  %v3298_v47 = vld [vmem:[#allocation2 + $0xcb] sm:$0xff] }
 0x399   : > { %5631 = vst.msk [vmem:[#allocation2 + $0x1c8] sm:$0xff] %vm250_vm2, %v5548_v5  ;;  %v2379_v31 = vadd.f32 %v2378_v10, %v14137_v40  ;;  %v14441_v63 = vpop.f32.mrf.mxu0  ;;  %v14451_v10 = vld [vmem:[#allocation2 + $0x1e8] sm:$0xff] }
 0x39a   : > { %5632 = vst.msk [vmem:[#allocation2 + $0x1d0] sm:$0xff] %vm250_vm2, %v5550_v45  ;;  %v14439_v5 = vpop.f32.mrf.mxu1 }
 0x39b   : > { %19044 = vst [vmem:[#allocation105_spill] sm:$0xff] %v14433_v52  ;;  %11662 = vmatmul.msk.f32.gmra.mxu0 %vm250_vm2, %v14433_v52  ;;  %v2689_v45 = vadd.f32 %v2625_v48, %v2379_v31 }
 0x39c   : > { %2786 = vst.msk [vmem:[#allocation2 + $0x1f0] sm:$0xff] %vm250_vm2, %v2754_v41  ;;  %v14449_v41 = vld [vmem:[#allocation2 + $0x1e5] sm:$0xff] }
 0x39d   : > { %19045 = vst [vmem:[#allocation106_spill] sm:$0xff] %v14441_v63  ;;  %v2723_v23 = vadd.f32 %v14082_v38, %v2689_v45  ;;  %11744 = vmatmul.msk.f32.gmra.mxu3 %vm250_vm2, %v14129_v58  ;;  %11688 = vmatmul.msk.f32.gmra.mxu1 %vm250_vm2, %v14247_v49  ;;  %v5552_v45 = vpop.permute.xlu0 %5551 }
 0x39e   : > { %19046 = vst [vmem:[#allocation107_spill] sm:$0xff] %v14449_v41  ;;  %11711 = vmatmul.msk.f32.gmra.mxu2 %vm250_vm2, %v3298_v47 }
 0x39f   : > { %v2755_v40 = vmax.f32 %v2723_v23, 0.0  ;;  %19047 = vst [vmem:[#allocation108_spill] sm:$0xff] %v14451_v10 }
 0x3a0   : > { %v2381_v17 = vpop.f32.mrf.mxu2  ;;  %v2628_v48 = vpop.f32.mrf.mxu3 }
 0x3a1   : > { %v2382_v52 = vadd.f32 %v2381_v17, %v14157_v59  ;;  %2787 = vst.msk [vmem:[#allocation2 + $0x208] sm:$0xff] %vm250_vm2, %v2755_v40 }
 0x3a2   : > { %v14463_v58 = vpop.f32.mrf.mxu1 }
 0x3a3   : > { %v14453_v50 = vld [vmem:[#allocation2 + $0x1f0] sm:$0xff]  ;;  %v2690_v59 = vadd.f32 %v2628_v48, %v2382_v52 }
 0x3a4   : > { %19048 = vst [vmem:[#allocation109_spill] sm:$0xff] %v14453_v50  ;;  %v14455_v31 = vld [vmem:[#allocation2 + $0x1ed] sm:$0xff]  ;;  %11663 = vmatmul.msk.f32.gmra.mxu0 %vm250_vm2, %v14453_v50  ;;  %v14479_v17 = vpop.f32.mrf.mxu0 }
 0x3a5   : > { %19049 = vst [vmem:[#allocation110_spill] sm:$0xff] %v14455_v31  ;;  %v14457_v15 = vld [vmem:[#allocation2 + $0x1eb] sm:$0xff]  ;;  %v14465_v23 = vld [vmem:[#allocation2 + $0x1f3] sm:$0xff]  ;;  %v2724_v40 = vadd.f32 %v14082_v38, %v2690_v59  ;;  %11745 = vmatmul.msk.f32.gmra.mxu3 %vm250_vm2, %v14177_v22  ;;  %11689 = vmatmul.msk.f32.gmra.mxu1 %vm250_vm2, %v14301_v60 }
 0x3a6   : > { %19050 = vst [vmem:[#allocation111_spill] sm:$0xff] %v14457_v15  ;;  %v14467_v10 = vld [vmem:[#allocation2 + $0x1f0] sm:$0xff] }
 0x3a7   : > { %19051 = vst [vmem:[#allocation112_spill] sm:$0xff] %v14465_v23  ;;  %v14469_v63 = vld [vmem:[#allocation2 + $0x1eb] sm:$0xff]  ;;  %v14472_v15 = vld [vmem:[#allocation2 + $0x1f3] sm:$0xff] }
 0x3a8   : > { %19052 = vst [vmem:[#allocation113_spill] sm:$0xff] %v14467_v10  ;;  %v2384_v10 = vpop.f32.mrf.mxu2  ;;  %v3299_v22 = vld [vmem:[#allocation2 + $0xd3] sm:$0xff] }
 0x3a9   : > { %19053 = vst [vmem:[#allocation114_spill] sm:$0xff] %v14469_v63  ;;  %v2756_v63 = vmax.f32 %v2724_v40, 0.0  ;;  %v2385_v52 = vadd.f32 %v2384_v10, %v14175_v36  ;;  %11712 = vmatmul.msk.f32.gmra.mxu2 %vm250_vm2, %v3299_v22  ;;  %v14501_v10 = vld [vmem:[#allocation2 + $0x208] sm:$0xff] }
 0x3aa   : > { %5633 = vst.msk [vmem:[#allocation2 + $0x1e8] sm:$0xff] %vm250_vm2, %v5552_v45  ;;  %v14483_v45 = vld [vmem:[#allocation2 + $0x208] sm:$0xff]  ;;  %v14489_v47 = vpop.f32.mrf.mxu1 }
 0x3ab   : > { %19054 = vst [vmem:[#allocation115_spill] sm:$0xff] %v14472_v15  ;;  %v2631_v15 = vpop.f32.mrf.mxu3 }
 0x3ac   : > { %5634 = vst.msk [vmem:[#allocation2 + $0x1f0] sm:$0xff] %vm250_vm2, %v5554_v1  ;;  %11664 = vmatmul.msk.f32.gmra.mxu0 %vm250_vm2, %v14483_v45  ;;  %v2691_v1 = vadd.f32 %v2631_v15, %v2385_v52  ;;  %v14495_v59 = vpop.f32.mrf.mxu0 }
 0x3ad   : > { %19055 = vst [vmem:[#allocation116_spill] sm:$0xff] %v14479_v17  ;;  %11746 = vmatmul.msk.f32.gmra.mxu3 %vm250_vm2, %v14167_v29  ;;  %11690 = vmatmul.msk.f32.gmra.mxu1 %vm250_vm2, %v14291_v14  ;;  %v3300_v17 = vld [vmem:[#allocation2 + $0xeb] sm:$0xff] }
 0x3ae   : > { %19056 = vst [vmem:[#allocation117_spill] sm:$0xff] %v14483_v45  ;;  %v2725_v48 = vadd.f32 %v14082_v38, %v2691_v1  ;;  %v5556_v1 = vpop.permute.xlu2 %5555 }
 0x3af   : > { %2788 = vst.msk [vmem:[#allocation2 + $0x210] sm:$0xff] %vm250_vm2, %v2756_v63  ;;  %v14499_v63 = vld [vmem:[#allocation2 + $0x205] sm:$0xff] }
 0x3b0   : > { %19057 = vst [vmem:[#allocation118_spill] sm:$0xff] %v14495_v59  ;;  %v2757_v36 = vmax.f32 %v2725_v48, 0.0  ;;  %v2387_v40 = vpop.f32.mrf.mxu2  ;;  %v5558_v59 = vpop.permute.xlu0 %5557 }
 0x3b1   : > { %19058 = vst [vmem:[#allocation119_spill] sm:$0xff] %v14501_v10  ;;  %v2388_v29 = vadd.f32 %v2387_v40, %v14195_v62  ;;  %11713 = vmatmul.msk.f32.gmra.mxu2 %vm250_vm2, %v3300_v17  ;;  %v3301_v17 = vld [vmem:[#allocation2 + $0xf3] sm:$0xff] }
 0x3b2   : > { %2789 = vst.msk [vmem:[#allocation2 + $0x228] sm:$0xff] %vm250_vm2, %v2757_v36  ;;  %v14522_v57 = vpop.f32.mrf.mxu1 }
 0x3b3   : > { %v2634_v15 = vpop.f32.mrf.mxu3 }
 0x3b4   : > { %v14529_v36 = vpop.f32.mrf.mxu0 }
 0x3b5   : > { %11747 = vmatmul.msk.f32.gmra.mxu3 %vm250_vm2, %v14215_v20  ;;  %19064 = vst [vmem:[#allocation125_spill] sm:$0xff] %v14529_v36  ;;  %11691 = vmatmul.msk.f32.gmra.mxu1 %vm250_vm2, %v14351_v19 }
 0x3b6   : > { %v14503_v45 = vld [vmem:[#allocation2 + $0x210] sm:$0xff] }
 0x3b7   : > { %19059 = vst [vmem:[#allocation120_spill] sm:$0xff] %v14503_v45  ;;  %v14505_v52 = vld [vmem:[#allocation2 + $0x20d] sm:$0xff]  ;;  %11665 = vmatmul.msk.f32.gmra.mxu0 %vm250_vm2, %v14503_v45  ;;  %v5562_v45 = vpop.permute.xlu2 %5561 }
 0x3b8   : > { %v14507_v22 = vld [vmem:[#allocation2 + $0x20b] sm:$0xff]  ;;  %v14513_v48 = vld [vmem:[#allocation2 + $0x213] sm:$0xff] }
 0x3b9   : > { %19060 = vst [vmem:[#allocation121_spill] sm:$0xff] %v14507_v22  ;;  %v14515_v50 = vld [vmem:[#allocation2 + $0x210] sm:$0xff]  ;;  %v2692_v22 = vadd.f32 %v2634_v15, %v2388_v29  ;;  %11714 = vmatmul.msk.f32.gmra.mxu2 %vm250_vm2, %v3301_v17 }
 0x3ba   : > { %19061 = vst [vmem:[#allocation122_spill] sm:$0xff] %v14515_v50  ;;  %v14517_v10 = vld [vmem:[#allocation2 + $0x20b] sm:$0xff]  ;;  %v14520_v23 = vld [vmem:[#allocation2 + $0x213] sm:$0xff]  ;;  %v14539_v20 = vpop.f32.mrf.mxu1  ;;  %v5560_v50 = vpop.permute.xlu1 %5559 }
 0x3bb   : > { %19062 = vst [vmem:[#allocation123_spill] sm:$0xff] %v14517_v10  ;;  %v2726_v62 = vadd.f32 %v14082_v38, %v2692_v22  ;;  %v2637_v15 = vpop.f32.mrf.mxu3 }
 0x3bc   : > { %5635 = vst.msk [vmem:[#allocation2 + $0x208] sm:$0xff] %vm250_vm2, %v5556_v1  ;;  %v2390_v1 = vpop.f32.mrf.mxu2 }
 0x3bd   : > { %19063 = vst [vmem:[#allocation124_spill] sm:$0xff] %v14520_v23  ;;  %v2758_v40 = vmax.f32 %v2726_v62, 0.0  ;;  %v14533_v23 = vld [vmem:[#allocation2 + $0x228] sm:$0xff]  ;;  %v2391_v29 = vadd.f32 %v2390_v1, %v14213_v16  ;;  %11748 = vmatmul.msk.f32.gmra.mxu3 %vm250_vm2, %v14205_v13  ;;  %v14545_v62 = vpop.f32.mrf.mxu0  ;;  %11692 = vmatmul.msk.f32.gmra.mxu1 %vm250_vm2, %v14353_v54 }
 0x3be   : > { %5636 = vst.msk [vmem:[#allocation2 + $0x210] sm:$0xff] %vm250_vm2, %v5558_v59  ;;  %v14551_v1 = vld [vmem:[#allocation2 + $0x228] sm:$0xff] }
 0x3bf   : > { %19065 = vst [vmem:[#allocation126_spill] sm:$0xff] %v14533_v23  ;;  %11666 = vmatmul.msk.f32.gmra.mxu0 %vm250_vm2, %v14533_v23  ;;  %v2693_v59 = vadd.f32 %v2637_v15, %v2391_v29 }
 0x3c0   : > { %2790 = vst.msk [vmem:[#allocation2 + $0x230] sm:$0xff] %vm250_vm2, %v2758_v40  ;;  %v14549_v40 = vld [vmem:[#allocation2 + $0x225] sm:$0xff] }
 0x3c1   : > { %v2727_v22 = vadd.f32 %v14082_v38, %v2693_v59  ;;  %19066 = vst [vmem:[#allocation127_spill] sm:$0xff] %v14545_v62  ;;  %11715 = vmatmul.msk.f32.gmra.mxu2 %vm250_vm2, %v14131_v26 }
 0x3c2   : > { %19067 = vst [vmem:[#allocation128_spill] sm:$0xff] %v14549_v40 }
 0x3c3   : > { %v2759_v16 = vmax.f32 %v2727_v22, 0.0  ;;  %19068 = vst [vmem:[#allocation129_spill] sm:$0xff] %v14551_v1  ;;  %v2640_v10 = vpop.f32.mrf.mxu3 }
 0x3c4   : > { %v2393_v15 = vpop.f32.mrf.mxu2 }
 0x3c5   : > { %v2394_v13 = vadd.f32 %v2393_v15, %v14233_v35  ;;  %2791 = vst.msk [vmem:[#allocation2 + $0x248] sm:$0xff] %vm250_vm2, %v2759_v16  ;;  %11749 = vmatmul.msk.f32.gmra.mxu3 %vm250_vm2, %v14241_v51  ;;  %v14580_v16 = vpop.f32.mrf.mxu0  ;;  %11693 = vmatmul.msk.f32.gmra.mxu1 %vm250_vm2, %v14411_v28  ;;  %v5564_v51 = vpop.permute.xlu0 %5563 }
 0x3c6   : > { %19076 = vst [vmem:[#allocation137_spill] sm:$0xff] %v14580_v16 }
 0x3c7   : > { %v14553_v29 = vld [vmem:[#allocation2 + $0x230] sm:$0xff]  ;;  %v2694_v36 = vadd.f32 %v2640_v10, %v2394_v13 }
 0x3c8   : > { %19069 = vst [vmem:[#allocation130_spill] sm:$0xff] %v14553_v29  ;;  %v14555_v17 = vld [vmem:[#allocation2 + $0x22d] sm:$0xff]  ;;  %11667 = vmatmul.msk.f32.gmra.mxu0 %vm250_vm2, %v14553_v29 }
 0x3c9   : > { %19070 = vst [vmem:[#allocation131_spill] sm:$0xff] %v14555_v17  ;;  %v14557_v59 = vld [vmem:[#allocation2 + $0x22b] sm:$0xff]  ;;  %v14563_v22 = vld [vmem:[#allocation2 + $0x233] sm:$0xff]  ;;  %v2728_v35 = vadd.f32 %v14082_v38, %v2694_v36  ;;  %11716 = vmatmul.msk.f32.gmra.mxu2 %vm250_vm2, %v14141_v7 }
 0x3ca   : > { %19071 = vst [vmem:[#allocation132_spill] sm:$0xff] %v14557_v59  ;;  %v14565_v23 = vld [vmem:[#allocation2 + $0x230] sm:$0xff]  ;;  %v14572_v59 = vpop.f32.mrf.mxu1 }
 0x3cb   : > { %19072 = vst [vmem:[#allocation133_spill] sm:$0xff] %v14563_v22  ;;  %v14567_v1 = vld [vmem:[#allocation2 + $0x22b] sm:$0xff]  ;;  %v14570_v62 = vld [vmem:[#allocation2 + $0x233] sm:$0xff]  ;;  %v2643_v13 = vpop.f32.mrf.mxu3 }
 0x3cc   : > { %19073 = vst [vmem:[#allocation134_spill] sm:$0xff] %v14565_v23  ;;  %v2396_v15 = vpop.f32.mrf.mxu2  ;;  %v14584_v10 = vld [vmem:[#allocation2 + $0x248] sm:$0xff] }
 0x3cd   : > { %19074 = vst [vmem:[#allocation135_spill] sm:$0xff] %v14567_v1  ;;  %11750 = vmatmul.msk.f32.gmra.mxu3 %vm250_vm2, %v14247_v49  ;;  %11694 = vmatmul.msk.f32.gmra.mxu1 %vm250_vm2, %v14401_v0 }
 0x3ce   : > { %5637 = vst.msk [vmem:[#allocation2 + $0x228] sm:$0xff] %vm250_vm2, %v5560_v50  ;;  %v2760_v50 = vmax.f32 %v2728_v35, 0.0  ;;  %v14597_v35 = vpop.f32.mrf.mxu0 }
 0x3cf   : > { %19075 = vst [vmem:[#allocation136_spill] sm:$0xff] %v14570_v62 }
 0x3d0   : > { %5638 = vst.msk [vmem:[#allocation2 + $0x230] sm:$0xff] %vm250_vm2, %v5562_v45  ;;  %v2397_v45 = vadd.f32 %v2396_v15, %v14255_v18  ;;  %11668 = vmatmul.msk.f32.gmra.mxu0 %vm250_vm2, %v14584_v10  ;;  %v14603_v15 = vld [vmem:[#allocation2 + $0x248] sm:$0xff] }
 0x3d1   : > { %19077 = vst [vmem:[#allocation138_spill] sm:$0xff] %v14584_v10  ;;  %11717 = vmatmul.msk.f32.gmra.mxu2 %vm250_vm2, %v14169_v56 }
 0x3d2   : > { %2792 = vst.msk [vmem:[#allocation2 + $0x250] sm:$0xff] %vm250_vm2, %v2760_v50  ;;  %v2695_v36 = vadd.f32 %v2643_v13, %v2397_v45  ;;  %v14590_v62 = vpop.f32.mrf.mxu1  ;;  %v14601_v50 = vld [vmem:[#allocation2 + $0x245] sm:$0xff] }
 0x3d3   : > { %19078 = vst [vmem:[#allocation139_spill] sm:$0xff] %v14597_v35  ;;  %v2646_v23 = vpop.f32.mrf.mxu3  ;;  %v5566_v35 = vpop.permute.xlu1 %5565 }
 0x3d4   : > { %v2729_v1 = vadd.f32 %v14082_v38, %v2695_v36  ;;  %19079 = vst [vmem:[#allocation140_spill] sm:$0xff] %v14601_v50  ;;  %v2399_v13 = vpop.f32.mrf.mxu2 }
 0x3d5   : > { %19080 = vst [vmem:[#allocation141_spill] sm:$0xff] %v14603_v15  ;;  %v2400_v49 = vadd.f32 %v2399_v13, %v14280_v46  ;;  %11751 = vmatmul.msk.f32.gmra.mxu3 %vm250_vm2, %v14301_v60  ;;  %11695 = vmatmul.msk.f32.gmra.mxu1 %vm250_vm2, %v14449_v41  ;;  %v5568_v60 = vpop.permute.xlu2 %5567 }
 0x3d6   : > { %v2761_v18 = vmax.f32 %v2729_v1, 0.0 }
 0x3d8   : > { %2793 = vst.msk [vmem:[#allocation2 + $0x268] sm:$0xff] %vm250_vm2, %v2761_v18  ;;  %v14632_v18 = vpop.f32.mrf.mxu0 }
 0x3d9   : > { %v14605_v45 = vld [vmem:[#allocation2 + $0x250] sm:$0xff]  ;;  %19087 = vst [vmem:[#allocation148_spill] sm:$0xff] %v14632_v18  ;;  %11718 = vmatmul.msk.f32.gmra.mxu2 %vm250_vm2, %v14179_v37 }
 0x3da   : > { %19081 = vst [vmem:[#allocation142_spill] sm:$0xff] %v14605_v45  ;;  %v14607_v10 = vld [vmem:[#allocation2 + $0x24d] sm:$0xff]  ;;  %11669 = vmatmul.msk.f32.gmra.mxu0 %vm250_vm2, %v14605_v45  ;;  %v14624_v22 = vpop.f32.mrf.mxu1 }
 0x3db   : > { %v14609_v36 = vld [vmem:[#allocation2 + $0x24b] sm:$0xff]  ;;  %v14615_v1 = vld [vmem:[#allocation2 + $0x253] sm:$0xff] }
 0x3dc   : > { %19082 = vst [vmem:[#allocation143_spill] sm:$0xff] %v14609_v36  ;;  %v14617_v29 = vld [vmem:[#allocation2 + $0x250] sm:$0xff]  ;;  %v2696_v36 = vadd.f32 %v2646_v23, %v2400_v49  ;;  %v2402_v13 = vpop.f32.mrf.mxu2  ;;  %v2649_v23 = vpop.f32.mrf.mxu3 }
 0x3dd   : > { %19083 = vst [vmem:[#allocation144_spill] sm:$0xff] %v14615_v1  ;;  %v14619_v15 = vld [vmem:[#allocation2 + $0x24b] sm:$0xff]  ;;  %v14622_v16 = vld [vmem:[#allocation2 + $0x253] sm:$0xff]  ;;  %11752 = vmatmul.msk.f32.gmra.mxu3 %vm250_vm2, %v14291_v14  ;;  %11696 = vmatmul.msk.f32.gmra.mxu1 %vm250_vm2, %v14455_v31 }
 0x3de   : > { %19084 = vst [vmem:[#allocation145_spill] sm:$0xff] %v14617_v29  ;;  %v2730_v46 = vadd.f32 %v14082_v38, %v2696_v36 }
 0x3df   : > { %19085 = vst [vmem:[#allocation146_spill] sm:$0xff] %v14619_v15  ;;  %v14636_v49 = vld [vmem:[#allocation2 + $0x268] sm:$0xff] }
 0x3e0   : > { %5639 = vst.msk [vmem:[#allocation2 + $0x248] sm:$0xff] %vm250_vm2, %v5564_v51  ;;  %v2762_v51 = vmax.f32 %v2730_v46, 0.0  ;;  %v14649_v46 = vpop.f32.mrf.mxu0 }
 0x3e1   : > { %19086 = vst [vmem:[#allocation147_spill] sm:$0xff] %v14622_v16  ;;  %11719 = vmatmul.msk.f32.gmra.mxu2 %vm250_vm2, %v14207_v30 }
 0x3e2   : > { %5640 = vst.msk [vmem:[#allocation2 + $0x250] sm:$0xff] %vm250_vm2, %v5566_v35  ;;  %v2403_v35 = vadd.f32 %v2402_v13, %v14299_v53  ;;  %11670 = vmatmul.msk.f32.gmra.mxu0 %vm250_vm2, %v14636_v49  ;;  %v14642_v16 = vpop.f32.mrf.mxu1  ;;  %v14655_v13 = vld [vmem:[#allocation2 + $0x268] sm:$0xff] }
 0x3e3   : > { %19088 = vst [vmem:[#allocation149_spill] sm:$0xff] %v14636_v49 }
 0x3e4   : > { %2794 = vst.msk [vmem:[#allocation2 + $0x270] sm:$0xff] %vm250_vm2, %v2762_v51  ;;  %v2697_v36 = vadd.f32 %v2649_v23, %v2403_v35  ;;  %v14653_v51 = vld [vmem:[#allocation2 + $0x265] sm:$0xff]  ;;  %v2405_v23 = vpop.f32.mrf.mxu2  ;;  %v2652_v29 = vpop.f32.mrf.mxu3 }
 0x3e5   : > { %19089 = vst [vmem:[#allocation150_spill] sm:$0xff] %v14649_v46  ;;  %v2406_v14 = vadd.f32 %v2405_v23, %v14337_v55  ;;  %v5570_v46 = vpop.permute.xlu0 %5569  ;;  %11753 = vmatmul.msk.f32.gmra.mxu3 %vm250_vm2, %v14351_v19  ;;  %11697 = vmatmul.msk.f32.gmra.mxu1 %vm250_vm2, %v14499_v63 }
 0x3e6   : > { %v2731_v15 = vadd.f32 %v14082_v38, %v2697_v36  ;;  %19090 = vst [vmem:[#allocation151_spill] sm:$0xff] %v14653_v51 }
 0x3e7   : > { %19091 = vst [vmem:[#allocation152_spill] sm:$0xff] %v14655_v13 }
 0x3e8   : > { %v2763_v53 = vmax.f32 %v2731_v15, 0.0 }
 0x3e9   : > { %11720 = vmatmul.msk.f32.gmra.mxu2 %vm250_vm2, %v14217_v33 }
 0x3ea   : > { %2795 = vst.msk [vmem:[#allocation2 + $0x288] sm:$0xff] %vm250_vm2, %v2763_v53  ;;  %v14676_v1 = vpop.f32.mrf.mxu1  ;;  %v14684_v53 = vpop.f32.mrf.mxu0 }
 0x3eb   : > { %v14657_v35 = vld [vmem:[#allocation2 + $0x270] sm:$0xff]  ;;  %19098 = vst [vmem:[#allocation159_spill] sm:$0xff] %v14684_v53 }
 0x3ec   : > { %19092 = vst [vmem:[#allocation153_spill] sm:$0xff] %v14657_v35  ;;  %v14659_v49 = vld [vmem:[#allocation2 + $0x26d] sm:$0xff]  ;;  %11671 = vmatmul.msk.f32.gmra.mxu0 %vm250_vm2, %v14657_v35  ;;  %v2408_v23 = vpop.f32.mrf.mxu2  ;;  %v5574_v35 = vpop.permute.xlu2 %5573 }
 0x3ed   : > { %19093 = vst [vmem:[#allocation154_spill] sm:$0xff] %v14659_v49  ;;  %v14661_v36 = vld [vmem:[#allocation2 + $0x26b] sm:$0xff]  ;;  %v14667_v15 = vld [vmem:[#allocation2 + $0x273] sm:$0xff]  ;;  %11754 = vmatmul.msk.f32.gmra.mxu3 %vm250_vm2, %v14353_v54  ;;  %11698 = vmatmul.msk.f32.gmra.mxu1 %vm250_vm2, %v14505_v52 }
 0x3ee   : > { %19094 = vst [vmem:[#allocation155_spill] sm:$0xff] %v14661_v36  ;;  %v14669_v45 = vld [vmem:[#allocation2 + $0x270] sm:$0xff]  ;;  %v2698_v36 = vadd.f32 %v2652_v29, %v2406_v14  ;;  %v2655_v29 = vpop.f32.mrf.mxu3 }
 0x3ef   : > { %19095 = vst [vmem:[#allocation156_spill] sm:$0xff] %v14669_v45  ;;  %v14671_v13 = vld [vmem:[#allocation2 + $0x26b] sm:$0xff]  ;;  %v14674_v18 = vld [vmem:[#allocation2 + $0x273] sm:$0xff] }
 0x3f0   : > { %19096 = vst [vmem:[#allocation157_spill] sm:$0xff] %v14671_v13  ;;  %v2732_v55 = vadd.f32 %v14082_v38, %v2698_v36 }
 0x3f1   : > { %5641 = vst.msk [vmem:[#allocation2 + $0x268] sm:$0xff] %vm250_vm2, %v5568_v60  ;;  %v14688_v14 = vld [vmem:[#allocation2 + $0x288] sm:$0xff]  ;;  %11721 = vmatmul.msk.f32.gmra.mxu2 %vm250_vm2, %v14249_v25 }
 0x3f2   : > { %19097 = vst [vmem:[#allocation158_spill] sm:$0xff] %v14674_v18  ;;  %v2764_v60 = vmax.f32 %v2732_v55, 0.0  ;;  %v14694_v18 = vpop.f32.mrf.mxu1  ;;  %v14704_v55 = vpop.f32.mrf.mxu0 }
 0x3f3   : > { %5642 = vst.msk [vmem:[#allocation2 + $0x270] sm:$0xff] %vm250_vm2, %v5570_v46  ;;  %v2409_v46 = vadd.f32 %v2408_v23, %v14361_v61  ;;  %v11877_v61 = vld [vmem:[%s18820_s3 + $0x1a] sm:$0x3]  ;;  %v14709_v23 = vld [vmem:[#allocation2 + $0x285] sm:$0xff] }
 0x3f4   : > { %19099 = vst [vmem:[#allocation160_spill] sm:$0xff] %v14688_v14  ;;  %11672 = vmatmul.msk.f32.gmra.mxu0 %vm250_vm2, %v14688_v14  ;;  %11878 = vmatpush.msk.msra.mxu3 %vm789_vm1, %v11877_v61  ;;  %v5572_v14 = vpop.permute.xlu1 %5571 }
 0x3f5   : > { %2796 = vst.msk [vmem:[#allocation2 + $0x290] sm:$0xff] %vm250_vm2, %v2764_v60  ;;  %v2699_v36 = vadd.f32 %v2655_v29, %v2409_v46  ;;  %v14711_v29 = vld [vmem:[#allocation2 + $0x288] sm:$0xff]  ;;  %11755 = vmatmul.msk.f32.gmra.mxu3 %vm250_vm2, %v14411_v28  ;;  %11699 = vmatmul.msk.f32.gmra.mxu1 %vm250_vm2, %v14549_v40 }
 0x3f6   : > { %19100 = vst [vmem:[#allocation161_spill] sm:$0xff] %v14704_v55 }
 0x3f7   : > { %v2733_v13 = vadd.f32 %v14082_v38, %v2699_v36  ;;  %19101 = vst [vmem:[#allocation162_spill] sm:$0xff] %v14709_v23  ;;  %v2411_v38 = vpop.f32.mrf.mxu2  ;;  %v2658_v36 = vpop.f32.mrf.mxu3 }
 0x3f8   : > { %19102 = vst [vmem:[#allocation163_spill] sm:$0xff] %v14711_v29  ;;  %v2412_v19 = vadd.f32 %v2411_v38, %v14389_v21  ;;  %v14740_v21 = vld [vmem:[%s18821_s4 + $0x1] ss:$0 sm:$0xff] }
 0x3f9   : > { %v2765_v60 = vmax.f32 %v2733_v13, 0.0  ;;  %11722 = vmatmul.msk.f32.gmra.mxu2 %vm250_vm2, %v14257_v4 }
 0x3fa   : > { %v2700_v53 = vadd.f32 %v2658_v36, %v2412_v19  ;;  %v11911_v19 = vld [vmem:[%s18820_s3 + $0x1c] sm:$0x3] }
 0x3fb   : > { %2797 = vst.msk [vmem:[#allocation2 + $0x2a8] sm:$0xff] %vm250_vm2, %v2765_v60  ;;  %11912 = vmatpush.msk.msra.mxu0 %vm789_vm1, %v11911_v19 }
 0x3fc   : > { %v14713_v46 = vld [vmem:[#allocation2 + $0x290] sm:$0xff]  ;;  %v2734_v60 = vadd.f32 %v14740_v21, %v2700_v53 }
 0x3fd   : > { %19103 = vst [vmem:[#allocation164_spill] sm:$0xff] %v14713_v46  ;;  %v14715_v45 = vld [vmem:[#allocation2 + $0x28d] sm:$0xff]  ;;  %11673 = vmatmul.msk.f32.gmra.mxu0 %vm250_vm2, %v14713_v46  ;;  %11756 = vmatmul.msk.f32.gmra.mxu3 %vm250_vm2, %v14401_v0  ;;  %v5578_v46 = vpop.permute.xlu1 %5577 }
 0x3fe   : > { %19104 = vst [vmem:[#allocation165_spill] sm:$0xff] %v14715_v45  ;;  %v14717_v54 = vld [vmem:[#allocation2 + $0x28b] sm:$0xff]  ;;  %v14723_v13 = vld [vmem:[#allocation2 + $0x293] sm:$0xff]  ;;  %11700 = vmatmul.msk.f32.gmra.mxu1 %vm250_vm2, %v14555_v17 }
 0x3ff   : > { %19105 = vst [vmem:[#allocation166_spill] sm:$0xff] %v14717_v54  ;;  %v14725_v61 = vld [vmem:[#allocation2 + $0x290] sm:$0xff]  ;;  %v14732_v54 = vpop.f32.mrf.mxu1  ;;  %v2414_v38 = vpop.f32.mrf.mxu2 }
 0x400   : > { %19106 = vst [vmem:[#allocation167_spill] sm:$0xff] %v14725_v61  ;;  %v14727_v29 = vld [vmem:[#allocation2 + $0x28b] sm:$0xff]  ;;  %v14730_v55 = vld [vmem:[#allocation2 + $0x293] sm:$0xff]  ;;  %v2661_v36 = vpop.f32.mrf.mxu3 }
 0x401   : > { %19107 = vst [vmem:[#allocation168_spill] sm:$0xff] %v14727_v29  ;;  %11723 = vmatmul.msk.f32.gmra.mxu2 %vm250_vm2, %v14293_v27 }
 0x402   : > { %5643 = vst.msk [vmem:[#allocation2 + $0x288] sm:$0xff] %vm250_vm2, %v5572_v14  ;;  %v14748_v14 = vpop.f32.mrf.mxu0  ;;  %v14778_v0 = vld [vmem:[#allocation2 + $0x2a5] sm:$0xff] }
 0x403   : > { %19108 = vst [vmem:[#allocation169_spill] sm:$0xff] %v14730_v55  ;;  %v2415_v55 = vadd.f32 %v2414_v38, %v14409_v39  ;;  %v14780_v28 = vld [vmem:[#allocation2 + $0x2a8] sm:$0xff] }
 0x404   : > { %5644 = vst.msk [vmem:[#allocation2 + $0x290] sm:$0xff] %vm250_vm2, %v5574_v35  ;;  %v2766_v35 = vmax.f32 %v2734_v60, 0.0 }
 0x405   : > { %11777 = vmatmul.msk.f32.vlgmr.msrb.gmra.mxu0 %vm250_vm2, %v14110_v24  ;;  %v2701_v53 = vadd.f32 %v2661_v36, %v2415_v55  ;;  %v5576_v36 = vpop.permute.xlu0 %5575  ;;  %19112 = vst [vmem:[#allocation173_spill] sm:$0xff] %v14778_v0  ;;  %11757 = vmatmul.msk.f32.gmra.mxu3 %vm250_vm2, %v14449_v41 }
 0x406   : > { %2798 = vst.msk [vmem:[#allocation2 + $0x2b0] sm:$0xff] %vm250_vm2, %v2766_v35  ;;  %11701 = vmatmul.msk.f32.gmra.mxu1 %vm250_vm2, %v14601_v50 }
 0x407   : > { %v14757_v29 = vpop.f32.mrf.mxu1  ;;  %v2735_v61 = vadd.f32 %v14740_v21, %v2701_v53  ;;  %v2417_v19 = vpop.f32.mrf.mxu2  ;;  %19113 = vst [vmem:[#allocation174_spill] sm:$0xff] %v14780_v28 }
 0x408   : > { %v2664_v35 = vpop.f32.mrf.mxu3  ;;  %v2418_v53 = vadd.f32 %v2417_v19, %v14439_v5 }
 0x409   : > { %v2767_v39 = vmax.f32 %v2735_v61, 0.0  ;;  %11724 = vmatmul.msk.f32.gmra.mxu2 %vm250_vm2, %v14303_v34 }
 0x40a   : > { %v14764_v60 = vpop.f32.mrf.mxu0 }
 0x40b   : > { %19109 = vst [vmem:[#allocation170_spill] sm:$0xff] %v14764_v60 }
 0x40c   : > { %2799 = vst.msk [vmem:[#allocation2 + $0x2c8] sm:$0xff] %vm250_vm2, %v2767_v39 }
 0x40d   : > { %v14768_v24 = vld [vmem:[#allocation2 + $0x2ad] sm:$0xff]  ;;  %11778 = vmatmul.msk.f32.gmra.mxu0 %vm250_vm2, %v14127_v44  ;;  %11758 = vmatmul.msk.f32.gmra.mxu3 %vm250_vm2, %v14455_v31  ;;  %v5582_v41 = vpop.permute.xlu0 %5581 }
 0x40e   : > { %v14770_v55 = vld [vmem:[#allocation2 + $0x2b0] sm:$0xff]  ;;  %11702 = vmatmul.msk.f32.gmra.mxu1 %vm250_vm2, %v14607_v10 }
 0x40f   : > { %19110 = vst [vmem:[#allocation171_spill] sm:$0xff] %v14770_v55  ;;  %v14772_v38 = vld [vmem:[#allocation2 + $0x2ab] sm:$0xff]  ;;  %v14782_v61 = vld [vmem:[#allocation2 + $0x2b3] sm:$0xff]  ;;  %v2702_v55 = vadd.f32 %v2664_v35, %v2418_v53  ;;  %v14785_v60 = vpop.f32.mrf.mxu1  ;;  %v2420_v19 = vpop.f32.mrf.mxu2 }
 0x410   : > { %19111 = vst [vmem:[#allocation172_spill] sm:$0xff] %v14772_v38  ;;  %v2667_v35 = vpop.f32.mrf.mxu3 }
 0x411   : > { %19114 = vst [vmem:[#allocation175_spill] sm:$0xff] %v14782_v61  ;;  %v2736_v5 = vadd.f32 %v14740_v21, %v2702_v55  ;;  %v5580_v61 = vpop.permute.xlu2 %5579  ;;  %11725 = vmatmul.msk.f32.gmra.mxu2 %vm250_vm2, %v14355_v32 }
 0x412   : > { %5645 = vst.msk [vmem:[#allocation2 + $0x2a8] sm:$0xff] %vm250_vm2, %v5576_v36  ;;  %v14793_v44 = vpop.f32.mrf.mxu0  ;;  %v2421_v36 = vadd.f32 %v2420_v19, %v14463_v58 }
 0x413   : > { %5646 = vst.msk [vmem:[#allocation2 + $0x2b0] sm:$0xff] %vm250_vm2, %v5578_v46  ;;  %v2768_v39 = vmax.f32 %v2736_v5, 0.0  ;;  %v14822_v38 = vld [vmem:[#allocation2 + $0x2c5] sm:$0xff] }
 0x414   : > { %v2703_v46 = vadd.f32 %v2667_v35, %v2421_v36  ;;  %19117 = vst [vmem:[#allocation178_spill] sm:$0xff] %v14822_v38  ;;  %v14824_v31 = vld [vmem:[#allocation2 + $0x2c8] sm:$0xff] }
 0x415   : > { %2800 = vst.msk [vmem:[#allocation2 + $0x2d0] sm:$0xff] %vm250_vm2, %v2768_v39  ;;  %11779 = vmatmul.msk.f32.gmra.mxu0 %vm250_vm2, %v14151_v9  ;;  %11759 = vmatmul.msk.f32.gmra.mxu3 %vm250_vm2, %v14499_v63 }
 0x416   : > { %v2737_v53 = vadd.f32 %v14740_v21, %v2703_v46  ;;  %11703 = vmatmul.msk.f32.gmra.mxu1 %vm250_vm2, %v14653_v51 }
 0x417   : > { %v14801_v55 = vpop.f32.mrf.mxu1  ;;  %v2423_v39 = vpop.f32.mrf.mxu2 }
 0x418   : > { %v2769_v58 = vmax.f32 %v2737_v53, 0.0  ;;  %v2670_v19 = vpop.f32.mrf.mxu3  ;;  %v2424_v46 = vadd.f32 %v2423_v39, %v14489_v47 }
 0x419   : > { %11726 = vmatmul.msk.f32.gmra.mxu2 %vm250_vm2, %v14363_v3 }
 0x41a   : > { %v14808_v5 = vpop.f32.mrf.mxu0  ;;  %2801 = vst.msk [vmem:[#allocation2 + $0x2e8] sm:$0xff] %vm250_vm2, %v2769_v58 }
 0x41c   : > { %v14812_v9 = vld [vmem:[#allocation2 + $0x2cd] sm:$0xff] }
 0x41d   : > { %v14814_v35 = vld [vmem:[#allocation2 + $0x2d0] sm:$0xff]  ;;  %11780 = vmatmul.msk.f32.gmra.mxu0 %vm250_vm2, %v14165_v11  ;;  %11760 = vmatmul.msk.f32.gmra.mxu3 %vm250_vm2, %v14505_v52 }
 0x41e   : > { %19115 = vst [vmem:[#allocation176_spill] sm:$0xff] %v14814_v35  ;;  %v14816_v36 = vld [vmem:[#allocation2 + $0x2cb] sm:$0xff]  ;;  %v14826_v53 = vld [vmem:[#allocation2 + $0x2d3] sm:$0xff]  ;;  %v2704_v35 = vadd.f32 %v2670_v19, %v2424_v46  ;;  %11704 = vmatmul.msk.f32.gmra.mxu1 %vm250_vm2, %v14659_v49  ;;  %v3204_v46 = vadd.f32 %v14539_v20, %v14340_v42 }
 0x41f   : > { %19116 = vst [vmem:[#allocation177_spill] sm:$0xff] %v14816_v36  ;;  %v14829_v28 = vpop.f32.mrf.mxu1  ;;  %v3446_v39 = vpop.f32.mrf.mxu2 }
 0x420   : > { %19118 = vst [vmem:[#allocation179_spill] sm:$0xff] %v14826_v53  ;;  %v2738_v47 = vadd.f32 %v14740_v21, %v2704_v35  ;;  %v3724_v19 = vpop.f32.mrf.mxu3  ;;  %v5586_v53 = vpop.permute.xlu2 %5585 }
 0x421   : > { %5647 = vst.msk [vmem:[#allocation2 + $0x2c8] sm:$0xff] %vm250_vm2, %v5580_v61  ;;  %v3201_v61 = vadd.f32 %v14522_v57, %v14313_v2  ;;  %v5584_v2 = vpop.permute.xlu1 %5583  ;;  %11727 = vmatmul.msk.f32.gmra.mxu2 %vm250_vm2, %v14403_v43 }
 0x422   : > { %5648 = vst.msk [vmem:[#allocation2 + $0x2d0] sm:$0xff] %vm250_vm2, %v5582_v41  ;;  %v14837_v11 = vpop.f32.mrf.mxu0  ;;  %v2770_v58 = vmax.f32 %v2738_v47, 0.0  ;;  %v14862_v47 = vld [vmem:[#allocation2 + $0x2e8] sm:$0xff] }
 0x423   : > { %v3542_v41 = vadd.f32 %v3446_v39, %v3201_v61 }
 0x424   : > { %2802 = vst.msk [vmem:[#allocation2 + $0x2f0] sm:$0xff] %vm250_vm2, %v2770_v58 }
 0x425   : > { %11781 = vmatmul.msk.f32.gmra.mxu0 %vm250_vm2, %v14189_v6  ;;  %v14846_v21 = vadd.f32 %v3724_v19, %v3542_v41  ;;  %v14860_v6 = vld [vmem:[#allocation2 + $0x2e5] sm:$0xff]  ;;  %11761 = vmatmul.msk.f32.gmra.mxu3 %vm250_vm2, %v14549_v40 }
 0x426   : > { %19120 = vst [vmem:[#allocation181_spill] sm:$0xff] %v14860_v6  ;;  %11705 = vmatmul.msk.f32.gmra.mxu1 %vm250_vm2, %v14709_v23  ;;  %v19132_v40 = vld [vmem:[#allocation111_spill] sm:$0xff] }
 0x427   : > { %19119 = vst [vmem:[#allocation180_spill] sm:$0xff] %v14846_v21  ;;  %v14848_v35 = vpop.f32.mrf.mxu1  ;;  %v3449_v61 = vpop.f32.mrf.mxu2 }
 0x428   : > { %v3727_v58 = vpop.f32.mrf.mxu3  ;;  %v3543_v36 = vadd.f32 %v3449_v61, %v3204_v46  ;;  %v19126_v61 = vld [vmem:[#allocation70_spill] sm:$0xff] }
 0x42a   : > { %v14854_v57 = vpop.f32.mrf.mxu0  ;;  %v14876_v42 = vadd.f32 %v3727_v58, %v3543_v36 }
 0x42b   : > { %v14864_v39 = vld [vmem:[#allocation2 + $0x2ed] sm:$0xff] }
 0x42c   : > { %19121 = vst [vmem:[#allocation182_spill] sm:$0xff] %v14864_v39  ;;  %v14866_v19 = vld [vmem:[#allocation2 + $0x2f0] sm:$0xff] }
 0x42d   : > { %19122 = vst [vmem:[#allocation183_spill] sm:$0xff] %v14866_v19  ;;  %v14868_v41 = vld [vmem:[#allocation2 + $0x2eb] sm:$0xff]  ;;  %11782 = vmatmul.msk.f32.gmra.mxu0 %vm250_vm2, %v14203_v8  ;;  %v14872_v21 = vld [vmem:[#allocation2 + $0x2f3] sm:$0xff]  ;;  %v3207_v8 = vadd.f32 %v14572_v59, %v14373_v12  ;;  %11762 = vmatmul.msk.f32.gmra.mxu3 %vm250_vm2, %v14555_v17 }
 0x42e   : > { %19123 = vst [vmem:[#allocation184_spill] sm:$0xff] %v14868_v41  ;;  %v19128_v41 = vld [vmem:[#allocation99_spill] sm:$0xff]  ;;  %11706 = vmatmul.msk.f32.gmra.mxu1 %vm250_vm2, %v14715_v45  ;;  %v19136_v19 = vld [vmem:[#allocation112_spill] sm:$0xff] }
 0x42f   : > { %19124 = vst [vmem:[#allocation185_spill] sm:$0xff] %v14872_v21  ;;  %v14878_v20 = vpop.f32.mrf.mxu1  ;;  %11728 = vmatmul.msk.f32.gmra.mxu2 %vm250_vm2, %v19128_v41  ;;  %v19129_v12 = vld [vmem:[#allocation95_spill] sm:$0xff] }
 0x430   : > { %5649 = vst.msk [vmem:[#allocation2 + $0x2e8] sm:$0xff] %vm250_vm2, %v5584_v2  ;;  %v3452_v2 = vpop.f32.mrf.mxu2  ;;  %v3210_v59 = vadd.f32 %v14590_v62, %v19129_v12  ;;  %v19133_v62 = vld [vmem:[#allocation104_spill] sm:$0xff] }
 0x431   : > { %5650 = vst.msk [vmem:[#allocation2 + $0x2f0] sm:$0xff] %vm250_vm2, %v5586_v53  ;;  %v3730_v53 = vpop.f32.mrf.mxu3  ;;  %v3544_v36 = vadd.f32 %v3452_v2, %v3207_v8  ;;  %v3213_v12 = vadd.f32 %v14624_v22, %v19133_v62  ;;  %v19137_v22 = vld [vmem:[#allocation106_spill] sm:$0xff] }
 0x432   : > { %19125 = vst [vmem:[#allocation186_spill] sm:$0xff] %v14876_v42  ;;  %v14884_v46 = vpop.f32.mrf.mxu0  ;;  %v3216_v62 = vadd.f32 %v14642_v16, %v19137_v22  ;;  %v19141_v16 = vld [vmem:[#allocation116_spill] sm:$0xff] }
 0x433   : > { %v14892_v58 = vadd.f32 %v3730_v53, %v3544_v36  ;;  %v19130_v36 = vld [vmem:[#allocation73_spill] sm:$0xff]  ;;  %v3219_v22 = vadd.f32 %v14676_v1, %v19141_v16  ;;  %v19144_v1 = vld [vmem:[#allocation118_spill] sm:$0xff] }
 0x434   : > { %v3222_v16 = vadd.f32 %v14694_v18, %v19144_v1  ;;  %v19148_v18 = vld [vmem:[#allocation125_spill] sm:$0xff] }
 0x435   : > { %11783 = vmatmul.msk.f32.gmra.mxu0 %vm250_vm2, %v19126_v61  ;;  %19127 = vst [vmem:[#allocation70_spill] sm:$0xff] %v14892_v58  ;;  %11763 = vmatmul.msk.f32.gmra.mxu3 %vm250_vm2, %v14601_v50  ;;  %v19140_v50 = vld [vmem:[#allocation121_spill] sm:$0xff]  ;;  %v3225_v1 = vadd.f32 %v14732_v54, %v19148_v18  ;;  %v19152_v54 = vld [vmem:[#allocation127_spill] sm:$0xff] }
 0x436   : > { %11811 = vmatmul.msk.f32.vlgmr.msrb.gmra.mxu1 %vm250_vm2, %v14131_v26  ;;  %v3228_v18 = vadd.f32 %v14757_v29, %v19152_v54  ;;  %v19156_v29 = vld [vmem:[#allocation137_spill] sm:$0xff] }
 0x437   : > { %v14894_v21 = vpop.f32.mrf.mxu1  ;;  %11729 = vmatmul.msk.f32.gmra.mxu2 %vm250_vm2, %v19132_v40  ;;  %v3231_v54 = vadd.f32 %v14785_v60, %v19156_v29  ;;  %v19160_v60 = vld [vmem:[#allocation139_spill] sm:$0xff] }
 0x438   : > { %v3455_v8 = vpop.f32.mrf.mxu2  ;;  %v3234_v29 = vadd.f32 %v14801_v55, %v19160_v60  ;;  %v19164_v60 = vld [vmem:[#allocation148_spill] sm:$0xff] }
 0x439   : > { %v3733_v2 = vpop.f32.mrf.mxu3  ;;  %v3545_v53 = vadd.f32 %v3455_v8, %v3210_v59 }
 0x43a   : > { %v14900_v42 = vpop.f32.mrf.mxu0 }
 0x43b   : > { %v14908_v61 = vadd.f32 %v3733_v2, %v3545_v53  ;;  %v19134_v53 = vld [vmem:[#allocation78_spill] sm:$0xff] }
 0x43d   : > { %11784 = vmatmul.msk.f32.gmra.mxu0 %vm250_vm2, %v19130_v36  ;;  %19131 = vst [vmem:[#allocation99_spill] sm:$0xff] %v14908_v61  ;;  %11764 = vmatmul.msk.f32.gmra.mxu3 %vm250_vm2, %v14607_v10 }
 0x43e   : > { %11812 = vmatmul.msk.f32.gmra.mxu1 %vm250_vm2, %v14141_v7 }
 0x43f   : > { %v14910_v58 = vpop.f32.mrf.mxu1  ;;  %11730 = vmatmul.msk.f32.gmra.mxu2 %vm250_vm2, %v19136_v19 }
 0x440   : > { %v3458_v59 = vpop.f32.mrf.mxu2 }
 0x441   : > { %v3736_v8 = vpop.f32.mrf.mxu3  ;;  %v3546_v2 = vadd.f32 %v3458_v59, %v3213_v12 }
 0x442   : > { %v14916_v17 = vpop.f32.mrf.mxu0 }
 0x443   : > { %v14924_v36 = vadd.f32 %v3736_v8, %v3546_v2  ;;  %v19138_v2 = vld [vmem:[#allocation79_spill] sm:$0xff] }
 0x445   : > { %11785 = vmatmul.msk.f32.gmra.mxu0 %vm250_vm2, %v19134_v53  ;;  %19135 = vst [vmem:[#allocation95_spill] sm:$0xff] %v14924_v36  ;;  %11765 = vmatmul.msk.f32.gmra.mxu3 %vm250_vm2, %v14653_v51  ;;  %v19147_v51 = vld [vmem:[#allocation132_spill] sm:$0xff] }
 0x446   : > { %11813 = vmatmul.msk.f32.gmra.mxu1 %vm250_vm2, %v14169_v56 }
 0x447   : > { %v14926_v61 = vpop.f32.mrf.mxu1  ;;  %11731 = vmatmul.msk.f32.gmra.mxu2 %vm250_vm2, %v19140_v50 }
 0x448   : > { %v3461_v12 = vpop.f32.mrf.mxu2 }
 0x449   : > { %v3739_v59 = vpop.f32.mrf.mxu3  ;;  %v3547_v8 = vadd.f32 %v3461_v12, %v3216_v62 }
 0x44a   : > { %v14932_v26 = vpop.f32.mrf.mxu0 }
 0x44b   : > { %v14940_v53 = vadd.f32 %v3739_v59, %v3547_v8  ;;  %v19142_v8 = vld [vmem:[#allocation86_spill] sm:$0xff] }
 0x44d   : > { %11786 = vmatmul.msk.f32.gmra.mxu0 %vm250_vm2, %v19138_v2  ;;  %19139 = vst [vmem:[#allocation73_spill] sm:$0xff] %v14940_v53  ;;  %11766 = vmatmul.msk.f32.gmra.mxu3 %vm250_vm2, %v14659_v49  ;;  %v19151_v49 = vld [vmem:[#allocation133_spill] sm:$0xff] }
 0x44e   : > { %11814 = vmatmul.msk.f32.gmra.mxu1 %vm250_vm2, %v14179_v37 }
 0x44f   : > { %v14942_v36 = vpop.f32.mrf.mxu1  ;;  %11732 = vmatmul.msk.f32.gmra.mxu2 %vm250_vm2, %v14513_v48 }
 0x450   : > { %v3464_v62 = vpop.f32.mrf.mxu2 }
 0x451   : > { %v3742_v12 = vpop.f32.mrf.mxu3  ;;  %v3548_v59 = vadd.f32 %v3464_v62, %v3219_v22 }
 0x452   : > { %v14948_v7 = vpop.f32.mrf.mxu0 }
 0x453   : > { %v14956_v2 = vadd.f32 %v3742_v12, %v3548_v59  ;;  %v19145_v59 = vld [vmem:[#allocation87_spill] sm:$0xff] }
 0x455   : > { %11787 = vmatmul.msk.f32.gmra.mxu0 %vm250_vm2, %v19142_v8  ;;  %19143 = vst [vmem:[#allocation111_spill] sm:$0xff] %v14956_v2  ;;  %11767 = vmatmul.msk.f32.gmra.mxu3 %vm250_vm2, %v14709_v23  ;;  %v19155_v23 = vld [vmem:[#allocation143_spill] sm:$0xff] }
 0x456   : > { %11815 = vmatmul.msk.f32.gmra.mxu1 %vm250_vm2, %v14207_v30 }
 0x457   : > { %v14958_v53 = vpop.f32.mrf.mxu1  ;;  %11733 = vmatmul.msk.f32.gmra.mxu2 %vm250_vm2, %v19147_v51 }
 0x458   : > { %v3467_v22 = vpop.f32.mrf.mxu2 }
 0x459   : > { %v3745_v62 = vpop.f32.mrf.mxu3  ;;  %v3549_v12 = vadd.f32 %v3467_v22, %v3222_v16 }
 0x45a   : > { %v14964_v56 = vpop.f32.mrf.mxu0 }
 0x45b   : > { %v14972_v8 = vadd.f32 %v3745_v62, %v3549_v12  ;;  %v19149_v12 = vld [vmem:[#allocation94_spill] sm:$0xff] }
 0x45d   : > { %11788 = vmatmul.msk.f32.gmra.mxu0 %vm250_vm2, %v19145_v59  ;;  %19146 = vst [vmem:[#allocation104_spill] sm:$0xff] %v14972_v8  ;;  %11768 = vmatmul.msk.f32.gmra.mxu3 %vm250_vm2, %v14715_v45  ;;  %v19159_v45 = vld [vmem:[#allocation144_spill] sm:$0xff] }
 0x45e   : > { %11816 = vmatmul.msk.f32.gmra.mxu1 %vm250_vm2, %v14217_v33 }
 0x45f   : > { %v14974_v2 = vpop.f32.mrf.mxu1  ;;  %11734 = vmatmul.msk.f32.gmra.mxu2 %vm250_vm2, %v19151_v49 }
 0x460   : > { %v3470_v16 = vpop.f32.mrf.mxu2 }
 0x461   : > { %v3748_v22 = vpop.f32.mrf.mxu3  ;;  %v3550_v62 = vadd.f32 %v3470_v16, %v3225_v1 }
 0x462   : > { %v14980_v37 = vpop.f32.mrf.mxu0 }
 0x463   : > { %v14988_v59 = vadd.f32 %v3748_v22, %v3550_v62  ;;  %v19153_v62 = vld [vmem:[#allocation96_spill] sm:$0xff] }
 0x465   : > { %11789 = vmatmul.msk.f32.gmra.mxu0 %vm250_vm2, %v19149_v12  ;;  %19150 = vst [vmem:[#allocation78_spill] sm:$0xff] %v14988_v59  ;;  %11769 = vmatmul.msk.f32.gmra.mxu3 %vm250_vm2, %v14778_v0  ;;  %v19163_v0 = vld [vmem:[#allocation155_spill] sm:$0xff] }
 0x466   : > { %11817 = vmatmul.msk.f32.gmra.mxu1 %vm250_vm2, %v14249_v25 }
 0x467   : > { %v14990_v8 = vpop.f32.mrf.mxu1  ;;  %11735 = vmatmul.msk.f32.gmra.mxu2 %vm250_vm2, %v19155_v23 }
 0x468   : > { %v3473_v1 = vpop.f32.mrf.mxu2 }
 0x469   : > { %v3751_v16 = vpop.f32.mrf.mxu3  ;;  %v3551_v22 = vadd.f32 %v3473_v1, %v3228_v18 }
 0x46a   : > { %v14996_v30 = vpop.f32.mrf.mxu0 }
 0x46b   : > { %v15004_v12 = vadd.f32 %v3751_v16, %v3551_v22  ;;  %v19157_v22 = vld [vmem:[#allocation105_spill] sm:$0xff] }
 0x46d   : > { %11790 = vmatmul.msk.f32.gmra.mxu0 %vm250_vm2, %v19153_v62  ;;  %19154 = vst [vmem:[#allocation112_spill] sm:$0xff] %v15004_v12  ;;  %11770 = vmatmul.msk.f32.gmra.mxu3 %vm250_vm2, %v14768_v24 }
 0x46e   : > { %11818 = vmatmul.msk.f32.gmra.mxu1 %vm250_vm2, %v14257_v4  ;;  %v11980_v4 = vld [vmem:[%s18820_s3 + $0x20] sm:$0x3] }
 0x46f   : > { %v15006_v59 = vpop.f32.mrf.mxu1  ;;  %11736 = vmatmul.msk.f32.gmra.mxu2 %vm250_vm2, %v19159_v45 }
 0x470   : > { %v3476_v18 = vpop.f32.mrf.mxu2  ;;  %11981 = vmatpush.msk.msrb.mxu2 %vm789_vm1, %v11980_v4  ;;  %v19167_v4 = vld [vmem:[#allocation150_spill] sm:$0xff] }
 0x471   : > { %v3754_v1 = vpop.f32.mrf.mxu3  ;;  %v3552_v16 = vadd.f32 %v3476_v18, %v3231_v54 }
 0x472   : > { %v15012_v33 = vpop.f32.mrf.mxu0 }
 0x473   : > { %v15020_v62 = vadd.f32 %v3754_v1, %v3552_v16  ;;  %v19161_v16 = vld [vmem:[#allocation109_spill] sm:$0xff] }
 0x475   : > { %11791 = vmatmul.msk.f32.gmra.mxu0 %vm250_vm2, %v19157_v22  ;;  %19158 = vst [vmem:[#allocation106_spill] sm:$0xff] %v15020_v62  ;;  %11771 = vmatmul.msk.f32.gmra.mxu3 %vm250_vm2, %v14822_v38 }
 0x476   : > { %11819 = vmatmul.msk.f32.gmra.mxu1 %vm250_vm2, %v14293_v27 }
 0x477   : > { %v15022_v12 = vpop.f32.mrf.mxu1  ;;  %11737 = vmatmul.msk.f32.gmra.mxu2 %vm250_vm2, %v19163_v0 }
 0x478   : > { %v3479_v54 = vpop.f32.mrf.mxu2 }
 0x479   : > { %v3757_v18 = vpop.f32.mrf.mxu3  ;;  %v3553_v1 = vadd.f32 %v3479_v54, %v3234_v29  ;;  %v3237_v29 = vadd.f32 %v14829_v28, %v19164_v60  ;;  %v3240_v60 = vadd.f32 %v14848_v35, %v19167_v4  ;;  %v19171_v35 = vld [vmem:[#allocation159_spill] sm:$0xff] }
 0x47a   : > { %v15028_v25 = vpop.f32.mrf.mxu0  ;;  %v3243_v4 = vadd.f32 %v14878_v20, %v19171_v35  ;;  %v19174_v20 = vld [vmem:[#allocation161_spill] sm:$0xff] }
 0x47b   : > { %v15036_v22 = vadd.f32 %v3757_v18, %v3553_v1  ;;  %v3246_v35 = vadd.f32 %v14894_v21, %v19174_v20  ;;  %v3249_v21 = vadd.f32 %v14910_v58, %v14748_v14  ;;  %v19182_v14 = vld [vmem:[#allocation170_spill] sm:$0xff] }
 0x47c   : > { %v3252_v58 = vadd.f32 %v14926_v61, %v19182_v14  ;;  %v3255_v61 = vadd.f32 %v14942_v36, %v14793_v44 }
 0x47d   : > { %11792 = vmatmul.msk.f32.gmra.mxu0 %vm250_vm2, %v19161_v16  ;;  %19162 = vst [vmem:[#allocation79_spill] sm:$0xff] %v15036_v22  ;;  %v19165_v16 = vld [vmem:[#allocation117_spill] sm:$0xff]  ;;  %v11945_v22 = vld [vmem:[%s18822_s5 + $0x2] sm:$0x3]  ;;  %11772 = vmatmul.msk.f32.gmra.mxu3 %vm250_vm2, %v14812_v9 }
 0x47e   : > { %11946 = vmatpush.msk.msra.mxu1 %vm789_vm1, %v11945_v22 }
 0x47f   : > { %v15038_v62 = vpop.f32.mrf.mxu1  ;;  %11738 = vmatmul.msk.f32.gmra.mxu2 %vm250_vm2, %v14667_v15  ;;  %11820 = vmatmul.msk.f32.gmra.mxu1 %vm250_vm2, %v14303_v34 }
 0x480   : > { %v3482_v54 = vpop.f32.mrf.mxu2 }
 0x481   : > { %v3760_v18 = vpop.f32.mrf.mxu3  ;;  %v3554_v1 = vadd.f32 %v3482_v54, %v3237_v29 }
 0x482   : > { %v15047_v55 = vpop.f32.mrf.mxu0 }
 0x483   : > { %v15060_v38 = vadd.f32 %v3760_v18, %v3554_v1  ;;  %v19168_v18 = vld [vmem:[#allocation120_spill] sm:$0xff] }
 0x485   : > { %11793 = vmatmul.msk.f32.gmra.mxu0 %vm250_vm2, %v19165_v16  ;;  %19166 = vst [vmem:[#allocation121_spill] sm:$0xff] %v15060_v38  ;;  %v19170_v38 = vld [vmem:[#allocation166_spill] sm:$0xff]  ;;  %11773 = vmatmul.msk.f32.gmra.mxu3 %vm250_vm2, %v14860_v6  ;;  %v19176_v6 = vld [vmem:[#allocation71_spill] sm:$0xff] }
 0x487   : > { %v15062_v27 = vpop.f32.mrf.mxu1  ;;  %11739 = vmatmul.msk.f32.gmra.mxu2 %vm250_vm2, %v19170_v38  ;;  %11821 = vmatmul.msk.f32.gmra.mxu1 %vm250_vm2, %v14355_v32 }
 0x488   : > { %v3485_v29 = vpop.f32.mrf.mxu2 }
 0x489   : > { %v3763_v22 = vpop.f32.mrf.mxu3  ;;  %v3555_v54 = vadd.f32 %v3485_v29, %v3240_v60 }
 0x48a   : > { %v15068_v28 = vpop.f32.mrf.mxu0 }
 0x48b   : > { %v15076_v1 = vadd.f32 %v3763_v22, %v3555_v54  ;;  %v19172_v54 = vld [vmem:[#allocation126_spill] sm:$0xff] }
 0x48d   : > { %11794 = vmatmul.msk.f32.gmra.mxu0 %vm250_vm2, %v19168_v18  ;;  %19169 = vst [vmem:[#allocation116_spill] sm:$0xff] %v15076_v1  ;;  %11774 = vmatmul.msk.f32.gmra.mxu3 %vm250_vm2, %v14864_v39  ;;  %v19177_v39 = vld [vmem:[#allocation72_spill] sm:$0xff] }
 0x48f   : > { %v15078_v16 = vpop.f32.mrf.mxu1  ;;  %11740 = vmatmul.msk.f32.gmra.mxu2 %vm250_vm2, %v14723_v13  ;;  %11822 = vmatmul.msk.f32.gmra.mxu1 %vm250_vm2, %v14363_v3 }
 0x490   : > { %v3488_v60 = vpop.f32.mrf.mxu2 }
 0x491   : > { %v3766_v29 = vpop.f32.mrf.mxu3  ;;  %v3556_v22 = vadd.f32 %v3488_v60, %v3243_v4 }
 0x492   : > { %v15084_v34 = vpop.f32.mrf.mxu0 }
 0x493   : > { %v15092_v18 = vadd.f32 %v3766_v29, %v3556_v22  ;;  %v19175_v22 = vld [vmem:[#allocation130_spill] sm:$0xff] }
 0x495   : > { %11795 = vmatmul.msk.f32.gmra.mxu0 %vm250_vm2, %v19172_v54  ;;  %19173 = vst [vmem:[#allocation86_spill] sm:$0xff] %v15092_v18  ;;  %11879 = vmatmul.msk.f32.vlgmr.msra.gmra.mxu3 %vm250_vm2, %v19177_v39  ;;  %v19181_v39 = vld [vmem:[#allocation75_spill] sm:$0xff] }
 0x497   : > { %v15094_v1 = vpop.f32.mrf.mxu1  ;;  %11845 = vmatmul.msk.f32.vlgmr.msra.gmra.mxu2 %vm250_vm2, %v19176_v6  ;;  %11823 = vmatmul.msk.f32.gmra.mxu1 %vm250_vm2, %v14403_v43 }
 0x498   : > { %v3491_v4 = vpop.f32.mrf.mxu2 }
 0x499   : > { %v3769_v60 = vpop.f32.mrf.mxu3  ;;  %v3557_v29 = vadd.f32 %v3491_v4, %v3246_v35 }
 0x49a   : > { %v15100_v32 = vpop.f32.mrf.mxu0 }
 0x49b   : > { %v15108_v54 = vadd.f32 %v3769_v60, %v3557_v29  ;;  %v19178_v60 = vld [vmem:[#allocation138_spill] sm:$0xff] }
 0x49d   : > { %11796 = vmatmul.msk.f32.gmra.mxu0 %vm250_vm2, %v19175_v22  ;;  %v19180_v22 = vld [vmem:[#allocation74_spill] sm:$0xff]  ;;  %11880 = vmatmul.msk.f32.gmra.mxu3 %vm250_vm2, %v19181_v39 }
 0x49f   : > { %v15110_v18 = vpop.f32.mrf.mxu1  ;;  %11846 = vmatmul.msk.f32.gmra.mxu2 %vm250_vm2, %v19180_v22  ;;  %11824 = vmatmul.msk.f32.gmra.mxu1 %vm250_vm2, %v19128_v41  ;;  %v19184_v22 = vld [vmem:[#allocation81_spill] sm:$0xff] }
 0x4a0   : > { %v3494_v20 = vpop.f32.mrf.mxu2 }
 0x4a1   : > { %v3772_v35 = vpop.f32.mrf.mxu3  ;;  %v3558_v4 = vadd.f32 %v3494_v20, %v3249_v21 }
 0x4a2   : > { %v15116_v3 = vpop.f32.mrf.mxu0 }
 0x4a3   : > { %v15124_v29 = vadd.f32 %v3772_v35, %v3558_v4  ;;  %v19183_v4 = vld [vmem:[#allocation142_spill] sm:$0xff] }
 0x4a5   : > { %11797 = vmatmul.msk.f32.gmra.mxu0 %vm250_vm2, %v19178_v60  ;;  %19179 = vst [vmem:[#allocation118_spill] sm:$0xff] %v15124_v29  ;;  %v19185_v29 = vld [vmem:[#allocation83_spill] sm:$0xff] }
 0x4a6   : > { %11881 = vmatmul.msk.f32.gmra.mxu3 %vm250_vm2, %v19185_v29  ;;  %v19188_v29 = vld [vmem:[#allocation82_spill] sm:$0xff] }
 0x4a7   : > { %v15126_v6 = vpop.f32.mrf.mxu1  ;;  %11847 = vmatmul.msk.f32.gmra.mxu2 %vm250_vm2, %v19184_v22  ;;  %11825 = vmatmul.msk.f32.gmra.mxu1 %vm250_vm2, %v19132_v40  ;;  %v3258_v40 = vadd.f32 %v14958_v53, %v14808_v5  ;;  %v3261_v5 = vadd.f32 %v14974_v2, %v14837_v11  ;;  %v3264_v11 = vadd.f32 %v14990_v8, %v14854_v57 }
 0x4a8   : > { %v3497_v21 = vpop.f32.mrf.mxu2  ;;  %v3267_v57 = vadd.f32 %v15006_v59, %v14884_v46  ;;  %v3270_v46 = vadd.f32 %v15022_v12, %v14900_v42 }
 0x4a9   : > { %v3775_v20 = vpop.f32.mrf.mxu3  ;;  %v3559_v35 = vadd.f32 %v3497_v21, %v3252_v58 }
 0x4aa   : > { %v15132_v43 = vpop.f32.mrf.mxu0 }
 0x4ab   : > { %v15140_v60 = vadd.f32 %v3775_v20, %v3559_v35  ;;  %v19186_v20 = vld [vmem:[#allocation149_spill] sm:$0xff] }
 0x4ad   : > { %11798 = vmatmul.msk.f32.gmra.mxu0 %vm250_vm2, %v19183_v4  ;;  %v19187_v4 = vld [vmem:[#allocation80_spill] sm:$0xff] }
 0x4ae   : > { %11882 = vmatmul.msk.f32.gmra.mxu3 %vm250_vm2, %v19188_v29 }
 0x4af   : > { %v15144_v39 = vpop.f32.mrf.mxu1  ;;  %11848 = vmatmul.msk.f32.gmra.mxu2 %vm250_vm2, %v19187_v4  ;;  %11826 = vmatmul.msk.f32.gmra.mxu1 %vm250_vm2, %v19136_v19  ;;  %v19191_v4 = vld [vmem:[#allocation90_spill] sm:$0xff] }
 0x4b0   : > { %v3500_v14 = vpop.f32.mrf.mxu2 }
 0x4b1   : > { %v3778_v58 = vpop.f32.mrf.mxu3  ;;  %v3560_v21 = vadd.f32 %v3500_v14, %v3255_v61 }
 0x4b2   : > { %v15148_v41 = vpop.f32.mrf.mxu0 }
 0x4b3   : > { %v15156_v35 = vadd.f32 %v3778_v58, %v3560_v21  ;;  %v19189_v58 = vld [vmem:[#allocation153_spill] sm:$0xff] }
 0x4b5   : > { %11799 = vmatmul.msk.f32.gmra.mxu0 %vm250_vm2, %v19186_v20  ;;  %v19190_v20 = vld [vmem:[#allocation88_spill] sm:$0xff] }
 0x4b6   : > { %11883 = vmatmul.msk.f32.gmra.mxu3 %vm250_vm2, %v19191_v4 }
 0x4b7   : > { %v15168_v44 = vpop.f32.mrf.mxu1  ;;  %11849 = vmatmul.msk.f32.gmra.mxu2 %vm250_vm2, %v19190_v20  ;;  %11827 = vmatmul.msk.f32.gmra.mxu1 %vm250_vm2, %v19140_v50  ;;  %v19194_v20 = vld [vmem:[#allocation91_spill] sm:$0xff] }
 0x4b8   : > { %v3503_v36 = vpop.f32.mrf.mxu2 }
 0x4b9   : > { %v3781_v61 = vpop.f32.mrf.mxu3  ;;  %v3561_v14 = vadd.f32 %v3503_v36, %v3258_v40 }
 0x4ba   : > { %v15162_v22 = vpop.f32.mrf.mxu0 }
 0x4bb   : > { %v15172_v21 = vadd.f32 %v3781_v61, %v3561_v14  ;;  %v19192_v61 = vld [vmem:[#allocation160_spill] sm:$0xff] }
 0x4bd   : > { %11800 = vmatmul.msk.f32.gmra.mxu0 %vm250_vm2, %v19189_v58  ;;  %v19193_v58 = vld [vmem:[#allocation89_spill] sm:$0xff] }
 0x4be   : > { %11884 = vmatmul.msk.f32.gmra.mxu3 %vm250_vm2, %v19194_v20 }
 0x4bf   : > { %v15184_v36 = vpop.f32.mrf.mxu1  ;;  %11850 = vmatmul.msk.f32.gmra.mxu2 %vm250_vm2, %v19193_v58  ;;  %11828 = vmatmul.msk.f32.gmra.mxu1 %vm250_vm2, %v14513_v48  ;;  %v19197_v58 = vld [vmem:[#allocation101_spill] sm:$0xff] }
 0x4c0   : > { %v3506_v53 = vpop.f32.mrf.mxu2 }
 0x4c1   : > { %v3784_v29 = vpop.f32.mrf.mxu3  ;;  %v3562_v40 = vadd.f32 %v3506_v53, %v3261_v5  ;;  %v19195_v53 = vld [vmem:[#allocation164_spill] sm:$0xff] }
 0x4c2   : > { %v15178_v19 = vpop.f32.mrf.mxu0 }
 0x4c3   : > { %v15188_v14 = vadd.f32 %v3784_v29, %v3562_v40 }
 0x4c5   : > { %11801 = vmatmul.msk.f32.gmra.mxu0 %vm250_vm2, %v19192_v61  ;;  %v19196_v61 = vld [vmem:[#allocation98_spill] sm:$0xff] }
 0x4c6   : > { %11885 = vmatmul.msk.f32.gmra.mxu3 %vm250_vm2, %v19197_v58 }
 0x4c7   : > { %v15202_v29 = vpop.f32.mrf.mxu1  ;;  %11851 = vmatmul.msk.f32.gmra.mxu2 %vm250_vm2, %v19196_v61  ;;  %11829 = vmatmul.msk.f32.gmra.mxu1 %vm250_vm2, %v19147_v51  ;;  %v19201_v61 = vld [vmem:[#allocation100_spill] sm:$0xff] }
 0x4c8   : > { %v3509_v2 = vpop.f32.mrf.mxu2 }
 0x4c9   : > { %v3787_v4 = vpop.f32.mrf.mxu3  ;;  %v3563_v5 = vadd.f32 %v3509_v2, %v3264_v11  ;;  %v19198_v2 = vld [vmem:[#allocation174_spill] sm:$0xff] }
 0x4ca   : > { %v15194_v50 = vpop.f32.mrf.mxu0 }
 0x4cb   : > { %v15204_v40 = vadd.f32 %v3787_v4, %v3563_v5  ;;  %v19200_v5 = vld [vmem:[#allocation97_spill] sm:$0xff] }
 0x4cd   : > { %11802 = vmatmul.msk.f32.gmra.mxu0 %vm250_vm2, %v19195_v53 }
 0x4ce   : > { %11886 = vmatmul.msk.f32.gmra.mxu3 %vm250_vm2, %v19201_v61 }
 0x4cf   : > { %11852 = vmatmul.msk.f32.gmra.mxu2 %vm250_vm2, %v19200_v5  ;;  %v15222_v53 = vpop.f32.mrf.mxu1  ;;  %11830 = vmatmul.msk.f32.gmra.mxu1 %vm250_vm2, %v19151_v49  ;;  %v19205_v5 = vld [vmem:[#allocation108_spill] sm:$0xff]  ;;  %v3273_v49 = vadd.f32 %v15038_v62, %v14916_v17  ;;  %v3276_v17 = vadd.f32 %v15062_v27, %v14932_v26  ;;  %v3279_v26 = vadd.f32 %v15078_v16, %v14948_v7 }
 0x4d0   : > { %v3512_v8 = vpop.f32.mrf.mxu2  ;;  %v3282_v7 = vadd.f32 %v15094_v1, %v14964_v56  ;;  %v3285_v1 = vadd.f32 %v15110_v18, %v14980_v37  ;;  %v3288_v37 = vadd.f32 %v15126_v6, %v14996_v30  ;;  %v3291_v30 = vadd.f32 %v15144_v39, %v15012_v33 }
 0x4d1   : > { %v3790_v20 = vpop.f32.mrf.mxu3  ;;  %v3564_v11 = vadd.f32 %v3512_v8, %v3267_v57  ;;  %v19202_v8 = vld [vmem:[#allocation171_spill] sm:$0xff]  ;;  %v3294_v33 = vadd.f32 %v15168_v44, %v15028_v25  ;;  %v19236_v44 = vld [vmem:[#allocation177_spill] sm:$0xff] }
 0x4d2   : > { %v15210_v48 = vpop.f32.mrf.mxu0 }
 0x4d3   : > { %v15218_v4 = vadd.f32 %v3790_v20, %v3564_v11  ;;  %v19204_v11 = vld [vmem:[#allocation107_spill] sm:$0xff] }
 0x4d5   : > { %11803 = vmatmul.msk.f32.gmra.mxu0 %vm250_vm2, %v19198_v2  ;;  %19199 = vst [vmem:[#allocation87_spill] sm:$0xff] %v15218_v4 }
 0x4d6   : > { %11887 = vmatmul.msk.f32.gmra.mxu3 %vm250_vm2, %v19205_v5 }
 0x4d7   : > { %11853 = vmatmul.msk.f32.gmra.mxu2 %vm250_vm2, %v19204_v11  ;;  %11831 = vmatmul.msk.f32.gmra.mxu1 %vm250_vm2, %v19155_v23  ;;  %v15246_v42 = vpop.f32.mrf.mxu1  ;;  %v19208_v11 = vld [vmem:[#allocation113_spill] sm:$0xff] }
 0x4d8   : > { %v3515_v59 = vpop.f32.mrf.mxu2 }
 0x4d9   : > { %v3793_v58 = vpop.f32.mrf.mxu3  ;;  %v3565_v57 = vadd.f32 %v3515_v59, %v3270_v46 }
 0x4da   : > { %v15226_v51 = vpop.f32.mrf.mxu0 }
 0x4db   : > { %v15234_v20 = vadd.f32 %v3793_v58, %v3565_v57  ;;  %v19207_v57 = vld [vmem:[#allocation110_spill] sm:$0xff] }
 0x4dd   : > { %11804 = vmatmul.msk.f32.gmra.mxu0 %vm250_vm2, %v19202_v8  ;;  %19203 = vst [vmem:[#allocation132_spill] sm:$0xff] %v15234_v20  ;;  %v19251_v20 = vld [vmem:[#allocation167_spill] sm:$0xff] }
 0x4de   : > { %11888 = vmatmul.msk.f32.gmra.mxu3 %vm250_vm2, %v19208_v11 }
 0x4df   : > { %11854 = vmatmul.msk.f32.gmra.mxu2 %vm250_vm2, %v19207_v57  ;;  %11832 = vmatmul.msk.f32.gmra.mxu1 %vm250_vm2, %v19159_v45  ;;  %v19211_v57 = vld [vmem:[#allocation119_spill] sm:$0xff] }
 0x4e0   : > { %v3518_v12 = vpop.f32.mrf.mxu2 }
 0x4e1   : > { %v3796_v46 = vpop.f32.mrf.mxu3  ;;  %v3566_v59 = vadd.f32 %v3518_v12, %v3273_v49  ;;  %v15262_v12 = vpop.f32.mrf.mxu1 }
 0x4e2   : > { %v15240_v61 = vpop.f32.mrf.mxu0 }
 0x4e3   : > { %v15250_v58 = vadd.f32 %v3796_v46, %v3566_v59  ;;  %v19209_v46 = vld [vmem:[#allocation176_spill] sm:$0xff] }
 0x4e5   : > { %11805 = vmatmul.msk.f32.gmra.mxu0 %vm250_vm2, %v14824_v31  ;;  %19206 = vst [vmem:[#allocation125_spill] sm:$0xff] %v15250_v58 }
 0x4e6   : > { %11889 = vmatmul.msk.f32.gmra.mxu3 %vm250_vm2, %v19211_v57 }
 0x4e7   : > { %11855 = vmatmul.msk.f32.gmra.mxu2 %vm250_vm2, %v14499_v63  ;;  %11833 = vmatmul.msk.f32.gmra.mxu1 %vm250_vm2, %v19163_v0 }
 0x4e8   : > { %v3521_v62 = vpop.f32.mrf.mxu2 }
 0x4e9   : > { %v3799_v5 = vpop.f32.mrf.mxu3  ;;  %v3567_v49 = vadd.f32 %v3521_v62, %v3276_v17  ;;  %v15280_v62 = vpop.f32.mrf.mxu1 }
 0x4ea   : > { %v15256_v23 = vpop.f32.mrf.mxu0 }
 0x4eb   : > { %v15266_v59 = vadd.f32 %v3799_v5, %v3567_v49  ;;  %v19213_v5 = vld [vmem:[#allocation122_spill] sm:$0xff] }
 0x4ed   : > { %11806 = vmatmul.msk.f32.gmra.mxu0 %vm250_vm2, %v19209_v46  ;;  %19210 = vst [vmem:[#allocation94_spill] sm:$0xff] %v15266_v59 }
 0x4ee   : > { %11890 = vmatmul.msk.f32.gmra.mxu3 %vm250_vm2, %v19213_v5 }
 0x4ef   : > { %11856 = vmatmul.msk.f32.gmra.mxu2 %vm250_vm2, %v14505_v52  ;;  %11834 = vmatmul.msk.f32.gmra.mxu1 %vm250_vm2, %v14667_v15  ;;  %v19216_v52 = vld [vmem:[#allocation128_spill] sm:$0xff]  ;;  %v11979_v15 = vld [vmem:[%s18820_s3 + $0x1e] sm:$0x3] }
 0x4f0   : > { %v3524_v27 = vpop.f32.mrf.mxu2  ;;  %12014 = vmatpush.msk.msrb.mxu3 %vm789_vm1, %v11979_v15 }
 0x4f1   : > { %v3802_v11 = vpop.f32.mrf.mxu3  ;;  %v3568_v17 = vadd.f32 %v3524_v27, %v3279_v26  ;;  %v19214_v26 = vld [vmem:[#allocation183_spill] sm:$0xff] }
 0x4f2   : > { %v15272_v45 = vpop.f32.mrf.mxu0 }
 0x4f3   : > { %v15282_v63 = vadd.f32 %v3802_v11, %v3568_v17  ;;  %v15300_v11 = vpop.f32.mrf.mxu1  ;;  %v19217_v17 = vld [vmem:[#allocation129_spill] sm:$0xff] }
 0x4f5   : > { %11807 = vmatmul.msk.f32.gmra.mxu0 %vm250_vm2, %v14862_v47  ;;  %19212 = vst [vmem:[#allocation133_spill] sm:$0xff] %v15282_v63  ;;  %v19244_v63 = vld [vmem:[#allocation162_spill] sm:$0xff] }
 0x4f6   : > { %11891 = vmatmul.msk.f32.gmra.mxu3 %vm250_vm2, %v19217_v17  ;;  %v19221_v17 = vld [vmem:[#allocation134_spill] sm:$0xff] }
 0x4f7   : > { %11857 = vmatmul.msk.f32.gmra.mxu2 %vm250_vm2, %v19216_v52  ;;  %11835 = vmatmul.msk.f32.gmra.mxu1 %vm250_vm2, %v19170_v38  ;;  %v19220_v52 = vld [vmem:[#allocation131_spill] sm:$0xff] }
 0x4f8   : > { %v3527_v16 = vpop.f32.mrf.mxu2 }
 0x4f9   : > { %v3805_v49 = vpop.f32.mrf.mxu3  ;;  %v3569_v57 = vadd.f32 %v3527_v16, %v3282_v7 }
 0x4fa   : > { %v15288_v0 = vpop.f32.mrf.mxu0 }
 0x4fb   : > { %v15296_v27 = vadd.f32 %v3805_v49, %v3569_v57  ;;  %v19218_v49 = vld [vmem:[#allocation76_spill] sm:$0xff]  ;;  %v15328_v18 = vpop.f32.mrf.mxu1 }
 0x4fd   : > { %11808 = vmatmul.msk.f32.gmra.mxu0 %vm250_vm2, %v19214_v26  ;;  %19215 = vst [vmem:[#allocation127_spill] sm:$0xff] %v15296_v27 }
 0x4fe   : > { %11892 = vmatmul.msk.f32.gmra.mxu3 %vm250_vm2, %v19221_v17  ;;  %v19226_v17 = vld [vmem:[#allocation172_spill] sm:$0xff] }
 0x4ff   : > { %11858 = vmatmul.msk.f32.gmra.mxu2 %vm250_vm2, %v19220_v52  ;;  %11836 = vmatmul.msk.f32.gmra.mxu1 %vm250_vm2, %v14723_v13  ;;  %v19225_v52 = vld [vmem:[#allocation141_spill] sm:$0xff] }
 0x500   : > { %v3530_v5 = vpop.f32.mrf.mxu2 }
 0x501   : > { %v3808_v7 = vpop.f32.mrf.mxu3  ;;  %v3570_v16 = vadd.f32 %v3530_v5, %v3285_v1 }
 0x502   : > { %v15307_v56 = vpop.f32.mrf.mxu0 }
 0x503   : > { %v15316_v57 = vadd.f32 %v3808_v7, %v3570_v16  ;;  %v19222_v7 = vld [vmem:[#allocation77_spill] sm:$0xff] }
 0x505   : > { %11913 = vmatmul.msk.f32.vlgmr.msra.gmra.mxu0 %vm250_vm2, %v19218_v49  ;;  %19219 = vst [vmem:[#allocation96_spill] sm:$0xff] %v15316_v57  ;;  %v19224_v49 = vld [vmem:[#allocation140_spill] sm:$0xff] }
 0x506   : > { %11893 = vmatmul.msk.f32.gmra.mxu3 %vm250_vm2, %v19225_v52  ;;  %v19235_v57 = vld [vmem:[#allocation152_spill] sm:$0xff] }
 0x507   : > { %11859 = vmatmul.msk.f32.gmra.mxu2 %vm250_vm2, %v19224_v49  ;;  %11837 = vmatmul.msk.f32.gmra.mxu1 %vm250_vm2, %v19226_v17  ;;  %v19229_v49 = vld [vmem:[#allocation145_spill] sm:$0xff] }
 0x508   : > { %v3533_v15 = vpop.f32.mrf.mxu2 }
 0x509   : > { %v3811_v1 = vpop.f32.mrf.mxu3  ;;  %v3571_v5 = vadd.f32 %v3533_v15, %v3288_v37 }
 0x50a   : > { %v15322_v38 = vpop.f32.mrf.mxu0 }
 0x50b   : > { %v15332_v16 = vadd.f32 %v3811_v1, %v3571_v5  ;;  %v19227_v1 = vld [vmem:[#allocation84_spill] sm:$0xff] }
 0x50d   : > { %11914 = vmatmul.msk.f32.gmra.mxu0 %vm250_vm2, %v19222_v7  ;;  %19223 = vst [vmem:[#allocation143_spill] sm:$0xff] %v15332_v16  ;;  %v15344_v7 = vpop.f32.mrf.mxu1  ;;  %v19230_v16 = vld [vmem:[#allocation175_spill] sm:$0xff] }
 0x50e   : > { %11894 = vmatmul.msk.f32.gmra.mxu3 %vm250_vm2, %v19229_v49 }
 0x50f   : > { %11860 = vmatmul.msk.f32.gmra.mxu2 %vm250_vm2, %v14607_v10  ;;  %11838 = vmatmul.msk.f32.gmra.mxu1 %vm250_vm2, %v19230_v16 }
 0x510   : > { %v3536_v6 = vpop.f32.mrf.mxu2 }
 0x511   : > { %v3814_v37 = vpop.f32.mrf.mxu3  ;;  %v3572_v15 = vadd.f32 %v3536_v6, %v3291_v30 }
 0x512   : > { %v15338_v13 = vpop.f32.mrf.mxu0 }
 0x513   : > { %v15348_v5 = vadd.f32 %v3814_v37, %v3572_v15  ;;  %v19233_v15 = vld [vmem:[#allocation180_spill] sm:$0xff] }
 0x514   : > { %v4098_v49 = vadd.f32 %v15047_v55, %v19233_v15  ;;  %v19238_v55 = vld [vmem:[#allocation186_spill] sm:$0xff] }
 0x515   : > { %11915 = vmatmul.msk.f32.gmra.mxu0 %vm250_vm2, %v19227_v1  ;;  %19228 = vst [vmem:[#allocation137_spill] sm:$0xff] %v15348_v5  ;;  %v19231_v1 = vld [vmem:[#allocation85_spill] sm:$0xff]  ;;  %v15362_v37 = vpop.f32.mrf.mxu1  ;;  %v19234_v5 = vld [vmem:[#allocation151_spill] sm:$0xff]  ;;  %v19239_v15 = vld [vmem:[#allocation154_spill] sm:$0xff] }
 0x516   : > { %11895 = vmatmul.msk.f32.gmra.mxu3 %vm250_vm2, %v19235_v57 }
 0x517   : > { %11861 = vmatmul.msk.f32.gmra.mxu2 %vm250_vm2, %v19234_v5  ;;  %11839 = vmatmul.msk.f32.gmra.mxu1 %vm250_vm2, %v19236_v44  ;;  %v4099_v5 = vadd.f32 %v15068_v28, %v19238_v55  ;;  %v19242_v28 = vld [vmem:[#allocation93_spill] sm:$0xff]  ;;  %v19243_v55 = vld [vmem:[#allocation70_spill] sm:$0xff] }
 0x518   : > { %v3539_v39 = vpop.f32.mrf.mxu2 }
 0x519   : > { %v3817_v30 = vpop.f32.mrf.mxu3  ;;  %v3573_v6 = vadd.f32 %v3539_v39, %v3294_v33  ;;  %v4376_v33 = vadd.f32 %v15184_v36, %v4098_v49  ;;  %v19241_v49 = vld [vmem:[#allocation179_spill] sm:$0xff] }
 0x51a   : > { %v15354_v52 = vpop.f32.mrf.mxu0 }
 0x51b   : > { %v15364_v10 = vadd.f32 %v3817_v30, %v3573_v6  ;;  %v19237_v6 = vld [vmem:[#allocation92_spill] sm:$0xff] }
 0x51d   : > { %11916 = vmatmul.msk.f32.gmra.mxu0 %vm250_vm2, %v19231_v1  ;;  %19232 = vst [vmem:[#allocation105_spill] sm:$0xff] %v15364_v10  ;;  %v15387_v57 = vpop.f32.mrf.mxu1  ;;  %v19240_v10 = vld [vmem:[#allocation156_spill] sm:$0xff] }
 0x51e   : > { %11896 = vmatmul.msk.f32.gmra.mxu3 %vm250_vm2, %v19240_v10  ;;  %v19245_v10 = vld [vmem:[#allocation163_spill] sm:$0xff] }
 0x51f   : > { %11862 = vmatmul.msk.f32.gmra.mxu2 %vm250_vm2, %v19239_v15  ;;  %11840 = vmatmul.msk.f32.gmra.mxu1 %vm250_vm2, %v19241_v49  ;;  %v4100_v15 = vadd.f32 %v15084_v34, %v19243_v55  ;;  %v19248_v34 = vld [vmem:[#allocation102_spill] sm:$0xff] }
 0x520   : > { %v4559_v39 = vpop.f32.mrf.mxu2 }
 0x521   : > { %v15377_v1 = vpop.f32.mrf.mxu3  ;;  %v15379_v30 = vadd.f32 %v4559_v39, %v4376_v33  ;;  %v4377_v33 = vadd.f32 %v15202_v29, %v4099_v5  ;;  %v19247_v29 = vld [vmem:[#allocation184_spill] sm:$0xff]  ;;  %v4378_v5 = vadd.f32 %v15222_v53, %v4100_v15  ;;  %v19253_v15 = vld [vmem:[#allocation185_spill] sm:$0xff] }
 0x522   : > { %v15372_v25 = vpop.f32.mrf.mxu0 }
 0x525   : > { %11917 = vmatmul.msk.f32.gmra.mxu0 %vm250_vm2, %v19237_v6 }
 0x526   : > { %11897 = vmatmul.msk.f32.gmra.mxu3 %vm250_vm2, %v19245_v10  ;;  %v19250_v10 = vld [vmem:[#allocation165_spill] sm:$0xff] }
 0x527   : > { %11863 = vmatmul.msk.f32.gmra.mxu2 %vm250_vm2, %v19244_v63  ;;  %11841 = vmatmul.msk.f32.gmra.mxu1 %vm250_vm2, %v19247_v29  ;;  %v19249_v63 = vld [vmem:[#allocation99_spill] sm:$0xff] }
 0x528   : > { %v4562_v39 = vpop.f32.mrf.mxu2  ;;  %v4101_v55 = vadd.f32 %v15100_v32, %v19249_v63  ;;  %v19254_v32 = vld [vmem:[#allocation103_spill] sm:$0xff] }
 0x529   : > { %v15396_v6 = vpop.f32.mrf.mxu3  ;;  %v15398_v27 = vadd.f32 %v4562_v39, %v4377_v33  ;;  %v15413_v33 = vpop.f32.mrf.mxu1  ;;  %v19255_v63 = vld [vmem:[#allocation95_spill] sm:$0xff] }
 0x52a   : > { %v15391_v36 = vpop.f32.mrf.mxu0 }
 0x52d   : > { %11918 = vmatmul.msk.f32.gmra.mxu0 %vm250_vm2, %v19242_v28 }
 0x52e   : > { %11898 = vmatmul.msk.f32.gmra.mxu3 %vm250_vm2, %v19251_v20  ;;  %v4102_v20 = vadd.f32 %v15116_v3, %v19255_v63  ;;  %v12047_v3 = vld [vmem:[%s18820_s3 + $0x22] sm:$0x3] }
 0x52f   : > { %11864 = vmatmul.msk.f32.gmra.mxu2 %vm250_vm2, %v19250_v10  ;;  %11842 = vmatmul.msk.f32.gmra.mxu1 %vm250_vm2, %v19253_v15  ;;  %v19256_v10 = vld [vmem:[#allocation173_spill] sm:$0xff]  ;;  %v19258_v15 = vld [vmem:[#allocation114_spill] sm:$0xff] }
 0x530   : > { %v4565_v39 = vpop.f32.mrf.mxu2  ;;  %12048 = vmatpush.msk.msrb.mxu0 %vm789_vm1, %v12047_v3  ;;  %v19262_v3 = vld [vmem:[#allocation111_spill] sm:$0xff] }
 0x531   : > { %v15415_v28 = vpop.f32.mrf.mxu3  ;;  %v15417_v58 = vadd.f32 %v4565_v39, %v4378_v5  ;;  %v4379_v5 = vadd.f32 %v15246_v42, %v4101_v55  ;;  %v15436_v4 = vpop.f32.mrf.mxu1  ;;  %v4380_v55 = vadd.f32 %v15262_v12, %v4102_v20 }
 0x532   : > { %v15408_v59 = vpop.f32.mrf.mxu0 }
 0x533   : > { %19246 = vst [vmem:[#allocation144_spill] sm:$0xff] %v15408_v59 }
 0x535   : > { %11919 = vmatmul.msk.f32.gmra.mxu0 %vm250_vm2, %v19248_v34 }
 0x536   : > { %11899 = vmatmul.msk.f32.gmra.mxu3 %vm250_vm2, %v19198_v2  ;;  %v19259_v2 = vld [vmem:[#allocation73_spill] sm:$0xff] }
 0x537   : > { %11865 = vmatmul.msk.f32.gmra.mxu2 %vm250_vm2, %v19256_v10  ;;  %v4103_v63 = vadd.f32 %v15132_v43, %v19259_v2  ;;  %v4104_v43 = vadd.f32 %v15148_v41, %v19262_v3  ;;  %v19266_v41 = vld [vmem:[#allocation104_spill] sm:$0xff] }
 0x538   : > { %v4568_v39 = vpop.f32.mrf.mxu2  ;;  %v4105_v3 = vadd.f32 %v15162_v22, %v19266_v41  ;;  %v19269_v22 = vld [vmem:[#allocation78_spill] sm:$0xff]  ;;  %v19270_v41 = vld [vmem:[#allocation181_spill] sm:$0xff] }
 0x539   : > { %v15432_v59 = vpop.f32.mrf.mxu3  ;;  %v15434_v34 = vadd.f32 %v4568_v39, %v4379_v5 }
 0x53a   : > { %v15427_v53 = vpop.f32.mrf.mxu0 }
 0x53b   : > { %19252 = vst [vmem:[#allocation139_spill] sm:$0xff] %v15427_v53 }
 0x53d   : > { %11920 = vmatmul.msk.f32.gmra.mxu0 %vm250_vm2, %v19254_v32  ;;  %v15459_v32 = vpop.f32.mrf.mxu1 }
 0x53e   : > { %11900 = vmatmul.msk.f32.gmra.mxu3 %vm250_vm2, %v19202_v8 }
 0x53f   : > { %11866 = vmatmul.msk.f32.gmra.mxu2 %vm250_vm2, %v14768_v24  ;;  %v19263_v24 = vld [vmem:[#allocation178_spill] sm:$0xff] }
 0x540   : > { %v4571_v5 = vpop.f32.mrf.mxu2 }
 0x541   : > { %v15449_v39 = vpop.f32.mrf.mxu3  ;;  %v15451_v53 = vadd.f32 %v4571_v5, %v4380_v55  ;;  %v19261_v5 = vld [vmem:[#allocation115_spill] sm:$0xff] }
 0x542   : > { %v15446_v42 = vpop.f32.mrf.mxu0 }
 0x543   : > { %19257 = vst [vmem:[#allocation109_spill] sm:$0xff] %v15446_v42  ;;  %v19280_v42 = vld [vmem:[#allocation79_spill] sm:$0xff] }
 0x545   : > { %11921 = vmatmul.msk.f32.gmra.mxu0 %vm250_vm2, %v19258_v15  ;;  %v4381_v15 = vadd.f32 %v15280_v62, %v4103_v63  ;;  %v15478_v2 = vpop.f32.mrf.mxu1  ;;  %v4382_v62 = vadd.f32 %v15300_v11, %v4104_v43  ;;  %v4383_v11 = vadd.f32 %v15328_v18, %v4105_v3 }
 0x546   : > { %11901 = vmatmul.msk.f32.gmra.mxu3 %vm250_vm2, %v14824_v31 }
 0x547   : > { %11867 = vmatmul.msk.f32.gmra.mxu2 %vm250_vm2, %v19263_v24 }
 0x548   : > { %v4574_v20 = vpop.f32.mrf.mxu2 }
 0x549   : > { %v15470_v10 = vpop.f32.mrf.mxu3  ;;  %v15472_v55 = vadd.f32 %v4574_v20, %v4381_v15 }
 0x54a   : > { %v15467_v12 = vpop.f32.mrf.mxu0 }
 0x54b   : > { %19260 = vst [vmem:[#allocation155_spill] sm:$0xff] %v15467_v12  ;;  %v4714_v12 = vld [vmem:[#allocation2 + $0x310] sm:$0xff] }
 0x54d   : > { %11922 = vmatmul.msk.f32.gmra.mxu0 %vm250_vm2, %v19261_v5  ;;  %v19265_v5 = vld [vmem:[#allocation123_spill] sm:$0xff]  ;;  %v15502_v43 = vpop.f32.mrf.mxu1 }
 0x54e   : > { %11902 = vmatmul.msk.f32.gmra.mxu3 %vm250_vm2, %v19209_v46 }
 0x54f   : > { %11868 = vmatmul.msk.f32.gmra.mxu2 %vm250_vm2, %v14812_v9  ;;  %v4106_v9 = vadd.f32 %v15178_v19, %v19269_v22  ;;  %v19273_v19 = vld [vmem:[#allocation112_spill] sm:$0xff] }
 0x550   : > { %v4577_v63 = vpop.f32.mrf.mxu2  ;;  %v4107_v22 = vadd.f32 %v15194_v50, %v19273_v19  ;;  %v4713_v19 = vld [vmem:[#allocation2 + $0x308] sm:$0xff] }
 0x551   : > { %v15487_v15 = vpop.f32.mrf.mxu3  ;;  %v15489_v20 = vadd.f32 %v4577_v63, %v4382_v62  ;;  %v4384_v18 = vadd.f32 %v15344_v7, %v4106_v9 }
 0x552   : > { %v15484_v8 = vpop.f32.mrf.mxu0  ;;  %v4385_v7 = vadd.f32 %v15362_v37, %v4107_v22 }
 0x553   : > { %19264 = vst [vmem:[#allocation148_spill] sm:$0xff] %v15484_v8 }
 0x555   : > { %11923 = vmatmul.msk.f32.gmra.mxu0 %vm250_vm2, %v19265_v5  ;;  %v19268_v5 = vld [vmem:[#allocation124_spill] sm:$0xff] }
 0x556   : > { %11903 = vmatmul.msk.f32.gmra.mxu3 %vm250_vm2, %v14862_v47 }
 0x557   : > { %11869 = vmatmul.msk.f32.gmra.mxu2 %vm250_vm2, %v19270_v41  ;;  %v19274_v41 = vld [vmem:[#allocation182_spill] sm:$0xff] }
 0x558   : > { %v4580_v24 = vpop.f32.mrf.mxu2 }
 0x559   : > { %v15504_v62 = vpop.f32.mrf.mxu3  ;;  %v15506_v63 = vadd.f32 %v4580_v24, %v4383_v11  ;;  %v15521_v11 = vpop.f32.mrf.mxu1 }
 0x55a   : > { %v15499_v31 = vpop.f32.mrf.mxu0 }
 0x55b   : > { %19267 = vst [vmem:[#allocation117_spill] sm:$0xff] %v15499_v31 }
 0x55d   : > { %11924 = vmatmul.msk.f32.gmra.mxu0 %vm250_vm2, %v19268_v5  ;;  %v19272_v5 = vld [vmem:[#allocation135_spill] sm:$0xff] }
 0x55e   : > { %11904 = vmatmul.msk.f32.gmra.mxu3 %vm250_vm2, %v19214_v26 }
 0x55f   : > { %11870 = vmatmul.msk.f32.gmra.mxu2 %vm250_vm2, %v19274_v41  ;;  %v19277_v41 = vld [vmem:[#allocation106_spill] sm:$0xff] }
 0x560   : > { %v4583_v3 = vpop.f32.mrf.mxu2  ;;  %v4108_v8 = vadd.f32 %v15210_v48, %v19277_v41  ;;  %v4109_v48 = vadd.f32 %v15226_v51, %v19280_v42  ;;  %v4715_v51 = vld [vmem:[#allocation2 + $0x328] sm:$0xff]  ;;  %v19283_v42 = vld [vmem:[#allocation121_spill] sm:$0xff] }
 0x561   : > { %v15519_v31 = vpop.f32.mrf.mxu3  ;;  %v15523_v24 = vadd.f32 %v4583_v3, %v4384_v18  ;;  %v19276_v3 = vld [vmem:[#allocation136_spill] sm:$0xff]  ;;  %v15542_v50 = vpop.f32.mrf.mxu1 }
 0x562   : > { %v15516_v46 = vpop.f32.mrf.mxu0  ;;  %v4386_v37 = vadd.f32 %v15387_v57, %v4108_v8  ;;  %v4387_v8 = vadd.f32 %v15413_v33, %v4109_v48  ;;  %v15580_v33 = vld [vmem:[%s18821_s4 + $0x2] ss:$0 sm:$0xff] }
 0x563   : > { %19271 = vst [vmem:[#allocation150_spill] sm:$0xff] %v15516_v46 }
 0x565   : > { %11925 = vmatmul.msk.f32.gmra.mxu0 %vm250_vm2, %v19272_v5  ;;  %v4435_v5 = vld [vmem:[#allocation2 + $0x305] sm:$0xff] }
 0x566   : > { %11905 = vmatmul.msk.f32.gmra.mxu3 %vm250_vm2, %v4713_v19 }
 0x567   : > { %11871 = vmatmul.msk.f32.gmra.mxu2 %vm250_vm2, %v4435_v5 }
 0x568   : > { %v4586_v9 = vpop.f32.mrf.mxu2 }
 0x569   : > { %v15536_v46 = vpop.f32.mrf.mxu3  ;;  %v15538_v18 = vadd.f32 %v4586_v9, %v4385_v7  ;;  %v15559_v5 = vpop.f32.mrf.mxu1 }
 0x56a   : > { %v15533_v47 = vpop.f32.mrf.mxu0 }
 0x56b   : > { %19275 = vst [vmem:[#allocation120_spill] sm:$0xff] %v15533_v47  ;;  %v4436_v47 = vld [vmem:[#allocation2 + $0x30d] sm:$0xff] }
 0x56d   : > { %11926 = vmatmul.msk.f32.gmra.mxu0 %vm250_vm2, %v19276_v3  ;;  %v19279_v3 = vld [vmem:[#allocation146_spill] sm:$0xff] }
 0x56e   : > { %11906 = vmatmul.msk.f32.gmra.mxu3 %vm250_vm2, %v4714_v12  ;;  %v4933_v12 = vadd.f32 %v15377_v1, %v15379_v30 }
 0x56f   : > { %11872 = vmatmul.msk.f32.gmra.mxu2 %vm250_vm2, %v4436_v47  ;;  %v12115_v47 = vld [vmem:[%s18820_s3 + $0x26] sm:$0x3] }
 0x570   : > { %v4589_v22 = vpop.f32.mrf.mxu2  ;;  %12116 = vmatpush.msk.msra.mxu2 %vm789_vm1, %v12115_v47  ;;  %v4438_v47 = vld [vmem:[#allocation2 + $0x32d] sm:$0xff] }
 0x571   : > { %v15551_v7 = vpop.f32.mrf.mxu3  ;;  %v15553_v9 = vadd.f32 %v4589_v22, %v4386_v37  ;;  %v19282_v22 = vld [vmem:[#allocation147_spill] sm:$0xff] }
 0x572   : > { %v15548_v26 = vpop.f32.mrf.mxu0 }
 0x573   : > { %19278 = vst [vmem:[#allocation166_spill] sm:$0xff] %v15548_v26  ;;  %v4110_v26 = vadd.f32 %v15240_v61, %v19283_v42  ;;  %v12081_v42 = vld [vmem:[%s18820_s3 + $0x24] sm:$0x3] }
 0x574   : > { %12082 = vmatpush.msk.msrb.mxu1 %vm789_vm1, %v12081_v42 }
 0x575   : > { %11927 = vmatmul.msk.f32.gmra.mxu0 %vm250_vm2, %v19279_v3  ;;  %v4437_v3 = vld [vmem:[#allocation2 + $0x325] sm:$0xff]  ;;  %v4388_v61 = vadd.f32 %v15436_v4, %v4110_v26  ;;  %v4716_v4 = vld [vmem:[#allocation2 + $0x330] sm:$0xff] }
 0x576   : > { %11907 = vmatmul.msk.f32.gmra.mxu3 %vm250_vm2, %v4715_v51  ;;  %v19284_v51 = vld [vmem:[#allocation157_spill] sm:$0xff]  ;;  %v19285_v26 = vld [vmem:[#allocation116_spill] sm:$0xff] }
 0x577   : > { %11873 = vmatmul.msk.f32.gmra.mxu2 %vm250_vm2, %v4437_v3 }
 0x578   : > { %v4592_v19 = vpop.f32.mrf.mxu2 }
 0x579   : > { %v15566_v41 = vpop.f32.mrf.mxu3  ;;  %v15568_v37 = vadd.f32 %v4592_v19, %v4387_v8  ;;  %v15588_v8 = vpop.f32.mrf.mxu1 }
 0x57a   : > { %v15563_v57 = vpop.f32.mrf.mxu0 }
 0x57b   : > { %19281 = vst [vmem:[#allocation159_spill] sm:$0xff] %v15563_v57 }
 0x57d   : > { %11928 = vmatmul.msk.f32.gmra.mxu0 %vm250_vm2, %v19282_v22 }
 0x57e   : > { %11908 = vmatmul.msk.f32.gmra.mxu3 %vm250_vm2, %v4716_v4  ;;  %v4935_v4 = vadd.f32 %v15415_v28, %v15417_v58  ;;  %v4718_v58 = vld [vmem:[#allocation2 + $0x350] sm:$0xff] }
 0x57f   : > { %11874 = vmatmul.msk.f32.gmra.mxu2 %vm250_vm2, %v4438_v47  ;;  %v19287_v47 = vld [vmem:[#allocation86_spill] sm:$0xff] }
 0x580   : > { %v4595_v30 = vpop.f32.mrf.mxu2 }
 0x581   : > { %v15590_v19 = vpop.f32.mrf.mxu3  ;;  %v15592_v22 = vadd.f32 %v4595_v30, %v4388_v61  ;;  %v15611_v42 = vpop.f32.mrf.mxu1 }
 0x582   : > { %v5115_v48 = vpop.f32.mrf.mxu0 }
 0x583   : > { %v5211_v1 = vadd.f32 %v5115_v48, %v4933_v12  ;;  %v4111_v12 = vadd.f32 %v15256_v23, %v19285_v26  ;;  %v4934_v48 = vadd.f32 %v15396_v6, %v15398_v27  ;;  %v19286_v26 = vld [vmem:[#allocation158_spill] sm:$0xff]  ;;  %v4717_v6 = vld [vmem:[#allocation2 + $0x348] sm:$0xff] }
 0x584   : > { %v4439_v27 = vld [vmem:[#allocation2 + $0x345] sm:$0xff] }
 0x585   : > { %v5245_v3 = vadd.f32 %v15580_v33, %v5211_v1  ;;  %11929 = vmatmul.msk.f32.gmra.mxu0 %vm250_vm2, %v19284_v51  ;;  %v4389_v1 = vadd.f32 %v15459_v32, %v4111_v12  ;;  %v4112_v32 = vadd.f32 %v15272_v45, %v19287_v47  ;;  %v4440_v45 = vld [vmem:[#allocation2 + $0x34d] sm:$0xff] }
 0x586   : > { %11909 = vmatmul.msk.f32.gmra.mxu3 %vm250_vm2, %v4717_v6 }
 0x587   : > { %11947 = vmatmul.msk.f32.vlgmr.msra.gmra.mxu1 %vm250_vm2, %v5245_v3  ;;  %11875 = vmatmul.msk.f32.gmra.mxu2 %vm250_vm2, %v4439_v27  ;;  %v4936_v27 = vadd.f32 %v15432_v59, %v15434_v34  ;;  %v5651_v59 = vld [vmem:[#allocation2 + $0x106] sm:$0xff] }
 0x588   : > { %v4598_v51 = vpop.f32.mrf.mxu2 }
 0x589   : > { %v15609_v57 = vpop.f32.mrf.mxu3  ;;  %v15613_v3 = vadd.f32 %v4598_v51, %v4389_v1  ;;  %v15633_v28 = vpop.f32.mrf.mxu1 }
 0x58a   : > { %v5118_v61 = vpop.f32.mrf.mxu0 }
 0x58b   : > { %v5212_v30 = vadd.f32 %v5118_v61, %v4934_v48  ;;  %v4390_v48 = vadd.f32 %v15478_v2, %v4112_v32  ;;  %v4113_v2 = vadd.f32 %v15288_v0, %v15108_v54  ;;  %v5685_v54 = vld [vmem:[#allocation2 + $0x107] sm:$0xff] }
 0x58c   : > { %v19290_v0 = vld [vmem:[#allocation118_spill] sm:$0xff] }
 0x58d   : > { %v5246_v23 = vadd.f32 %v15580_v33, %v5212_v30  ;;  %11930 = vmatmul.msk.f32.gmra.mxu0 %vm250_vm2, %v19286_v26  ;;  %v19288_v26 = vld [vmem:[#allocation168_spill] sm:$0xff]  ;;  %v4391_v47 = vadd.f32 %v15502_v43, %v4113_v2  ;;  %v4114_v34 = vadd.f32 %v15307_v56, %v19290_v0  ;;  %v4937_v43 = vadd.f32 %v15449_v39, %v15451_v53 }
 0x58e   : > { %11910 = vmatmul.msk.f32.gmra.mxu3 %vm250_vm2, %v4718_v58  ;;  %v5686_v53 = vld [vmem:[#allocation2 + $0x10f] sm:$0xff] }
 0x58f   : > { %11948 = vmatmul.msk.f32.gmra.mxu1 %vm250_vm2, %v5246_v23  ;;  %11876 = vmatmul.msk.f32.gmra.mxu2 %vm250_vm2, %v4440_v45  ;;  %v4392_v45 = vadd.f32 %v15521_v11, %v4114_v34  ;;  %v5652_v39 = vld [vmem:[#allocation2 + $0x10e] sm:$0xff]  ;;  %v4938_v11 = vadd.f32 %v15470_v10, %v15472_v55  ;;  %v5653_v10 = vld [vmem:[#allocation2 + $0x126] sm:$0xff]  ;;  %v4116_v55 = vadd.f32 %v15338_v13, %v15156_v35 }
 0x590   : > { %v4601_v1 = vpop.f32.mrf.mxu2  ;;  %v5688_v13 = vld [vmem:[#allocation2 + $0x12f] sm:$0xff] }
 0x591   : > { %v15626_v30 = vpop.f32.mrf.mxu3  ;;  %v15628_v51 = vadd.f32 %v4601_v1, %v4390_v48  ;;  %v19289_v1 = vld [vmem:[#allocation169_spill] sm:$0xff]  ;;  %v4394_v34 = vadd.f32 %v15559_v5, %v4116_v55  ;;  %v4940_v5 = vadd.f32 %v15504_v62, %v15506_v63  ;;  %v5655_v62 = vld [vmem:[#allocation2 + $0x146] sm:$0xff]  ;;  %v4118_v63 = vadd.f32 %v15372_v25, %v15188_v14  ;;  %v5690_v14 = vld [vmem:[#allocation2 + $0x14f] sm:$0xff] }
 0x592   : > { %v5121_v12 = vpop.f32.mrf.mxu0  ;;  %v5656_v25 = vld [vmem:[#allocation2 + $0x14e] sm:$0xff] }
 0x593   : > { %v5213_v61 = vadd.f32 %v5121_v12, %v4935_v4 }
 0x595   : > { %v5247_v23 = vadd.f32 %v15580_v33, %v5213_v61  ;;  %11931 = vmatmul.msk.f32.gmra.mxu0 %vm250_vm2, %v19288_v26 }
 0x596   : > { %12015 = vmatmul.msk.f32.vlgmr.msrb.gmra.mxu3 %vm250_vm2, %v5651_v59 }
 0x597   : > { %11949 = vmatmul.msk.f32.gmra.mxu1 %vm250_vm2, %v5247_v23  ;;  %v15655_v23 = vpop.f32.mrf.mxu1  ;;  %11982 = vmatmul.msk.f32.vlgmr.msrb.gmra.mxu2 %vm250_vm2, %v5685_v54 }
 0x598   : > { %v4604_v4 = vpop.f32.mrf.mxu2 }
 0x599   : > { %v15643_v12 = vpop.f32.mrf.mxu3  ;;  %v15645_v48 = vadd.f32 %v4604_v4, %v4391_v47  ;;  %v4115_v47 = vadd.f32 %v15322_v38, %v15140_v60  ;;  %v5687_v38 = vld [vmem:[#allocation2 + $0x127] sm:$0xff] }
 0x59a   : > { %v5124_v6 = vpop.f32.mrf.mxu0 }
 0x59b   : > { %v5214_v32 = vadd.f32 %v5124_v6, %v4936_v27  ;;  %v4393_v4 = vadd.f32 %v15542_v50, %v4115_v47  ;;  %v4939_v50 = vadd.f32 %v15487_v15, %v15489_v20  ;;  %v5654_v15 = vld [vmem:[#allocation2 + $0x12e] sm:$0xff]  ;;  %v4117_v20 = vadd.f32 %v15354_v52, %v15172_v21 }
 0x59c   : > { %v5689_v52 = vld [vmem:[#allocation2 + $0x147] sm:$0xff] }
 0x59d   : > { %v5248_v61 = vadd.f32 %v15580_v33, %v5214_v32  ;;  %11932 = vmatmul.msk.f32.gmra.mxu0 %vm250_vm2, %v19289_v1 }
 0x59e   : > { %12016 = vmatmul.msk.f32.gmra.mxu3 %vm250_vm2, %v5652_v39 }
 0x59f   : > { %11950 = vmatmul.msk.f32.gmra.mxu1 %vm250_vm2, %v5248_v61  ;;  %11983 = vmatmul.msk.f32.gmra.mxu2 %vm250_vm2, %v5686_v53  ;;  %v15675_v61 = vpop.f32.mrf.mxu1 }
 0x5a0   : > { %v4607_v2 = vpop.f32.mrf.mxu2 }
 0x5a1   : > { %v15660_v27 = vpop.f32.mrf.mxu3  ;;  %v15662_v6 = vadd.f32 %v4607_v2, %v4392_v45 }
 0x5a2   : > { %v5127_v26 = vpop.f32.mrf.mxu0 }
 0x5a3   : > { %v5215_v58 = vadd.f32 %v5127_v26, %v4937_v43 }
 0x5a5   : > { %v5249_v56 = vadd.f32 %v15580_v33, %v5215_v58  ;;  %11933 = vmatmul.msk.f32.gmra.mxu0 %vm250_vm2, %v19226_v17 }
 0x5a6   : > { %12017 = vmatmul.msk.f32.gmra.mxu3 %vm250_vm2, %v5653_v10 }
 0x5a7   : > { %11951 = vmatmul.msk.f32.gmra.mxu1 %vm250_vm2, %v5249_v56  ;;  %11984 = vmatmul.msk.f32.gmra.mxu2 %vm250_vm2, %v5687_v38  ;;  %v15694_v45 = vpop.f32.mrf.mxu1  ;;  %v4395_v56 = vadd.f32 %v15588_v8, %v4117_v20  ;;  %v4941_v8 = vadd.f32 %v15519_v31, %v15523_v24  ;;  %v4119_v31 = vadd.f32 %v15391_v36, %v15204_v40  ;;  %v19291_v36 = vld [vmem:[#allocation185_spill] sm:$0xff] }
 0x5a8   : > { %v4610_v1 = vpop.f32.mrf.mxu2  ;;  %v4942_v24 = vadd.f32 %v15536_v46, %v15538_v18  ;;  %v5691_v46 = vld [vmem:[#allocation2 + $0x167] sm:$0xff] }
 0x5a9   : > { %v15677_v54 = vpop.f32.mrf.mxu3  ;;  %v15679_v59 = vadd.f32 %v4610_v1, %v4393_v4  ;;  %v4396_v4 = vadd.f32 %v15611_v42, %v4118_v63  ;;  %v4397_v55 = vadd.f32 %v15633_v28, %v4119_v31  ;;  %v5657_v18 = vld [vmem:[#allocation2 + $0x166] sm:$0xff]  ;;  %v4943_v28 = vadd.f32 %v15551_v7, %v15553_v9  ;;  %v5692_v7 = vld [vmem:[#allocation2 + $0x16f] sm:$0xff] }
 0x5aa   : > { %v5130_v32 = vpop.f32.mrf.mxu0  ;;  %v5658_v9 = vld [vmem:[#allocation2 + $0x16e] sm:$0xff] }
 0x5ab   : > { %v5216_v17 = vadd.f32 %v5130_v32, %v4938_v11 }
 0x5ad   : > { %v5250_v60 = vadd.f32 %v15580_v33, %v5216_v17  ;;  %11934 = vmatmul.msk.f32.gmra.mxu0 %vm250_vm2, %v19230_v16 }
 0x5ae   : > { %12018 = vmatmul.msk.f32.gmra.mxu3 %vm250_vm2, %v5654_v15  ;;  %v4991_v15 = vld [vmem:[#allocation2 + $0x30b] sm:$0xff] }
 0x5af   : > { %11952 = vmatmul.msk.f32.gmra.mxu1 %vm250_vm2, %v5250_v60  ;;  %11985 = vmatmul.msk.f32.gmra.mxu2 %vm250_vm2, %v5688_v13  ;;  %v15716_v21 = vpop.f32.mrf.mxu1 }
 0x5b0   : > { %v4613_v26 = vpop.f32.mrf.mxu2 }
 0x5b1   : > { %v15692_v16 = vpop.f32.mrf.mxu3  ;;  %v15696_v58 = vadd.f32 %v4613_v26, %v4394_v34  ;;  %v19293_v26 = vld [vmem:[#allocation144_spill] sm:$0xff] }
 0x5b2   : > { %v5133_v0 = vpop.f32.mrf.mxu0 }
 0x5b3   : > { %v5217_v43 = vadd.f32 %v5133_v0, %v4939_v50 }
 0x5b5   : > { %v5251_v35 = vadd.f32 %v15580_v33, %v5217_v43  ;;  %11935 = vmatmul.msk.f32.gmra.mxu0 %vm250_vm2, %v19236_v44  ;;  %v19292_v43 = vld [vmem:[#allocation87_spill] sm:$0xff] }
 0x5b6   : > { %12019 = vmatmul.msk.f32.gmra.mxu3 %vm250_vm2, %v5655_v62  ;;  %v19295_v62 = vld [vmem:[#allocation139_spill] sm:$0xff] }
 0x5b7   : > { %11953 = vmatmul.msk.f32.gmra.mxu1 %vm250_vm2, %v5251_v35  ;;  %11986 = vmatmul.msk.f32.gmra.mxu2 %vm250_vm2, %v5689_v52  ;;  %v15738_v42 = vpop.f32.mrf.mxu1  ;;  %v4120_v35 = vadd.f32 %v19293_v26, %v19292_v43  ;;  %v19294_v52 = vld [vmem:[#allocation132_spill] sm:$0xff] }
 0x5b8   : > { %v4616_v39 = vpop.f32.mrf.mxu2  ;;  %v4121_v63 = vadd.f32 %v19295_v62, %v19294_v52 }
 0x5b9   : > { %v15709_v44 = vpop.f32.mrf.mxu3  ;;  %v15711_v47 = vadd.f32 %v4616_v39, %v4395_v56  ;;  %v4398_v20 = vadd.f32 %v15655_v23, %v4120_v35  ;;  %v4944_v23 = vadd.f32 %v15566_v41, %v15568_v37  ;;  %v5693_v41 = vld [vmem:[#allocation2 + $0x187] sm:$0xff] }
 0x5ba   : > { %v5136_v2 = vpop.f32.mrf.mxu0  ;;  %v5659_v37 = vld [vmem:[#allocation2 + $0x186] sm:$0xff] }
 0x5bb   : > { %v5218_v53 = vadd.f32 %v5136_v2, %v4940_v5 }
 0x5bd   : > { %v5252_v11 = vadd.f32 %v15580_v33, %v5218_v53  ;;  %11936 = vmatmul.msk.f32.gmra.mxu0 %vm250_vm2, %v19241_v49 }
 0x5be   : > { %12020 = vmatmul.msk.f32.gmra.mxu3 %vm250_vm2, %v5656_v25 }
 0x5bf   : > { %11954 = vmatmul.msk.f32.gmra.mxu1 %vm250_vm2, %v5252_v11  ;;  %11987 = vmatmul.msk.f32.gmra.mxu2 %vm250_vm2, %v5690_v14  ;;  %v15758_v5 = vpop.f32.mrf.mxu1 }
 0x5c0   : > { %v4619_v17 = vpop.f32.mrf.mxu2 }
 0x5c1   : > { %v15726_v1 = vpop.f32.mrf.mxu3  ;;  %v15728_v60 = vadd.f32 %v4619_v17, %v4396_v4  ;;  %v4399_v4 = vadd.f32 %v15675_v61, %v4121_v63  ;;  %v4945_v61 = vadd.f32 %v15590_v19, %v15592_v22  ;;  %v5694_v19 = vld [vmem:[#allocation2 + $0x18f] sm:$0xff]  ;;  %v19300_v63 = vld [vmem:[#allocation133_spill] sm:$0xff] }
 0x5c2   : > { %v5139_v32 = vpop.f32.mrf.mxu0  ;;  %v5660_v22 = vld [vmem:[#allocation2 + $0x18e] sm:$0xff] }
 0x5c3   : > { %v5219_v49 = vadd.f32 %v5139_v32, %v4941_v8  ;;  %v4992_v32 = vld [vmem:[#allocation2 + $0x313] sm:$0xff] }
 0x5c5   : > { %v5253_v38 = vadd.f32 %v15580_v33, %v5219_v49  ;;  %11937 = vmatmul.msk.f32.gmra.mxu0 %vm250_vm2, %v19247_v29 }
 0x5c6   : > { %12021 = vmatmul.msk.f32.gmra.mxu3 %vm250_vm2, %v5657_v18 }
 0x5c7   : > { %11955 = vmatmul.msk.f32.gmra.mxu1 %vm250_vm2, %v5253_v38  ;;  %11988 = vmatmul.msk.f32.gmra.mxu2 %vm250_vm2, %v5691_v46  ;;  %v15776_v14 = vpop.f32.mrf.mxu1 }
 0x5c8   : > { %v4622_v50 = vpop.f32.mrf.mxu2 }
 0x5c9   : > { %v15743_v0 = vpop.f32.mrf.mxu3  ;;  %v15745_v34 = vadd.f32 %v4622_v50, %v4397_v55  ;;  %v4993_v50 = vld [vmem:[#allocation2 + $0x32b] sm:$0xff] }
 0x5ca   : > { %v5142_v10 = vpop.f32.mrf.mxu0 }
 0x5cb   : > { %v5220_v29 = vadd.f32 %v5142_v10, %v4942_v24  ;;  %v19296_v24 = vld [vmem:[#allocation125_spill] sm:$0xff] }
 0x5cc   : > { %v19297_v10 = vld [vmem:[#allocation109_spill] sm:$0xff] }
 0x5cd   : > { %v5254_v40 = vadd.f32 %v15580_v33, %v5220_v29  ;;  %11938 = vmatmul.msk.f32.gmra.mxu0 %vm250_vm2, %v19291_v36  ;;  %v4122_v55 = vadd.f32 %v19297_v10, %v19296_v24 }
 0x5ce   : > { %12022 = vmatmul.msk.f32.gmra.mxu3 %vm250_vm2, %v5658_v9 }
 0x5cf   : > { %11956 = vmatmul.msk.f32.gmra.mxu1 %vm250_vm2, %v5254_v40  ;;  %11989 = vmatmul.msk.f32.gmra.mxu2 %vm250_vm2, %v5692_v7  ;;  %v4400_v40 = vadd.f32 %v15694_v45, %v4122_v55  ;;  %v15796_v35 = vpop.f32.mrf.mxu1  ;;  %v4946_v45 = vadd.f32 %v15609_v57, %v15613_v3  ;;  %v5695_v57 = vld [vmem:[#allocation2 + $0x1a7] sm:$0xff] }
 0x5d0   : > { %v4625_v56 = vpop.f32.mrf.mxu2  ;;  %v5661_v3 = vld [vmem:[#allocation2 + $0x1a6] sm:$0xff] }
 0x5d1   : > { %v15760_v53 = vpop.f32.mrf.mxu3  ;;  %v15762_v39 = vadd.f32 %v4625_v56, %v4398_v20  ;;  %v19302_v55 = vld [vmem:[#allocation127_spill] sm:$0xff] }
 0x5d2   : > { %v5145_v13 = vpop.f32.mrf.mxu0 }
 0x5d3   : > { %v5221_v2 = vadd.f32 %v5145_v13, %v4943_v28  ;;  %v19298_v28 = vld [vmem:[#allocation94_spill] sm:$0xff]  ;;  %v19299_v13 = vld [vmem:[#allocation155_spill] sm:$0xff] }
 0x5d5   : > { %v5255_v11 = vadd.f32 %v15580_v33, %v5221_v2  ;;  %11939 = vmatmul.msk.f32.gmra.mxu0 %vm250_vm2, %v4991_v15  ;;  %v4123_v15 = vadd.f32 %v19299_v13, %v19298_v28  ;;  %v4994_v2 = vld [vmem:[#allocation2 + $0x333] sm:$0xff] }
 0x5d6   : > { %12023 = vmatmul.msk.f32.gmra.mxu3 %vm250_vm2, %v5659_v37 }
 0x5d7   : > { %11957 = vmatmul.msk.f32.gmra.mxu1 %vm250_vm2, %v5255_v11  ;;  %11990 = vmatmul.msk.f32.gmra.mxu2 %vm250_vm2, %v5693_v41  ;;  %v4401_v56 = vadd.f32 %v15716_v21, %v4123_v15  ;;  %v4947_v21 = vadd.f32 %v15626_v30, %v15628_v51  ;;  %v5696_v30 = vld [vmem:[#allocation2 + $0x1af] sm:$0xff] }
 0x5d8   : > { %v4628_v17 = vpop.f32.mrf.mxu2  ;;  %v5662_v51 = vld [vmem:[#allocation2 + $0x1ae] sm:$0xff] }
 0x5d9   : > { %v15774_v38 = vpop.f32.mrf.mxu3  ;;  %v15778_v25 = vadd.f32 %v4628_v17, %v4399_v4  ;;  %v19304_v15 = vld [vmem:[#allocation96_spill] sm:$0xff] }
 0x5da   : > { %v5148_v8 = vpop.f32.mrf.mxu0 }
 0x5db   : > { %v5222_v49 = vadd.f32 %v5148_v8, %v4944_v23  ;;  %v19301_v23 = vld [vmem:[#allocation148_spill] sm:$0xff] }
 0x5dc   : > { %v4124_v8 = vadd.f32 %v19301_v23, %v19300_v63  ;;  %v5698_v23 = vld [vmem:[#allocation2 + $0x1cf] sm:$0xff] }
 0x5dd   : > { %v5256_v31 = vadd.f32 %v15580_v33, %v5222_v49  ;;  %11940 = vmatmul.msk.f32.gmra.mxu0 %vm250_vm2, %v4992_v32  ;;  %v15817_v32 = vpop.f32.mrf.mxu1  ;;  %v4995_v49 = vld [vmem:[#allocation2 + $0x34b] sm:$0xff] }
 0x5de   : > { %12024 = vmatmul.msk.f32.gmra.mxu3 %vm250_vm2, %v5660_v22  ;;  %v4402_v17 = vadd.f32 %v15738_v42, %v4124_v8  ;;  %v4948_v42 = vadd.f32 %v15643_v12, %v15645_v48  ;;  %v5697_v12 = vld [vmem:[#allocation2 + $0x1c7] sm:$0xff] }
 0x5df   : > { %11958 = vmatmul.msk.f32.gmra.mxu1 %vm250_vm2, %v5256_v31  ;;  %11991 = vmatmul.msk.f32.gmra.mxu2 %vm250_vm2, %v5694_v19  ;;  %v5663_v48 = vld [vmem:[#allocation2 + $0x1c6] sm:$0xff]  ;;  %v5664_v8 = vld [vmem:[#allocation2 + $0x1ce] sm:$0xff] }
 0x5e0   : > { %v4631_v46 = vpop.f32.mrf.mxu2 }
 0x5e1   : > { %v15790_v18 = vpop.f32.mrf.mxu3  ;;  %v15792_v43 = vadd.f32 %v4631_v46, %v4400_v40  ;;  %v4996_v40 = vld [vmem:[#allocation2 + $0x353] sm:$0xff] }
 0x5e2   : > { %v5151_v29 = vpop.f32.mrf.mxu0 }
 0x5e3   : > { %v5223_v36 = vadd.f32 %v5151_v29, %v4945_v61  ;;  %v19303_v61 = vld [vmem:[#allocation117_spill] sm:$0xff] }
 0x5e4   : > { %v4125_v29 = vadd.f32 %v19303_v61, %v19302_v55 }
 0x5e5   : > { %v5257_v26 = vadd.f32 %v15580_v33, %v5223_v36  ;;  %11941 = vmatmul.msk.f32.gmra.mxu0 %vm250_vm2, %v4993_v50  ;;  %v15836_v46 = vpop.f32.mrf.mxu1 }
 0x5e6   : > { %12025 = vmatmul.msk.f32.gmra.mxu3 %vm250_vm2, %v5661_v3  ;;  %v4403_v36 = vadd.f32 %v15758_v5, %v4125_v29  ;;  %v4949_v5 = vadd.f32 %v15660_v27, %v15662_v6  ;;  %v6143_v3 = vld [vmem:[#allocation2 + $0x108] sm:$0xff] }
 0x5e7   : > { %11959 = vmatmul.msk.f32.gmra.mxu1 %vm250_vm2, %v5257_v26  ;;  %11992 = vmatmul.msk.f32.gmra.mxu2 %vm250_vm2, %v5695_v57 }
 0x5e8   : > { %v4634_v7 = vpop.f32.mrf.mxu2 }
 0x5e9   : > { %v15806_v9 = vpop.f32.mrf.mxu3  ;;  %v15808_v52 = vadd.f32 %v4634_v7, %v4401_v56 }
 0x5ea   : > { %v5154_v20 = vpop.f32.mrf.mxu0 }
 0x5eb   : > { %v5224_v11 = vadd.f32 %v5154_v20, %v4946_v45  ;;  %v19305_v45 = vld [vmem:[#allocation150_spill] sm:$0xff] }
 0x5ec   : > { %v4126_v20 = vadd.f32 %v19305_v45, %v19304_v15 }
 0x5ed   : > { %v5258_v62 = vadd.f32 %v15580_v33, %v5224_v11  ;;  %11942 = vmatmul.msk.f32.gmra.mxu0 %vm250_vm2, %v4994_v2  ;;  %v12150_v2 = vld [vmem:[%s18820_s3 + $0x2a] sm:$0x3] }
 0x5ee   : > { %12026 = vmatmul.msk.f32.gmra.mxu3 %vm250_vm2, %v5662_v51  ;;  %v4404_v11 = vadd.f32 %v15776_v14, %v4126_v20  ;;  %v6144_v51 = vld [vmem:[#allocation2 + $0x110] sm:$0xff] }
 0x5ef   : > { %11960 = vmatmul.msk.f32.gmra.mxu1 %vm250_vm2, %v5258_v62  ;;  %11993 = vmatmul.msk.f32.gmra.mxu2 %vm250_vm2, %v5696_v30 }
 0x5f0   : > { %v4637_v41 = vpop.f32.mrf.mxu2  ;;  %12151 = vmatpush.msk.msra.mxu3 %vm789_vm1, %v12150_v2  ;;  %v19314_v2 = vld [vmem:[#allocation159_spill] sm:$0xff] }
 0x5f1   : > { %v15822_v37 = vpop.f32.mrf.mxu3  ;;  %v15824_v24 = vadd.f32 %v4637_v41, %v4402_v17 }
 0x5f2   : > { %v5157_v4 = vpop.f32.mrf.mxu0 }
 0x5f3   : > { %v5225_v31 = vadd.f32 %v5157_v4, %v4947_v21  ;;  %v19307_v21 = vld [vmem:[#allocation143_spill] sm:$0xff]  ;;  %v19308_v4 = vld [vmem:[#allocation120_spill] sm:$0xff] }
 0x5f4   : > { %v4127_v14 = vadd.f32 %v19308_v4, %v19307_v21 }
 0x5f5   : > { %v5259_v10 = vadd.f32 %v15580_v33, %v5225_v31  ;;  %11943 = vmatmul.msk.f32.gmra.mxu0 %vm250_vm2, %v4995_v49  ;;  %v4950_v49 = vadd.f32 %v15677_v54, %v15679_v59  ;;  %v5699_v54 = vld [vmem:[#allocation2 + $0x1e7] sm:$0xff] }
 0x5f6   : > { %12027 = vmatmul.msk.f32.gmra.mxu3 %vm250_vm2, %v5663_v48  ;;  %v4405_v31 = vadd.f32 %v15796_v35, %v4127_v14  ;;  %v5665_v59 = vld [vmem:[#allocation2 + $0x1e6] sm:$0xff] }
 0x5f7   : > { %11961 = vmatmul.msk.f32.gmra.mxu1 %vm250_vm2, %v5259_v10  ;;  %11994 = vmatmul.msk.f32.gmra.mxu2 %vm250_vm2, %v5697_v12  ;;  %v6145_v48 = vld [vmem:[#allocation2 + $0x128] sm:$0xff] }
 0x5f8   : > { %v4640_v19 = vpop.f32.mrf.mxu2 }
 0x5f9   : > { %v15838_v22 = vpop.f32.mrf.mxu3  ;;  %v15840_v28 = vadd.f32 %v4640_v19, %v4403_v36 }
 0x5fa   : > { %v5160_v50 = vpop.f32.mrf.mxu0 }
 0x5fb   : > { %v5226_v26 = vadd.f32 %v5160_v50, %v4948_v42  ;;  %v19310_v42 = vld [vmem:[#allocation137_spill] sm:$0xff]  ;;  %v19311_v50 = vld [vmem:[#allocation166_spill] sm:$0xff] }
 0x5fc   : > { %v4128_v35 = vadd.f32 %v19311_v50, %v19310_v42 }
 0x5fd   : > { %v5260_v13 = vadd.f32 %v15580_v33, %v5226_v26  ;;  %11944 = vmatmul.msk.f32.gmra.mxu0 %vm250_vm2, %v4996_v40  ;;  %v4951_v40 = vadd.f32 %v15692_v16, %v15696_v58  ;;  %v5700_v16 = vld [vmem:[#allocation2 + $0x1ef] sm:$0xff] }
 0x5fe   : > { %12028 = vmatmul.msk.f32.gmra.mxu3 %vm250_vm2, %v5664_v8  ;;  %v4406_v26 = vadd.f32 %v15817_v32, %v4128_v35  ;;  %v5666_v58 = vld [vmem:[#allocation2 + $0x1ee] sm:$0xff] }
 0x5ff   : > { %11962 = vmatmul.msk.f32.gmra.mxu1 %vm250_vm2, %v5260_v13  ;;  %11995 = vmatmul.msk.f32.gmra.mxu2 %vm250_vm2, %v5698_v23  ;;  %v6146_v23 = vld [vmem:[#allocation2 + $0x130] sm:$0xff] }
 0x600   : > { %v4643_v62 = vpop.f32.mrf.mxu2 }
 0x601   : > { %v15858_v63 = vadd.f32 %v4643_v62, %v4404_v11  ;;  %v15862_v6 = vpop.f32.mrf.mxu3 }
 0x602   : > { %v5163_v56 = vpop.f32.mrf.mxu0 }
 0x603   : > { %v5227_v7 = vadd.f32 %v5163_v56, %v4949_v5  ;;  %v19313_v5 = vld [vmem:[#allocation105_spill] sm:$0xff]  ;;  %v4952_v56 = vadd.f32 %v15709_v44, %v15711_v47  ;;  %v5701_v44 = vld [vmem:[#allocation2 + $0x207] sm:$0xff] }
 0x604   : > { %v15856_v57 = vpop.f32.mrf.mxu1  ;;  %v4129_v32 = vadd.f32 %v19314_v2, %v19313_v5  ;;  %v5667_v47 = vld [vmem:[#allocation2 + $0x206] sm:$0xff] }
 0x605   : > { %19306 = vst [vmem:[#allocation126_spill] sm:$0xff] %v15856_v57  ;;  %v5261_v27 = vadd.f32 %v15580_v33, %v5227_v7  ;;  %12049 = vmatmul.msk.f32.vlgmr.msrb.gmra.mxu0 %vm250_vm2, %v6143_v3  ;;  %v6149_v5 = vld [vmem:[#allocation2 + $0x168] sm:$0xff]  ;;  %v7077_v57 = vld [vmem:[#allocation2 + $0xd0] sm:$0xff] }
 0x606   : > { %12029 = vmatmul.msk.f32.gmra.mxu3 %vm250_vm2, %v5665_v59  ;;  %v4407_v7 = vadd.f32 %v15836_v46, %v4129_v32  ;;  %v4953_v46 = vadd.f32 %v15726_v1, %v15728_v60  ;;  %v5702_v1 = vld [vmem:[#allocation2 + $0x20f] sm:$0xff] }
 0x607   : > { %11963 = vmatmul.msk.f32.gmra.mxu1 %vm250_vm2, %v5261_v27  ;;  %11996 = vmatmul.msk.f32.gmra.mxu2 %vm250_vm2, %v5699_v54  ;;  %v5668_v60 = vld [vmem:[#allocation2 + $0x20e] sm:$0xff]  ;;  %v4954_v54 = vadd.f32 %v15743_v0, %v15745_v34  ;;  %v5669_v34 = vld [vmem:[#allocation2 + $0x226] sm:$0xff] }
 0x608   : > { %v4646_v10 = vpop.f32.mrf.mxu2  ;;  %v5703_v0 = vld [vmem:[#allocation2 + $0x227] sm:$0xff] }
 0x609   : > { %v15874_v55 = vadd.f32 %v4646_v10, %v4405_v31  ;;  %v15878_v29 = vpop.f32.mrf.mxu3 }
 0x60a   : > { %v5166_v17 = vpop.f32.mrf.mxu0 }
 0x60b   : > { %v5228_v41 = vadd.f32 %v5166_v17, %v4950_v49 }
 0x60c   : > { %v15872_v30 = vpop.f32.mrf.mxu1 }
 0x60d   : > { %19309 = vst [vmem:[#allocation161_spill] sm:$0xff] %v15872_v30  ;;  %v5262_v61 = vadd.f32 %v15580_v33, %v5228_v41  ;;  %12050 = vmatmul.msk.f32.gmra.mxu0 %vm250_vm2, %v6144_v51  ;;  %v6147_v41 = vld [vmem:[#allocation2 + $0x148] sm:$0xff]  ;;  %v7111_v30 = vld [vmem:[#allocation2 + $0xf0] sm:$0xff] }
 0x60e   : > { %12030 = vmatmul.msk.f32.gmra.mxu3 %vm250_vm2, %v5666_v58 }
 0x60f   : > { %11964 = vmatmul.msk.f32.gmra.mxu1 %vm250_vm2, %v5262_v61  ;;  %11997 = vmatmul.msk.f32.gmra.mxu2 %vm250_vm2, %v5700_v16 }
 0x610   : > { %v4649_v13 = vpop.f32.mrf.mxu2 }
 0x611   : > { %v15890_v15 = vadd.f32 %v4649_v13, %v4406_v26  ;;  %v15894_v20 = vpop.f32.mrf.mxu3  ;;  %v4955_v13 = vadd.f32 %v15760_v53, %v15762_v39  ;;  %v5704_v53 = vld [vmem:[#allocation2 + $0x22f] sm:$0xff] }
 0x612   : > { %v5169_v36 = vpop.f32.mrf.mxu0  ;;  %v5670_v39 = vld [vmem:[#allocation2 + $0x22e] sm:$0xff] }
 0x613   : > { %v5229_v19 = vadd.f32 %v5169_v36, %v4951_v40  ;;  %v6148_v40 = vld [vmem:[#allocation2 + $0x150] sm:$0xff] }
 0x614   : > { %v15888_v12 = vpop.f32.mrf.mxu1 }
 0x615   : > { %19312 = vst [vmem:[#allocation130_spill] sm:$0xff] %v15888_v12  ;;  %v5263_v45 = vadd.f32 %v15580_v33, %v5229_v19  ;;  %12051 = vmatmul.msk.f32.gmra.mxu0 %vm250_vm2, %v6145_v48 }
 0x616   : > { %12031 = vmatmul.msk.f32.gmra.mxu3 %vm250_vm2, %v5667_v47 }
 0x617   : > { %11965 = vmatmul.msk.f32.gmra.mxu1 %vm250_vm2, %v5263_v45  ;;  %11998 = vmatmul.msk.f32.gmra.mxu2 %vm250_vm2, %v5701_v44 }
 0x618   : > { %v4652_v3 = vpop.f32.mrf.mxu2 }
 0x619   : > { %v15906_v8 = vadd.f32 %v4652_v3, %v4407_v7  ;;  %v15910_v4 = vpop.f32.mrf.mxu3 }
 0x61a   : > { %v5172_v11 = vpop.f32.mrf.mxu0 }
 0x61b   : > { %v5230_v62 = vadd.f32 %v5172_v11, %v4952_v56  ;;  %v4956_v11 = vadd.f32 %v15774_v38, %v15778_v25  ;;  %v5705_v38 = vld [vmem:[#allocation2 + $0x247] sm:$0xff] }
 0x61c   : > { %v15904_v27 = vpop.f32.mrf.mxu1  ;;  %v5671_v25 = vld [vmem:[#allocation2 + $0x246] sm:$0xff] }
 0x61d   : > { %19315 = vst [vmem:[#allocation71_spill] sm:$0xff] %v15904_v27  ;;  %v5264_v21 = vadd.f32 %v15580_v33, %v5230_v62  ;;  %12052 = vmatmul.msk.f32.gmra.mxu0 %vm250_vm2, %v6146_v23  ;;  %v6437_v27 = vld [vmem:[#allocation2 + $0x209] sm:$0xff] }
 0x61e   : > { %12032 = vmatmul.msk.f32.gmra.mxu3 %vm250_vm2, %v5668_v60 }
 0x61f   : > { %11966 = vmatmul.msk.f32.gmra.mxu1 %vm250_vm2, %v5264_v21  ;;  %11999 = vmatmul.msk.f32.gmra.mxu2 %vm250_vm2, %v5702_v1  ;;  %v6150_v21 = vld [vmem:[#allocation2 + $0x170] sm:$0xff]  ;;  %v12149_v1 = vld [vmem:[%s18820_s3 + $0x28] sm:$0x3] }
 0x620   : > { %v5835_v17 = vpop.f32.mrf.mxu2  ;;  %12184 = vmatpush.msk.msra.mxu0 %vm789_vm1, %v12149_v1 }
 0x621   : > { %v6047_v51 = vpop.f32.mrf.mxu3 }
 0x622   : > { %v5175_v14 = vpop.f32.mrf.mxu0  ;;  %v15921_v61 = vadd.f32 %v6047_v51, %v5835_v17  ;;  %v6151_v51 = vld [vmem:[#allocation2 + $0x188] sm:$0xff] }
 0x623   : > { %v5231_v49 = vadd.f32 %v5175_v14, %v4953_v46  ;;  %v4957_v14 = vadd.f32 %v15790_v18, %v15792_v43  ;;  %v5706_v43 = vld [vmem:[#allocation2 + $0x24f] sm:$0xff] }
 0x624   : > { %v15917_v31 = vpop.f32.mrf.mxu1 }
 0x625   : > { %19316 = vst [vmem:[#allocation72_spill] sm:$0xff] %v15917_v31  ;;  %v5265_v10 = vadd.f32 %v15580_v33, %v5231_v49  ;;  %12053 = vmatmul.msk.f32.gmra.mxu0 %vm250_vm2, %v6147_v41 }
 0x626   : > { %12033 = vmatmul.msk.f32.gmra.mxu3 %vm250_vm2, %v5669_v34 }
 0x627   : > { %11967 = vmatmul.msk.f32.gmra.mxu1 %vm250_vm2, %v5265_v10  ;;  %12000 = vmatmul.msk.f32.gmra.mxu2 %vm250_vm2, %v5703_v0  ;;  %v6152_v0 = vld [vmem:[#allocation2 + $0x190] sm:$0xff] }
 0x628   : > { %v5838_v50 = vpop.f32.mrf.mxu2 }
 0x629   : > { %v6050_v26 = vpop.f32.mrf.mxu3 }
 0x62a   : > { %v5178_v59 = vpop.f32.mrf.mxu0  ;;  %v15932_v19 = vadd.f32 %v6050_v26, %v5838_v50 }
 0x62b   : > { %v5232_v42 = vadd.f32 %v5178_v59, %v4954_v54  ;;  %v5672_v59 = vld [vmem:[#allocation2 + $0x24e] sm:$0xff] }
 0x62c   : > { %v15928_v35 = vpop.f32.mrf.mxu1 }
 0x62d   : > { %19317 = vst [vmem:[#allocation138_spill] sm:$0xff] %v15928_v35  ;;  %v5266_v36 = vadd.f32 %v15580_v33, %v5232_v42  ;;  %12054 = vmatmul.msk.f32.gmra.mxu0 %vm250_vm2, %v6148_v40  ;;  %v4958_v42 = vadd.f32 %v15806_v9, %v15808_v52  ;;  %v5707_v9 = vld [vmem:[#allocation2 + $0x267] sm:$0xff] }
 0x62e   : > { %12034 = vmatmul.msk.f32.gmra.mxu3 %vm250_vm2, %v5670_v39  ;;  %v5673_v52 = vld [vmem:[#allocation2 + $0x266] sm:$0xff] }
 0x62f   : > { %11968 = vmatmul.msk.f32.gmra.mxu1 %vm250_vm2, %v5266_v36  ;;  %12001 = vmatmul.msk.f32.gmra.mxu2 %vm250_vm2, %v5704_v53  ;;  %v6153_v53 = vld [vmem:[#allocation2 + $0x1a8] sm:$0xff] }
 0x630   : > { %v5841_v16 = vpop.f32.mrf.mxu2 }
 0x631   : > { %v6053_v32 = vpop.f32.mrf.mxu3 }
 0x632   : > { %v5181_v48 = vpop.f32.mrf.mxu0  ;;  %v15943_v56 = vadd.f32 %v6053_v32, %v5841_v16 }
 0x633   : > { %v5233_v45 = vadd.f32 %v5181_v48, %v4955_v13 }
 0x634   : > { %v15939_v58 = vpop.f32.mrf.mxu1 }
 0x635   : > { %19318 = vst [vmem:[#allocation74_spill] sm:$0xff] %v15939_v58  ;;  %v5267_v2 = vadd.f32 %v15580_v33, %v5233_v45  ;;  %12055 = vmatmul.msk.f32.gmra.mxu0 %vm250_vm2, %v6149_v5  ;;  %v4959_v45 = vadd.f32 %v15822_v37, %v15824_v24  ;;  %v5708_v37 = vld [vmem:[#allocation2 + $0x26f] sm:$0xff] }
 0x636   : > { %12035 = vmatmul.msk.f32.gmra.mxu3 %vm250_vm2, %v5671_v25  ;;  %v5674_v24 = vld [vmem:[#allocation2 + $0x26e] sm:$0xff] }
 0x637   : > { %11969 = vmatmul.msk.f32.gmra.mxu1 %vm250_vm2, %v5267_v2  ;;  %12002 = vmatmul.msk.f32.gmra.mxu2 %vm250_vm2, %v5705_v38  ;;  %v6154_v38 = vld [vmem:[#allocation2 + $0x1b0] sm:$0xff] }
 0x638   : > { %v5844_v3 = vpop.f32.mrf.mxu2  ;;  %v6174_v58 = vld [vmem:[#allocation2 + $0x2f0] sm:$0xff] }
 0x639   : > { %v6056_v47 = vpop.f32.mrf.mxu3 }
 0x63a   : > { %v5184_v7 = vpop.f32.mrf.mxu0  ;;  %v15954_v46 = vadd.f32 %v6056_v47, %v5844_v3 }
 0x63b   : > { %v5234_v62 = vadd.f32 %v5184_v7, %v4956_v11 }
 0x63c   : > { %v15950_v23 = vpop.f32.mrf.mxu1 }
 0x63d   : > { %19319 = vst [vmem:[#allocation75_spill] sm:$0xff] %v15950_v23  ;;  %v5268_v44 = vadd.f32 %v15580_v33, %v5234_v62  ;;  %12056 = vmatmul.msk.f32.gmra.mxu0 %vm250_vm2, %v6150_v21  ;;  %v4960_v62 = vadd.f32 %v15838_v22, %v15840_v28  ;;  %v5709_v22 = vld [vmem:[#allocation2 + $0x287] sm:$0xff] }
 0x63e   : > { %12036 = vmatmul.msk.f32.gmra.mxu3 %vm250_vm2, %v5672_v59  ;;  %v5675_v28 = vld [vmem:[#allocation2 + $0x286] sm:$0xff]  ;;  %v5710_v59 = vld [vmem:[#allocation2 + $0x28f] sm:$0xff] }
 0x63f   : > { %11970 = vmatmul.msk.f32.gmra.mxu1 %vm250_vm2, %v5268_v44  ;;  %12003 = vmatmul.msk.f32.gmra.mxu2 %vm250_vm2, %v5706_v43 }
 0x640   : > { %v5847_v41 = vpop.f32.mrf.mxu2 }
 0x641   : > { %v6059_v54 = vpop.f32.mrf.mxu3 }
 0x642   : > { %v5187_v49 = vpop.f32.mrf.mxu0  ;;  %v15968_v18 = vadd.f32 %v6059_v54, %v5847_v41  ;;  %v6155_v54 = vld [vmem:[#allocation2 + $0x1c8] sm:$0xff] }
 0x643   : > { %v5235_v17 = vadd.f32 %v5187_v49, %v4957_v14 }
 0x644   : > { %v15961_v10 = vpop.f32.mrf.mxu1 }
 0x645   : > { %19320 = vst [vmem:[#allocation170_spill] sm:$0xff] %v15961_v10  ;;  %v5269_v60 = vadd.f32 %v15580_v33, %v5235_v17  ;;  %12057 = vmatmul.msk.f32.gmra.mxu0 %vm250_vm2, %v6151_v51  ;;  %v4961_v17 = vadd.f32 %v15862_v6, %v15858_v63  ;;  %v4962_v63 = vadd.f32 %v15878_v29, %v15874_v55 }
 0x646   : > { %12037 = vmatmul.msk.f32.gmra.mxu3 %vm250_vm2, %v5673_v52  ;;  %v4963_v55 = vadd.f32 %v15894_v20, %v15890_v15  ;;  %v4964_v15 = vadd.f32 %v15910_v4, %v15906_v8 }
 0x647   : > { %11971 = vmatmul.msk.f32.gmra.mxu1 %vm250_vm2, %v5269_v60  ;;  %12004 = vmatmul.msk.f32.gmra.mxu2 %vm250_vm2, %v5707_v9  ;;  %v5677_v9 = vld [vmem:[#allocation2 + $0x2a6] sm:$0xff] }
 0x648   : > { %v5850_v36 = vpop.f32.mrf.mxu2 }
 0x649   : > { %v6062_v13 = vpop.f32.mrf.mxu3 }
 0x64a   : > { %v5190_v50 = vpop.f32.mrf.mxu0  ;;  %v15980_v48 = vadd.f32 %v6062_v13, %v5850_v36  ;;  %v5711_v13 = vld [vmem:[#allocation2 + $0x2a7] sm:$0xff] }
 0x64b   : > { %v5236_v40 = vadd.f32 %v5190_v50, %v4958_v42  ;;  %v5676_v42 = vld [vmem:[#allocation2 + $0x28e] sm:$0xff] }
 0x64c   : > { %v15976_v26 = vpop.f32.mrf.mxu1 }
 0x64d   : > { %19321 = vst [vmem:[#allocation142_spill] sm:$0xff] %v15976_v26  ;;  %v5270_v34 = vadd.f32 %v15580_v33, %v5236_v40  ;;  %12058 = vmatmul.msk.f32.gmra.mxu0 %vm250_vm2, %v6152_v0  ;;  %v6156_v0 = vld [vmem:[#allocation2 + $0x1d0] sm:$0xff]  ;;  %v6173_v26 = vld [vmem:[#allocation2 + $0x2e8] sm:$0xff] }
 0x64e   : > { %12038 = vmatmul.msk.f32.gmra.mxu3 %vm250_vm2, %v5674_v24 }
 0x64f   : > { %11972 = vmatmul.msk.f32.gmra.mxu1 %vm250_vm2, %v5270_v34  ;;  %12005 = vmatmul.msk.f32.gmra.mxu2 %vm250_vm2, %v5708_v37 }
 0x650   : > { %v5853_v2 = vpop.f32.mrf.mxu2 }
 0x651   : > { %v6065_v11 = vpop.f32.mrf.mxu3 }
 0x652   : > { %v5193_v16 = vpop.f32.mrf.mxu0  ;;  %v15991_v7 = vadd.f32 %v6065_v11, %v5853_v2 }
 0x653   : > { %v5237_v5 = vadd.f32 %v5193_v16, %v4959_v45 }
 0x654   : > { %v15987_v32 = vpop.f32.mrf.mxu1 }
 0x655   : > { %19322 = vst [vmem:[#allocation81_spill] sm:$0xff] %v15987_v32  ;;  %v5271_v39 = vadd.f32 %v15580_v33, %v5237_v5  ;;  %12059 = vmatmul.msk.f32.gmra.mxu0 %vm250_vm2, %v6153_v53  ;;  %v6157_v5 = vld [vmem:[#allocation2 + $0x1e8] sm:$0xff] }
 0x656   : > { %12039 = vmatmul.msk.f32.gmra.mxu3 %vm250_vm2, %v5675_v28  ;;  %v5712_v53 = vld [vmem:[#allocation2 + $0x2af] sm:$0xff] }
 0x657   : > { %11973 = vmatmul.msk.f32.gmra.mxu1 %vm250_vm2, %v5271_v39  ;;  %12006 = vmatmul.msk.f32.gmra.mxu2 %vm250_vm2, %v5709_v22  ;;  %v5678_v39 = vld [vmem:[#allocation2 + $0x2ae] sm:$0xff] }
 0x658   : > { %v5856_v44 = vpop.f32.mrf.mxu2  ;;  %v5680_v22 = vld [vmem:[#allocation2 + $0x2ce] sm:$0xff] }
 0x659   : > { %v6068_v14 = vpop.f32.mrf.mxu3 }
 0x65a   : > { %v5196_v3 = vpop.f32.mrf.mxu0  ;;  %v16002_v49 = vadd.f32 %v6068_v14, %v5856_v44  ;;  %v5679_v44 = vld [vmem:[#allocation2 + $0x2c6] sm:$0xff]  ;;  %v5714_v14 = vld [vmem:[#allocation2 + $0x2cf] sm:$0xff] }
 0x65b   : > { %v5238_v21 = vadd.f32 %v5196_v3, %v4960_v62  ;;  %v6158_v62 = vld [vmem:[#allocation2 + $0x1f0] sm:$0xff] }
 0x65c   : > { %v15998_v47 = vpop.f32.mrf.mxu1 }
 0x65d   : > { %19323 = vst [vmem:[#allocation83_spill] sm:$0xff] %v15998_v47  ;;  %v5272_v25 = vadd.f32 %v15580_v33, %v5238_v21  ;;  %12060 = vmatmul.msk.f32.gmra.mxu0 %vm250_vm2, %v6154_v38  ;;  %v5713_v21 = vld [vmem:[#allocation2 + $0x2c7] sm:$0xff] }
 0x65e   : > { %12040 = vmatmul.msk.f32.gmra.mxu3 %vm250_vm2, %v5676_v42 }
 0x65f   : > { %11974 = vmatmul.msk.f32.gmra.mxu1 %vm250_vm2, %v5272_v25  ;;  %12007 = vmatmul.msk.f32.gmra.mxu2 %vm250_vm2, %v5710_v59  ;;  %v6159_v25 = vld [vmem:[#allocation2 + $0x208] sm:$0xff] }
 0x660   : > { %v16009_v1 = vpop.f32.mrf.mxu2  ;;  %v5681_v59 = vld [vmem:[#allocation2 + $0x2e6] sm:$0xff] }
 0x662   : > { %v5199_v41 = vpop.f32.mrf.mxu0 }
 0x663   : > { %v5239_v51 = vadd.f32 %v5199_v41, %v4961_v17 }
 0x664   : > { %v16011_v60 = vpop.f32.mrf.mxu1 }
 0x665   : > { %19324 = vst [vmem:[#allocation149_spill] sm:$0xff] %v16011_v60  ;;  %v5273_v43 = vadd.f32 %v15580_v33, %v5239_v51  ;;  %12061 = vmatmul.msk.f32.gmra.mxu0 %vm250_vm2, %v6155_v54  ;;  %v6160_v51 = vld [vmem:[#allocation2 + $0x210] sm:$0xff] }
 0x666   : > { %12041 = vmatmul.msk.f32.gmra.mxu3 %vm250_vm2, %v5677_v9  ;;  %v6422_v54 = vld [vmem:[#allocation2 + $0x111] sm:$0xff] }
 0x667   : > { %11975 = vmatmul.msk.f32.gmra.mxu1 %vm250_vm2, %v5273_v43  ;;  %12008 = vmatmul.msk.f32.gmra.mxu2 %vm250_vm2, %v5711_v13  ;;  %v5715_v43 = vld [vmem:[#allocation2 + $0x2e7] sm:$0xff]  ;;  %v6172_v60 = vld [vmem:[#allocation2 + $0x2d0] sm:$0xff] }
 0x668   : > { %v16020_v40 = vpop.f32.mrf.mxu2  ;;  %v5682_v13 = vld [vmem:[#allocation2 + $0x2ee] sm:$0xff] }
 0x66a   : > { %v5202_v6 = vpop.f32.mrf.mxu0 }
 0x66b   : > { %v5240_v50 = vadd.f32 %v5202_v6, %v4962_v63 }
 0x66c   : > { %v16022_v36 = vpop.f32.mrf.mxu1 }
 0x66d   : > { %19325 = vst [vmem:[#allocation80_spill] sm:$0xff] %v16022_v36  ;;  %v5274_v34 = vadd.f32 %v15580_v33, %v5240_v50  ;;  %12062 = vmatmul.msk.f32.gmra.mxu0 %vm250_vm2, %v6156_v0  ;;  %v6161_v50 = vld [vmem:[#allocation2 + $0x228] sm:$0xff] }
 0x66e   : > { %12042 = vmatmul.msk.f32.gmra.mxu3 %vm250_vm2, %v5678_v39  ;;  %v6423_v0 = vld [vmem:[#allocation2 + $0x129] sm:$0xff] }
 0x66f   : > { %11976 = vmatmul.msk.f32.gmra.mxu1 %vm250_vm2, %v5274_v34  ;;  %12009 = vmatmul.msk.f32.gmra.mxu2 %vm250_vm2, %v5712_v53  ;;  %v5716_v34 = vld [vmem:[#allocation2 + $0x2ef] sm:$0xff] }
 0x670   : > { %v16031_v45 = vpop.f32.mrf.mxu2 }
 0x672   : > { %v5205_v29 = vpop.f32.mrf.mxu0 }
 0x673   : > { %v5241_v52 = vadd.f32 %v5205_v29, %v4963_v55 }
 0x674   : > { %v16033_v16 = vpop.f32.mrf.mxu1 }
 0x675   : > { %19326 = vst [vmem:[#allocation82_spill] sm:$0xff] %v16033_v16  ;;  %v5275_v2 = vadd.f32 %v15580_v33, %v5241_v52  ;;  %12063 = vmatmul.msk.f32.gmra.mxu0 %vm250_vm2, %v6157_v5  ;;  %v6162_v52 = vld [vmem:[#allocation2 + $0x230] sm:$0xff] }
 0x676   : > { %12043 = vmatmul.msk.f32.gmra.mxu3 %vm250_vm2, %v5679_v44  ;;  %v6424_v5 = vld [vmem:[#allocation2 + $0x131] sm:$0xff] }
 0x677   : > { %11977 = vmatmul.msk.f32.gmra.mxu1 %vm250_vm2, %v5275_v2  ;;  %12010 = vmatmul.msk.f32.gmra.mxu2 %vm250_vm2, %v5713_v21  ;;  %v6699_v2 = vld [vmem:[#allocation2 + $0x10a] sm:$0xff] }
 0x678   : > { %v16042_v37 = vpop.f32.mrf.mxu2 }
 0x67a   : > { %v5208_v20 = vpop.f32.mrf.mxu0 }
 0x67b   : > { %v5242_v11 = vadd.f32 %v5208_v20, %v4964_v15  ;;  %v6163_v20 = vld [vmem:[#allocation2 + $0x248] sm:$0xff] }
 0x67c   : > { %v16044_v24 = vpop.f32.mrf.mxu1 }
 0x67d   : > { %19327 = vst [vmem:[#allocation153_spill] sm:$0xff] %v16044_v24  ;;  %v5276_v3 = vadd.f32 %v15580_v33, %v5242_v11  ;;  %12064 = vmatmul.msk.f32.gmra.mxu0 %vm250_vm2, %v6158_v62  ;;  %v6421_v33 = vld [vmem:[#allocation2 + $0x109] sm:$0xff]  ;;  %v6700_v62 = vld [vmem:[#allocation2 + $0x112] sm:$0xff] }
 0x67e   : > { %12044 = vmatmul.msk.f32.gmra.mxu3 %vm250_vm2, %v5680_v22  ;;  %v6425_v11 = vld [vmem:[#allocation2 + $0x149] sm:$0xff] }
 0x67f   : > { %11978 = vmatmul.msk.f32.gmra.mxu1 %vm250_vm2, %v5276_v3  ;;  %12011 = vmatmul.msk.f32.gmra.mxu2 %vm250_vm2, %v5714_v14  ;;  %v6701_v14 = vld [vmem:[#allocation2 + $0x12a] sm:$0xff] }
 0x680   : > { %v16053_v4 = vpop.f32.mrf.mxu2  ;;  %v6171_v24 = vld [vmem:[#allocation2 + $0x2c8] sm:$0xff] }
 0x682   : > { %v16051_v8 = vpop.f32.mrf.mxu0 }
 0x684   : > { %v16055_v38 = vpop.f32.mrf.mxu1 }
 0x685   : > { %19328 = vst [vmem:[#allocation88_spill] sm:$0xff] %v16055_v38  ;;  %12065 = vmatmul.msk.f32.gmra.mxu0 %vm250_vm2, %v6159_v25  ;;  %v6164_v25 = vld [vmem:[#allocation2 + $0x250] sm:$0xff] }
 0x686   : > { %12045 = vmatmul.msk.f32.gmra.mxu3 %vm250_vm2, %v5681_v59  ;;  %v6165_v59 = vld [vmem:[#allocation2 + $0x268] sm:$0xff] }
 0x687   : > { %12083 = vmatmul.msk.f32.vlgmr.msrb.gmra.mxu1 %vm250_vm2, %v6421_v33  ;;  %12012 = vmatmul.msk.f32.gmra.mxu2 %vm250_vm2, %v5715_v43  ;;  %v6426_v33 = vld [vmem:[#allocation2 + $0x151] sm:$0xff] }
 0x688   : > { %v16063_v17 = vpop.f32.mrf.mxu2 }
 0x68a   : > { %v16061_v28 = vpop.f32.mrf.mxu0 }
 0x68c   : > { %v16065_v41 = vpop.f32.mrf.mxu1 }
 0x68d   : > { %19329 = vst [vmem:[#allocation90_spill] sm:$0xff] %v16065_v41  ;;  %12066 = vmatmul.msk.f32.gmra.mxu0 %vm250_vm2, %v6160_v51  ;;  %v16110_v51 = vpop.f32.mrf.mxu3  ;;  %v6170_v41 = vld [vmem:[#allocation2 + $0x2b0] sm:$0xff] }
 0x68e   : > { %12046 = vmatmul.msk.f32.gmra.mxu3 %vm250_vm2, %v5682_v13 }
 0x68f   : > { %12084 = vmatmul.msk.f32.gmra.mxu1 %vm250_vm2, %v6422_v54  ;;  %12013 = vmatmul.msk.f32.gmra.mxu2 %vm250_vm2, %v5716_v34 }
 0x690   : > { %v16073_v63 = vpop.f32.mrf.mxu2 }
 0x692   : > { %v16071_v42 = vpop.f32.mrf.mxu0 }
 0x694   : > { %v16075_v6 = vpop.f32.mrf.mxu1 }
 0x695   : > { %19330 = vst [vmem:[#allocation160_spill] sm:$0xff] %v16075_v6  ;;  %12067 = vmatmul.msk.f32.gmra.mxu0 %vm250_vm2, %v6161_v50  ;;  %v6427_v50 = vld [vmem:[#allocation2 + $0x169] sm:$0xff] }
 0x697   : > { %12085 = vmatmul.msk.f32.gmra.mxu1 %vm250_vm2, %v6423_v0  ;;  %12117 = vmatmul.msk.f32.vlgmr.msra.gmra.mxu2 %vm250_vm2, %v6699_v2  ;;  %v6702_v0 = vld [vmem:[#allocation2 + $0x132] sm:$0xff]  ;;  %v16125_v2 = vpop.f32.mrf.mxu3 }
 0x698   : > { %v16083_v55 = vpop.f32.mrf.mxu2 }
 0x69a   : > { %v16081_v9 = vpop.f32.mrf.mxu0 }
 0x69c   : > { %v16085_v29 = vpop.f32.mrf.mxu1 }
 0x69d   : > { %19331 = vst [vmem:[#allocation89_spill] sm:$0xff] %v16085_v29  ;;  %12068 = vmatmul.msk.f32.gmra.mxu0 %vm250_vm2, %v6162_v52 }
 0x69f   : > { %12086 = vmatmul.msk.f32.gmra.mxu1 %vm250_vm2, %v6424_v5  ;;  %12118 = vmatmul.msk.f32.gmra.mxu2 %vm250_vm2, %v6700_v62  ;;  %v6166_v5 = vld [vmem:[#allocation2 + $0x270] sm:$0xff] }
 0x6a0   : > { %v16092_v39 = vpop.f32.mrf.mxu2 }
 0x6a2   : > { %v16090_v53 = vpop.f32.mrf.mxu0 }
 0x6a4   : > { %v16094_v15 = vpop.f32.mrf.mxu1 }
 0x6a5   : > { %19332 = vst [vmem:[#allocation91_spill] sm:$0xff] %v16094_v15  ;;  %12069 = vmatmul.msk.f32.gmra.mxu0 %vm250_vm2, %v6163_v20  ;;  %v6428_v20 = vld [vmem:[#allocation2 + $0x171] sm:$0xff]  ;;  %v6169_v15 = vld [vmem:[#allocation2 + $0x2a8] sm:$0xff] }
 0x6a7   : > { %12087 = vmatmul.msk.f32.gmra.mxu1 %vm250_vm2, %v6425_v11  ;;  %12119 = vmatmul.msk.f32.gmra.mxu2 %vm250_vm2, %v6701_v14  ;;  %v6703_v11 = vld [vmem:[#allocation2 + $0x14a] sm:$0xff] }
 0x6a8   : > { %v16101_v21 = vpop.f32.mrf.mxu2  ;;  %v6167_v14 = vld [vmem:[#allocation2 + $0x288] sm:$0xff] }
 0x6aa   : > { %v16099_v3 = vpop.f32.mrf.mxu0 }
 0x6ac   : > { %v16103_v44 = vpop.f32.mrf.mxu1 }
 0x6ad   : > { %19333 = vst [vmem:[#allocation164_spill] sm:$0xff] %v16103_v44  ;;  %12070 = vmatmul.msk.f32.gmra.mxu0 %vm250_vm2, %v6164_v25 }
 0x6af   : > { %12088 = vmatmul.msk.f32.gmra.mxu1 %vm250_vm2, %v6426_v33  ;;  %12120 = vmatmul.msk.f32.gmra.mxu2 %vm250_vm2, %v6702_v0  ;;  %v16141_v0 = vpop.f32.mrf.mxu3 }
 0x6b0   : > { %v16112_v54 = vpop.f32.mrf.mxu2 }
 0x6b2   : > { %v16108_v22 = vpop.f32.mrf.mxu0 }
 0x6b4   : > { %v16114_v43 = vpop.f32.mrf.mxu1 }
 0x6b5   : > { %19334 = vst [vmem:[#allocation98_spill] sm:$0xff] %v16114_v43  ;;  %12071 = vmatmul.msk.f32.gmra.mxu0 %vm250_vm2, %v6165_v59  ;;  %v12217_v59 = vld [vmem:[%s18820_s3 + $0x2c] sm:$0x3] }
 0x6b6   : > { %12218 = vmatpush.msk.msra.mxu1 %vm789_vm1, %v12217_v59  ;;  %v6705_v59 = vld [vmem:[#allocation2 + $0x16a] sm:$0xff] }
 0x6b7   : > { %12089 = vmatmul.msk.f32.gmra.mxu1 %vm250_vm2, %v6427_v50  ;;  %12121 = vmatmul.msk.f32.gmra.mxu2 %vm250_vm2, %v6703_v11  ;;  %v6429_v50 = vld [vmem:[#allocation2 + $0x189] sm:$0xff]  ;;  %v16153_v43 = vpop.f32.mrf.mxu3 }
 0x6b8   : > { %v16121_v13 = vpop.f32.mrf.mxu2 }
 0x6b9   : > { %19335 = vst [vmem:[#allocation101_spill] sm:$0xff] %v16121_v13  ;;  %v6441_v13 = vld [vmem:[#allocation2 + $0x249] sm:$0xff] }
 0x6ba   : > { %v16119_v34 = vpop.f32.mrf.mxu0 }
 0x6bc   : > { %v16123_v52 = vpop.f32.mrf.mxu1 }
 0x6bd   : > { %19336 = vst [vmem:[#allocation174_spill] sm:$0xff] %v16123_v52  ;;  %12072 = vmatmul.msk.f32.gmra.mxu0 %vm250_vm2, %v6166_v5  ;;  %v6704_v5 = vld [vmem:[#allocation2 + $0x152] sm:$0xff] }
 0x6be   : > { %v6168_v52 = vld [vmem:[#allocation2 + $0x290] sm:$0xff] }
 0x6bf   : > { %12090 = vmatmul.msk.f32.gmra.mxu1 %vm250_vm2, %v6428_v20  ;;  %12122 = vmatmul.msk.f32.gmra.mxu2 %vm250_vm2, %v6704_v5  ;;  %v16167_v29 = vpop.f32.mrf.mxu3 }
 0x6c0   : > { %v16132_v25 = vpop.f32.mrf.mxu2 }
 0x6c1   : > { %19337 = vst [vmem:[#allocation97_spill] sm:$0xff] %v16132_v25 }
 0x6c2   : > { %v16130_v62 = vpop.f32.mrf.mxu0 }
 0x6c4   : > { %v16134_v33 = vpop.f32.mrf.mxu1 }
 0x6c5   : > { %19338 = vst [vmem:[#allocation100_spill] sm:$0xff] %v16134_v33  ;;  %12073 = vmatmul.msk.f32.gmra.mxu0 %vm250_vm2, %v6167_v14  ;;  %v6430_v14 = vld [vmem:[#allocation2 + $0x191] sm:$0xff] }
 0x6c7   : > { %12091 = vmatmul.msk.f32.gmra.mxu1 %vm250_vm2, %v6429_v50  ;;  %12123 = vmatmul.msk.f32.gmra.mxu2 %vm250_vm2, %v6705_v59  ;;  %v16182_v16 = vpop.f32.mrf.mxu3 }
 0x6c8   : > { %v16147_v11 = vpop.f32.mrf.mxu2 }
 0x6c9   : > { %19339 = vst [vmem:[#allocation171_spill] sm:$0xff] %v16147_v11 }
 0x6ca   : > { %v16145_v20 = vpop.f32.mrf.mxu0 }
 0x6cc   : > { %v16149_v33 = vpop.f32.mrf.mxu1 }
 0x6cd   : > { %19340 = vst [vmem:[#allocation107_spill] sm:$0xff] %v16149_v33  ;;  %12074 = vmatmul.msk.f32.gmra.mxu0 %vm250_vm2, %v6168_v52  ;;  %v6431_v33 = vld [vmem:[#allocation2 + $0x1a9] sm:$0xff]  ;;  %v6706_v52 = vld [vmem:[#allocation2 + $0x172] sm:$0xff] }
 0x6cf   : > { %12092 = vmatmul.msk.f32.gmra.mxu1 %vm250_vm2, %v6430_v14  ;;  %12124 = vmatmul.msk.f32.gmra.mxu2 %vm250_vm2, %v6706_v52  ;;  %v16194_v47 = vpop.f32.mrf.mxu3 }
 0x6d0   : > { %v16158_v5 = vpop.f32.mrf.mxu2 }
 0x6d1   : > { %19341 = vst [vmem:[#allocation108_spill] sm:$0xff] %v16158_v5  ;;  %v6440_v5 = vld [vmem:[#allocation2 + $0x231] sm:$0xff] }
 0x6d2   : > { %v16156_v50 = vpop.f32.mrf.mxu0 }
 0x6d4   : > { %v16160_v44 = vpop.f32.mrf.mxu1 }
 0x6d5   : > { %19342 = vst [vmem:[#allocation110_spill] sm:$0xff] %v16160_v44  ;;  %12075 = vmatmul.msk.f32.gmra.mxu0 %vm250_vm2, %v6169_v15  ;;  %v6432_v44 = vld [vmem:[#allocation2 + $0x1b1] sm:$0xff] }
 0x6d6   : > { %v6707_v15 = vld [vmem:[#allocation2 + $0x18a] sm:$0xff] }
 0x6d7   : > { %12093 = vmatmul.msk.f32.gmra.mxu1 %vm250_vm2, %v6431_v33  ;;  %12125 = vmatmul.msk.f32.gmra.mxu2 %vm250_vm2, %v6707_v15  ;;  %v16206_v10 = vpop.f32.mrf.mxu3 }
 0x6d8   : > { %v16169_v59 = vpop.f32.mrf.mxu2 }
 0x6d9   : > { %19343 = vst [vmem:[#allocation113_spill] sm:$0xff] %v16169_v59  ;;  %v6714_v59 = vld [vmem:[#allocation2 + $0x1f2] sm:$0xff] }
 0x6da   : > { %v16165_v14 = vpop.f32.mrf.mxu0 }
 0x6dc   : > { %v16171_v6 = vpop.f32.mrf.mxu1 }
 0x6dd   : > { %19344 = vst [vmem:[#allocation176_spill] sm:$0xff] %v16171_v6  ;;  %12076 = vmatmul.msk.f32.gmra.mxu0 %vm250_vm2, %v6170_v41  ;;  %v6433_v6 = vld [vmem:[#allocation2 + $0x1c9] sm:$0xff]  ;;  %v6708_v41 = vld [vmem:[#allocation2 + $0x192] sm:$0xff] }
 0x6df   : > { %12094 = vmatmul.msk.f32.gmra.mxu1 %vm250_vm2, %v6432_v44  ;;  %12126 = vmatmul.msk.f32.gmra.mxu2 %vm250_vm2, %v6708_v41 }
 0x6e0   : > { %v16178_v52 = vpop.f32.mrf.mxu2 }
 0x6e1   : > { %19345 = vst [vmem:[#allocation119_spill] sm:$0xff] %v16178_v52  ;;  %v6439_v52 = vld [vmem:[#allocation2 + $0x229] sm:$0xff] }
 0x6e2   : > { %v16176_v33 = vpop.f32.mrf.mxu0 }
 0x6e4   : > { %v16180_v38 = vpop.f32.mrf.mxu1 }
 0x6e5   : > { %19346 = vst [vmem:[#allocation122_spill] sm:$0xff] %v16180_v38  ;;  %12077 = vmatmul.msk.f32.gmra.mxu0 %vm250_vm2, %v6171_v24  ;;  %v6434_v38 = vld [vmem:[#allocation2 + $0x1d1] sm:$0xff] }
 0x6e6   : > { %v6709_v24 = vld [vmem:[#allocation2 + $0x1aa] sm:$0xff] }
 0x6e7   : > { %12095 = vmatmul.msk.f32.gmra.mxu1 %vm250_vm2, %v6433_v6  ;;  %12127 = vmatmul.msk.f32.gmra.mxu2 %vm250_vm2, %v6709_v24 }
 0x6e8   : > { %v16189_v15 = vpop.f32.mrf.mxu2 }
 0x6e9   : > { %19347 = vst [vmem:[#allocation183_spill] sm:$0xff] %v16189_v15 }
 0x6ea   : > { %v16187_v44 = vpop.f32.mrf.mxu0 }
 0x6ec   : > { %v16191_v36 = vpop.f32.mrf.mxu1 }
 0x6ed   : > { %19348 = vst [vmem:[#allocation128_spill] sm:$0xff] %v16191_v36  ;;  %12078 = vmatmul.msk.f32.gmra.mxu0 %vm250_vm2, %v6172_v60  ;;  %v6435_v36 = vld [vmem:[#allocation2 + $0x1e9] sm:$0xff]  ;;  %v6710_v60 = vld [vmem:[#allocation2 + $0x1b2] sm:$0xff] }
 0x6ef   : > { %12096 = vmatmul.msk.f32.gmra.mxu1 %vm250_vm2, %v6434_v38  ;;  %12128 = vmatmul.msk.f32.gmra.mxu2 %vm250_vm2, %v6710_v60  ;;  %v7110_v60 = vld [vmem:[#allocation2 + $0xe8] sm:$0xff] }
 0x6f0   : > { %v16200_v41 = vpop.f32.mrf.mxu2  ;;  %12152 = vmatmul.msk.f32.vlgmr.msra.gmra.mxu3 %vm250_vm2, %v7110_v60 }
 0x6f1   : > { %19349 = vst [vmem:[#allocation129_spill] sm:$0xff] %v16200_v41 }
 0x6f2   : > { %v16198_v6 = vpop.f32.mrf.mxu0 }
 0x6f4   : > { %v16202_v32 = vpop.f32.mrf.mxu1 }
 0x6f5   : > { %19350 = vst [vmem:[#allocation76_spill] sm:$0xff] %v16202_v32  ;;  %12079 = vmatmul.msk.f32.gmra.mxu0 %vm250_vm2, %v6173_v26  ;;  %v6436_v32 = vld [vmem:[#allocation2 + $0x1f1] sm:$0xff] }
 0x6f6   : > { %v6711_v26 = vld [vmem:[#allocation2 + $0x1ca] sm:$0xff] }
 0x6f7   : > { %12097 = vmatmul.msk.f32.gmra.mxu1 %vm250_vm2, %v6435_v36  ;;  %12129 = vmatmul.msk.f32.gmra.mxu2 %vm250_vm2, %v6711_v26  ;;  %v12251_v36 = vld [vmem:[%s18820_s3 + $0x2e] sm:$0x3] }
 0x6f8   : > { %v16211_v24 = vpop.f32.mrf.mxu2  ;;  %12252 = vmatpush.msk.msrb.mxu2 %vm789_vm1, %v12251_v36  ;;  %v6712_v36 = vld [vmem:[#allocation2 + $0x1d2] sm:$0xff]  ;;  %12153 = vmatmul.msk.f32.gmra.mxu3 %vm250_vm2, %v7111_v30 }
 0x6f9   : > { %19351 = vst [vmem:[#allocation131_spill] sm:$0xff] %v16211_v24 }
 0x6fa   : > { %v16209_v38 = vpop.f32.mrf.mxu0 }
 0x6fc   : > { %v16213_v23 = vpop.f32.mrf.mxu1 }
 0x6fd   : > { %19352 = vst [vmem:[#allocation134_spill] sm:$0xff] %v16213_v23  ;;  %12080 = vmatmul.msk.f32.gmra.mxu0 %vm250_vm2, %v6174_v58  ;;  %v7076_v23 = vld [vmem:[#allocation2 + $0xc8] sm:$0xff]  ;;  %v12285_v58 = vld [vmem:[%s18820_s3 + $0x30] sm:$0x3] }
 0x6fe   : > { %12286 = vmatpush.msk.msrb.mxu3 %vm789_vm1, %v12285_v58 }
 0x6ff   : > { %12098 = vmatmul.msk.f32.gmra.mxu1 %vm250_vm2, %v6436_v32  ;;  %v16228_v32 = vpop.f32.mrf.mxu3  ;;  %12130 = vmatmul.msk.f32.gmra.mxu2 %vm250_vm2, %v6712_v36 }
 0x700   : > { %v16231_v26 = vpop.f32.mrf.mxu2 }
 0x701   : > { %19353 = vst [vmem:[#allocation77_spill] sm:$0xff] %v16231_v26 }
 0x702   : > { %v16221_v35 = vpop.f32.mrf.mxu0 }
 0x704   : > { %v6571_v31 = vpop.f32.mrf.mxu1 }
 0x705   : > { %12185 = vmatmul.msk.f32.vlgmr.msra.gmra.mxu0 %vm250_vm2, %v7076_v23  ;;  %v6438_v23 = vld [vmem:[#allocation2 + $0x211] sm:$0xff] }
 0x707   : > { %12099 = vmatmul.msk.f32.gmra.mxu1 %vm250_vm2, %v6437_v27  ;;  %v16241_v41 = vpop.f32.mrf.mxu3  ;;  %v6713_v27 = vld [vmem:[#allocation2 + $0x1ea] sm:$0xff] }
 0x708   : > { %v16239_v24 = vpop.f32.mrf.mxu2  ;;  %12131 = vmatmul.msk.f32.gmra.mxu2 %vm250_vm2, %v6713_v27 }
 0x709   : > { %19354 = vst [vmem:[#allocation140_spill] sm:$0xff] %v16239_v24 }
 0x70a   : > { %v16236_v12 = vpop.f32.mrf.mxu0 }
 0x70c   : > { %v6574_v58 = vpop.f32.mrf.mxu1 }
 0x70d   : > { %12186 = vmatmul.msk.f32.gmra.mxu0 %vm250_vm2, %v7077_v57 }
 0x70f   : > { %12100 = vmatmul.msk.f32.gmra.mxu1 %vm250_vm2, %v6438_v23  ;;  %v16251_v24 = vpop.f32.mrf.mxu3 }
 0x710   : > { %v16248_v26 = vpop.f32.mrf.mxu2  ;;  %12132 = vmatmul.msk.f32.gmra.mxu2 %vm250_vm2, %v6714_v59 }
 0x711   : > { %19356 = vst [vmem:[#allocation172_spill] sm:$0xff] %v16248_v26  ;;  %v6389_v26 = vadd.f32 %v16051_v8, %v15921_v61  ;;  %v6390_v61 = vadd.f32 %v16061_v28, %v15932_v19  ;;  %v6391_v19 = vadd.f32 %v16071_v42, %v15943_v56 }
 0x712   : > { %v16246_v36 = vpop.f32.mrf.mxu0 }
 0x713   : > { %19355 = vst [vmem:[#allocation141_spill] sm:$0xff] %v16246_v36  ;;  %v6442_v36 = vld [vmem:[#allocation2 + $0x251] sm:$0xff] }
 0x714   : > { %v6577_v15 = vpop.f32.mrf.mxu1 }
 0x715   : > { %12187 = vmatmul.msk.f32.gmra.mxu0 %vm250_vm2, %v7110_v60  ;;  %v6715_v60 = vld [vmem:[#allocation2 + $0x20a] sm:$0xff] }
 0x717   : > { %12101 = vmatmul.msk.f32.gmra.mxu1 %vm250_vm2, %v6439_v52  ;;  %v16263_v11 = vpop.f32.mrf.mxu3  ;;  %v6667_v52 = vadd.f32 %v6571_v31, %v6389_v26  ;;  %v6668_v26 = vadd.f32 %v6574_v58, %v6390_v61  ;;  %v6669_v58 = vadd.f32 %v6577_v15, %v6391_v19  ;;  %v6392_v15 = vadd.f32 %v16081_v9, %v15954_v46 }
 0x718   : > { %v16257_v23 = vpop.f32.mrf.mxu2  ;;  %19359 = vst [vmem:[#allocation175_spill] sm:$0xff] %v16263_v11  ;;  %12133 = vmatmul.msk.f32.gmra.mxu2 %vm250_vm2, %v6715_v60 }
 0x719   : > { %19358 = vst [vmem:[#allocation145_spill] sm:$0xff] %v16257_v23  ;;  %v16271_v23 = vld [vmem:[%s18821_s4 + $0x3] ss:$0 sm:$0xff] }
 0x71a   : > { %v16255_v57 = vpop.f32.mrf.mxu0 }
 0x71b   : > { %19357 = vst [vmem:[#allocation84_spill] sm:$0xff] %v16255_v57 }
 0x71c   : > { %v6580_v27 = vpop.f32.mrf.mxu1 }
 0x71d   : > { %12188 = vmatmul.msk.f32.gmra.mxu0 %vm250_vm2, %v7111_v30  ;;  %v6670_v19 = vadd.f32 %v6580_v27, %v6392_v15 }
 0x71f   : > { %12102 = vmatmul.msk.f32.gmra.mxu1 %vm250_vm2, %v6440_v5  ;;  %v6716_v5 = vld [vmem:[#allocation2 + $0x212] sm:$0xff] }
 0x720   : > { %v6849_v30 = vpop.f32.mrf.mxu2  ;;  %12134 = vmatmul.msk.f32.gmra.mxu2 %vm250_vm2, %v6716_v5  ;;  %v6443_v5 = vld [vmem:[#allocation2 + $0x269] sm:$0xff] }
 0x721   : > { %v6945_v57 = vadd.f32 %v6849_v30, %v6667_v52 }
 0x722   : > { %v16266_v59 = vpop.f32.mrf.mxu0 }
 0x723   : > { %19360 = vst [vmem:[#allocation85_spill] sm:$0xff] %v16266_v59  ;;  %v6979_v8 = vadd.f32 %v16271_v23, %v6945_v57  ;;  %v16280_v59 = vpop.f32.mrf.mxu3 }
 0x724   : > { %v6583_v25 = vpop.f32.mrf.mxu1 }
 0x725   : > { %v7011_v31 = vmax.f32 %v6979_v8, 0.0 }
 0x727   : > { %12103 = vmatmul.msk.f32.gmra.mxu1 %vm250_vm2, %v6441_v13  ;;  %7043 = vst.msk [vmem:[#allocation2 + $0x108] sm:$0xff] %vm250_vm2, %v7011_v31  ;;  %v6717_v13 = vld [vmem:[#allocation2 + $0x22a] sm:$0xff] }
 0x728   : > { %v6852_v52 = vpop.f32.mrf.mxu2  ;;  %12135 = vmatmul.msk.f32.gmra.mxu2 %vm250_vm2, %v6717_v13 }
 0x729   : > { %v6946_v11 = vadd.f32 %v6852_v52, %v6668_v26  ;;  %v6718_v26 = vld [vmem:[#allocation2 + $0x232] sm:$0xff] }
 0x72a   : > { %v16278_v60 = vpop.f32.mrf.mxu0 }
 0x72b   : > { %v6980_v28 = vadd.f32 %v16271_v23, %v6946_v11  ;;  %v16297_v11 = vpop.f32.mrf.mxu3 }
 0x72c   : > { %v6586_v30 = vpop.f32.mrf.mxu1 }
 0x72d   : > { %v7012_v57 = vmax.f32 %v6980_v28, 0.0 }
 0x72e   : > { %v16288_v61 = vld [vmem:[#allocation2 + $0x108] sm:$0xff] }
 0x72f   : > { %12104 = vmatmul.msk.f32.gmra.mxu1 %vm250_vm2, %v6442_v36  ;;  %7044 = vst.msk [vmem:[#allocation2 + $0x110] sm:$0xff] %vm250_vm2, %v7012_v57  ;;  %12154 = vmatmul.msk.f32.gmra.mxu3 %vm250_vm2, %v16288_v61 }
 0x730   : > { %12189 = vmatmul.msk.f32.gmra.mxu0 %vm250_vm2, %v16288_v61  ;;  %v6855_v56 = vpop.f32.mrf.mxu2  ;;  %12136 = vmatmul.msk.f32.gmra.mxu2 %vm250_vm2, %v6718_v26 }
 0x731   : > { %v6947_v36 = vadd.f32 %v6855_v56, %v6669_v58  ;;  %v6444_v58 = vld [vmem:[#allocation2 + $0x271] sm:$0xff]  ;;  %v6393_v56 = vadd.f32 %v16090_v53, %v15968_v18 }
 0x732   : > { %v16290_v8 = vpop.f32.mrf.mxu0 }
 0x733   : > { %v6981_v31 = vadd.f32 %v16271_v23, %v6947_v36  ;;  %v16315_v27 = vpop.f32.mrf.mxu3 }
 0x734   : > { %v6589_v42 = vpop.f32.mrf.mxu1 }
 0x735   : > { %v7013_v52 = vmax.f32 %v6981_v31, 0.0  ;;  %v6671_v31 = vadd.f32 %v6583_v25, %v6393_v56  ;;  %v6394_v25 = vadd.f32 %v16099_v3, %v15980_v48  ;;  %v12320_v48 = vld [vmem:[%s18820_s3 + $0x34] sm:$0x3] }
 0x736   : > { %v16304_v28 = vld [vmem:[#allocation2 + $0x110] sm:$0xff]  ;;  %12321 = vmatpush.msk.msrb.mxu0 %vm789_vm1, %v12320_v48 }
 0x737   : > { %12105 = vmatmul.msk.f32.gmra.mxu1 %vm250_vm2, %v6443_v5  ;;  %7045 = vst.msk [vmem:[#allocation2 + $0x128] sm:$0xff] %vm250_vm2, %v7013_v52  ;;  %12155 = vmatmul.msk.f32.gmra.mxu3 %vm250_vm2, %v16304_v28  ;;  %v6719_v5 = vld [vmem:[#allocation2 + $0x24a] sm:$0xff] }
 0x738   : > { %12190 = vmatmul.msk.f32.gmra.mxu0 %vm250_vm2, %v16304_v28  ;;  %v6858_v46 = vpop.f32.mrf.mxu2  ;;  %12137 = vmatmul.msk.f32.gmra.mxu2 %vm250_vm2, %v6719_v5  ;;  %v6672_v5 = vadd.f32 %v6586_v30, %v6394_v25  ;;  %v6721_v25 = vld [vmem:[#allocation2 + $0x26a] sm:$0xff] }
 0x739   : > { %v6948_v57 = vadd.f32 %v6858_v46, %v6670_v19  ;;  %v6445_v46 = vld [vmem:[#allocation2 + $0x289] sm:$0xff] }
 0x73a   : > { %v16306_v13 = vpop.f32.mrf.mxu0 }
 0x73b   : > { %v6982_v36 = vadd.f32 %v16271_v23, %v6948_v57  ;;  %v16335_v56 = vpop.f32.mrf.mxu3 }
 0x73c   : > { %v6592_v9 = vpop.f32.mrf.mxu1 }
 0x73d   : > { %v7014_v15 = vmax.f32 %v6982_v36, 0.0 }
 0x73e   : > { %v16320_v26 = vld [vmem:[#allocation2 + $0x128] sm:$0xff] }
 0x73f   : > { %12106 = vmatmul.msk.f32.gmra.mxu1 %vm250_vm2, %v6444_v58  ;;  %7046 = vst.msk [vmem:[#allocation2 + $0x130] sm:$0xff] %vm250_vm2, %v7014_v15  ;;  %12156 = vmatmul.msk.f32.gmra.mxu3 %vm250_vm2, %v16320_v26  ;;  %v6720_v58 = vld [vmem:[#allocation2 + $0x252] sm:$0xff] }
 0x740   : > { %12191 = vmatmul.msk.f32.gmra.mxu0 %vm250_vm2, %v16320_v26  ;;  %v6861_v18 = vpop.f32.mrf.mxu2  ;;  %12138 = vmatmul.msk.f32.gmra.mxu2 %vm250_vm2, %v6720_v58 }
 0x741   : > { %v6949_v19 = vadd.f32 %v6861_v18, %v6671_v31  ;;  %v6446_v18 = vld [vmem:[#allocation2 + $0x291] sm:$0xff] }
 0x742   : > { %v16322_v52 = vpop.f32.mrf.mxu0 }
 0x743   : > { %19361 = vst [vmem:[#allocation180_spill] sm:$0xff] %v16322_v52  ;;  %v6983_v57 = vadd.f32 %v16271_v23, %v6949_v19  ;;  %v6395_v19 = vadd.f32 %v16108_v22, %v15991_v7 }
 0x744   : > { %v16329_v53 = vpop.f32.mrf.mxu1 }
 0x745   : > { %v7015_v36 = vmax.f32 %v6983_v57, 0.0  ;;  %v6673_v58 = vadd.f32 %v6589_v42, %v6395_v19  ;;  %v6396_v42 = vadd.f32 %v16119_v34, %v16002_v49 }
 0x746   : > { %v16338_v15 = vld [vmem:[#allocation2 + $0x130] sm:$0xff] }
 0x747   : > { %12107 = vmatmul.msk.f32.gmra.mxu1 %vm250_vm2, %v6445_v46  ;;  %7047 = vst.msk [vmem:[#allocation2 + $0x148] sm:$0xff] %vm250_vm2, %v7015_v36  ;;  %12157 = vmatmul.msk.f32.gmra.mxu3 %vm250_vm2, %v16338_v15 }
 0x748   : > { %12192 = vmatmul.msk.f32.gmra.mxu0 %vm250_vm2, %v16338_v15  ;;  %v6864_v3 = vpop.f32.mrf.mxu2  ;;  %12139 = vmatmul.msk.f32.gmra.mxu2 %vm250_vm2, %v6721_v25 }
 0x749   : > { %v6950_v31 = vadd.f32 %v6864_v3, %v6672_v5  ;;  %v6447_v3 = vld [vmem:[#allocation2 + $0x2a9] sm:$0xff] }
 0x74a   : > { %v16340_v52 = vpop.f32.mrf.mxu0 }
 0x74b   : > { %19362 = vst [vmem:[#allocation151_spill] sm:$0xff] %v16340_v52  ;;  %v6984_v46 = vadd.f32 %v16271_v23, %v6950_v31  ;;  %v16358_v52 = vpop.f32.mrf.mxu3 }
 0x74c   : > { %v6598_v30 = vpop.f32.mrf.mxu1 }
 0x74d   : > { %v7016_v57 = vmax.f32 %v6984_v46, 0.0  ;;  %v6674_v46 = vadd.f32 %v6592_v9, %v6396_v42 }
 0x74e   : > { %v16356_v36 = vld [vmem:[#allocation2 + $0x148] sm:$0xff] }
 0x74f   : > { %12108 = vmatmul.msk.f32.gmra.mxu1 %vm250_vm2, %v6446_v18  ;;  %7048 = vst.msk [vmem:[#allocation2 + $0x150] sm:$0xff] %vm250_vm2, %v7016_v57  ;;  %12158 = vmatmul.msk.f32.gmra.mxu3 %vm250_vm2, %v16356_v36  ;;  %v6722_v18 = vld [vmem:[#allocation2 + $0x272] sm:$0xff]  ;;  %v6072_v57 = vadd.f32 %v16110_v51, %v16009_v1 }
 0x750   : > { %12193 = vmatmul.msk.f32.gmra.mxu0 %vm250_vm2, %v16356_v36  ;;  %v6867_v22 = vpop.f32.mrf.mxu2  ;;  %12140 = vmatmul.msk.f32.gmra.mxu2 %vm250_vm2, %v6722_v18 }
 0x751   : > { %v6951_v48 = vadd.f32 %v6867_v22, %v6673_v58 }
 0x752   : > { %v16365_v7 = vpop.f32.mrf.mxu0 }
 0x753   : > { %19363 = vst [vmem:[#allocation152_spill] sm:$0xff] %v16365_v7  ;;  %v6985_v31 = vadd.f32 %v16271_v23, %v6951_v48  ;;  %v16383_v58 = vpop.f32.mrf.mxu3  ;;  %v6448_v48 = vld [vmem:[#allocation2 + $0x2b1] sm:$0xff] }
 0x754   : > { %v6601_v5 = vpop.f32.mrf.mxu1 }
 0x755   : > { %v7017_v19 = vmax.f32 %v6985_v31, 0.0  ;;  %v6723_v31 = vld [vmem:[#allocation2 + $0x28a] sm:$0xff] }
 0x756   : > { %v16372_v25 = vld [vmem:[#allocation2 + $0x150] sm:$0xff] }
 0x757   : > { %12109 = vmatmul.msk.f32.gmra.mxu1 %vm250_vm2, %v6447_v3  ;;  %7049 = vst.msk [vmem:[#allocation2 + $0x168] sm:$0xff] %vm250_vm2, %v7017_v19  ;;  %12159 = vmatmul.msk.f32.gmra.mxu3 %vm250_vm2, %v16372_v25  ;;  %v6397_v3 = vadd.f32 %v16130_v62, %v6072_v57  ;;  %v6075_v62 = vadd.f32 %v16125_v2, %v16020_v40 }
 0x758   : > { %12194 = vmatmul.msk.f32.gmra.mxu0 %vm250_vm2, %v16372_v25  ;;  %v6870_v49 = vpop.f32.mrf.mxu2  ;;  %12141 = vmatmul.msk.f32.gmra.mxu2 %vm250_vm2, %v6723_v31 }
 0x759   : > { %v6952_v22 = vadd.f32 %v6870_v49, %v6674_v46  ;;  %v6675_v19 = vadd.f32 %v16329_v53, %v6397_v3  ;;  %v6449_v49 = vld [vmem:[#allocation2 + $0x2c9] sm:$0xff]  ;;  %v6398_v53 = vadd.f32 %v16145_v20, %v6075_v62  ;;  %v6724_v3 = vld [vmem:[#allocation2 + $0x292] sm:$0xff]  ;;  %v6078_v20 = vadd.f32 %v16141_v0, %v16031_v45 }
 0x75a   : > { %v16385_v9 = vpop.f32.mrf.mxu0 }
 0x75b   : > { %v6986_v42 = vadd.f32 %v16271_v23, %v6952_v22  ;;  %v16404_v57 = vpop.f32.mrf.mxu3  ;;  %v6676_v31 = vadd.f32 %v6598_v30, %v6398_v53  ;;  %v6399_v30 = vadd.f32 %v16156_v50, %v6078_v20  ;;  %v6081_v50 = vadd.f32 %v16153_v43, %v16042_v37 }
 0x75c   : > { %v16379_v34 = vpop.f32.mrf.mxu1 }
 0x75d   : > { %v7018_v18 = vmax.f32 %v6986_v42, 0.0 }
 0x75e   : > { %v16392_v7 = vld [vmem:[#allocation2 + $0x168] sm:$0xff] }
 0x75f   : > { %12110 = vmatmul.msk.f32.gmra.mxu1 %vm250_vm2, %v6448_v48  ;;  %7050 = vst.msk [vmem:[#allocation2 + $0x170] sm:$0xff] %vm250_vm2, %v7018_v18  ;;  %12160 = vmatmul.msk.f32.gmra.mxu3 %vm250_vm2, %v16392_v7 }
 0x760   : > { %12195 = vmatmul.msk.f32.gmra.mxu0 %vm250_vm2, %v16392_v7  ;;  %v6873_v1 = vpop.f32.mrf.mxu2  ;;  %12142 = vmatmul.msk.f32.gmra.mxu2 %vm250_vm2, %v6724_v3 }
 0x761   : > { %v6953_v46 = vadd.f32 %v6873_v1, %v6675_v19  ;;  %v6450_v1 = vld [vmem:[#allocation2 + $0x2d1] sm:$0xff] }
 0x762   : > { %v16407_v48 = vpop.f32.mrf.mxu0 }
 0x763   : > { %v6987_v22 = vadd.f32 %v16271_v23, %v6953_v46  ;;  %v6725_v46 = vld [vmem:[#allocation2 + $0x2aa] sm:$0xff] }
 0x764   : > { %v16399_v51 = vpop.f32.mrf.mxu1 }
 0x765   : > { %v7019_v42 = vmax.f32 %v6987_v22, 0.0  ;;  %v6677_v22 = vadd.f32 %v6601_v5, %v6399_v30  ;;  %v6400_v5 = vadd.f32 %v16165_v14, %v6081_v50 }
 0x766   : > { %v16411_v18 = vld [vmem:[#allocation2 + $0x170] sm:$0xff] }
 0x767   : > { %12111 = vmatmul.msk.f32.gmra.mxu1 %vm250_vm2, %v6449_v49  ;;  %7051 = vst.msk [vmem:[#allocation2 + $0x188] sm:$0xff] %vm250_vm2, %v7019_v42  ;;  %12161 = vmatmul.msk.f32.gmra.mxu3 %vm250_vm2, %v16411_v18  ;;  %v16425_v49 = vpop.f32.mrf.mxu3  ;;  %v6678_v30 = vadd.f32 %v16379_v34, %v6400_v5 }
 0x768   : > { %12196 = vmatmul.msk.f32.gmra.mxu0 %vm250_vm2, %v16411_v18  ;;  %v6876_v40 = vpop.f32.mrf.mxu2  ;;  %12143 = vmatmul.msk.f32.gmra.mxu2 %vm250_vm2, %v6725_v46 }
 0x769   : > { %v6954_v19 = vadd.f32 %v6876_v40, %v6676_v31  ;;  %v6451_v40 = vld [vmem:[#allocation2 + $0x2e9] sm:$0xff] }
 0x76a   : > { %v16428_v3 = vpop.f32.mrf.mxu0 }
 0x76b   : > { %v6988_v62 = vadd.f32 %v16271_v23, %v6954_v19  ;;  %v6726_v19 = vld [vmem:[#allocation2 + $0x2b2] sm:$0xff] }
 0x76c   : > { %v16418_v2 = vpop.f32.mrf.mxu1 }
 0x76d   : > { %v7020_v53 = vmax.f32 %v6988_v62, 0.0 }
 0x76e   : > { %v16430_v42 = vld [vmem:[#allocation2 + $0x188] sm:$0xff] }
 0x76f   : > { %12112 = vmatmul.msk.f32.gmra.mxu1 %vm250_vm2, %v6450_v1  ;;  %7052 = vst.msk [vmem:[#allocation2 + $0x190] sm:$0xff] %vm250_vm2, %v7020_v53  ;;  %12162 = vmatmul.msk.f32.gmra.mxu3 %vm250_vm2, %v16430_v42  ;;  %v16446_v46 = vpop.f32.mrf.mxu3  ;;  %v6084_v53 = vadd.f32 %v16167_v29, %v16053_v4 }
 0x770   : > { %12197 = vmatmul.msk.f32.gmra.mxu0 %vm250_vm2, %v16430_v42  ;;  %v6879_v45 = vpop.f32.mrf.mxu2  ;;  %12144 = vmatmul.msk.f32.gmra.mxu2 %vm250_vm2, %v6726_v19 }
 0x771   : > { %v6955_v31 = vadd.f32 %v6879_v45, %v6677_v22  ;;  %v6452_v22 = vld [vmem:[#allocation2 + $0x2f1] sm:$0xff]  ;;  %v6401_v45 = vadd.f32 %v16176_v33, %v6084_v53  ;;  %v6087_v33 = vadd.f32 %v16182_v16, %v16063_v17 }
 0x772   : > { %v16453_v37 = vpop.f32.mrf.mxu0  ;;  %v6728_v53 = vld [vmem:[#allocation2 + $0x2d2] sm:$0xff] }
 0x773   : > { %v6989_v20 = vadd.f32 %v16271_v23, %v6955_v31  ;;  %v6727_v31 = vld [vmem:[#allocation2 + $0x2ca] sm:$0xff]  ;;  %v6679_v5 = vadd.f32 %v16399_v51, %v6401_v45  ;;  %v6402_v51 = vadd.f32 %v16187_v44, %v6087_v33  ;;  %v6090_v44 = vadd.f32 %v16194_v47, %v16073_v63 }
 0x774   : > { %v6613_v0 = vpop.f32.mrf.mxu1 }
 0x775   : > { %v7021_v1 = vmax.f32 %v6989_v20, 0.0 }
 0x776   : > { %v16444_v62 = vld [vmem:[#allocation2 + $0x190] sm:$0xff] }
 0x777   : > { %12113 = vmatmul.msk.f32.gmra.mxu1 %vm250_vm2, %v6451_v40  ;;  %7053 = vst.msk [vmem:[#allocation2 + $0x1a8] sm:$0xff] %vm250_vm2, %v7021_v1  ;;  %12163 = vmatmul.msk.f32.gmra.mxu3 %vm250_vm2, %v16444_v62  ;;  %v16471_v19 = vpop.f32.mrf.mxu3 }
 0x778   : > { %12198 = vmatmul.msk.f32.gmra.mxu0 %vm250_vm2, %v16444_v62  ;;  %v6882_v43 = vpop.f32.mrf.mxu2  ;;  %12145 = vmatmul.msk.f32.gmra.mxu2 %vm250_vm2, %v6727_v31 }
 0x779   : > { %v6956_v34 = vadd.f32 %v6882_v43, %v6678_v30 }
 0x77a   : > { %v16473_v30 = vpop.f32.mrf.mxu0 }
 0x77b   : > { %v6990_v50 = vadd.f32 %v16271_v23, %v6956_v34 }
 0x77c   : > { %v6616_v14 = vpop.f32.mrf.mxu1 }
 0x77d   : > { %v7022_v40 = vmax.f32 %v6990_v50, 0.0  ;;  %v6403_v50 = vadd.f32 %v16198_v6, %v6090_v44  ;;  %v6093_v6 = vadd.f32 %v16206_v10, %v16083_v55 }
 0x77e   : > { %v16462_v20 = vld [vmem:[#allocation2 + $0x1a8] sm:$0xff] }
 0x77f   : > { %12114 = vmatmul.msk.f32.gmra.mxu1 %vm250_vm2, %v6452_v22  ;;  %7054 = vst.msk [vmem:[#allocation2 + $0x1b0] sm:$0xff] %vm250_vm2, %v7022_v40  ;;  %12164 = vmatmul.msk.f32.gmra.mxu3 %vm250_vm2, %v16462_v20  ;;  %v6680_v22 = vadd.f32 %v16418_v2, %v6402_v51  ;;  %v16491_v31 = vpop.f32.mrf.mxu3  ;;  %v6681_v33 = vadd.f32 %v6613_v0, %v6403_v50 }
 0x780   : > { %12199 = vmatmul.msk.f32.gmra.mxu0 %vm250_vm2, %v16462_v20  ;;  %v6885_v4 = vpop.f32.mrf.mxu2  ;;  %12146 = vmatmul.msk.f32.gmra.mxu2 %vm250_vm2, %v6728_v53  ;;  %v6404_v51 = vadd.f32 %v16209_v38, %v6093_v6  ;;  %v6096_v38 = vadd.f32 %v16228_v32, %v16092_v39 }
 0x781   : > { %v6957_v1 = vadd.f32 %v6885_v4, %v6679_v5  ;;  %v6729_v5 = vld [vmem:[#allocation2 + $0x2ea] sm:$0xff] }
 0x782   : > { %v16494_v40 = vpop.f32.mrf.mxu0 }
 0x783   : > { %v6991_v43 = vadd.f32 %v16271_v23, %v6957_v1 }
 0x784   : > { %v6619_v29 = vpop.f32.mrf.mxu1 }
 0x785   : > { %v7023_v34 = vmax.f32 %v6991_v43, 0.0  ;;  %v6730_v43 = vld [vmem:[#allocation2 + $0x2f2] sm:$0xff] }
 0x786   : > { %v16481_v45 = vld [vmem:[#allocation2 + $0x1b0] sm:$0xff] }
 0x787   : > { %12219 = vmatmul.msk.f32.vlgmr.msra.gmra.mxu1 %vm250_vm2, %v16288_v61  ;;  %7055 = vst.msk [vmem:[#allocation2 + $0x1c8] sm:$0xff] %vm250_vm2, %v7023_v34  ;;  %12165 = vmatmul.msk.f32.gmra.mxu3 %vm250_vm2, %v16481_v45  ;;  %v16512_v53 = vpop.f32.mrf.mxu3 }
 0x788   : > { %12200 = vmatmul.msk.f32.gmra.mxu0 %vm250_vm2, %v16481_v45  ;;  %v6888_v16 = vpop.f32.mrf.mxu2  ;;  %12147 = vmatmul.msk.f32.gmra.mxu2 %vm250_vm2, %v6729_v5 }
 0x789   : > { %v6958_v61 = vadd.f32 %v6888_v16, %v6680_v22  ;;  %v6682_v22 = vadd.f32 %v6616_v14, %v6404_v51  ;;  %v6405_v14 = vadd.f32 %v16221_v35, %v6096_v38 }
 0x78a   : > { %v16515_v16 = vpop.f32.mrf.mxu0 }
 0x78b   : > { %v6992_v2 = vadd.f32 %v16271_v23, %v6958_v61  ;;  %19364 = vst [vmem:[#allocation177_spill] sm:$0xff] %v16515_v16  ;;  %v6683_v5 = vadd.f32 %v6619_v29, %v6405_v14 }
 0x78c   : > { %v6622_v17 = vpop.f32.mrf.mxu1 }
 0x78d   : > { %v7024_v4 = vmax.f32 %v6992_v2, 0.0 }
 0x78e   : > { %v16499_v1 = vld [vmem:[#allocation2 + $0x1c8] sm:$0xff] }
 0x78f   : > { %12220 = vmatmul.msk.f32.gmra.mxu1 %vm250_vm2, %v16304_v28  ;;  %7056 = vst.msk [vmem:[#allocation2 + $0x1d0] sm:$0xff] %vm250_vm2, %v7024_v4  ;;  %12166 = vmatmul.msk.f32.gmra.mxu3 %vm250_vm2, %v16499_v1  ;;  %v16532_v4 = vpop.f32.mrf.mxu3 }
 0x790   : > { %12201 = vmatmul.msk.f32.gmra.mxu0 %vm250_vm2, %v16499_v1  ;;  %v6891_v47 = vpop.f32.mrf.mxu2  ;;  %12148 = vmatmul.msk.f32.gmra.mxu2 %vm250_vm2, %v6730_v43  ;;  %v6102_v43 = vadd.f32 %v16251_v24, %v16112_v54 }
 0x791   : > { %v6959_v28 = vadd.f32 %v6891_v47, %v6681_v33 }
 0x792   : > { %v16539_v35 = vpop.f32.mrf.mxu0 }
 0x793   : > { %v6993_v0 = vadd.f32 %v16271_v23, %v6959_v28 }
 0x794   : > { %v6625_v63 = vpop.f32.mrf.mxu1 }
 0x795   : > { %v7025_v34 = vmax.f32 %v6993_v0, 0.0 }
 0x796   : > { %v16517_v44 = vld [vmem:[#allocation2 + $0x1d0] sm:$0xff] }
 0x797   : > { %12221 = vmatmul.msk.f32.gmra.mxu1 %vm250_vm2, %v16320_v26  ;;  %7057 = vst.msk [vmem:[#allocation2 + $0x1e8] sm:$0xff] %vm250_vm2, %v7025_v34  ;;  %12167 = vmatmul.msk.f32.gmra.mxu3 %vm250_vm2, %v16517_v44 }
 0x798   : > { %12202 = vmatmul.msk.f32.gmra.mxu0 %vm250_vm2, %v16517_v44  ;;  %v6894_v10 = vpop.f32.mrf.mxu2  ;;  %12253 = vmatmul.msk.f32.vlgmr.msrb.gmra.mxu2 %vm250_vm2, %v16320_v26  ;;  %v6099_v26 = vadd.f32 %v16241_v41, %v16101_v21  ;;  %v16556_v21 = vpop.f32.mrf.mxu3 }
 0x799   : > { %v6960_v61 = vadd.f32 %v6894_v10, %v6682_v22  ;;  %19365 = vst [vmem:[#allocation92_spill] sm:$0xff] %v16556_v21 }
 0x79a   : > { %v6406_v47 = vadd.f32 %v16236_v12, %v6099_v26 }
 0x79b   : > { %v6994_v50 = vadd.f32 %v16271_v23, %v6960_v61 }
 0x79c   : > { %v6628_v55 = vpop.f32.mrf.mxu1  ;;  %v6684_v51 = vadd.f32 %v6622_v17, %v6406_v47  ;;  %v19366_v17 = vld [vmem:[#allocation141_spill] sm:$0xff] }
 0x79d   : > { %v7026_v2 = vmax.f32 %v6994_v50, 0.0  ;;  %v6407_v22 = vadd.f32 %v19366_v17, %v6102_v43  ;;  %v19367_v50 = vld [vmem:[#allocation101_spill] sm:$0xff] }
 0x79e   : > { %v16534_v33 = vld [vmem:[#allocation2 + $0x1e8] sm:$0xff]  ;;  %v19370_v17 = vld [vmem:[#allocation97_spill] sm:$0xff] }
 0x79f   : > { %12222 = vmatmul.msk.f32.gmra.mxu1 %vm250_vm2, %v16338_v15  ;;  %7058 = vst.msk [vmem:[#allocation2 + $0x1f0] sm:$0xff] %vm250_vm2, %v7026_v2  ;;  %12168 = vmatmul.msk.f32.gmra.mxu3 %vm250_vm2, %v16534_v33  ;;  %v6685_v61 = vadd.f32 %v6625_v63, %v6407_v22  ;;  %v19368_v2 = vld [vmem:[#allocation175_spill] sm:$0xff]  ;;  %v6108_v22 = vadd.f32 %v16280_v59, %v19370_v17 }
 0x7a0   : > { %12203 = vmatmul.msk.f32.gmra.mxu0 %vm250_vm2, %v16534_v33  ;;  %v6897_v39 = vpop.f32.mrf.mxu2  ;;  %12254 = vmatmul.msk.f32.gmra.mxu2 %vm250_vm2, %v16338_v15  ;;  %v7481_v15 = vpop.f32.mrf.mxu0 }
 0x7a1   : > { %v6961_v29 = vadd.f32 %v6897_v39, %v6683_v5  ;;  %v6105_v5 = vadd.f32 %v19368_v2, %v19367_v50 }
 0x7a3   : > { %v6995_v6 = vadd.f32 %v16271_v23, %v6961_v29  ;;  %v19369_v29 = vld [vmem:[#allocation84_spill] sm:$0xff] }
 0x7a4   : > { %v6631_v32 = vpop.f32.mrf.mxu1  ;;  %v6408_v63 = vadd.f32 %v19369_v29, %v6105_v5 }
 0x7a5   : > { %v7027_v28 = vmax.f32 %v6995_v6, 0.0 }
 0x7a6   : > { %v16551_v0 = vld [vmem:[#allocation2 + $0x1f0] sm:$0xff] }
 0x7a7   : > { %12223 = vmatmul.msk.f32.gmra.mxu1 %vm250_vm2, %v16356_v36  ;;  %7059 = vst.msk [vmem:[#allocation2 + $0x208] sm:$0xff] %vm250_vm2, %v7027_v28  ;;  %12169 = vmatmul.msk.f32.gmra.mxu3 %vm250_vm2, %v16551_v0 }
 0x7a8   : > { %12204 = vmatmul.msk.f32.gmra.mxu0 %vm250_vm2, %v16551_v0  ;;  %v6900_v12 = vpop.f32.mrf.mxu2  ;;  %12255 = vmatmul.msk.f32.gmra.mxu2 %vm250_vm2, %v16356_v36 }
 0x7a9   : > { %v6962_v34 = vadd.f32 %v6900_v12, %v6684_v51  ;;  %v6686_v51 = vadd.f32 %v6628_v55, %v6408_v63  ;;  %v19372_v63 = vld [vmem:[#allocation171_spill] sm:$0xff] }
 0x7ab   : > { %v6996_v10 = vadd.f32 %v16271_v23, %v6962_v34 }
 0x7ac   : > { %v6634_v41 = vpop.f32.mrf.mxu1 }
 0x7ad   : > { %v7028_v38 = vmax.f32 %v6996_v10, 0.0  ;;  %v7484_v6 = vpop.f32.mrf.mxu0 }
 0x7ae   : > { %v16568_v14 = vld [vmem:[#allocation2 + $0x208] sm:$0xff] }
 0x7af   : > { %12224 = vmatmul.msk.f32.gmra.mxu1 %vm250_vm2, %v16372_v25  ;;  %7060 = vst.msk [vmem:[#allocation2 + $0x210] sm:$0xff] %vm250_vm2, %v7028_v38  ;;  %12170 = vmatmul.msk.f32.gmra.mxu3 %vm250_vm2, %v16568_v14 }
 0x7b0   : > { %12205 = vmatmul.msk.f32.gmra.mxu0 %vm250_vm2, %v16568_v14  ;;  %v6903_v54 = vpop.f32.mrf.mxu2  ;;  %12256 = vmatmul.msk.f32.gmra.mxu2 %vm250_vm2, %v16372_v25 }
 0x7b1   : > { %v6963_v39 = vadd.f32 %v6903_v54, %v6685_v61  ;;  %v19371_v61 = vld [vmem:[#allocation85_spill] sm:$0xff] }
 0x7b2   : > { %v16577_v26 = vpop.f32.mrf.mxu3  ;;  %v6409_v55 = vadd.f32 %v19371_v61, %v6108_v22 }
 0x7b3   : > { %v6997_v47 = vadd.f32 %v16271_v23, %v6963_v39 }
 0x7b4   : > { %v6637_v24 = vpop.f32.mrf.mxu1  ;;  %v6687_v5 = vadd.f32 %v6631_v32, %v6409_v55 }
 0x7b5   : > { %v7029_v28 = vmax.f32 %v6997_v47, 0.0  ;;  %v7487_v39 = vpop.f32.mrf.mxu0  ;;  %v6111_v47 = vadd.f32 %v16297_v11, %v19372_v63  ;;  %v12319_v11 = vld [vmem:[%s18820_s3 + $0x32] sm:$0x3] }
 0x7b6   : > { %v16585_v12 = vld [vmem:[#allocation2 + $0x210] sm:$0xff]  ;;  %12354 = vmatpush.msk.msrb.mxu1 %vm789_vm1, %v12319_v11 }
 0x7b7   : > { %12225 = vmatmul.msk.f32.gmra.mxu1 %vm250_vm2, %v16392_v7  ;;  %7061 = vst.msk [vmem:[#allocation2 + $0x228] sm:$0xff] %vm250_vm2, %v7029_v28  ;;  %12171 = vmatmul.msk.f32.gmra.mxu3 %vm250_vm2, %v16585_v12  ;;  %v6410_v32 = vadd.f32 %v16278_v60, %v6111_v47 }
 0x7b8   : > { %12206 = vmatmul.msk.f32.gmra.mxu0 %vm250_vm2, %v16585_v12  ;;  %v6906_v43 = vpop.f32.mrf.mxu2  ;;  %12257 = vmatmul.msk.f32.gmra.mxu2 %vm250_vm2, %v16392_v7 }
 0x7b9   : > { %v6964_v10 = vadd.f32 %v6906_v43, %v6686_v51 }
 0x7ba   : > { %v7269_v38 = vpop.f32.mrf.mxu3 }
 0x7bb   : > { %v6998_v54 = vadd.f32 %v16271_v23, %v6964_v10  ;;  %v16598_v50 = vadd.f32 %v7481_v15, %v7269_v38  ;;  %v6688_v10 = vadd.f32 %v6634_v41, %v6410_v32  ;;  %v19373_v41 = vld [vmem:[#allocation108_spill] sm:$0xff] }
 0x7bc   : > { %v16592_v34 = vpop.f32.mrf.mxu1  ;;  %v6114_v55 = vadd.f32 %v16315_v27, %v19373_v41 }
 0x7bd   : > { %v7030_v2 = vmax.f32 %v6998_v54, 0.0  ;;  %v7490_v60 = vpop.f32.mrf.mxu0 }
 0x7be   : > { %v16604_v29 = vld [vmem:[#allocation2 + $0x228] sm:$0xff] }
 0x7bf   : > { %12226 = vmatmul.msk.f32.gmra.mxu1 %vm250_vm2, %v16411_v18  ;;  %7062 = vst.msk [vmem:[#allocation2 + $0x230] sm:$0xff] %vm250_vm2, %v7030_v2  ;;  %12172 = vmatmul.msk.f32.gmra.mxu3 %vm250_vm2, %v16604_v29 }
 0x7c0   : > { %12207 = vmatmul.msk.f32.gmra.mxu0 %vm250_vm2, %v16604_v29  ;;  %v6909_v59 = vpop.f32.mrf.mxu2  ;;  %12258 = vmatmul.msk.f32.gmra.mxu2 %vm250_vm2, %v16411_v18 }
 0x7c1   : > { %v6965_v28 = vadd.f32 %v6909_v59, %v6687_v5  ;;  %v6411_v5 = vadd.f32 %v16290_v8, %v6114_v55 }
 0x7c2   : > { %v7272_v51 = vpop.f32.mrf.mxu3 }
 0x7c3   : > { %v6999_v43 = vadd.f32 %v16271_v23, %v6965_v28  ;;  %v16617_v17 = vadd.f32 %v7484_v6, %v7272_v51  ;;  %v6689_v28 = vadd.f32 %v6637_v24, %v6411_v5 }
 0x7c4   : > { %v16611_v15 = vpop.f32.mrf.mxu1 }
 0x7c5   : > { %v7031_v22 = vmax.f32 %v6999_v43, 0.0 }
 0x7c6   : > { %v16623_v38 = vld [vmem:[#allocation2 + $0x230] sm:$0xff] }
 0x7c7   : > { %12227 = vmatmul.msk.f32.gmra.mxu1 %vm250_vm2, %v16430_v42  ;;  %7063 = vst.msk [vmem:[#allocation2 + $0x248] sm:$0xff] %vm250_vm2, %v7031_v22  ;;  %12173 = vmatmul.msk.f32.gmra.mxu3 %vm250_vm2, %v16623_v38  ;;  %v7493_v22 = vpop.f32.mrf.mxu0 }
 0x7c8   : > { %12208 = vmatmul.msk.f32.gmra.mxu0 %vm250_vm2, %v16623_v38  ;;  %v6912_v6 = vpop.f32.mrf.mxu2  ;;  %12259 = vmatmul.msk.f32.gmra.mxu2 %vm250_vm2, %v16430_v42 }
 0x7c9   : > { %v6966_v54 = vadd.f32 %v6912_v6, %v6688_v10 }
 0x7ca   : > { %v7275_v2 = vpop.f32.mrf.mxu3 }
 0x7cb   : > { %v7000_v59 = vadd.f32 %v16271_v23, %v6966_v54  ;;  %v16638_v63 = vadd.f32 %v7487_v39, %v7275_v2  ;;  %v19374_v39 = vld [vmem:[#allocation113_spill] sm:$0xff] }
 0x7cc   : > { %v6646_v61 = vpop.f32.mrf.mxu1  ;;  %v6117_v32 = vadd.f32 %v16335_v56, %v19374_v39 }
 0x7cd   : > { %v7032_v47 = vmax.f32 %v7000_v59, 0.0 }
 0x7ce   : > { %v16644_v51 = vld [vmem:[#allocation2 + $0x248] sm:$0xff]  ;;  %v6412_v24 = vadd.f32 %v16306_v13, %v6117_v32 }
 0x7cf   : > { %12228 = vmatmul.msk.f32.gmra.mxu1 %vm250_vm2, %v16444_v62  ;;  %7064 = vst.msk [vmem:[#allocation2 + $0x250] sm:$0xff] %vm250_vm2, %v7032_v47  ;;  %12174 = vmatmul.msk.f32.gmra.mxu3 %vm250_vm2, %v16644_v51  ;;  %v19376_v47 = vld [vmem:[#allocation180_spill] sm:$0xff]  ;;  %v16675_v39 = vpop.f32.mrf.mxu0 }
 0x7d0   : > { %12209 = vmatmul.msk.f32.gmra.mxu0 %vm250_vm2, %v16644_v51  ;;  %v6915_v8 = vpop.f32.mrf.mxu2  ;;  %12260 = vmatmul.msk.f32.gmra.mxu2 %vm250_vm2, %v16444_v62  ;;  %v6690_v55 = vadd.f32 %v16592_v34, %v6412_v24  ;;  %v19377_v24 = vld [vmem:[#allocation183_spill] sm:$0xff] }
 0x7d1   : > { %v6967_v43 = vadd.f32 %v6915_v8, %v6689_v28 }
 0x7d2   : > { %v7278_v10 = vpop.f32.mrf.mxu3 }
 0x7d3   : > { %v7001_v11 = vadd.f32 %v16271_v23, %v6967_v43  ;;  %v16655_v6 = vadd.f32 %v7490_v60, %v7278_v10  ;;  %v19375_v60 = vld [vmem:[#allocation119_spill] sm:$0xff] }
 0x7d4   : > { %v6649_v27 = vpop.f32.mrf.mxu1  ;;  %v6120_v2 = vadd.f32 %v16358_v52, %v19375_v60 }
 0x7d5   : > { %v7033_v41 = vmax.f32 %v7001_v11, 0.0  ;;  %v6123_v11 = vadd.f32 %v16383_v58, %v19377_v24  ;;  %v19380_v24 = vld [vmem:[#allocation152_spill] sm:$0xff] }
 0x7d6   : > { %v16662_v54 = vld [vmem:[#allocation2 + $0x250] sm:$0xff]  ;;  %v6413_v28 = vadd.f32 %v19376_v47, %v6120_v2 }
 0x7d7   : > { %12229 = vmatmul.msk.f32.gmra.mxu1 %vm250_vm2, %v16462_v20  ;;  %7065 = vst.msk [vmem:[#allocation2 + $0x268] sm:$0xff] %vm250_vm2, %v7033_v41  ;;  %12175 = vmatmul.msk.f32.gmra.mxu3 %vm250_vm2, %v16662_v54 }
 0x7d8   : > { %12210 = vmatmul.msk.f32.gmra.mxu0 %vm250_vm2, %v16662_v54  ;;  %v6918_v13 = vpop.f32.mrf.mxu2  ;;  %12261 = vmatmul.msk.f32.gmra.mxu2 %vm250_vm2, %v16462_v20  ;;  %v6691_v43 = vadd.f32 %v16611_v15, %v6413_v28 }
 0x7d9   : > { %v6968_v5 = vadd.f32 %v6918_v13, %v6690_v55  ;;  %v19378_v13 = vld [vmem:[#allocation151_spill] sm:$0xff] }
 0x7da   : > { %v7281_v59 = vpop.f32.mrf.mxu3  ;;  %v6414_v15 = vadd.f32 %v19378_v13, %v6123_v11 }
 0x7db   : > { %v7002_v34 = vadd.f32 %v16271_v23, %v6968_v5  ;;  %v16673_v8 = vadd.f32 %v7493_v22, %v7281_v59  ;;  %v16697_v5 = vpop.f32.mrf.mxu0 }
 0x7dc   : > { %v6652_v56 = vpop.f32.mrf.mxu1  ;;  %v6692_v59 = vadd.f32 %v6646_v61, %v6414_v15 }
 0x7dd   : > { %v7034_v32 = vmax.f32 %v7002_v34, 0.0  ;;  %v19379_v34 = vld [vmem:[#allocation129_spill] sm:$0xff] }
 0x7de   : > { %v16682_v52 = vld [vmem:[#allocation2 + $0x268] sm:$0xff] }
 0x7df   : > { %12230 = vmatmul.msk.f32.gmra.mxu1 %vm250_vm2, %v16481_v45  ;;  %7066 = vst.msk [vmem:[#allocation2 + $0x270] sm:$0xff] %vm250_vm2, %v7034_v32  ;;  %12176 = vmatmul.msk.f32.gmra.mxu3 %vm250_vm2, %v16682_v52  ;;  %v6126_v32 = vadd.f32 %v16404_v57, %v19379_v34 }
 0x7e0   : > { %12211 = vmatmul.msk.f32.gmra.mxu0 %vm250_vm2, %v16682_v52  ;;  %v6921_v22 = vpop.f32.mrf.mxu2  ;;  %12262 = vmatmul.msk.f32.gmra.mxu2 %vm250_vm2, %v16481_v45 }
 0x7e1   : > { %v6969_v41 = vadd.f32 %v6921_v22, %v6691_v43  ;;  %v6415_v61 = vadd.f32 %v19380_v24, %v6126_v32 }
 0x7e2   : > { %v16691_v55 = vpop.f32.mrf.mxu3 }
 0x7e3   : > { %v7003_v60 = vadd.f32 %v16271_v23, %v6969_v41  ;;  %v6693_v13 = vadd.f32 %v6649_v27, %v6415_v61  ;;  %v16721_v57 = vpop.f32.mrf.mxu0 }
 0x7e4   : > { %v6655_v10 = vpop.f32.mrf.mxu1 }
 0x7e5   : > { %v7035_v2 = vmax.f32 %v7003_v60, 0.0 }
 0x7e6   : > { %v16701_v47 = vld [vmem:[#allocation2 + $0x270] sm:$0xff] }
 0x7e7   : > { %12231 = vmatmul.msk.f32.gmra.mxu1 %vm250_vm2, %v16499_v1  ;;  %7067 = vst.msk [vmem:[#allocation2 + $0x288] sm:$0xff] %vm250_vm2, %v7035_v2  ;;  %12177 = vmatmul.msk.f32.gmra.mxu3 %vm250_vm2, %v16701_v47 }
 0x7e8   : > { %12212 = vmatmul.msk.f32.gmra.mxu0 %vm250_vm2, %v16701_v47  ;;  %v6924_v58 = vpop.f32.mrf.mxu2  ;;  %12263 = vmatmul.msk.f32.gmra.mxu2 %vm250_vm2, %v16499_v1 }
 0x7e9   : > { %v6970_v43 = vadd.f32 %v6924_v58, %v6692_v59  ;;  %v19381_v59 = vld [vmem:[#allocation131_spill] sm:$0xff] }
 0x7ea   : > { %v16710_v22 = vpop.f32.mrf.mxu3  ;;  %v6129_v58 = vadd.f32 %v16425_v49, %v19381_v59 }
 0x7eb   : > { %v7004_v11 = vadd.f32 %v16271_v23, %v6970_v43 }
 0x7ec   : > { %v6658_v28 = vpop.f32.mrf.mxu1  ;;  %v6416_v27 = vadd.f32 %v16385_v9, %v6129_v58 }
 0x7ed   : > { %v7036_v41 = vmax.f32 %v7004_v11, 0.0 }
 0x7ee   : > { %v16718_v15 = vld [vmem:[#allocation2 + $0x288] sm:$0xff]  ;;  %v6694_v61 = vadd.f32 %v6652_v56, %v6416_v27 }
 0x7ef   : > { %12232 = vmatmul.msk.f32.gmra.mxu1 %vm250_vm2, %v16517_v44  ;;  %7068 = vst.msk [vmem:[#allocation2 + $0x290] sm:$0xff] %vm250_vm2, %v7036_v41  ;;  %12178 = vmatmul.msk.f32.gmra.mxu3 %vm250_vm2, %v16718_v15  ;;  %v19382_v41 = vld [vmem:[#allocation77_spill] sm:$0xff] }
 0x7f0   : > { %12213 = vmatmul.msk.f32.gmra.mxu0 %vm250_vm2, %v16718_v15  ;;  %v6927_v60 = vpop.f32.mrf.mxu2  ;;  %12264 = vmatmul.msk.f32.gmra.mxu2 %vm250_vm2, %v16517_v44 }
 0x7f1   : > { %v6971_v34 = vadd.f32 %v6927_v60, %v6693_v13  ;;  %v6132_v13 = vadd.f32 %v16446_v46, %v19382_v41  ;;  %v16746_v60 = vpop.f32.mrf.mxu0 }
 0x7f2   : > { %v16729_v32 = vpop.f32.mrf.mxu3 }
 0x7f3   : > { %v7005_v43 = vadd.f32 %v16271_v23, %v6971_v34  ;;  %v6417_v56 = vadd.f32 %v16407_v48, %v6132_v13 }
 0x7f4   : > { %v6661_v2 = vpop.f32.mrf.mxu1 }
 0x7f5   : > { %v7037_v24 = vmax.f32 %v7005_v43, 0.0  ;;  %v6695_v43 = vadd.f32 %v6655_v10, %v6417_v56 }
 0x7f6   : > { %v16737_v11 = vld [vmem:[#allocation2 + $0x290] sm:$0xff] }
 0x7f7   : > { %12233 = vmatmul.msk.f32.gmra.mxu1 %vm250_vm2, %v16534_v33  ;;  %7069 = vst.msk [vmem:[#allocation2 + $0x2a8] sm:$0xff] %vm250_vm2, %v7037_v24  ;;  %12179 = vmatmul.msk.f32.gmra.mxu3 %vm250_vm2, %v16737_v11 }
 0x7f8   : > { %12214 = vmatmul.msk.f32.gmra.mxu0 %vm250_vm2, %v16737_v11  ;;  %v6930_v9 = vpop.f32.mrf.mxu2  ;;  %12265 = vmatmul.msk.f32.gmra.mxu2 %vm250_vm2, %v16534_v33 }
 0x7f9   : > { %v6972_v59 = vadd.f32 %v6930_v9, %v6694_v61  ;;  %v19383_v61 = vld [vmem:[#allocation140_spill] sm:$0xff] }
 0x7fa   : > { %v16748_v58 = vpop.f32.mrf.mxu3  ;;  %v6135_v9 = vadd.f32 %v16471_v19, %v19383_v61 }
 0x7fb   : > { %v7006_v34 = vadd.f32 %v16271_v23, %v6972_v59  ;;  %v16770_v59 = vpop.f32.mrf.mxu0 }
 0x7fc   : > { %v6664_v49 = vpop.f32.mrf.mxu1  ;;  %v6418_v10 = vadd.f32 %v16428_v3, %v6135_v9 }
 0x7fd   : > { %v7038_v27 = vmax.f32 %v7006_v34, 0.0 }
 0x7fe   : > { %v16756_v24 = vld [vmem:[#allocation2 + $0x2a8] sm:$0xff] }
 0x7ff   : > { %12234 = vmatmul.msk.f32.gmra.mxu1 %vm250_vm2, %v16551_v0  ;;  %7070 = vst.msk [vmem:[#allocation2 + $0x2b0] sm:$0xff] %vm250_vm2, %v7038_v27  ;;  %12180 = vmatmul.msk.f32.gmra.mxu3 %vm250_vm2, %v16756_v24  ;;  %v6696_v27 = vadd.f32 %v6658_v28, %v6418_v10 }
 0x800   : > { %12215 = vmatmul.msk.f32.gmra.mxu0 %vm250_vm2, %v16756_v24  ;;  %v6933_v48 = vpop.f32.mrf.mxu2  ;;  %12266 = vmatmul.msk.f32.gmra.mxu2 %vm250_vm2, %v16551_v0 }
 0x801   : > { %v6973_v41 = vadd.f32 %v6933_v48, %v6695_v43  ;;  %v19385_v43 = vld [vmem:[#allocation172_spill] sm:$0xff] }
 0x802   : > { %v16767_v13 = vpop.f32.mrf.mxu3  ;;  %v6138_v48 = vadd.f32 %v16491_v31, %v19385_v43 }
 0x803   : > { %v7007_v56 = vadd.f32 %v16271_v23, %v6973_v41  ;;  %v16794_v10 = vpop.f32.mrf.mxu0 }
 0x804   : > { %v16763_v46 = vpop.f32.mrf.mxu1  ;;  %v6419_v28 = vadd.f32 %v16453_v37, %v6138_v48 }
 0x805   : > { %v7039_v34 = vmax.f32 %v7007_v56, 0.0 }
 0x806   : > { %v16777_v16 = vld [vmem:[#allocation2 + $0x2b0] sm:$0xff] }
 0x807   : > { %12235 = vmatmul.msk.f32.gmra.mxu1 %vm250_vm2, %v16568_v14  ;;  %7071 = vst.msk [vmem:[#allocation2 + $0x2c8] sm:$0xff] %vm250_vm2, %v7039_v34  ;;  %12181 = vmatmul.msk.f32.gmra.mxu3 %vm250_vm2, %v16777_v16  ;;  %v6697_v34 = vadd.f32 %v6661_v2, %v6419_v28 }
 0x808   : > { %12216 = vmatmul.msk.f32.gmra.mxu0 %vm250_vm2, %v16777_v16  ;;  %v6936_v3 = vpop.f32.mrf.mxu2  ;;  %12267 = vmatmul.msk.f32.gmra.mxu2 %vm250_vm2, %v16568_v14 }
 0x809   : > { %v6974_v61 = vadd.f32 %v6936_v3, %v6696_v27  ;;  %v19386_v27 = vld [vmem:[#allocation145_spill] sm:$0xff] }
 0x80a   : > { %v16788_v9 = vpop.f32.mrf.mxu3  ;;  %v6141_v3 = vadd.f32 %v16512_v53, %v19386_v27 }
 0x80b   : > { %v7008_v41 = vadd.f32 %v16271_v23, %v6974_v61  ;;  %v16815_v21 = vpop.f32.mrf.mxu0 }
 0x80c   : > { %v16784_v19 = vpop.f32.mrf.mxu1  ;;  %v6420_v61 = vadd.f32 %v16473_v30, %v6141_v3 }
 0x80d   : > { %19384 = vst [vmem:[#allocation186_spill] sm:$0xff] %v16784_v19  ;;  %v7040_v56 = vmax.f32 %v7008_v41, 0.0 }
 0x80e   : > { %v16798_v19 = vld [vmem:[#allocation2 + $0x2c8] sm:$0xff]  ;;  %v6698_v28 = vadd.f32 %v6664_v49, %v6420_v61 }
 0x80f   : > { %12236 = vmatmul.msk.f32.gmra.mxu1 %vm250_vm2, %v16585_v12  ;;  %7072 = vst.msk [vmem:[#allocation2 + $0x2d0] sm:$0xff] %vm250_vm2, %v7040_v56  ;;  %12182 = vmatmul.msk.f32.gmra.mxu3 %vm250_vm2, %v16798_v19 }
 0x810   : > { %v6939_v37 = vpop.f32.mrf.mxu2  ;;  %12268 = vmatmul.msk.f32.gmra.mxu2 %vm250_vm2, %v16585_v12 }
 0x811   : > { %v6975_v43 = vadd.f32 %v6939_v37, %v6697_v34  ;;  %v12721_v37 = vld [vmem:[%s18821_s4 + $0x3] ss:$0 sm:$0xff] }
 0x812   : > { %v16805_v48 = vpop.f32.mrf.mxu3 }
 0x813   : > { %v7009_v41 = vadd.f32 %v16271_v23, %v6975_v43  ;;  %v16834_v61 = vpop.f32.mrf.mxu0 }
 0x814   : > { %v7724_v31 = vpop.f32.mrf.mxu1 }
 0x815   : > { %v7041_v2 = vmax.f32 %v7009_v41, 0.0 }
 0x816   : > { %v16813_v56 = vld [vmem:[#allocation2 + $0x2d0] sm:$0xff] }
 0x817   : > { %12237 = vmatmul.msk.f32.gmra.mxu1 %vm250_vm2, %v16604_v29  ;;  %7073 = vst.msk [vmem:[#allocation2 + $0x2e8] sm:$0xff] %vm250_vm2, %v7041_v2  ;;  %12183 = vmatmul.msk.f32.gmra.mxu3 %vm250_vm2, %v16813_v56 }
 0x818   : > { %v6942_v30 = vpop.f32.mrf.mxu2  ;;  %12269 = vmatmul.msk.f32.gmra.mxu2 %vm250_vm2, %v16604_v29 }
 0x819   : > { %v6976_v23 = vadd.f32 %v6942_v30, %v6698_v28  ;;  %v7479_v30 = vadd.f32 %v16539_v35, %v16577_v26 }
 0x81a   : > { %v16820_v34 = vpop.f32.mrf.mxu3 }
 0x81b   : > { %v7010_v27 = vadd.f32 %v12721_v37, %v6976_v23  ;;  %v16850_v23 = vpop.f32.mrf.mxu0  ;;  %v7816_v37 = vadd.f32 %v7724_v31, %v7479_v30 }
 0x81c   : > { %v7727_v53 = vpop.f32.mrf.mxu1 }
 0x81d   : > { %v7042_v49 = vmax.f32 %v7010_v27, 0.0  ;;  %v7817_v26 = vadd.f32 %v7727_v53, %v16598_v50 }
 0x81f   : > { %12238 = vmatmul.msk.f32.gmra.mxu1 %vm250_vm2, %v16623_v38  ;;  %7074 = vst.msk [vmem:[#allocation2 + $0x2f0] sm:$0xff] %vm250_vm2, %v7042_v49  ;;  %12287 = vmatmul.msk.f32.vlgmr.msrb.gmra.mxu3 %vm250_vm2, %v16356_v36 }
 0x820   : > { %v16832_v3 = vpop.f32.mrf.mxu2  ;;  %12270 = vmatmul.msk.f32.gmra.mxu2 %vm250_vm2, %v16623_v38 }
 0x822   : > { %v16836_v41 = vpop.f32.mrf.mxu3 }
 0x823   : > { %v16864_v35 = vpop.f32.mrf.mxu0 }
 0x824   : > { %v7730_v43 = vpop.f32.mrf.mxu1 }
 0x827   : > { %12239 = vmatmul.msk.f32.gmra.mxu1 %vm250_vm2, %v16644_v51  ;;  %12288 = vmatmul.msk.f32.gmra.mxu3 %vm250_vm2, %v16372_v25 }
 0x828   : > { %v16844_v2 = vpop.f32.mrf.mxu2  ;;  %12271 = vmatmul.msk.f32.gmra.mxu2 %vm250_vm2, %v16644_v51 }
 0x829   : > { %19387 = vst [vmem:[#allocation154_spill] sm:$0xff] %v16844_v2 }
 0x82a   : > { %v16846_v36 = vpop.f32.mrf.mxu3 }
 0x82b   : > { %v16888_v50 = vpop.f32.mrf.mxu0 }
 0x82c   : > { %v7733_v28 = vpop.f32.mrf.mxu1 }
 0x82f   : > { %12240 = vmatmul.msk.f32.gmra.mxu1 %vm250_vm2, %v16662_v54  ;;  %12289 = vmatmul.msk.f32.gmra.mxu3 %vm250_vm2, %v16392_v7  ;;  %v12387_v7 = vld [vmem:[%s18820_s3 + $0x36] sm:$0x3] }
 0x830   : > { %v8002_v25 = vpop.f32.mrf.mxu2  ;;  %12272 = vmatmul.msk.f32.gmra.mxu2 %vm250_vm2, %v16662_v54 }
 0x831   : > { %v16858_v49 = vadd.f32 %v8002_v25, %v7816_v37  ;;  %12388 = vmatpush.msk.msra.mxu2 %vm789_vm1, %v12387_v7  ;;  %v12421_v25 = vld [vmem:[%s18820_s3 + $0x38] sm:$0x3]  ;;  %v8536_v7 = vld [vmem:[#allocation2 + $0x68] sm:$0xff] }
 0x832   : > { %v16860_v2 = vpop.f32.mrf.mxu3  ;;  %12422 = vmatpush.msk.msra.mxu3 %vm789_vm1, %v12421_v25  ;;  %12322 = vmatmul.msk.f32.vlgmr.msrb.gmra.mxu0 %vm250_vm2, %v8536_v7  ;;  %v12455_v25 = vld [vmem:[%s18820_s3 + $0x3a] sm:$0x3] }
 0x833   : > { %19388 = vst [vmem:[#allocation156_spill] sm:$0xff] %v16858_v49  ;;  %12456 = vmatpush.msk.msra.mxu0 %vm789_vm1, %v12455_v25 }
 0x834   : > { %v7736_v27 = vpop.f32.mrf.mxu1 }
 0x837   : > { %12241 = vmatmul.msk.f32.gmra.mxu1 %vm250_vm2, %v16682_v52  ;;  %12290 = vmatmul.msk.f32.gmra.mxu3 %vm250_vm2, %v16411_v18  ;;  %v7818_v18 = vadd.f32 %v7730_v43, %v16617_v17 }
 0x838   : > { %v8005_v31 = vpop.f32.mrf.mxu2  ;;  %12273 = vmatmul.msk.f32.gmra.mxu2 %vm250_vm2, %v16682_v52 }
 0x839   : > { %v16875_v37 = vadd.f32 %v8005_v31, %v7817_v26 }
 0x83a   : > { %v16880_v49 = vpop.f32.mrf.mxu3 }
 0x83b   : > { %19389 = vst [vmem:[#allocation179_spill] sm:$0xff] %v16875_v37 }
 0x83c   : > { %v7739_v30 = vpop.f32.mrf.mxu1 }
 0x83f   : > { %12242 = vmatmul.msk.f32.gmra.mxu1 %vm250_vm2, %v16701_v47  ;;  %12291 = vmatmul.msk.f32.gmra.mxu3 %vm250_vm2, %v16430_v42  ;;  %v7819_v42 = vadd.f32 %v7733_v28, %v16638_v63  ;;  %v7820_v63 = vadd.f32 %v7736_v27, %v16655_v6  ;;  %v7821_v6 = vadd.f32 %v7739_v30, %v16673_v8 }
 0x840   : > { %v8008_v53 = vpop.f32.mrf.mxu2  ;;  %12274 = vmatmul.msk.f32.gmra.mxu2 %vm250_vm2, %v16701_v47 }
 0x841   : > { %v16892_v31 = vadd.f32 %v8008_v53, %v7818_v18  ;;  %v8537_v18 = vld [vmem:[#allocation2 + $0x70] sm:$0xff]  ;;  %v16908_v53 = vpop.f32.mrf.mxu0 }
 0x842   : > { %v16898_v37 = vpop.f32.mrf.mxu3  ;;  %12323 = vmatmul.msk.f32.gmra.mxu0 %vm250_vm2, %v8537_v18 }
 0x843   : > { %19390 = vst [vmem:[#allocation93_spill] sm:$0xff] %v16892_v31  ;;  %v8538_v31 = vld [vmem:[#allocation2 + $0x88] sm:$0xff] }
 0x844   : > { %v7742_v26 = vpop.f32.mrf.mxu1 }
 0x847   : > { %12243 = vmatmul.msk.f32.gmra.mxu1 %vm250_vm2, %v16718_v15  ;;  %12292 = vmatmul.msk.f32.gmra.mxu3 %vm250_vm2, %v16444_v62 }
 0x848   : > { %v8011_v17 = vpop.f32.mrf.mxu2  ;;  %12275 = vmatmul.msk.f32.gmra.mxu2 %vm250_vm2, %v16718_v15 }
 0x849   : > { %v16910_v7 = vadd.f32 %v8011_v17, %v7819_v42  ;;  %v16927_v18 = vpop.f32.mrf.mxu0 }
 0x84a   : > { %v16913_v25 = vpop.f32.mrf.mxu3  ;;  %12324 = vmatmul.msk.f32.gmra.mxu0 %vm250_vm2, %v8538_v31 }
 0x84b   : > { %19391 = vst [vmem:[#allocation70_spill] sm:$0xff] %v16910_v7 }
 0x84c   : > { %v7745_v43 = vpop.f32.mrf.mxu1 }
 0x84f   : > { %12244 = vmatmul.msk.f32.gmra.mxu1 %vm250_vm2, %v16737_v11  ;;  %12293 = vmatmul.msk.f32.gmra.mxu3 %vm250_vm2, %v16462_v20 }
 0x850   : > { %v8014_v62 = vpop.f32.mrf.mxu2  ;;  %12276 = vmatmul.msk.f32.gmra.mxu2 %vm250_vm2, %v16737_v11 }
 0x851   : > { %v16922_v42 = vadd.f32 %v8014_v62, %v7820_v63  ;;  %v8539_v63 = vld [vmem:[#allocation2 + $0x90] sm:$0xff]  ;;  %v16945_v7 = vpop.f32.mrf.mxu0 }
 0x852   : > { %v16925_v17 = vpop.f32.mrf.mxu3  ;;  %12325 = vmatmul.msk.f32.gmra.mxu0 %vm250_vm2, %v8539_v63 }
 0x853   : > { %19392 = vst [vmem:[#allocation162_spill] sm:$0xff] %v16922_v42  ;;  %v7497_v42 = vadd.f32 %v16675_v39, %v16691_v55  ;;  %v7500_v55 = vadd.f32 %v16697_v5, %v16710_v22  ;;  %v7503_v22 = vadd.f32 %v16721_v57, %v16729_v32  ;;  %v16986_v32 = vld [vmem:[#allocation2 + $0x2e8] sm:$0xff] }
 0x854   : > { %v7748_v28 = vpop.f32.mrf.mxu1 }
 0x857   : > { %12245 = vmatmul.msk.f32.gmra.mxu1 %vm250_vm2, %v16756_v24  ;;  %12294 = vmatmul.msk.f32.gmra.mxu3 %vm250_vm2, %v16481_v45  ;;  %v7822_v45 = vadd.f32 %v7742_v26, %v7497_v42  ;;  %v7823_v26 = vadd.f32 %v7745_v43, %v7500_v55  ;;  %v7824_v43 = vadd.f32 %v7748_v28, %v7503_v22  ;;  %v8542_v55 = vld [vmem:[#allocation2 + $0xc8] sm:$0xff] }
 0x858   : > { %v8017_v20 = vpop.f32.mrf.mxu2  ;;  %12277 = vmatmul.msk.f32.gmra.mxu2 %vm250_vm2, %v16756_v24 }
 0x859   : > { %v16936_v62 = vadd.f32 %v8017_v20, %v7821_v6  ;;  %v8540_v6 = vld [vmem:[#allocation2 + $0xa8] sm:$0xff] }
 0x85a   : > { %v16939_v31 = vpop.f32.mrf.mxu3  ;;  %12326 = vmatmul.msk.f32.gmra.mxu0 %vm250_vm2, %v8540_v6 }
 0x85c   : > { %v7751_v27 = vpop.f32.mrf.mxu1 }
 0x85f   : > { %12246 = vmatmul.msk.f32.gmra.mxu1 %vm250_vm2, %v16777_v16  ;;  %12295 = vmatmul.msk.f32.gmra.mxu3 %vm250_vm2, %v16499_v1  ;;  %v16962_v1 = vpop.f32.mrf.mxu0 }
 0x860   : > { %v8020_v8 = vpop.f32.mrf.mxu2  ;;  %12278 = vmatmul.msk.f32.gmra.mxu2 %vm250_vm2, %v16777_v16 }
 0x861   : > { %v16951_v20 = vadd.f32 %v8020_v8, %v7822_v45  ;;  %v8541_v45 = vld [vmem:[#allocation2 + $0xb0] sm:$0xff] }
 0x862   : > { %v16954_v39 = vpop.f32.mrf.mxu3  ;;  %12327 = vmatmul.msk.f32.gmra.mxu0 %vm250_vm2, %v8541_v45  ;;  %v7506_v45 = vadd.f32 %v16746_v60, %v16748_v58  ;;  %v17001_v60 = vld [vmem:[#allocation2 + $0x2f0] sm:$0xff]  ;;  %v7509_v58 = vadd.f32 %v16770_v59, %v16767_v13  ;;  %v7512_v59 = vadd.f32 %v16794_v10, %v16788_v9  ;;  %v17032_v10 = vld [vmem:[#allocation2 + $0x308] sm:$0xff] }
 0x864   : > { %v7754_v30 = vpop.f32.mrf.mxu1 }
 0x867   : > { %12247 = vmatmul.msk.f32.gmra.mxu1 %vm250_vm2, %v16798_v19  ;;  %12296 = vmatmul.msk.f32.gmra.mxu3 %vm250_vm2, %v16517_v44 }
 0x868   : > { %v8023_v42 = vpop.f32.mrf.mxu2  ;;  %12279 = vmatmul.msk.f32.gmra.mxu2 %vm250_vm2, %v16798_v19 }
 0x869   : > { %v16966_v8 = vadd.f32 %v8023_v42, %v7823_v26  ;;  %v16979_v26 = vpop.f32.mrf.mxu0 }
 0x86a   : > { %v16969_v5 = vpop.f32.mrf.mxu3  ;;  %12328 = vmatmul.msk.f32.gmra.mxu0 %vm250_vm2, %v8542_v55 }
 0x86c   : > { %v7757_v63 = vpop.f32.mrf.mxu1 }
 0x86f   : > { %12248 = vmatmul.msk.f32.gmra.mxu1 %vm250_vm2, %v16813_v56  ;;  %12297 = vmatmul.msk.f32.gmra.mxu3 %vm250_vm2, %v16534_v33  ;;  %v7825_v33 = vadd.f32 %v7751_v27, %v7506_v45 }
 0x870   : > { %v8026_v44 = vpop.f32.mrf.mxu2  ;;  %12280 = vmatmul.msk.f32.gmra.mxu2 %vm250_vm2, %v16813_v56 }
 0x871   : > { %v16981_v42 = vadd.f32 %v8026_v44, %v7824_v43  ;;  %v8543_v43 = vld [vmem:[#allocation2 + $0xd0] sm:$0xff] }
 0x872   : > { %v16984_v57 = vpop.f32.mrf.mxu3  ;;  %12329 = vmatmul.msk.f32.gmra.mxu0 %vm250_vm2, %v8543_v43 }
 0x873   : > { %19393 = vst [vmem:[#allocation163_spill] sm:$0xff] %v16981_v42  ;;  %v17005_v42 = vpop.f32.mrf.mxu0 }
 0x874   : > { %v7760_v6 = vpop.f32.mrf.mxu1 }
 0x877   : > { %12249 = vmatmul.msk.f32.gmra.mxu1 %vm250_vm2, %v16986_v32  ;;  %12298 = vmatmul.msk.f32.gmra.mxu3 %vm250_vm2, %v16551_v0  ;;  %v7826_v0 = vadd.f32 %v7754_v30, %v7509_v58 }
 0x878   : > { %v8029_v28 = vpop.f32.mrf.mxu2  ;;  %12281 = vmatmul.msk.f32.gmra.mxu2 %vm250_vm2, %v16986_v32 }
 0x879   : > { %v16996_v44 = vadd.f32 %v8029_v28, %v7825_v33  ;;  %v8544_v33 = vld [vmem:[#allocation2 + $0xe8] sm:$0xff] }
 0x87a   : > { %v16999_v55 = vpop.f32.mrf.mxu3  ;;  %v8502_v28 = vld [vmem:[#allocation2 + $0x63] sm:$0xff]  ;;  %12330 = vmatmul.msk.f32.gmra.mxu0 %vm250_vm2, %v8544_v33 }
 0x87b   : > { %19394 = vst [vmem:[#allocation184_spill] sm:$0xff] %v16996_v44  ;;  %v17021_v44 = vpop.f32.mrf.mxu0 }
 0x87c   : > { %v7763_v22 = vpop.f32.mrf.mxu1 }
 0x87f   : > { %12250 = vmatmul.msk.f32.gmra.mxu1 %vm250_vm2, %v17001_v60  ;;  %12299 = vmatmul.msk.f32.gmra.mxu3 %vm250_vm2, %v16568_v14  ;;  %v7827_v14 = vadd.f32 %v7757_v63, %v7512_v59 }
 0x880   : > { %v8032_v27 = vpop.f32.mrf.mxu2  ;;  %12282 = vmatmul.msk.f32.gmra.mxu2 %vm250_vm2, %v17001_v60 }
 0x881   : > { %v17013_v43 = vadd.f32 %v8032_v27, %v7826_v0  ;;  %v8545_v0 = vld [vmem:[#allocation2 + $0xf0] sm:$0xff] }
 0x882   : > { %v17016_v13 = vpop.f32.mrf.mxu3  ;;  %v8503_v27 = vld [vmem:[#allocation2 + $0x6b] sm:$0xff]  ;;  %12331 = vmatmul.msk.f32.gmra.mxu0 %vm250_vm2, %v8545_v0 }
 0x883   : > { %19395 = vst [vmem:[#allocation102_spill] sm:$0xff] %v17013_v43  ;;  %v17039_v63 = vpop.f32.mrf.mxu0  ;;  %v17047_v43 = vld [vmem:[#allocation2 + $0x310] sm:$0xff] }
 0x884   : > { %v7766_v45 = vpop.f32.mrf.mxu1 }
 0x887   : > { %12355 = vmatmul.msk.f32.vlgmr.msrb.gmra.mxu1 %vm250_vm2, %v8502_v28  ;;  %12300 = vmatmul.msk.f32.gmra.mxu3 %vm250_vm2, %v16585_v12  ;;  %v7515_v28 = vadd.f32 %v16815_v21, %v16805_v48  ;;  %v7518_v21 = vadd.f32 %v16834_v61, %v16820_v34  ;;  %v8994_v34 = vld [vmem:[#allocation2 + $0x6d] sm:$0xff]  ;;  %v7473_v61 = vadd.f32 %v16494_v40, %v16532_v4  ;;  %v17081_v4 = vld [vmem:[%s18821_s4 + $0x4] ss:$0 sm:$0xff] }
 0x888   : > { %v8035_v30 = vpop.f32.mrf.mxu2  ;;  %12283 = vmatmul.msk.f32.gmra.mxu2 %vm250_vm2, %v17032_v10 }
 0x889   : > { %v17027_v33 = vadd.f32 %v8035_v30, %v7827_v14  ;;  %v7828_v12 = vadd.f32 %v7760_v6, %v7515_v28  ;;  %v8504_v30 = vld [vmem:[#allocation2 + $0x83] sm:$0xff]  ;;  %v7829_v48 = vadd.f32 %v7763_v22, %v7518_v21  ;;  %v7521_v22 = vadd.f32 %v16850_v23, %v16836_v41  ;;  %v8995_v41 = vld [vmem:[#allocation2 + $0x75] sm:$0xff] }
 0x88a   : > { %v17030_v9 = vpop.f32.mrf.mxu3  ;;  %v19399_v23 = vld [vmem:[#allocation92_spill] sm:$0xff] }
 0x88b   : > { %19396 = vst [vmem:[#allocation99_spill] sm:$0xff] %v17027_v33  ;;  %v17058_v28 = vpop.f32.mrf.mxu0 }
 0x88c   : > { %v7769_v58 = vpop.f32.mrf.mxu1 }
 0x88f   : > { %12356 = vmatmul.msk.f32.gmra.mxu1 %vm250_vm2, %v8503_v27  ;;  %12301 = vmatmul.msk.f32.gmra.mxu3 %vm250_vm2, %v16604_v29  ;;  %v8505_v27 = vld [vmem:[#allocation2 + $0x8b] sm:$0xff] }
 0x890   : > { %v8038_v59 = vpop.f32.mrf.mxu2  ;;  %12284 = vmatmul.msk.f32.gmra.mxu2 %vm250_vm2, %v17047_v43 }
 0x891   : > { %v17043_v0 = vadd.f32 %v8038_v59, %v7828_v12 }
 0x892   : > { %v17045_v33 = vpop.f32.mrf.mxu3 }
 0x894   : > { %v7772_v14 = vpop.f32.mrf.mxu1 }
 0x897   : > { %12357 = vmatmul.msk.f32.gmra.mxu1 %vm250_vm2, %v8504_v30  ;;  %12302 = vmatmul.msk.f32.gmra.mxu3 %vm250_vm2, %v16623_v38  ;;  %v7814_v38 = vadd.f32 %v16763_v46, %v7473_v61  ;;  %v7830_v30 = vadd.f32 %v7766_v45, %v7521_v22  ;;  %v19400_v45 = vld [vmem:[#allocation177_spill] sm:$0xff] }
 0x898   : > { %v8041_v29 = vpop.f32.mrf.mxu2  ;;  %12389 = vmatmul.msk.f32.vlgmr.msra.gmra.mxu2 %vm250_vm2, %v8994_v34  ;;  %v17087_v34 = vpop.f32.mrf.mxu0 }
 0x899   : > { %v17060_v12 = vadd.f32 %v8041_v29, %v7829_v48  ;;  %v8506_v29 = vld [vmem:[#allocation2 + $0xa3] sm:$0xff] }
 0x89a   : > { %v17062_v59 = vpop.f32.mrf.mxu3 }
 0x89b   : > { %19397 = vst [vmem:[#allocation165_spill] sm:$0xff] %v17060_v12  ;;  %v8092_v12 = vadd.f32 %v16832_v3, %v7814_v38  ;;  %v19401_v3 = vld [vmem:[#allocation186_spill] sm:$0xff] }
 0x89c   : > { %v17056_v6 = vpop.f32.mrf.mxu1 }
 0x89f   : > { %12358 = vmatmul.msk.f32.gmra.mxu1 %vm250_vm2, %v8505_v27  ;;  %12303 = vmatmul.msk.f32.gmra.mxu3 %vm250_vm2, %v16644_v51  ;;  %v7476_v27 = vadd.f32 %v19400_v45, %v19399_v23  ;;  %v7524_v51 = vadd.f32 %v16864_v35, %v16846_v36  ;;  %v8507_v36 = vld [vmem:[#allocation2 + $0xab] sm:$0xff]  ;;  %v19402_v35 = vld [vmem:[#allocation154_spill] sm:$0xff] }
 0x8a0   : > { %v8044_v21 = vpop.f32.mrf.mxu2  ;;  %12390 = vmatmul.msk.f32.gmra.mxu2 %vm250_vm2, %v8995_v41  ;;  %v7527_v41 = vadd.f32 %v16888_v50, %v16860_v2  ;;  %v8508_v2 = vld [vmem:[#allocation2 + $0xc3] sm:$0xff] }
 0x8a1   : > { %v17076_v40 = vadd.f32 %v8044_v21, %v7830_v30  ;;  %v7815_v22 = vadd.f32 %v19401_v3, %v7476_v27  ;;  %v7831_v30 = vadd.f32 %v7769_v58, %v7524_v51  ;;  %v17104_v27 = vpop.f32.mrf.mxu0 }
 0x8a2   : > { %v8275_v46 = vpop.f32.mrf.mxu3  ;;  %v7832_v51 = vadd.f32 %v7772_v14, %v7527_v41  ;;  %v7530_v14 = vadd.f32 %v16908_v53, %v16880_v49  ;;  %v8509_v53 = vld [vmem:[#allocation2 + $0xcb] sm:$0xff] }
 0x8a3   : > { %19398 = vst [vmem:[#allocation167_spill] sm:$0xff] %v17076_v40  ;;  %v8371_v61 = vadd.f32 %v8275_v46, %v8092_v12  ;;  %v8093_v40 = vadd.f32 %v19402_v35, %v7815_v22  ;;  %v8996_v46 = vld [vmem:[#allocation2 + $0x8d] sm:$0xff] }
 0x8a4   : > { %v17073_v48 = vpop.f32.mrf.mxu1 }
 0x8a5   : > { %v8405_v38 = vadd.f32 %v17081_v4, %v8371_v61 }
 0x8a7   : > { %12359 = vmatmul.msk.f32.gmra.mxu1 %vm250_vm2, %v8506_v29  ;;  %v8437_v21 = vmax.f32 %v8405_v38, 0.0  ;;  %12304 = vmatmul.msk.f32.gmra.mxu3 %vm250_vm2, %v16662_v54 }
 0x8a8   : > { %v8047_v23 = vpop.f32.mrf.mxu2  ;;  %12391 = vmatmul.msk.f32.gmra.mxu2 %vm250_vm2, %v8996_v46 }
 0x8a9   : > { %8469 = vst.msk [vmem:[#allocation2 + $0x108] sm:$0xff] %vm250_vm2, %v8437_v21  ;;  %v17099_v12 = vadd.f32 %v8047_v23, %v7831_v30  ;;  %v8997_v30 = vld [vmem:[#allocation2 + $0x95] sm:$0xff]  ;;  %v17126_v35 = vpop.f32.mrf.mxu0 }
 0x8aa   : > { %v8278_v29 = vpop.f32.mrf.mxu3  ;;  %v19403_v21 = vld [vmem:[#allocation156_spill] sm:$0xff] }
 0x8ab   : > { %v8372_v58 = vadd.f32 %v8278_v29, %v8093_v40 }
 0x8ac   : > { %v17095_v45 = vpop.f32.mrf.mxu1 }
 0x8ad   : > { %v8406_v54 = vadd.f32 %v17081_v4, %v8372_v58 }
 0x8af   : > { %12360 = vmatmul.msk.f32.gmra.mxu1 %vm250_vm2, %v8507_v36  ;;  %v8438_v61 = vmax.f32 %v8406_v54, 0.0  ;;  %12305 = vmatmul.msk.f32.gmra.mxu3 %vm250_vm2, %v16682_v52  ;;  %v7833_v36 = vadd.f32 %v17056_v6, %v7530_v14  ;;  %v8998_v54 = vld [vmem:[#allocation2 + $0xad] sm:$0xff] }
 0x8b0   : > { %v8050_v3 = vpop.f32.mrf.mxu2  ;;  %v17110_v22 = vld [vmem:[#allocation2 + $0x108] sm:$0xff]  ;;  %12392 = vmatmul.msk.f32.gmra.mxu2 %vm250_vm2, %v8997_v30 }
 0x8b1   : > { %8470 = vst.msk [vmem:[#allocation2 + $0x110] sm:$0xff] %vm250_vm2, %v8438_v61  ;;  %v17115_v50 = vadd.f32 %v8050_v3, %v7832_v51  ;;  %12332 = vmatmul.msk.f32.gmra.mxu0 %vm250_vm2, %v17110_v22  ;;  %v7533_v51 = vadd.f32 %v16927_v18, %v16898_v37  ;;  %v19404_v61 = vld [vmem:[#allocation179_spill] sm:$0xff]  ;;  %v17152_v18 = vpop.f32.mrf.mxu0 }
 0x8b2   : > { %v8281_v40 = vpop.f32.mrf.mxu3  ;;  %v8510_v37 = vld [vmem:[#allocation2 + $0xe3] sm:$0xff] }
 0x8b3   : > { %v8373_v52 = vadd.f32 %v8281_v40, %v19403_v21 }
 0x8b4   : > { %v17112_v38 = vpop.f32.mrf.mxu1 }
 0x8b5   : > { %v8407_v23 = vadd.f32 %v17081_v4, %v8373_v52 }
 0x8b7   : > { %12361 = vmatmul.msk.f32.gmra.mxu1 %vm250_vm2, %v8508_v2  ;;  %v8439_v29 = vmax.f32 %v8407_v23, 0.0  ;;  %12306 = vmatmul.msk.f32.gmra.mxu3 %vm250_vm2, %v16701_v47  ;;  %v7834_v2 = vadd.f32 %v17073_v48, %v7533_v51  ;;  %v8999_v23 = vld [vmem:[#allocation2 + $0xb5] sm:$0xff] }
 0x8b8   : > { %v8053_v46 = vpop.f32.mrf.mxu2  ;;  %v17130_v41 = vld [vmem:[#allocation2 + $0x110] sm:$0xff]  ;;  %12393 = vmatmul.msk.f32.gmra.mxu2 %vm250_vm2, %v8998_v54 }
 0x8b9   : > { %8471 = vst.msk [vmem:[#allocation2 + $0x128] sm:$0xff] %vm250_vm2, %v8439_v29  ;;  %v17135_v58 = vadd.f32 %v8053_v46, %v7833_v36  ;;  %12333 = vmatmul.msk.f32.gmra.mxu0 %vm250_vm2, %v17130_v41  ;;  %v19405_v36 = vld [vmem:[#allocation93_spill] sm:$0xff] }
 0x8ba   : > { %v8284_v6 = vpop.f32.mrf.mxu3 }
 0x8bb   : > { %v8374_v47 = vadd.f32 %v8284_v6, %v19404_v61 }
 0x8bc   : > { %v17132_v49 = vpop.f32.mrf.mxu1 }
 0x8bd   : > { %v8408_v3 = vadd.f32 %v17081_v4, %v8374_v47  ;;  %v17177_v47 = vpop.f32.mrf.mxu0 }
 0x8bf   : > { %12362 = vmatmul.msk.f32.gmra.mxu1 %vm250_vm2, %v8509_v53  ;;  %v8440_v40 = vmax.f32 %v8408_v3, 0.0  ;;  %12307 = vmatmul.msk.f32.gmra.mxu3 %vm250_vm2, %v16718_v15  ;;  %v7536_v15 = vadd.f32 %v16945_v7, %v16913_v25  ;;  %v8511_v7 = vld [vmem:[#allocation2 + $0xeb] sm:$0xff] }
 0x8c0   : > { %v8056_v30 = vpop.f32.mrf.mxu2  ;;  %v17148_v14 = vld [vmem:[#allocation2 + $0x128] sm:$0xff]  ;;  %12394 = vmatmul.msk.f32.gmra.mxu2 %vm250_vm2, %v8999_v23 }
 0x8c1   : > { %8472 = vst.msk [vmem:[#allocation2 + $0x130] sm:$0xff] %vm250_vm2, %v8440_v40  ;;  %v17155_v52 = vadd.f32 %v8056_v30, %v7834_v2  ;;  %12334 = vmatmul.msk.f32.gmra.mxu0 %vm250_vm2, %v17148_v14  ;;  %v7835_v53 = vadd.f32 %v17095_v45, %v7536_v15  ;;  %v12489_v45 = vld [vmem:[%s18820_s3 + $0x3c] sm:$0x3]  ;;  %v9000_v3 = vld [vmem:[#allocation2 + $0xcd] sm:$0xff]  ;;  %v7539_v2 = vadd.f32 %v16962_v1, %v16925_v17  ;;  %v19406_v40 = vld [vmem:[#allocation70_spill] sm:$0xff] }
 0x8c2   : > { %v8287_v48 = vpop.f32.mrf.mxu3  ;;  %12490 = vmatpush.msk.msra.mxu1 %vm789_vm1, %v12489_v45 }
 0x8c3   : > { %v8375_v29 = vadd.f32 %v8287_v48, %v19405_v36  ;;  %v7836_v48 = vadd.f32 %v17112_v38, %v7539_v2  ;;  %v7542_v38 = vadd.f32 %v16979_v26, %v16939_v31 }
 0x8c4   : > { %v17150_v21 = vpop.f32.mrf.mxu1 }
 0x8c5   : > { %v8409_v46 = vadd.f32 %v17081_v4, %v8375_v29  ;;  %v7837_v45 = vadd.f32 %v17132_v49, %v7542_v38  ;;  %v7545_v49 = vadd.f32 %v17005_v42, %v16954_v39 }
 0x8c7   : > { %12363 = vmatmul.msk.f32.gmra.mxu1 %vm250_vm2, %v8510_v37  ;;  %v8441_v6 = vmax.f32 %v8409_v46, 0.0  ;;  %12308 = vmatmul.msk.f32.gmra.mxu3 %vm250_vm2, %v16737_v11  ;;  %v9001_v46 = vld [vmem:[#allocation2 + $0xd5] sm:$0xff] }
 0x8c8   : > { %v8059_v54 = vpop.f32.mrf.mxu2  ;;  %v17168_v51 = vld [vmem:[#allocation2 + $0x130] sm:$0xff]  ;;  %12395 = vmatmul.msk.f32.gmra.mxu2 %vm250_vm2, %v9000_v3 }
 0x8c9   : > { %8473 = vst.msk [vmem:[#allocation2 + $0x148] sm:$0xff] %vm250_vm2, %v8441_v6  ;;  %v17173_v25 = vadd.f32 %v8059_v54, %v7835_v53  ;;  %12335 = vmatmul.msk.f32.gmra.mxu0 %vm250_vm2, %v17168_v51  ;;  %v17201_v53 = vld [vmem:[#allocation2 + $0x103] sm:$0xff]  ;;  %v17206_v54 = vpop.f32.mrf.mxu0 }
 0x8ca   : > { %v8290_v11 = vpop.f32.mrf.mxu3 }
 0x8cb   : > { %v8376_v30 = vadd.f32 %v8290_v11, %v19406_v40 }
 0x8cc   : > { %v17170_v61 = vpop.f32.mrf.mxu1 }
 0x8cd   : > { %v8410_v37 = vadd.f32 %v17081_v4, %v8376_v30  ;;  %v9002_v30 = vld [vmem:[#allocation2 + $0xed] sm:$0xff] }
 0x8cf   : > { %12364 = vmatmul.msk.f32.gmra.mxu1 %vm250_vm2, %v8511_v7  ;;  %v8442_v23 = vmax.f32 %v8410_v37, 0.0  ;;  %12309 = vmatmul.msk.f32.gmra.mxu3 %vm250_vm2, %v16756_v24  ;;  %v19407_v24 = vld [vmem:[#allocation162_spill] sm:$0xff]  ;;  %v17224_v37 = vld [vmem:[#allocation2 + $0x10b] sm:$0xff] }
 0x8d0   : > { %v8062_v15 = vpop.f32.mrf.mxu2  ;;  %v17192_v36 = vld [vmem:[#allocation2 + $0x148] sm:$0xff]  ;;  %12396 = vmatmul.msk.f32.gmra.mxu2 %vm250_vm2, %v9001_v46 }
 0x8d1   : > { %8474 = vst.msk [vmem:[#allocation2 + $0x150] sm:$0xff] %vm250_vm2, %v8442_v23  ;;  %v17197_v17 = vadd.f32 %v8062_v15, %v7836_v48  ;;  %12336 = vmatmul.msk.f32.gmra.mxu0 %vm250_vm2, %v17192_v36  ;;  %v7838_v23 = vadd.f32 %v17150_v21, %v7545_v49  ;;  %v17234_v15 = vpop.f32.mrf.mxu0  ;;  %v9003_v21 = vld [vmem:[#allocation2 + $0xf5] sm:$0xff] }
 0x8d2   : > { %v8293_v1 = vpop.f32.mrf.mxu3 }
 0x8d3   : > { %v8377_v6 = vadd.f32 %v8293_v1, %v19407_v24  ;;  %v17247_v24 = vld [vmem:[#allocation2 + $0x123] sm:$0xff] }
 0x8d4   : > { %v17194_v29 = vpop.f32.mrf.mxu1 }
 0x8d5   : > { %v8411_v7 = vadd.f32 %v17081_v4, %v8377_v6  ;;  %v7548_v6 = vadd.f32 %v17021_v44, %v16969_v5 }
 0x8d7   : > { %12365 = vmatmul.msk.f32.gmra.mxu1 %vm250_vm2, %v17201_v53  ;;  %v8443_v11 = vmax.f32 %v8411_v7, 0.0  ;;  %12310 = vmatmul.msk.f32.gmra.mxu3 %vm250_vm2, %v16777_v16 }
 0x8d8   : > { %v8065_v3 = vpop.f32.mrf.mxu2  ;;  %v17215_v2 = vld [vmem:[#allocation2 + $0x150] sm:$0xff]  ;;  %12397 = vmatmul.msk.f32.gmra.mxu2 %vm250_vm2, %v9002_v30 }
 0x8d9   : > { %8475 = vst.msk [vmem:[#allocation2 + $0x168] sm:$0xff] %vm250_vm2, %v8443_v11  ;;  %v17220_v26 = vadd.f32 %v8065_v3, %v7837_v45  ;;  %12337 = vmatmul.msk.f32.gmra.mxu0 %vm250_vm2, %v17215_v2  ;;  %v7839_v45 = vadd.f32 %v17170_v61, %v7548_v6  ;;  %v17259_v3 = vpop.f32.mrf.mxu0  ;;  %v17270_v61 = vld [vmem:[#allocation2 + $0x12b] sm:$0xff] }
 0x8da   : > { %v8296_v40 = vpop.f32.mrf.mxu3  ;;  %19408 = vst [vmem:[#allocation103_spill] sm:$0xff] %v17259_v3  ;;  %v19410_v6 = vld [vmem:[#allocation163_spill] sm:$0xff] }
 0x8db   : > { %v8378_v16 = vadd.f32 %v8296_v40, %v16936_v62 }
 0x8dc   : > { %v17217_v31 = vpop.f32.mrf.mxu1 }
 0x8dd   : > { %v8412_v48 = vadd.f32 %v17081_v4, %v8378_v16  ;;  %v17277_v16 = vld [vmem:[#allocation2 + $0x10d] sm:$0xff] }
 0x8df   : > { %12366 = vmatmul.msk.f32.gmra.mxu1 %vm250_vm2, %v17224_v37  ;;  %v8444_v1 = vmax.f32 %v8412_v48, 0.0  ;;  %12311 = vmatmul.msk.f32.gmra.mxu3 %vm250_vm2, %v16798_v19 }
 0x8e0   : > { %v8068_v46 = vpop.f32.mrf.mxu2  ;;  %v17238_v38 = vld [vmem:[#allocation2 + $0x168] sm:$0xff]  ;;  %12398 = vmatmul.msk.f32.gmra.mxu2 %vm250_vm2, %v9003_v21 }
 0x8e1   : > { %8476 = vst.msk [vmem:[#allocation2 + $0x170] sm:$0xff] %vm250_vm2, %v8444_v1  ;;  %v17243_v62 = vadd.f32 %v8068_v46, %v7838_v23  ;;  %12338 = vmatmul.msk.f32.gmra.mxu0 %vm250_vm2, %v17238_v38 }
 0x8e2   : > { %v8299_v42 = vpop.f32.mrf.mxu3 }
 0x8e3   : > { %v8379_v19 = vadd.f32 %v8299_v42, %v16951_v20  ;;  %v17294_v42 = vpop.f32.mrf.mxu0 }
 0x8e4   : > { %v17240_v39 = vpop.f32.mrf.mxu1  ;;  %19409 = vst [vmem:[#allocation95_spill] sm:$0xff] %v17294_v42 }
 0x8e5   : > { %v8413_v7 = vadd.f32 %v17081_v4, %v8379_v19 }
 0x8e7   : > { %12367 = vmatmul.msk.f32.gmra.mxu1 %vm250_vm2, %v17247_v24  ;;  %v8445_v11 = vmax.f32 %v8413_v7, 0.0  ;;  %12312 = vmatmul.msk.f32.gmra.mxu3 %vm250_vm2, %v16813_v56  ;;  %v7551_v56 = vadd.f32 %v17039_v63, %v16984_v57  ;;  %v17303_v7 = vld [vmem:[#allocation2 + $0x115] sm:$0xff] }
 0x8e8   : > { %v8071_v40 = vpop.f32.mrf.mxu2  ;;  %v17261_v30 = vld [vmem:[#allocation2 + $0x170] sm:$0xff]  ;;  %12399 = vmatmul.msk.f32.gmra.mxu2 %vm250_vm2, %v17277_v16 }
 0x8e9   : > { %8477 = vst.msk [vmem:[#allocation2 + $0x188] sm:$0xff] %vm250_vm2, %v8445_v11  ;;  %v17266_v20 = vadd.f32 %v8071_v40, %v7839_v45  ;;  %12339 = vmatmul.msk.f32.gmra.mxu0 %vm250_vm2, %v17261_v30  ;;  %v7840_v23 = vadd.f32 %v17194_v29, %v7551_v56  ;;  %v17296_v29 = vld [vmem:[#allocation2 + $0x143] sm:$0xff] }
 0x8ea   : > { %v8302_v44 = vpop.f32.mrf.mxu3 }
 0x8eb   : > { %v8380_v49 = vadd.f32 %v8302_v44, %v16966_v8 }
 0x8ec   : > { %v17263_v5 = vpop.f32.mrf.mxu1 }
 0x8ed   : > { %v8414_v48 = vadd.f32 %v17081_v4, %v8380_v49 }
 0x8ef   : > { %12368 = vmatmul.msk.f32.gmra.mxu1 %vm250_vm2, %v17270_v61  ;;  %v8446_v1 = vmax.f32 %v8414_v48, 0.0  ;;  %12313 = vmatmul.msk.f32.gmra.mxu3 %vm250_vm2, %v16986_v32  ;;  %v7554_v32 = vadd.f32 %v17058_v28, %v16999_v55  ;;  %v17320_v48 = vld [vmem:[#allocation2 + $0x14b] sm:$0xff] }
 0x8f0   : > { %v8074_v46 = vpop.f32.mrf.mxu2  ;;  %v17285_v57 = vld [vmem:[#allocation2 + $0x188] sm:$0xff]  ;;  %12400 = vmatmul.msk.f32.gmra.mxu2 %vm250_vm2, %v17303_v7 }
 0x8f1   : > { %8478 = vst.msk [vmem:[#allocation2 + $0x190] sm:$0xff] %vm250_vm2, %v8446_v1  ;;  %v17290_v63 = vadd.f32 %v8074_v46, %v7840_v23  ;;  %12340 = vmatmul.msk.f32.gmra.mxu0 %vm250_vm2, %v17285_v57  ;;  %v7841_v11 = vadd.f32 %v17217_v31, %v7554_v32  ;;  %v7557_v31 = vadd.f32 %v17087_v34, %v17016_v13  ;;  %v19411_v23 = vld [vmem:[#allocation184_spill] sm:$0xff]  ;;  %v17325_v1 = vpop.f32.mrf.mxu0 }
 0x8f2   : > { %v8305_v21 = vpop.f32.mrf.mxu3  ;;  %19412 = vst [vmem:[#allocation173_spill] sm:$0xff] %v17325_v1  ;;  %v17329_v46 = vld [vmem:[#allocation2 + $0x12d] sm:$0xff] }
 0x8f3   : > { %v8381_v19 = vadd.f32 %v8305_v21, %v19410_v6  ;;  %v7842_v32 = vadd.f32 %v17240_v39, %v7557_v31  ;;  %v7560_v39 = vadd.f32 %v17104_v27, %v17030_v9 }
 0x8f4   : > { %v17287_v8 = vpop.f32.mrf.mxu1 }
 0x8f5   : > { %v8415_v45 = vadd.f32 %v17081_v4, %v8381_v19 }
 0x8f7   : > { %12369 = vmatmul.msk.f32.gmra.mxu1 %vm250_vm2, %v17296_v29  ;;  %v8447_v40 = vmax.f32 %v8415_v45, 0.0  ;;  %12314 = vmatmul.msk.f32.gmra.mxu3 %vm250_vm2, %v17001_v60 }
 0x8f8   : > { %v8077_v44 = vpop.f32.mrf.mxu2  ;;  %v17311_v55 = vld [vmem:[#allocation2 + $0x190] sm:$0xff]  ;;  %12401 = vmatmul.msk.f32.gmra.mxu2 %vm250_vm2, %v17329_v46 }
 0x8f9   : > { %8479 = vst.msk [vmem:[#allocation2 + $0x1a8] sm:$0xff] %vm250_vm2, %v8447_v40  ;;  %v17316_v56 = vadd.f32 %v8077_v44, %v7841_v11  ;;  %12341 = vmatmul.msk.f32.gmra.mxu0 %vm250_vm2, %v17311_v55  ;;  %v17346_v40 = vld [vmem:[#allocation2 + $0x163] sm:$0xff]  ;;  %v17422_v1 = vld [vmem:[#allocation2 + $0x18b] sm:$0xff] }
 0x8fa   : > { %v8308_v49 = vpop.f32.mrf.mxu3  ;;  %v19414_v44 = vld [vmem:[#allocation102_spill] sm:$0xff] }
 0x8fb   : > { %v8382_v60 = vadd.f32 %v8308_v49, %v19411_v23  ;;  %v17353_v49 = vld [vmem:[#allocation2 + $0x135] sm:$0xff]  ;;  %v7843_v23 = vadd.f32 %v17263_v5, %v7560_v39  ;;  %v17372_v5 = vld [vmem:[#allocation2 + $0x16b] sm:$0xff] }
 0x8fc   : > { %v17313_v28 = vpop.f32.mrf.mxu1  ;;  %v19417_v39 = vld [vmem:[#allocation99_spill] sm:$0xff] }
 0x8fd   : > { %v8416_v21 = vadd.f32 %v17081_v4, %v8382_v60  ;;  %v17359_v60 = vpop.f32.mrf.mxu0 }
 0x8fe   : > { %19415 = vst [vmem:[#allocation73_spill] sm:$0xff] %v17359_v60  ;;  %v17397_v60 = vld [vmem:[#allocation2 + $0x183] sm:$0xff] }
 0x8ff   : > { %12370 = vmatmul.msk.f32.gmra.mxu1 %vm250_vm2, %v17320_v48  ;;  %v8448_v6 = vmax.f32 %v8416_v21, 0.0  ;;  %12315 = vmatmul.msk.f32.gmra.mxu3 %vm250_vm2, %v17032_v10 }
 0x900   : > { %v8080_v13 = vpop.f32.mrf.mxu2  ;;  %v17337_v34 = vld [vmem:[#allocation2 + $0x1a8] sm:$0xff]  ;;  %12402 = vmatmul.msk.f32.gmra.mxu2 %vm250_vm2, %v17353_v49 }
 0x901   : > { %19413 = vst [vmem:[#allocation114_spill] sm:$0xff] %v17337_v34  ;;  %v17342_v45 = vadd.f32 %v8080_v13, %v7842_v32  ;;  %12342 = vmatmul.msk.f32.gmra.mxu0 %vm250_vm2, %v17337_v34 }
 0x902   : > { %8480 = vst.msk [vmem:[#allocation2 + $0x1b0] sm:$0xff] %vm250_vm2, %v8448_v6  ;;  %v8311_v11 = vpop.f32.mrf.mxu3 }
 0x903   : > { %v8383_v10 = vadd.f32 %v8311_v11, %v19414_v44  ;;  %v7563_v11 = vadd.f32 %v17126_v35, %v17045_v33  ;;  %v17379_v44 = vld [vmem:[#allocation2 + $0x14d] sm:$0xff] }
 0x904   : > { %v17339_v19 = vpop.f32.mrf.mxu1 }
 0x905   : > { %v8417_v31 = vadd.f32 %v17081_v4, %v8383_v10  ;;  %v8155_v10 = vld [vmem:[#allocation2 + $0x328] sm:$0xff] }
 0x907   : > { %12371 = vmatmul.msk.f32.gmra.mxu1 %vm250_vm2, %v17346_v40  ;;  %v8449_v21 = vmax.f32 %v8417_v31, 0.0  ;;  %12316 = vmatmul.msk.f32.gmra.mxu3 %vm250_vm2, %v17047_v43 }
 0x908   : > { %v8083_v9 = vpop.f32.mrf.mxu2  ;;  %12403 = vmatmul.msk.f32.gmra.mxu2 %vm250_vm2, %v17379_v44 }
 0x909   : > { %v17363_v27 = vld [vmem:[#allocation2 + $0x1b0] sm:$0xff]  ;;  %8481 = vst.msk [vmem:[#allocation2 + $0x1c8] sm:$0xff] %vm250_vm2, %v8449_v21  ;;  %v17368_v6 = vadd.f32 %v8083_v9, %v7843_v23  ;;  %v7844_v23 = vadd.f32 %v17287_v8, %v7563_v11  ;;  %v17386_v9 = vpop.f32.mrf.mxu0  ;;  %v7566_v8 = vadd.f32 %v17152_v18, %v17062_v59 }
 0x90a   : > { %19416 = vst [vmem:[#allocation115_spill] sm:$0xff] %v17363_v27  ;;  %12343 = vmatmul.msk.f32.gmra.mxu0 %vm250_vm2, %v17363_v27  ;;  %v8314_v13 = vpop.f32.mrf.mxu3 }
 0x90b   : > { %v8384_v43 = vadd.f32 %v8314_v13, %v19417_v39  ;;  %19418 = vst [vmem:[#allocation111_spill] sm:$0xff] %v17386_v9 }
 0x90c   : > { %v17365_v32 = vpop.f32.mrf.mxu1 }
 0x90d   : > { %v8418_v31 = vadd.f32 %v17081_v4, %v8384_v43 }
 0x90f   : > { %12372 = vmatmul.msk.f32.gmra.mxu1 %vm250_vm2, %v17372_v5  ;;  %v8450_v21 = vmax.f32 %v8418_v31, 0.0  ;;  %12317 = vmatmul.msk.f32.gmra.mxu3 %vm250_vm2, %v8155_v10  ;;  %v17404_v10 = vld [vmem:[#allocation2 + $0x155] sm:$0xff] }
 0x910   : > { %v8086_v33 = vpop.f32.mrf.mxu2  ;;  %v17388_v35 = vld [vmem:[#allocation2 + $0x1c8] sm:$0xff]  ;;  %v8156_v31 = vld [vmem:[#allocation2 + $0x330] sm:$0xff]  ;;  %12404 = vmatmul.msk.f32.gmra.mxu2 %vm250_vm2, %v17404_v10 }
 0x911   : > { %19419 = vst [vmem:[#allocation178_spill] sm:$0xff] %v17388_v35  ;;  %v17393_v39 = vadd.f32 %v8086_v33, %v7844_v23 }
 0x912   : > { %8482 = vst.msk [vmem:[#allocation2 + $0x1d0] sm:$0xff] %vm250_vm2, %v8450_v21  ;;  %12344 = vmatmul.msk.f32.gmra.mxu0 %vm250_vm2, %v17388_v35  ;;  %v8317_v43 = vpop.f32.mrf.mxu3  ;;  %v7845_v21 = vadd.f32 %v17313_v28, %v7566_v8  ;;  %v19423_v28 = vld [vmem:[#allocation165_spill] sm:$0xff] }
 0x913   : > { %v8385_v11 = vadd.f32 %v8317_v43, %v17043_v0 }
 0x914   : > { %v17390_v13 = vpop.f32.mrf.mxu1 }
 0x915   : > { %v8419_v23 = vadd.f32 %v17081_v4, %v8385_v11  ;;  %v17420_v11 = vpop.f32.mrf.mxu0 }
 0x916   : > { %19422 = vst [vmem:[#allocation124_spill] sm:$0xff] %v17420_v11 }
 0x917   : > { %12373 = vmatmul.msk.f32.gmra.mxu1 %vm250_vm2, %v17397_v60  ;;  %v8451_v33 = vmax.f32 %v8419_v23, 0.0  ;;  %12318 = vmatmul.msk.f32.gmra.mxu3 %vm250_vm2, %v8156_v31  ;;  %v17427_v31 = vld [vmem:[#allocation2 + $0x16d] sm:$0xff] }
 0x918   : > { %v8089_v9 = vpop.f32.mrf.mxu2  ;;  %19424 = vst [vmem:[#allocation78_spill] sm:$0xff] %v17427_v31  ;;  %12405 = vmatmul.msk.f32.gmra.mxu2 %vm250_vm2, %v17427_v31 }
 0x919   : > { %v17411_v59 = vld [vmem:[#allocation2 + $0x1d0] sm:$0xff]  ;;  %8483 = vst.msk [vmem:[#allocation2 + $0x1e8] sm:$0xff] %vm250_vm2, %v8451_v33  ;;  %v17416_v18 = vadd.f32 %v8089_v9, %v7845_v21 }
 0x91a   : > { %19420 = vst [vmem:[#allocation123_spill] sm:$0xff] %v17411_v59  ;;  %12345 = vmatmul.msk.f32.gmra.mxu0 %vm250_vm2, %v17411_v59  ;;  %v8320_v43 = vpop.f32.mrf.mxu3 }
 0x91b   : > { %v8386_v8 = vadd.f32 %v8320_v43, %v19423_v28  ;;  %v17443_v28 = vld [vmem:[#allocation2 + $0x1a3] sm:$0xff] }
 0x91c   : > { %v17413_v0 = vpop.f32.mrf.mxu1 }
 0x91d   : > { %19421 = vst [vmem:[#allocation104_spill] sm:$0xff] %v17413_v0  ;;  %v8420_v23 = vadd.f32 %v17081_v4, %v8386_v8  ;;  %v19427_v8 = vld [vmem:[#allocation167_spill] sm:$0xff] }
 0x91f   : > { %12374 = vmatmul.msk.f32.gmra.mxu1 %vm250_vm2, %v17422_v1  ;;  %v8452_v9 = vmax.f32 %v8420_v23, 0.0  ;;  %12423 = vmatmul.msk.f32.vlgmr.msra.gmra.mxu3 %vm250_vm2, %v17201_v53  ;;  %v17448_v53 = vld [vmem:[#allocation2 + $0x175] sm:$0xff]  ;;  %v17450_v23 = vpop.f32.mrf.mxu0 }
 0x920   : > { %v17434_v21 = vpop.f32.mrf.mxu2  ;;  %v17436_v33 = vld [vmem:[#allocation2 + $0x1e8] sm:$0xff]  ;;  %19428 = vst [vmem:[#allocation112_spill] sm:$0xff] %v17448_v53  ;;  %12406 = vmatmul.msk.f32.gmra.mxu2 %vm250_vm2, %v17448_v53 }
 0x921   : > { %19425 = vst [vmem:[#allocation181_spill] sm:$0xff] %v17436_v33 }
 0x922   : > { %8484 = vst.msk [vmem:[#allocation2 + $0x1f0] sm:$0xff] %vm250_vm2, %v8452_v9  ;;  %12346 = vmatmul.msk.f32.gmra.mxu0 %vm250_vm2, %v17436_v33  ;;  %v8323_v43 = vpop.f32.mrf.mxu3 }
 0x923   : > { %v8387_v59 = vadd.f32 %v8323_v43, %v19427_v8 }
 0x924   : > { %v17438_v11 = vpop.f32.mrf.mxu1 }
 0x925   : > { %19426 = vst [vmem:[#allocation135_spill] sm:$0xff] %v17438_v11  ;;  %v8421_v35 = vadd.f32 %v17081_v4, %v8387_v59  ;;  %v17466_v59 = vld [vmem:[#allocation2 + $0x1ab] sm:$0xff] }
 0x927   : > { %12375 = vmatmul.msk.f32.gmra.mxu1 %vm250_vm2, %v17443_v28  ;;  %v8453_v9 = vmax.f32 %v8421_v35, 0.0  ;;  %12424 = vmatmul.msk.f32.gmra.mxu3 %vm250_vm2, %v17224_v37  ;;  %v17471_v37 = vld [vmem:[#allocation2 + $0x18d] sm:$0xff] }
 0x928   : > { %v17457_v33 = vpop.f32.mrf.mxu2  ;;  %19431 = vst [vmem:[#allocation106_spill] sm:$0xff] %v17471_v37  ;;  %12407 = vmatmul.msk.f32.gmra.mxu2 %vm250_vm2, %v17471_v37 }
 0x929   : > { %v17459_v11 = vld [vmem:[#allocation2 + $0x1f0] sm:$0xff]  ;;  %8485 = vst.msk [vmem:[#allocation2 + $0x208] sm:$0xff] %vm250_vm2, %v8453_v9 }
 0x92a   : > { %19429 = vst [vmem:[#allocation182_spill] sm:$0xff] %v17459_v11  ;;  %12347 = vmatmul.msk.f32.gmra.mxu0 %vm250_vm2, %v17459_v11  ;;  %v8326_v8 = vpop.f32.mrf.mxu3 }
 0x92b   : > { %v8388_v42 = vadd.f32 %v8326_v8, %v17099_v12  ;;  %v17489_v8 = vld [vmem:[#allocation2 + $0x1c3] sm:$0xff] }
 0x92c   : > { %v17461_v43 = vpop.f32.mrf.mxu1 }
 0x92d   : > { %19430 = vst [vmem:[#allocation136_spill] sm:$0xff] %v17461_v43  ;;  %v8422_v35 = vadd.f32 %v17081_v4, %v8388_v42 }
 0x92e   : > { %v17476_v43 = vpop.f32.mrf.mxu0 }
 0x92f   : > { %12376 = vmatmul.msk.f32.gmra.mxu1 %vm250_vm2, %v17466_v59  ;;  %v8454_v9 = vmax.f32 %v8422_v35, 0.0  ;;  %12425 = vmatmul.msk.f32.gmra.mxu3 %vm250_vm2, %v17247_v24  ;;  %v17494_v24 = vld [vmem:[#allocation2 + $0x195] sm:$0xff] }
 0x930   : > { %v17480_v11 = vpop.f32.mrf.mxu2  ;;  %v17482_v53 = vld [vmem:[#allocation2 + $0x208] sm:$0xff]  ;;  %19434 = vst [vmem:[#allocation147_spill] sm:$0xff] %v17494_v24  ;;  %12408 = vmatmul.msk.f32.gmra.mxu2 %vm250_vm2, %v17494_v24 }
 0x931   : > { %19432 = vst [vmem:[#allocation146_spill] sm:$0xff] %v17482_v53 }
 0x932   : > { %8486 = vst.msk [vmem:[#allocation2 + $0x210] sm:$0xff] %vm250_vm2, %v8454_v9  ;;  %12348 = vmatmul.msk.f32.gmra.mxu0 %vm250_vm2, %v17482_v53  ;;  %v8329_v42 = vpop.f32.mrf.mxu3 }
 0x933   : > { %v8389_v37 = vadd.f32 %v8329_v42, %v17115_v50  ;;  %v12557_v42 = vld [vmem:[%s18820_s3 + $0x40] sm:$0x3] }
 0x934   : > { %v17484_v12 = vpop.f32.mrf.mxu1  ;;  %12558 = vmatpush.msk.msrb.mxu3 %vm789_vm1, %v12557_v42 }
 0x935   : > { %19433 = vst [vmem:[#allocation79_spill] sm:$0xff] %v17484_v12  ;;  %v8423_v35 = vadd.f32 %v17081_v4, %v8389_v37  ;;  %v12523_v37 = vld [vmem:[%s18820_s3 + $0x3e] sm:$0x3] }
 0x936   : > { %v17499_v12 = vpop.f32.mrf.mxu0  ;;  %12524 = vmatpush.msk.msrb.mxu2 %vm789_vm1, %v12523_v37 }
 0x937   : > { %12377 = vmatmul.msk.f32.gmra.mxu1 %vm250_vm2, %v17489_v8  ;;  %v8455_v9 = vmax.f32 %v8423_v35, 0.0  ;;  %12426 = vmatmul.msk.f32.gmra.mxu3 %vm250_vm2, %v17270_v61  ;;  %v17519_v35 = vld [vmem:[#allocation2 + $0x1cb] sm:$0xff] }
 0x938   : > { %v17503_v53 = vpop.f32.mrf.mxu2 }
 0x939   : > { %19435 = vst [vmem:[#allocation121_spill] sm:$0xff] %v17503_v53  ;;  %v17505_v27 = vld [vmem:[#allocation2 + $0x210] sm:$0xff] }
 0x93a   : > { %19436 = vst [vmem:[#allocation157_spill] sm:$0xff] %v17505_v27  ;;  %12349 = vmatmul.msk.f32.gmra.mxu0 %vm250_vm2, %v17505_v27  ;;  %v8332_v61 = vpop.f32.mrf.mxu3  ;;  %v17525_v27 = vld [vmem:[#allocation2 + $0x1ad] sm:$0xff] }
 0x93b   : > { %8487 = vst.msk [vmem:[#allocation2 + $0x228] sm:$0xff] %vm250_vm2, %v8455_v9  ;;  %v8390_v9 = vadd.f32 %v8332_v61, %v17135_v58  ;;  %12409 = vmatmul.msk.f32.gmra.mxu2 %vm250_vm2, %v17525_v27  ;;  %v12591_v61 = vld [vmem:[%s18820_s3 + $0x42] sm:$0x3] }
 0x93c   : > { %v17507_v50 = vpop.f32.mrf.mxu1  ;;  %19438 = vst [vmem:[#allocation158_spill] sm:$0xff] %v17525_v27  ;;  %12592 = vmatpush.msk.msrb.mxu0 %vm789_vm1, %v12591_v61 }
 0x93d   : > { %19437 = vst [vmem:[#allocation116_spill] sm:$0xff] %v17507_v50  ;;  %v8424_v50 = vadd.f32 %v17081_v4, %v8390_v9 }
 0x93e   : > { %v17530_v24 = vpop.f32.mrf.mxu0 }
 0x93f   : > { %12378 = vmatmul.msk.f32.gmra.mxu1 %vm250_vm2, %v17519_v35  ;;  %v8456_v53 = vmax.f32 %v8424_v50, 0.0  ;;  %12427 = vmatmul.msk.f32.gmra.mxu3 %vm250_vm2, %v17296_v29  ;;  %v17546_v50 = vld [vmem:[#allocation2 + $0x1e3] sm:$0xff] }
 0x940   : > { %v17534_v37 = vpop.f32.mrf.mxu2 }
 0x941   : > { %19439 = vst [vmem:[#allocation86_spill] sm:$0xff] %v17534_v37 }
 0x942   : > { %v17536_v42 = vld [vmem:[#allocation2 + $0x228] sm:$0xff]  ;;  %8488 = vst.msk [vmem:[#allocation2 + $0x230] sm:$0xff] %vm250_vm2, %v8456_v53  ;;  %v8335_v9 = vpop.f32.mrf.mxu3 }
 0x943   : > { %19440 = vst [vmem:[#allocation168_spill] sm:$0xff] %v17536_v42  ;;  %12350 = vmatmul.msk.f32.gmra.mxu0 %vm250_vm2, %v17536_v42  ;;  %v8391_v29 = vadd.f32 %v8335_v9, %v17155_v52 }
 0x944   : > { %v17538_v58 = vpop.f32.mrf.mxu1 }
 0x945   : > { %19441 = vst [vmem:[#allocation169_spill] sm:$0xff] %v17538_v58  ;;  %v17552_v58 = vld [vmem:[#allocation2 + $0x1b5] sm:$0xff]  ;;  %v8425_v53 = vadd.f32 %v17081_v4, %v8391_v29  ;;  %v17568_v29 = vld [vmem:[#allocation2 + $0x1eb] sm:$0xff] }
 0x946   : > { %19442 = vst [vmem:[#allocation118_spill] sm:$0xff] %v17552_v58  ;;  %12410 = vmatmul.msk.f32.gmra.mxu2 %vm250_vm2, %v17552_v58  ;;  %v17557_v42 = vpop.f32.mrf.mxu0 }
 0x947   : > { %12379 = vmatmul.msk.f32.gmra.mxu1 %vm250_vm2, %v17546_v50  ;;  %v8457_v27 = vmax.f32 %v8425_v53, 0.0  ;;  %12428 = vmatmul.msk.f32.gmra.mxu3 %vm250_vm2, %v17320_v48  ;;  %v17573_v53 = vld [vmem:[#allocation2 + $0x1cd] sm:$0xff] }
 0x948   : > { %v17561_v37 = vpop.f32.mrf.mxu2  ;;  %19445 = vst [vmem:[#allocation144_spill] sm:$0xff] %v17573_v53 }
 0x949   : > { %19443 = vst [vmem:[#allocation185_spill] sm:$0xff] %v17561_v37  ;;  %v17563_v61 = vld [vmem:[#allocation2 + $0x230] sm:$0xff] }
 0x94a   : > { %19444 = vst [vmem:[#allocation87_spill] sm:$0xff] %v17563_v61  ;;  %v8338_v9 = vpop.f32.mrf.mxu3  ;;  %v17649_v34 = vld [vmem:[#allocation2 + $0x22b] sm:$0xff] }
 0x94b   : > { %8489 = vst.msk [vmem:[#allocation2 + $0x248] sm:$0xff] %vm250_vm2, %v8457_v27  ;;  %12351 = vmatmul.msk.f32.gmra.mxu0 %vm250_vm2, %v17563_v61  ;;  %v8392_v58 = vadd.f32 %v8338_v9, %v17173_v25  ;;  %v17589_v9 = vld [vmem:[#allocation2 + $0x203] sm:$0xff] }
 0x94c   : > { %v8925_v52 = vpop.f32.mrf.mxu1 }
 0x94d   : > { %v8426_v48 = vadd.f32 %v17081_v4, %v8392_v58 }
 0x94e   : > { %12411 = vmatmul.msk.f32.gmra.mxu2 %vm250_vm2, %v17573_v53  ;;  %v17578_v37 = vpop.f32.mrf.mxu0 }
 0x94f   : > { %12380 = vmatmul.msk.f32.gmra.mxu1 %vm250_vm2, %v17568_v29  ;;  %v8458_v27 = vmax.f32 %v8426_v48, 0.0  ;;  %12429 = vmatmul.msk.f32.gmra.mxu3 %vm250_vm2, %v17346_v40  ;;  %v17594_v48 = vld [vmem:[#allocation2 + $0x1d5] sm:$0xff] }
 0x950   : > { %v17582_v61 = vpop.f32.mrf.mxu2  ;;  %19448 = vst [vmem:[#allocation125_spill] sm:$0xff] %v17594_v48 }
 0x951   : > { %19446 = vst [vmem:[#allocation132_spill] sm:$0xff] %v17582_v61 }
 0x952   : > { %v17584_v0 = vld [vmem:[#allocation2 + $0x248] sm:$0xff]  ;;  %8490 = vst.msk [vmem:[#allocation2 + $0x250] sm:$0xff] %vm250_vm2, %v8458_v27  ;;  %v8341_v58 = vpop.f32.mrf.mxu3 }
 0x953   : > { %19447 = vst [vmem:[#allocation139_spill] sm:$0xff] %v17584_v0  ;;  %12352 = vmatmul.msk.f32.gmra.mxu0 %vm250_vm2, %v17584_v0  ;;  %v8393_v53 = vadd.f32 %v8341_v58, %v17197_v17  ;;  %v17610_v58 = vld [vmem:[#allocation2 + $0x20b] sm:$0xff] }
 0x954   : > { %v8928_v25 = vpop.f32.mrf.mxu1 }
 0x955   : > { %v8427_v40 = vadd.f32 %v17081_v4, %v8393_v53 }
 0x956   : > { %12412 = vmatmul.msk.f32.gmra.mxu2 %vm250_vm2, %v17594_v48  ;;  %v17599_v61 = vpop.f32.mrf.mxu0 }
 0x957   : > { %12381 = vmatmul.msk.f32.gmra.mxu1 %vm250_vm2, %v17589_v9  ;;  %v8459_v27 = vmax.f32 %v8427_v40, 0.0  ;;  %12430 = vmatmul.msk.f32.gmra.mxu3 %vm250_vm2, %v17372_v5  ;;  %v17615_v40 = vld [vmem:[#allocation2 + $0x1ed] sm:$0xff] }
 0x958   : > { %v17603_v0 = vpop.f32.mrf.mxu2  ;;  %19451 = vst [vmem:[#allocation155_spill] sm:$0xff] %v17615_v40 }
 0x959   : > { %19449 = vst [vmem:[#allocation109_spill] sm:$0xff] %v17603_v0  ;;  %v17605_v3 = vld [vmem:[#allocation2 + $0x250] sm:$0xff] }
 0x95a   : > { %19450 = vst [vmem:[#allocation94_spill] sm:$0xff] %v17605_v3  ;;  %v8344_v53 = vpop.f32.mrf.mxu3 }
 0x95b   : > { %8491 = vst.msk [vmem:[#allocation2 + $0x268] sm:$0xff] %vm250_vm2, %v8459_v27  ;;  %12353 = vmatmul.msk.f32.gmra.mxu0 %vm250_vm2, %v17605_v3  ;;  %v8394_v48 = vadd.f32 %v8344_v53, %v17220_v26  ;;  %v17629_v53 = vld [vmem:[#allocation2 + $0x223] sm:$0xff] }
 0x95c   : > { %v8931_v17 = vpop.f32.mrf.mxu1 }
 0x95d   : > { %v8428_v5 = vadd.f32 %v17081_v4, %v8394_v48 }
 0x95e   : > { %12413 = vmatmul.msk.f32.gmra.mxu2 %vm250_vm2, %v17615_v40  ;;  %v17620_v0 = vpop.f32.mrf.mxu0 }
 0x95f   : > { %12382 = vmatmul.msk.f32.gmra.mxu1 %vm250_vm2, %v17610_v58  ;;  %v8460_v27 = vmax.f32 %v8428_v5, 0.0  ;;  %12431 = vmatmul.msk.f32.gmra.mxu3 %vm250_vm2, %v17397_v60  ;;  %v17634_v5 = vld [vmem:[#allocation2 + $0x1f5] sm:$0xff] }
 0x960   : > { %v17624_v3 = vpop.f32.mrf.mxu2 }
 0x961   : > { %19452 = vst [vmem:[#allocation133_spill] sm:$0xff] %v17624_v3 }
 0x962   : > { %8492 = vst.msk [vmem:[#allocation2 + $0x270] sm:$0xff] %vm250_vm2, %v8460_v27  ;;  %v8347_v26 = vpop.f32.mrf.mxu3  ;;  %v8926_v27 = vadd.f32 %v8925_v52, %v17450_v23  ;;  %v17654_v52 = vld [vmem:[#allocation2 + $0x20d] sm:$0xff] }
 0x963   : > { %12457 = vmatmul.msk.f32.vlgmr.msra.gmra.mxu0 %vm250_vm2, %v17110_v22  ;;  %v8395_v48 = vadd.f32 %v8347_v26, %v17243_v62  ;;  %19453 = vst [vmem:[#allocation148_spill] sm:$0xff] %v17654_v52 }
 0x964   : > { %v8934_v31 = vpop.f32.mrf.mxu1 }
 0x965   : > { %v8429_v60 = vadd.f32 %v17081_v4, %v8395_v48 }
 0x966   : > { %12414 = vmatmul.msk.f32.gmra.mxu2 %vm250_vm2, %v17634_v5  ;;  %v17640_v40 = vpop.f32.mrf.mxu0 }
 0x967   : > { %12383 = vmatmul.msk.f32.gmra.mxu1 %vm250_vm2, %v17629_v53  ;;  %v8461_v22 = vmax.f32 %v8429_v60, 0.0  ;;  %12432 = vmatmul.msk.f32.gmra.mxu3 %vm250_vm2, %v17422_v1 }
 0x968   : > { %v9171_v3 = vpop.f32.mrf.mxu2 }
 0x969   : > { %8493 = vst.msk [vmem:[#allocation2 + $0x288] sm:$0xff] %vm250_vm2, %v8461_v22  ;;  %v17645_v26 = vadd.f32 %v9171_v3, %v8926_v27  ;;  %v8929_v3 = vadd.f32 %v8928_v25, %v17476_v43  ;;  %v17674_v25 = vld [vmem:[#allocation2 + $0x215] sm:$0xff] }
 0x96a   : > { %v8350_v48 = vpop.f32.mrf.mxu3 }
 0x96b   : > { %12458 = vmatmul.msk.f32.gmra.mxu0 %vm250_vm2, %v17130_v41  ;;  %v8396_v23 = vadd.f32 %v8350_v48, %v17266_v20 }
 0x96c   : > { %v8937_v62 = vpop.f32.mrf.mxu1 }
 0x96d   : > { %v8430_v1 = vadd.f32 %v17081_v4, %v8396_v23  ;;  %v17669_v23 = vld [vmem:[#allocation2 + $0x243] sm:$0xff] }
 0x96e   : > { %12415 = vmatmul.msk.f32.gmra.mxu2 %vm250_vm2, %v17654_v52  ;;  %v17660_v60 = vpop.f32.mrf.mxu0  ;;  %v17689_v52 = vld [vmem:[#allocation2 + $0x24b] sm:$0xff] }
 0x96f   : > { %12384 = vmatmul.msk.f32.gmra.mxu1 %vm250_vm2, %v17649_v34  ;;  %v8462_v41 = vmax.f32 %v8430_v1, 0.0  ;;  %12433 = vmatmul.msk.f32.gmra.mxu3 %vm250_vm2, %v17443_v28 }
 0x970   : > { %v9174_v27 = vpop.f32.mrf.mxu2 }
 0x971   : > { %8494 = vst.msk [vmem:[#allocation2 + $0x290] sm:$0xff] %vm250_vm2, %v8462_v41  ;;  %v17665_v22 = vadd.f32 %v9174_v27, %v8929_v3  ;;  %v8932_v3 = vadd.f32 %v8931_v17, %v17499_v12  ;;  %v17694_v17 = vld [vmem:[#allocation2 + $0x22d] sm:$0xff] }
 0x972   : > { %v8353_v48 = vpop.f32.mrf.mxu3  ;;  %19454 = vst [vmem:[#allocation127_spill] sm:$0xff] %v17694_v17 }
 0x973   : > { %12459 = vmatmul.msk.f32.gmra.mxu0 %vm250_vm2, %v17148_v14  ;;  %v8397_v43 = vadd.f32 %v8353_v48, %v17290_v63 }
 0x974   : > { %v8940_v20 = vpop.f32.mrf.mxu1 }
 0x975   : > { %v8431_v1 = vadd.f32 %v17081_v4, %v8397_v43 }
 0x976   : > { %12416 = vmatmul.msk.f32.gmra.mxu2 %vm250_vm2, %v17674_v25  ;;  %v17680_v41 = vpop.f32.mrf.mxu0 }
 0x977   : > { %12385 = vmatmul.msk.f32.gmra.mxu1 %vm250_vm2, %v17669_v23  ;;  %v8463_v14 = vmax.f32 %v8431_v1, 0.0  ;;  %12434 = vmatmul.msk.f32.gmra.mxu3 %vm250_vm2, %v17466_v59 }
 0x978   : > { %v9177_v27 = vpop.f32.mrf.mxu2 }
 0x979   : > { %8495 = vst.msk [vmem:[#allocation2 + $0x2a8] sm:$0xff] %vm250_vm2, %v8463_v14  ;;  %v17685_v48 = vadd.f32 %v9177_v27, %v8932_v3  ;;  %v8935_v3 = vadd.f32 %v8934_v31, %v17530_v24  ;;  %v17712_v31 = vld [vmem:[#allocation2 + $0x235] sm:$0xff] }
 0x97a   : > { %v8356_v43 = vpop.f32.mrf.mxu3 }
 0x97b   : > { %12460 = vmatmul.msk.f32.gmra.mxu0 %vm250_vm2, %v17168_v51  ;;  %v8398_v12 = vadd.f32 %v8356_v43, %v17316_v56 }
 0x97c   : > { %v8943_v63 = vpop.f32.mrf.mxu1 }
 0x97d   : > { %v8432_v1 = vadd.f32 %v17081_v4, %v8398_v12 }
 0x97e   : > { %12417 = vmatmul.msk.f32.gmra.mxu2 %vm250_vm2, %v17694_v17  ;;  %v17700_v14 = vpop.f32.mrf.mxu0 }
 0x97f   : > { %12386 = vmatmul.msk.f32.gmra.mxu1 %vm250_vm2, %v17689_v52  ;;  %v8464_v51 = vmax.f32 %v8432_v1, 0.0  ;;  %12435 = vmatmul.msk.f32.gmra.mxu3 %vm250_vm2, %v17489_v8  ;;  %v8938_v1 = vadd.f32 %v8937_v62, %v17557_v42  ;;  %v17730_v42 = vld [vmem:[#allocation2 + $0x24d] sm:$0xff] }
 0x980   : > { %v9180_v27 = vpop.f32.mrf.mxu2 }
 0x981   : > { %8496 = vst.msk [vmem:[#allocation2 + $0x2b0] sm:$0xff] %vm250_vm2, %v8464_v51  ;;  %v17705_v43 = vadd.f32 %v9180_v27, %v8935_v3 }
 0x982   : > { %v8359_v12 = vpop.f32.mrf.mxu3 }
 0x983   : > { %12461 = vmatmul.msk.f32.gmra.mxu0 %vm250_vm2, %v17192_v36  ;;  %v8399_v17 = vadd.f32 %v8359_v12, %v17342_v45  ;;  %v8941_v12 = vadd.f32 %v8940_v20, %v17578_v37  ;;  %v17748_v37 = vld [vmem:[#allocation2 + $0x255] sm:$0xff] }
 0x984   : > { %v8946_v56 = vpop.f32.mrf.mxu1 }
 0x985   : > { %v8433_v24 = vadd.f32 %v17081_v4, %v8399_v17 }
 0x986   : > { %12418 = vmatmul.msk.f32.gmra.mxu2 %vm250_vm2, %v17712_v31 }
 0x987   : > { %12491 = vmatmul.msk.f32.vlgmr.msra.gmra.mxu1 %vm250_vm2, %v17277_v16  ;;  %v17718_v3 = vpop.f32.mrf.mxu0  ;;  %v8465_v51 = vmax.f32 %v8433_v24, 0.0  ;;  %12436 = vmatmul.msk.f32.gmra.mxu3 %vm250_vm2, %v17519_v35 }
 0x988   : > { %v9183_v36 = vpop.f32.mrf.mxu2 }
 0x989   : > { %8497 = vst.msk [vmem:[#allocation2 + $0x2c8] sm:$0xff] %vm250_vm2, %v8465_v51  ;;  %v17723_v16 = vadd.f32 %v9183_v36, %v8938_v1 }
 0x98a   : > { %v8362_v17 = vpop.f32.mrf.mxu3 }
 0x98b   : > { %12462 = vmatmul.msk.f32.gmra.mxu0 %vm250_vm2, %v17215_v2  ;;  %v8400_v27 = vadd.f32 %v8362_v17, %v17368_v6  ;;  %v8944_v17 = vadd.f32 %v8943_v63, %v17599_v61  ;;  %v8899_v61 = vadd.f32 %v17339_v19, %v17177_v47  ;;  %v12722_v63 = vld [vmem:[%s18821_s4 + $0x4] ss:$0 sm:$0xff] }
 0x98c   : > { %v8949_v45 = vpop.f32.mrf.mxu1 }
 0x98d   : > { %v8434_v62 = vadd.f32 %v17081_v4, %v8400_v27  ;;  %v9240_v47 = vadd.f32 %v17434_v21, %v8899_v61  ;;  %v8950_v21 = vadd.f32 %v8949_v45, %v17640_v40 }
 0x98e   : > { %12419 = vmatmul.msk.f32.gmra.mxu2 %vm250_vm2, %v17730_v42 }
 0x98f   : > { %12492 = vmatmul.msk.f32.gmra.mxu1 %vm250_vm2, %v17303_v7  ;;  %v17736_v24 = vpop.f32.mrf.mxu0  ;;  %v8466_v1 = vmax.f32 %v8434_v62, 0.0  ;;  %12437 = vmatmul.msk.f32.gmra.mxu3 %vm250_vm2, %v17546_v50 }
 0x990   : > { %v9186_v2 = vpop.f32.mrf.mxu2 }
 0x991   : > { %8498 = vst.msk [vmem:[#allocation2 + $0x2d0] sm:$0xff] %vm250_vm2, %v8466_v1  ;;  %v17741_v7 = vadd.f32 %v9186_v2, %v8941_v12  ;;  %v8947_v2 = vadd.f32 %v8946_v56, %v17620_v0  ;;  %v8902_v0 = vadd.f32 %v17365_v32, %v17206_v54 }
 0x992   : > { %v8365_v51 = vpop.f32.mrf.mxu3 }
 0x993   : > { %12463 = vmatmul.msk.f32.gmra.mxu0 %vm250_vm2, %v17238_v38  ;;  %v8401_v36 = vadd.f32 %v8365_v51, %v17393_v39 }
 0x994   : > { %v8952_v6 = vpop.f32.mrf.mxu1 }
 0x995   : > { %v8435_v20 = vadd.f32 %v17081_v4, %v8401_v36 }
 0x996   : > { %12420 = vmatmul.msk.f32.gmra.mxu2 %vm250_vm2, %v17748_v37 }
 0x997   : > { %12493 = vmatmul.msk.f32.gmra.mxu1 %vm250_vm2, %v17329_v46  ;;  %v17754_v27 = vpop.f32.mrf.mxu0  ;;  %v8467_v62 = vmax.f32 %v8435_v20, 0.0  ;;  %12438 = vmatmul.msk.f32.gmra.mxu3 %vm250_vm2, %v17568_v29 }
 0x998   : > { %v9189_v38 = vpop.f32.mrf.mxu2 }
 0x999   : > { %8499 = vst.msk [vmem:[#allocation2 + $0x2e8] sm:$0xff] %vm250_vm2, %v8467_v62  ;;  %v17759_v46 = vadd.f32 %v9189_v38, %v8944_v17  ;;  %v9241_v17 = vadd.f32 %v17457_v33, %v8902_v0 }
 0x99a   : > { %v8368_v4 = vpop.f32.mrf.mxu3 }
 0x99b   : > { %12464 = vmatmul.msk.f32.gmra.mxu0 %vm250_vm2, %v17261_v30  ;;  %v8402_v12 = vadd.f32 %v8368_v4, %v17416_v18 }
 0x99c   : > { %v8955_v39 = vpop.f32.mrf.mxu1 }
 0x99d   : > { %v8436_v1 = vadd.f32 %v12722_v63, %v8402_v12  ;;  %v8956_v12 = vadd.f32 %v8955_v39, %v17680_v41  ;;  %v19462_v41 = vld [vmem:[#allocation95_spill] sm:$0xff] }
 0x99e   : > { %12525 = vmatmul.msk.f32.vlgmr.msrb.gmra.mxu2 %vm250_vm2, %v17443_v28  ;;  %v19463_v39 = vld [vmem:[#allocation135_spill] sm:$0xff] }
 0x99f   : > { %12494 = vmatmul.msk.f32.gmra.mxu1 %vm250_vm2, %v17353_v49  ;;  %v17774_v30 = vpop.f32.mrf.mxu0  ;;  %v8468_v51 = vmax.f32 %v8436_v1, 0.0  ;;  %12439 = vmatmul.msk.f32.gmra.mxu3 %vm250_vm2, %v17589_v9  ;;  %v19459_v1 = vld [vmem:[#allocation121_spill] sm:$0xff]  ;;  %v8911_v0 = vadd.f32 %v19463_v39, %v19462_v41 }
 0x9a0   : > { %v9192_v49 = vpop.f32.mrf.mxu2 }
 0x9a1   : > { %8500 = vst.msk [vmem:[#allocation2 + $0x2f0] sm:$0xff] %vm250_vm2, %v8468_v51  ;;  %v17780_v19 = vadd.f32 %v9192_v49, %v8947_v2  ;;  %v19460_v49 = vld [vmem:[#allocation115_spill] sm:$0xff] }
 0x9a2   : > { %v9422_v28 = vpop.f32.mrf.mxu3 }
 0x9a3   : > { %12465 = vmatmul.msk.f32.gmra.mxu0 %vm250_vm2, %v17285_v57  ;;  %v17784_v36 = vadd.f32 %v9422_v28, %v9240_v47 }
 0x9a4   : > { %v8958_v18 = vpop.f32.mrf.mxu1 }
 0x9a6   : > { %12526 = vmatmul.msk.f32.gmra.mxu2 %vm250_vm2, %v17466_v59  ;;  %v8953_v59 = vadd.f32 %v8952_v6, %v17660_v60  ;;  %v19457_v60 = vld [vmem:[#allocation103_spill] sm:$0xff]  ;;  %v19458_v6 = vld [vmem:[#allocation104_spill] sm:$0xff] }
 0x9a7   : > { %12495 = vmatmul.msk.f32.gmra.mxu1 %vm250_vm2, %v17379_v44  ;;  %v17793_v56 = vpop.f32.mrf.mxu0  ;;  %12440 = vmatmul.msk.f32.gmra.mxu3 %vm250_vm2, %v17610_v58  ;;  %v8905_v44 = vadd.f32 %v17390_v13, %v17234_v15  ;;  %v8908_v4 = vadd.f32 %v19458_v6, %v19457_v60 }
 0x9a8   : > { %v9195_v57 = vpop.f32.mrf.mxu2 }
 0x9a9   : > { %v17798_v62 = vadd.f32 %v9195_v57, %v8950_v21  ;;  %v9242_v45 = vadd.f32 %v17480_v11, %v8905_v44  ;;  %v9243_v2 = vadd.f32 %v19459_v1, %v8908_v4  ;;  %v8959_v21 = vadd.f32 %v8958_v18, %v17700_v14  ;;  %v19464_v44 = vld [vmem:[#allocation86_spill] sm:$0xff]  ;;  %v19467_v18 = vld [vmem:[#allocation173_spill] sm:$0xff] }
 0x9aa   : > { %v9425_v54 = vpop.f32.mrf.mxu3  ;;  %v12625_v14 = vld [vmem:[%s18822_s5 + $0x4] sm:$0x3]  ;;  %v19469_v1 = vld [vmem:[#allocation185_spill] sm:$0xff] }
 0x9ab   : > { %12466 = vmatmul.msk.f32.gmra.mxu0 %vm250_vm2, %v17311_v55  ;;  %v17802_v32 = vadd.f32 %v9425_v54, %v9241_v17  ;;  %12626 = vmatpush.msk.msrb.mxu1 %vm789_vm1, %v12625_v14  ;;  %v19475_v14 = vld [vmem:[#allocation181_spill] sm:$0xff] }
 0x9ac   : > { %v8961_v20 = vpop.f32.mrf.mxu1 }
 0x9ad   : > { %v8962_v6 = vadd.f32 %v8961_v20, %v17718_v3  ;;  %v19472_v3 = vld [vmem:[#allocation73_spill] sm:$0xff]  ;;  %v19473_v20 = vld [vmem:[#allocation79_spill] sm:$0xff] }
 0x9ae   : > { %12527 = vmatmul.msk.f32.gmra.mxu2 %vm250_vm2, %v17489_v8  ;;  %v19456_v8 = vld [vmem:[#allocation78_spill] sm:$0xff]  ;;  %v8917_v39 = vadd.f32 %v19473_v20, %v19472_v3 }
 0x9af   : > { %12496 = vmatmul.msk.f32.gmra.mxu1 %vm250_vm2, %v17404_v10  ;;  %v17811_v33 = vpop.f32.mrf.mxu0  ;;  %12441 = vmatmul.msk.f32.gmra.mxu3 %vm250_vm2, %v17629_v53  ;;  %v19455_v10 = vld [vmem:[#allocation114_spill] sm:$0xff] }
 0x9b0   : > { %v9198_v55 = vpop.f32.mrf.mxu2  ;;  %v19480_v3 = vld [vmem:[#allocation182_spill] sm:$0xff] }
 0x9b1   : > { %v17816_v38 = vadd.f32 %v9198_v55, %v8953_v59  ;;  %v9244_v59 = vadd.f32 %v19464_v44, %v8911_v0 }
 0x9b2   : > { %v9428_v15 = vpop.f32.mrf.mxu3 }
 0x9b3   : > { %12467 = vmatmul.msk.f32.gmra.mxu0 %vm250_vm2, %v19455_v10  ;;  %v17820_v13 = vadd.f32 %v9428_v15, %v9242_v45  ;;  %v19465_v45 = vld [vmem:[#allocation178_spill] sm:$0xff] }
 0x9b4   : > { %v8964_v40 = vpop.f32.mrf.mxu1 }
 0x9b5   : > { %v8965_v0 = vadd.f32 %v8964_v40, %v17736_v24  ;;  %v19476_v24 = vld [vmem:[#allocation158_spill] sm:$0xff]  ;;  %v19477_v40 = vld [vmem:[#allocation111_spill] sm:$0xff] }
 0x9b6   : > { %12528 = vmatmul.msk.f32.gmra.mxu2 %vm250_vm2, %v17519_v35  ;;  %v19461_v35 = vld [vmem:[#allocation112_spill] sm:$0xff] }
 0x9b7   : > { %12497 = vmatmul.msk.f32.gmra.mxu1 %vm250_vm2, %v19456_v8  ;;  %v17829_v11 = vpop.f32.mrf.mxu0  ;;  %12442 = vmatmul.msk.f32.gmra.mxu3 %vm250_vm2, %v17649_v34  ;;  %v19468_v8 = vld [vmem:[#allocation136_spill] sm:$0xff] }
 0x9b8   : > { %v9201_v61 = vpop.f32.mrf.mxu2  ;;  %v8914_v60 = vadd.f32 %v19468_v8, %v19467_v18  ;;  %v19478_v8 = vld [vmem:[#allocation116_spill] sm:$0xff] }
 0x9b9   : > { %v17834_v51 = vadd.f32 %v9201_v61, %v8956_v12 }
 0x9ba   : > { %v9431_v47 = vpop.f32.mrf.mxu3 }
 0x9bb   : > { %12468 = vmatmul.msk.f32.gmra.mxu0 %vm250_vm2, %v19460_v49  ;;  %v17838_v28 = vadd.f32 %v9431_v47, %v9243_v2  ;;  %v9245_v2 = vadd.f32 %v19469_v1, %v8914_v60  ;;  %v19470_v47 = vld [vmem:[#allocation123_spill] sm:$0xff]  ;;  %v8920_v60 = vadd.f32 %v19478_v8, %v19477_v40 }
 0x9bc   : > { %v8967_v63 = vpop.f32.mrf.mxu1  ;;  %v17909_v1 = vld [vmem:[#allocation2 + $0x26b] sm:$0xff] }
 0x9be   : > { %12529 = vmatmul.msk.f32.gmra.mxu2 %vm250_vm2, %v17546_v50  ;;  %v19466_v50 = vld [vmem:[#allocation106_spill] sm:$0xff] }
 0x9bf   : > { %12498 = vmatmul.msk.f32.gmra.mxu1 %vm250_vm2, %v19461_v35  ;;  %12443 = vmatmul.msk.f32.gmra.mxu3 %vm250_vm2, %v17669_v23 }
 0x9c0   : > { %v17847_v57 = vpop.f32.mrf.mxu0  ;;  %v9204_v17 = vpop.f32.mrf.mxu2 }
 0x9c1   : > { %v17852_v55 = vadd.f32 %v9204_v17, %v8959_v21  ;;  %v17889_v17 = vld [vmem:[#allocation2 + $0x263] sm:$0xff] }
 0x9c2   : > { %v9434_v10 = vpop.f32.mrf.mxu3 }
 0x9c3   : > { %12469 = vmatmul.msk.f32.gmra.mxu0 %vm250_vm2, %v19465_v45  ;;  %v17856_v15 = vadd.f32 %v9434_v10, %v9244_v59  ;;  %v19474_v45 = vld [vmem:[#allocation132_spill] sm:$0xff] }
 0x9c4   : > { %v8970_v54 = vpop.f32.mrf.mxu1  ;;  %v9246_v10 = vadd.f32 %v19474_v45, %v8917_v39 }
 0x9c5   : > { %v8971_v45 = vadd.f32 %v8970_v54, %v17774_v30 }
 0x9c6   : > { %12530 = vmatmul.msk.f32.gmra.mxu2 %vm250_vm2, %v17568_v29  ;;  %v19471_v29 = vld [vmem:[#allocation147_spill] sm:$0xff] }
 0x9c7   : > { %12499 = vmatmul.msk.f32.gmra.mxu1 %vm250_vm2, %v19466_v50  ;;  %12444 = vmatmul.msk.f32.gmra.mxu3 %vm250_vm2, %v17689_v52 }
 0x9c8   : > { %v17869_v4 = vpop.f32.mrf.mxu0 }
 0x9c9   : > { %v9207_v12 = vpop.f32.mrf.mxu2 }
 0x9ca   : > { %v17874_v49 = vadd.f32 %v9207_v12, %v8962_v6  ;;  %v9437_v35 = vpop.f32.mrf.mxu3  ;;  %v8968_v6 = vadd.f32 %v8967_v63, %v17754_v27  ;;  %v19481_v27 = vld [vmem:[#allocation118_spill] sm:$0xff]  ;;  %v19482_v63 = vld [vmem:[#allocation124_spill] sm:$0xff] }
 0x9cb   : > { %12470 = vmatmul.msk.f32.gmra.mxu0 %vm250_vm2, %v19470_v47  ;;  %v17878_v41 = vadd.f32 %v9437_v35, %v9245_v2  ;;  %v19479_v47 = vld [vmem:[#allocation109_spill] sm:$0xff] }
 0x9cc   : > { %v8973_v61 = vpop.f32.mrf.mxu1  ;;  %v9247_v35 = vadd.f32 %v19479_v47, %v8920_v60  ;;  %v19485_v60 = vld [vmem:[#allocation146_spill] sm:$0xff] }
 0x9cd   : > { %v8974_v54 = vadd.f32 %v8973_v61, %v17793_v56 }
 0x9ce   : > { %12531 = vmatmul.msk.f32.gmra.mxu2 %vm250_vm2, %v17589_v9 }
 0x9cf   : > { %12500 = vmatmul.msk.f32.gmra.mxu1 %vm250_vm2, %v19471_v29  ;;  %12445 = vmatmul.msk.f32.gmra.mxu3 %vm250_vm2, %v17889_v17 }
 0x9d0   : > { %v17887_v21 = vpop.f32.mrf.mxu0 }
 0x9d1   : > { %v9210_v44 = vpop.f32.mrf.mxu2 }
 0x9d2   : > { %v17894_v50 = vadd.f32 %v9210_v44, %v8965_v0  ;;  %v9440_v18 = vpop.f32.mrf.mxu3  ;;  %v19483_v0 = vld [vmem:[#allocation169_spill] sm:$0xff] }
 0x9d3   : > { %12471 = vmatmul.msk.f32.gmra.mxu0 %vm250_vm2, %v19475_v14  ;;  %v17898_v9 = vadd.f32 %v9440_v18, %v9246_v10  ;;  %v8923_v44 = vadd.f32 %v19483_v0, %v19482_v63  ;;  %v17929_v14 = vld [vmem:[#allocation2 + $0x283] sm:$0xff] }
 0x9d4   : > { %v8976_v59 = vpop.f32.mrf.mxu1 }
 0x9d5   : > { %v8977_v56 = vadd.f32 %v8976_v59, %v17811_v33 }
 0x9d6   : > { %12532 = vmatmul.msk.f32.gmra.mxu2 %vm250_vm2, %v17610_v58 }
 0x9d7   : > { %12501 = vmatmul.msk.f32.gmra.mxu1 %vm250_vm2, %v19476_v24  ;;  %12446 = vmatmul.msk.f32.gmra.mxu3 %vm250_vm2, %v17909_v1  ;;  %v19484_v24 = vld [vmem:[#allocation133_spill] sm:$0xff] }
 0x9d8   : > { %v17907_v12 = vpop.f32.mrf.mxu0  ;;  %v9248_v40 = vadd.f32 %v19484_v24, %v8923_v44  ;;  %v17965_v44 = vld [vmem:[#allocation2 + $0x2a3] sm:$0xff] }
 0x9d9   : > { %v9213_v2 = vpop.f32.mrf.mxu2 }
 0x9da   : > { %v17914_v29 = vadd.f32 %v9213_v2, %v8968_v6  ;;  %v9443_v20 = vpop.f32.mrf.mxu3 }
 0x9db   : > { %12472 = vmatmul.msk.f32.gmra.mxu0 %vm250_vm2, %v19480_v3  ;;  %v17918_v58 = vadd.f32 %v9443_v20, %v9247_v35  ;;  %v17947_v35 = vld [vmem:[#allocation2 + $0x28b] sm:$0xff] }
 0x9dc   : > { %v8979_v39 = vpop.f32.mrf.mxu1 }
 0x9dd   : > { %v8980_v33 = vadd.f32 %v8979_v39, %v17829_v11  ;;  %v18001_v39 = vld [vmem:[#allocation2 + $0x2c3] sm:$0xff] }
 0x9de   : > { %12533 = vmatmul.msk.f32.gmra.mxu2 %vm250_vm2, %v17629_v53  ;;  %v19486_v53 = vld [vmem:[#allocation144_spill] sm:$0xff] }
 0x9df   : > { %12502 = vmatmul.msk.f32.gmra.mxu1 %vm250_vm2, %v19481_v27  ;;  %12447 = vmatmul.msk.f32.gmra.mxu3 %vm250_vm2, %v17929_v14  ;;  %v19487_v27 = vld [vmem:[#allocation157_spill] sm:$0xff] }
 0x9e0   : > { %v17927_v10 = vpop.f32.mrf.mxu0 }
 0x9e1   : > { %v9216_v18 = vpop.f32.mrf.mxu2 }
 0x9e2   : > { %v17934_v8 = vadd.f32 %v9216_v18, %v8971_v45  ;;  %v9446_v6 = vpop.f32.mrf.mxu3 }
 0x9e3   : > { %12473 = vmatmul.msk.f32.gmra.mxu0 %vm250_vm2, %v19485_v60  ;;  %v17938_v2 = vadd.f32 %v9446_v6, %v9248_v40  ;;  %v17983_v6 = vld [vmem:[#allocation2 + $0x2ab] sm:$0xff] }
 0x9e4   : > { %v8982_v30 = vpop.f32.mrf.mxu1 }
 0x9e6   : > { %12534 = vmatmul.msk.f32.gmra.mxu2 %vm250_vm2, %v17649_v34  ;;  %v19488_v34 = vld [vmem:[#allocation125_spill] sm:$0xff] }
 0x9e7   : > { %12503 = vmatmul.msk.f32.gmra.mxu1 %vm250_vm2, %v19486_v53  ;;  %12448 = vmatmul.msk.f32.gmra.mxu3 %vm250_vm2, %v17947_v35 }
 0x9e8   : > { %v17945_v47 = vpop.f32.mrf.mxu0 }
 0x9e9   : > { %v9219_v3 = vpop.f32.mrf.mxu2 }
 0x9ea   : > { %v17951_v20 = vadd.f32 %v9219_v3, %v8974_v54  ;;  %v9449_v63 = vpop.f32.mrf.mxu3 }
 0x9eb   : > { %12474 = vmatmul.msk.f32.gmra.mxu0 %vm250_vm2, %v19487_v27  ;;  %v17956_v0 = vadd.f32 %v9449_v63, %v17645_v26  ;;  %v19489_v26 = vld [vmem:[#allocation168_spill] sm:$0xff] }
 0x9ec   : > { %v8985_v45 = vpop.f32.mrf.mxu1 }
 0x9ee   : > { %12535 = vmatmul.msk.f32.gmra.mxu2 %vm250_vm2, %v17669_v23  ;;  %v19490_v23 = vld [vmem:[#allocation155_spill] sm:$0xff] }
 0x9ef   : > { %12504 = vmatmul.msk.f32.gmra.mxu1 %vm250_vm2, %v19488_v34  ;;  %12449 = vmatmul.msk.f32.gmra.mxu3 %vm250_vm2, %v17965_v44 }
 0x9f0   : > { %v17963_v61 = vpop.f32.mrf.mxu0 }
 0x9f1   : > { %v9222_v18 = vpop.f32.mrf.mxu2 }
 0x9f2   : > { %v17969_v24 = vadd.f32 %v9222_v18, %v8977_v56  ;;  %v9452_v40 = vpop.f32.mrf.mxu3 }
 0x9f3   : > { %12475 = vmatmul.msk.f32.gmra.mxu0 %vm250_vm2, %v19489_v26  ;;  %v17974_v60 = vadd.f32 %v9452_v40, %v17665_v22  ;;  %v19491_v22 = vld [vmem:[#allocation87_spill] sm:$0xff] }
 0x9f4   : > { %v8988_v54 = vpop.f32.mrf.mxu1  ;;  %v18019_v40 = vld [vmem:[#allocation2 + $0x2cb] sm:$0xff] }
 0x9f6   : > { %12536 = vmatmul.msk.f32.gmra.mxu2 %vm250_vm2, %v17689_v52  ;;  %v8983_v52 = vadd.f32 %v8982_v30, %v17847_v57  ;;  %v8986_v57 = vadd.f32 %v8985_v45, %v17869_v4 }
 0x9f7   : > { %12505 = vmatmul.msk.f32.gmra.mxu1 %vm250_vm2, %v19490_v23  ;;  %12450 = vmatmul.msk.f32.gmra.mxu3 %vm250_vm2, %v17983_v6 }
 0x9f8   : > { %v17981_v59 = vpop.f32.mrf.mxu0 }
 0x9f9   : > { %v9225_v53 = vpop.f32.mrf.mxu2 }
 0x9fa   : > { %v17987_v3 = vadd.f32 %v9225_v53, %v8980_v33  ;;  %v9455_v27 = vpop.f32.mrf.mxu3 }
 0x9fb   : > { %12476 = vmatmul.msk.f32.gmra.mxu0 %vm250_vm2, %v19491_v22  ;;  %v17992_v63 = vadd.f32 %v9455_v27, %v17685_v48  ;;  %v19492_v48 = vld [vmem:[#allocation139_spill] sm:$0xff] }
 0x9fc   : > { %v18037_v27 = vld [vmem:[#allocation2 + $0x2e3] sm:$0xff] }
 0x9fe   : > { %12537 = vmatmul.msk.f32.gmra.mxu2 %vm250_vm2, %v17889_v17  ;;  %v19493_v17 = vld [vmem:[#allocation148_spill] sm:$0xff] }
 0x9ff   : > { %12506 = vmatmul.msk.f32.gmra.mxu1 %vm250_vm2, %v17634_v5  ;;  %12451 = vmatmul.msk.f32.gmra.mxu3 %vm250_vm2, %v18001_v39  ;;  %v8991_v5 = vpop.f32.mrf.mxu1 }
 0xa00   : > { %v17999_v11 = vpop.f32.mrf.mxu0 }
 0xa01   : > { %v9228_v34 = vpop.f32.mrf.mxu2 }
 0xa02   : > { %v18005_v56 = vadd.f32 %v9228_v34, %v8983_v52  ;;  %v9458_v18 = vpop.f32.mrf.mxu3  ;;  %v18041_v34 = vld [vmem:[#allocation2 + $0x268] sm:$0xff] }
 0xa03   : > { %12477 = vmatmul.msk.f32.gmra.mxu0 %vm250_vm2, %v19492_v48  ;;  %v18010_v26 = vadd.f32 %v9458_v18, %v17705_v43  ;;  %v19494_v43 = vld [vmem:[#allocation94_spill] sm:$0xff]  ;;  %v18057_v18 = vld [vmem:[#allocation2 + $0x2eb] sm:$0xff] }
 0xa06   : > { %12538 = vmatmul.msk.f32.gmra.mxu2 %vm250_vm2, %v17909_v1  ;;  %v8989_v1 = vadd.f32 %v8988_v54, %v17887_v21  ;;  %v19495_v21 = vld [vmem:[#allocation127_spill] sm:$0xff]  ;;  %v8992_v54 = vadd.f32 %v8991_v5, %v17907_v12  ;;  %v9796_v12 = vadd.f32 %v17927_v10, %v17784_v36 }
 0xa07   : > { %12507 = vmatmul.msk.f32.gmra.mxu1 %vm250_vm2, %v19493_v17  ;;  %12452 = vmatmul.msk.f32.gmra.mxu3 %vm250_vm2, %v18019_v40  ;;  %v9978_v4 = vpop.f32.mrf.mxu1 }
 0xa08   : > { %v18017_v30 = vpop.f32.mrf.mxu0  ;;  %v10074_v5 = vadd.f32 %v9978_v4, %v9796_v12 }
 0xa09   : > { %v9231_v23 = vpop.f32.mrf.mxu2 }
 0xa0a   : > { %v18023_v33 = vadd.f32 %v9231_v23, %v8986_v57  ;;  %v9461_v53 = vpop.f32.mrf.mxu3  ;;  %v18061_v23 = vld [vmem:[#allocation2 + $0x270] sm:$0xff] }
 0xa0b   : > { %12478 = vmatmul.msk.f32.gmra.mxu0 %vm250_vm2, %v19494_v43  ;;  %v18028_v22 = vadd.f32 %v9461_v53, %v17723_v16 }
 0xa0e   : > { %12539 = vmatmul.msk.f32.gmra.mxu2 %vm250_vm2, %v17929_v14 }
 0xa0f   : > { %12508 = vmatmul.msk.f32.gmra.mxu1 %vm250_vm2, %v17674_v25  ;;  %12453 = vmatmul.msk.f32.gmra.mxu3 %vm250_vm2, %v18037_v27  ;;  %v9981_v17 = vpop.f32.mrf.mxu1 }
 0xa10   : > { %v18035_v45 = vpop.f32.mrf.mxu0 }
 0xa11   : > { %v9234_v52 = vpop.f32.mrf.mxu2 }
 0xa12   : > { %v18043_v16 = vadd.f32 %v9234_v52, %v8989_v1  ;;  %v9464_v25 = vpop.f32.mrf.mxu3  ;;  %v10385_v1 = vld [vmem:[#allocation2 + $0x1a8] sm:$0xff] }
 0xa13   : > { %12479 = vmatmul.msk.f32.gmra.mxu0 %vm250_vm2, %v18041_v34  ;;  %v18048_v14 = vadd.f32 %v9464_v25, %v17741_v7  ;;  %v18079_v25 = vld [vmem:[#allocation2 + $0x288] sm:$0xff] }
 0xa16   : > { %12540 = vmatmul.msk.f32.gmra.mxu2 %vm250_vm2, %v17947_v35 }
 0xa17   : > { %12509 = vmatmul.msk.f32.gmra.mxu1 %vm250_vm2, %v19495_v21  ;;  %12454 = vmatmul.msk.f32.gmra.mxu3 %vm250_vm2, %v18057_v18  ;;  %v9984_v21 = vpop.f32.mrf.mxu1 }
 0xa18   : > { %v18055_v48 = vpop.f32.mrf.mxu0 }
 0xa19   : > { %v9237_v57 = vpop.f32.mrf.mxu2 }
 0xa1a   : > { %v18063_v7 = vadd.f32 %v9237_v57, %v8992_v54  ;;  %v9467_v43 = vpop.f32.mrf.mxu3  ;;  %v10386_v54 = vld [vmem:[#allocation2 + $0x1b0] sm:$0xff] }
 0xa1b   : > { %12480 = vmatmul.msk.f32.gmra.mxu0 %vm250_vm2, %v18061_v23  ;;  %v18070_v35 = vadd.f32 %v9467_v43, %v17759_v46  ;;  %v18097_v43 = vld [vmem:[#allocation2 + $0x290] sm:$0xff] }
 0xa1e   : > { %12541 = vmatmul.msk.f32.gmra.mxu2 %vm250_vm2, %v17965_v44 }
 0xa1f   : > { %12510 = vmatmul.msk.f32.gmra.mxu1 %vm250_vm2, %v17712_v31  ;;  %12559 = vmatmul.msk.f32.vlgmr.msrb.gmra.mxu3 %vm250_vm2, %v10385_v1  ;;  %v9797_v31 = vadd.f32 %v17945_v47, %v17802_v32  ;;  %v9987_v32 = vpop.f32.mrf.mxu1 }
 0xa20   : > { %v18076_v53 = vpop.f32.mrf.mxu0 }
 0xa21   : > { %v10257_v52 = vpop.f32.mrf.mxu2  ;;  %v10075_v44 = vadd.f32 %v9981_v17, %v9797_v31 }
 0xa22   : > { %v18081_v36 = vadd.f32 %v10257_v52, %v10074_v5  ;;  %v9470_v46 = vpop.f32.mrf.mxu3  ;;  %v10387_v5 = vld [vmem:[#allocation2 + $0x1c8] sm:$0xff] }
 0xa23   : > { %12481 = vmatmul.msk.f32.gmra.mxu0 %vm250_vm2, %v18079_v25  ;;  %v18088_v10 = vadd.f32 %v9470_v46, %v17780_v19  ;;  %v18115_v52 = vld [vmem:[#allocation2 + $0x2a8] sm:$0xff] }
 0xa26   : > { %12542 = vmatmul.msk.f32.gmra.mxu2 %vm250_vm2, %v17983_v6 }
 0xa27   : > { %12511 = vmatmul.msk.f32.gmra.mxu1 %vm250_vm2, %v17730_v42  ;;  %12560 = vmatmul.msk.f32.gmra.mxu3 %vm250_vm2, %v10386_v54  ;;  %v9798_v42 = vadd.f32 %v17963_v61, %v17820_v13  ;;  %v18121_v13 = vld [vmem:[#allocation2 + $0x26d] sm:$0xff] }
 0xa28   : > { %v18094_v4 = vpop.f32.mrf.mxu0 }
 0xa29   : > { %v10260_v57 = vpop.f32.mrf.mxu2  ;;  %v10076_v6 = vadd.f32 %v9984_v21, %v9798_v42 }
 0xa2a   : > { %v18099_v12 = vadd.f32 %v10260_v57, %v10075_v44  ;;  %v9473_v19 = vpop.f32.mrf.mxu3  ;;  %v10388_v44 = vld [vmem:[#allocation2 + $0x1d0] sm:$0xff] }
 0xa2b   : > { %12482 = vmatmul.msk.f32.gmra.mxu0 %vm250_vm2, %v18097_v43  ;;  %v18106_v47 = vadd.f32 %v9473_v19, %v17798_v62  ;;  %v18135_v57 = vld [vmem:[#allocation2 + $0x2b0] sm:$0xff] }
 0xa2e   : > { %12543 = vmatmul.msk.f32.gmra.mxu2 %vm250_vm2, %v18001_v39  ;;  %v9990_v39 = vpop.f32.mrf.mxu1 }
 0xa2f   : > { %12512 = vmatmul.msk.f32.gmra.mxu1 %vm250_vm2, %v17748_v37  ;;  %12561 = vmatmul.msk.f32.gmra.mxu3 %vm250_vm2, %v10387_v5  ;;  %v9799_v37 = vadd.f32 %v17981_v59, %v17838_v28  ;;  %v18141_v59 = vld [vmem:[#allocation2 + $0x275] sm:$0xff] }
 0xa30   : > { %v18112_v17 = vpop.f32.mrf.mxu0 }
 0xa31   : > { %v10263_v1 = vpop.f32.mrf.mxu2  ;;  %v10077_v21 = vadd.f32 %v9987_v32, %v9799_v37 }
 0xa32   : > { %v18117_v46 = vadd.f32 %v10263_v1, %v10076_v6  ;;  %v9476_v62 = vpop.f32.mrf.mxu3  ;;  %v10389_v6 = vld [vmem:[#allocation2 + $0x1e8] sm:$0xff] }
 0xa33   : > { %12483 = vmatmul.msk.f32.gmra.mxu0 %vm250_vm2, %v18115_v52  ;;  %v18126_v61 = vadd.f32 %v9476_v62, %v17816_v38  ;;  %v18155_v62 = vld [vmem:[#allocation2 + $0x2c8] sm:$0xff] }
 0xa36   : > { %12544 = vmatmul.msk.f32.gmra.mxu2 %vm250_vm2, %v18019_v40  ;;  %v9800_v40 = vadd.f32 %v17999_v11, %v17856_v15  ;;  %v9993_v5 = vpop.f32.mrf.mxu1  ;;  %v18161_v11 = vld [vmem:[#allocation2 + $0x28d] sm:$0xff] }
 0xa37   : > { %12513 = vmatmul.msk.f32.gmra.mxu1 %vm250_vm2, %v18121_v13  ;;  %12562 = vmatmul.msk.f32.gmra.mxu3 %vm250_vm2, %v10388_v44  ;;  %v10390_v44 = vld [vmem:[#allocation2 + $0x1f0] sm:$0xff] }
 0xa38   : > { %v18132_v31 = vpop.f32.mrf.mxu0  ;;  %v10078_v32 = vadd.f32 %v9990_v39, %v9800_v40 }
 0xa39   : > { %v10266_v54 = vpop.f32.mrf.mxu2 }
 0xa3a   : > { %v18137_v28 = vadd.f32 %v10266_v54, %v10077_v21  ;;  %v9479_v38 = vpop.f32.mrf.mxu3 }
 0xa3b   : > { %12484 = vmatmul.msk.f32.gmra.mxu0 %vm250_vm2, %v18135_v57  ;;  %v18146_v19 = vadd.f32 %v9479_v38, %v17834_v51  ;;  %v18175_v38 = vld [vmem:[#allocation2 + $0x2d0] sm:$0xff] }
 0xa3d   : > { %19496 = vst [vmem:[#allocation117_spill] sm:$0xff] %v18146_v19  ;;  %v18257_v19 = vld [vmem:[#allocation2 + $0x2ed] sm:$0xff] }
 0xa3e   : > { %12545 = vmatmul.msk.f32.gmra.mxu2 %vm250_vm2, %v18037_v27  ;;  %v9801_v27 = vadd.f32 %v18017_v30, %v17878_v41  ;;  %v9996_v40 = vpop.f32.mrf.mxu1  ;;  %v10129_v30 = vld [vmem:[#allocation2 + $0x303] sm:$0xff] }
 0xa3f   : > { %12514 = vmatmul.msk.f32.gmra.mxu1 %vm250_vm2, %v18141_v59  ;;  %12563 = vmatmul.msk.f32.gmra.mxu3 %vm250_vm2, %v10389_v6 }
 0xa40   : > { %v18152_v42 = vpop.f32.mrf.mxu0  ;;  %v10079_v39 = vadd.f32 %v9993_v5, %v9801_v27 }
 0xa41   : > { %v10269_v1 = vpop.f32.mrf.mxu2 }
 0xa42   : > { %v18157_v15 = vadd.f32 %v10269_v1, %v10078_v32  ;;  %v9482_v51 = vpop.f32.mrf.mxu3  ;;  %v18181_v32 = vld [vmem:[#allocation2 + $0x295] sm:$0xff] }
 0xa43   : > { %12485 = vmatmul.msk.f32.gmra.mxu0 %vm250_vm2, %v18155_v62  ;;  %v18166_v37 = vadd.f32 %v9482_v51, %v17852_v55  ;;  %v10391_v51 = vld [vmem:[#allocation2 + $0x208] sm:$0xff] }
 0xa45   : > { %19497 = vst [vmem:[#allocation96_spill] sm:$0xff] %v18166_v37  ;;  %v10134_v37 = vld [vmem:[#allocation2 + $0x34b] sm:$0xff] }
 0xa46   : > { %12546 = vmatmul.msk.f32.gmra.mxu2 %vm250_vm2, %v18057_v18  ;;  %v9802_v18 = vadd.f32 %v18035_v45, %v17898_v9  ;;  %v10130_v9 = vld [vmem:[#allocation2 + $0x30b] sm:$0xff]  ;;  %v9999_v45 = vpop.f32.mrf.mxu1 }
 0xa47   : > { %12515 = vmatmul.msk.f32.gmra.mxu1 %vm250_vm2, %v18161_v11  ;;  %12564 = vmatmul.msk.f32.gmra.mxu3 %vm250_vm2, %v10390_v44 }
 0xa48   : > { %v18172_v21 = vpop.f32.mrf.mxu0  ;;  %v10080_v5 = vadd.f32 %v9996_v40, %v9802_v18  ;;  %v9803_v40 = vadd.f32 %v18055_v48, %v17918_v58  ;;  %v10131_v58 = vld [vmem:[#allocation2 + $0x323] sm:$0xff]  ;;  %v18219_v48 = vld [vmem:[#allocation2 + $0x2b5] sm:$0xff] }
 0xa49   : > { %v10272_v54 = vpop.f32.mrf.mxu2 }
 0xa4a   : > { %v18177_v41 = vadd.f32 %v10272_v54, %v10079_v39  ;;  %v9485_v55 = vpop.f32.mrf.mxu3  ;;  %v18194_v39 = vld [vmem:[#allocation2 + $0x2e8] sm:$0xff] }
 0xa4b   : > { %12486 = vmatmul.msk.f32.gmra.mxu0 %vm250_vm2, %v18175_v38  ;;  %v18186_v6 = vadd.f32 %v9485_v55, %v17874_v49  ;;  %v18200_v54 = vld [vmem:[#allocation2 + $0x2ad] sm:$0xff] }
 0xa4d   : > { %19498 = vst [vmem:[#allocation150_spill] sm:$0xff] %v18186_v6 }
 0xa4e   : > { %12547 = vmatmul.msk.f32.gmra.mxu2 %vm250_vm2, %v10129_v30  ;;  %v10081_v30 = vadd.f32 %v9999_v45, %v9803_v40  ;;  %v10393_v45 = vld [vmem:[#allocation2 + $0x228] sm:$0xff] }
 0xa4f   : > { %12516 = vmatmul.msk.f32.gmra.mxu1 %vm250_vm2, %v18181_v32  ;;  %12565 = vmatmul.msk.f32.gmra.mxu3 %vm250_vm2, %v10391_v51  ;;  %v10663_v40 = vld [vmem:[#allocation2 + $0x1ad] sm:$0xff] }
 0xa50   : > { %v18191_v1 = vpop.f32.mrf.mxu0 }
 0xa51   : > { %v10275_v27 = vpop.f32.mrf.mxu2 }
 0xa52   : > { %v18196_v44 = vadd.f32 %v10275_v27, %v10080_v5  ;;  %v9488_v49 = vpop.f32.mrf.mxu3  ;;  %v10392_v5 = vld [vmem:[#allocation2 + $0x210] sm:$0xff] }
 0xa53   : > { %12487 = vmatmul.msk.f32.gmra.mxu0 %vm250_vm2, %v18194_v39  ;;  %v18205_v55 = vadd.f32 %v9488_v49, %v17894_v50  ;;  %v18213_v27 = vld [vmem:[#allocation2 + $0x2f0] sm:$0xff] }
 0xa55   : > { %19499 = vst [vmem:[#allocation143_spill] sm:$0xff] %v18205_v55  ;;  %v18243_v55 = vld [vmem:[#allocation2 + $0x2d5] sm:$0xff] }
 0xa56   : > { %12548 = vmatmul.msk.f32.gmra.mxu2 %vm250_vm2, %v10130_v9 }
 0xa57   : > { %12517 = vmatmul.msk.f32.gmra.mxu1 %vm250_vm2, %v18200_v54  ;;  %12566 = vmatmul.msk.f32.gmra.mxu3 %vm250_vm2, %v10392_v5  ;;  %v10132_v5 = vld [vmem:[#allocation2 + $0x32b] sm:$0xff] }
 0xa58   : > { %v18210_v18 = vpop.f32.mrf.mxu0 }
 0xa59   : > { %v10278_v51 = vpop.f32.mrf.mxu2 }
 0xa5a   : > { %v18215_v6 = vadd.f32 %v10278_v51, %v10081_v30  ;;  %v9491_v50 = vpop.f32.mrf.mxu3  ;;  %v18231_v51 = vld [vmem:[#allocation2 + $0x2cd] sm:$0xff] }
 0xa5b   : > { %12488 = vmatmul.msk.f32.gmra.mxu0 %vm250_vm2, %v18213_v27  ;;  %v18222_v49 = vadd.f32 %v9491_v50, %v17914_v29 }
 0xa5d   : > { %19500 = vst [vmem:[#allocation120_spill] sm:$0xff] %v18222_v49  ;;  %v10133_v49 = vld [vmem:[#allocation2 + $0x343] sm:$0xff] }
 0xa5e   : > { %12549 = vmatmul.msk.f32.gmra.mxu2 %vm250_vm2, %v10131_v58  ;;  %v10394_v58 = vld [vmem:[#allocation2 + $0x230] sm:$0xff] }
 0xa5f   : > { %12518 = vmatmul.msk.f32.gmra.mxu1 %vm250_vm2, %v18219_v48  ;;  %12567 = vmatmul.msk.f32.gmra.mxu3 %vm250_vm2, %v10393_v45  ;;  %v10664_v45 = vld [vmem:[#allocation2 + $0x1b5] sm:$0xff] }
 0xa60   : > { %v18227_v9 = vpop.f32.mrf.mxu0 }
 0xa62   : > { %v9494_v30 = vpop.f32.mrf.mxu3 }
 0xa63   : > { %12593 = vmatmul.msk.f32.vlgmr.msrb.gmra.mxu0 %vm250_vm2, %v10663_v40  ;;  %v18234_v29 = vadd.f32 %v9494_v30, %v17934_v8 }
 0xa65   : > { %19501 = vst [vmem:[#allocation137_spill] sm:$0xff] %v18234_v29 }
 0xa66   : > { %12550 = vmatmul.msk.f32.gmra.mxu2 %vm250_vm2, %v10132_v5  ;;  %v10395_v5 = vld [vmem:[#allocation2 + $0x248] sm:$0xff] }
 0xa67   : > { %12519 = vmatmul.msk.f32.gmra.mxu1 %vm250_vm2, %v18231_v51  ;;  %12568 = vmatmul.msk.f32.gmra.mxu3 %vm250_vm2, %v10394_v58  ;;  %v10665_v58 = vld [vmem:[#allocation2 + $0x1cd] sm:$0xff] }
 0xa68   : > { %v18239_v50 = vpop.f32.mrf.mxu0 }
 0xa6a   : > { %v9497_v40 = vpop.f32.mrf.mxu3 }
 0xa6b   : > { %12594 = vmatmul.msk.f32.gmra.mxu0 %vm250_vm2, %v10664_v45  ;;  %v18246_v8 = vadd.f32 %v9497_v40, %v17951_v20  ;;  %v18255_v45 = vpop.f32.mrf.mxu1  ;;  %v10396_v40 = vld [vmem:[#allocation2 + $0x250] sm:$0xff] }
 0xa6d   : > { %19502 = vst [vmem:[#allocation166_spill] sm:$0xff] %v18246_v8  ;;  %v10135_v8 = vld [vmem:[#allocation2 + $0x363] sm:$0xff] }
 0xa6e   : > { %12551 = vmatmul.msk.f32.gmra.mxu2 %vm250_vm2, %v10133_v49 }
 0xa6f   : > { %12520 = vmatmul.msk.f32.gmra.mxu1 %vm250_vm2, %v18243_v55  ;;  %12569 = vmatmul.msk.f32.gmra.mxu3 %vm250_vm2, %v10395_v5  ;;  %v10666_v5 = vld [vmem:[#allocation2 + $0x1d5] sm:$0xff] }
 0xa70   : > { %v18251_v30 = vpop.f32.mrf.mxu0 }
 0xa71   : > { %19503 = vst [vmem:[#allocation105_spill] sm:$0xff] %v18251_v30  ;;  %v18269_v30 = vld [vmem:[#allocation2 + $0x2f5] sm:$0xff] }
 0xa72   : > { %v9500_v29 = vpop.f32.mrf.mxu3 }
 0xa73   : > { %12595 = vmatmul.msk.f32.gmra.mxu0 %vm250_vm2, %v10665_v58  ;;  %v18260_v20 = vadd.f32 %v9500_v29, %v17969_v24  ;;  %v18276_v29 = vpop.f32.mrf.mxu1 }
 0xa75   : > { %19504 = vst [vmem:[#allocation159_spill] sm:$0xff] %v18260_v20  ;;  %v10136_v20 = vld [vmem:[#allocation2 + $0x36b] sm:$0xff] }
 0xa76   : > { %12552 = vmatmul.msk.f32.gmra.mxu2 %vm250_vm2, %v10134_v37 }
 0xa77   : > { %12521 = vmatmul.msk.f32.gmra.mxu1 %vm250_vm2, %v18257_v19  ;;  %12570 = vmatmul.msk.f32.gmra.mxu3 %vm250_vm2, %v10396_v40  ;;  %v10667_v40 = vld [vmem:[#allocation2 + $0x1ed] sm:$0xff] }
 0xa78   : > { %v18265_v49 = vpop.f32.mrf.mxu0 }
 0xa7a   : > { %v9503_v58 = vpop.f32.mrf.mxu3 }
 0xa7b   : > { %12596 = vmatmul.msk.f32.gmra.mxu0 %vm250_vm2, %v10666_v5  ;;  %v18272_v24 = vadd.f32 %v9503_v58, %v17987_v3  ;;  %v18288_v58 = vpop.f32.mrf.mxu1 }
 0xa7d   : > { %19505 = vst [vmem:[#allocation141_spill] sm:$0xff] %v18272_v24 }
 0xa7e   : > { %12553 = vmatmul.msk.f32.gmra.mxu2 %vm250_vm2, %v10135_v8  ;;  %v10668_v8 = vld [vmem:[#allocation2 + $0x1f5] sm:$0xff] }
 0xa7f   : > { %12522 = vmatmul.msk.f32.gmra.mxu1 %vm250_vm2, %v18269_v30  ;;  %12571 = vmatmul.msk.f32.gmra.mxu3 %vm250_vm2, %v18041_v34 }
 0xa80   : > { %v18279_v37 = vpop.f32.mrf.mxu0 }
 0xa81   : > { %19506 = vst [vmem:[#allocation101_spill] sm:$0xff] %v18279_v37  ;;  %v10137_v37 = vld [vmem:[#allocation2 + $0x383] sm:$0xff] }
 0xa82   : > { %v9506_v5 = vpop.f32.mrf.mxu3 }
 0xa83   : > { %12597 = vmatmul.msk.f32.gmra.mxu0 %vm250_vm2, %v10667_v40  ;;  %v18285_v3 = vadd.f32 %v9506_v5, %v18005_v56  ;;  %v10669_v5 = vld [vmem:[#allocation2 + $0x20d] sm:$0xff] }
 0xa85   : > { %19507 = vst [vmem:[#allocation175_spill] sm:$0xff] %v18285_v3  ;;  %v10138_v3 = vld [vmem:[#allocation2 + $0x38b] sm:$0xff] }
 0xa86   : > { %12554 = vmatmul.msk.f32.gmra.mxu2 %vm250_vm2, %v10136_v20  ;;  %v18303_v20 = vpop.f32.mrf.mxu1 }
 0xa87   : > { %12572 = vmatmul.msk.f32.gmra.mxu3 %vm250_vm2, %v18061_v23 }
 0xa88   : > { %v18290_v24 = vpop.f32.mrf.mxu0 }
 0xa89   : > { %19508 = vst [vmem:[#allocation84_spill] sm:$0xff] %v18290_v24 }
 0xa8a   : > { %v9509_v34 = vpop.f32.mrf.mxu3 }
 0xa8b   : > { %12598 = vmatmul.msk.f32.gmra.mxu0 %vm250_vm2, %v10668_v8  ;;  %v18296_v40 = vadd.f32 %v9509_v34, %v18023_v33 }
 0xa8d   : > { %19509 = vst [vmem:[#allocation97_spill] sm:$0xff] %v18296_v40 }
 0xa8e   : > { %12555 = vmatmul.msk.f32.gmra.mxu2 %vm250_vm2, %v10137_v37  ;;  %v10670_v37 = vld [vmem:[#allocation2 + $0x215] sm:$0xff] }
 0xa8f   : > { %12573 = vmatmul.msk.f32.gmra.mxu3 %vm250_vm2, %v18079_v25  ;;  %v18315_v25 = vpop.f32.mrf.mxu1 }
 0xa90   : > { %v18299_v56 = vpop.f32.mrf.mxu0 }
 0xa91   : > { %19510 = vst [vmem:[#allocation85_spill] sm:$0xff] %v18299_v56 }
 0xa92   : > { %v9512_v23 = vpop.f32.mrf.mxu3 }
 0xa93   : > { %12599 = vmatmul.msk.f32.gmra.mxu0 %vm250_vm2, %v10669_v5  ;;  %v18307_v8 = vadd.f32 %v9512_v23, %v18043_v16  ;;  %v10671_v16 = vld [vmem:[#allocation2 + $0x22d] sm:$0xff] }
 0xa95   : > { %19511 = vst [vmem:[#allocation171_spill] sm:$0xff] %v18307_v8 }
 0xa96   : > { %12556 = vmatmul.msk.f32.gmra.mxu2 %vm250_vm2, %v10138_v3 }
 0xa97   : > { %12574 = vmatmul.msk.f32.gmra.mxu3 %vm250_vm2, %v18097_v43  ;;  %v18325_v23 = vpop.f32.mrf.mxu1 }
 0xa98   : > { %v18310_v33 = vpop.f32.mrf.mxu0 }
 0xa99   : > { %19512 = vst [vmem:[#allocation108_spill] sm:$0xff] %v18310_v33 }
 0xa9a   : > { %v9515_v34 = vpop.f32.mrf.mxu3 }
 0xa9b   : > { %12600 = vmatmul.msk.f32.gmra.mxu0 %vm250_vm2, %v10670_v37  ;;  %v18318_v5 = vadd.f32 %v9515_v34, %v18063_v7  ;;  %v10672_v37 = vld [vmem:[#allocation2 + $0x235] sm:$0xff] }
 0xa9d   : > { %19513 = vst [vmem:[#allocation113_spill] sm:$0xff] %v18318_v5 }
 0xa9f   : > { %12575 = vmatmul.msk.f32.gmra.mxu3 %vm250_vm2, %v18115_v52  ;;  %v18332_v34 = vpop.f32.mrf.mxu1  ;;  %v10673_v52 = vld [vmem:[#allocation2 + $0x24d] sm:$0xff] }
 0xaa0   : > { %v18320_v40 = vpop.f32.mrf.mxu0 }
 0xaa1   : > { %19514 = vst [vmem:[#allocation119_spill] sm:$0xff] %v18320_v40 }
 0xaa2   : > { %v10535_v3 = vpop.f32.mrf.mxu3 }
 0xaa3   : > { %12601 = vmatmul.msk.f32.gmra.mxu0 %vm250_vm2, %v10671_v16 }
 0xaa7   : > { %12576 = vmatmul.msk.f32.gmra.mxu3 %vm250_vm2, %v18135_v57  ;;  %v18343_v57 = vpop.f32.mrf.mxu1 }
 0xaa8   : > { %v18327_v43 = vpop.f32.mrf.mxu0 }
 0xaa9   : > { %19515 = vst [vmem:[#allocation180_spill] sm:$0xff] %v18327_v43 }
 0xaaa   : > { %v10538_v7 = vpop.f32.mrf.mxu3 }
 0xaab   : > { %12602 = vmatmul.msk.f32.gmra.mxu0 %vm250_vm2, %v10672_v37  ;;  %v10674_v37 = vld [vmem:[#allocation2 + $0x255] sm:$0xff] }
 0xaaf   : > { %12577 = vmatmul.msk.f32.gmra.mxu3 %vm250_vm2, %v18155_v62  ;;  %v18352_v62 = vpop.f32.mrf.mxu1 }
 0xab0   : > { %v18334_v5 = vpop.f32.mrf.mxu0 }
 0xab1   : > { %19516 = vst [vmem:[#allocation183_spill] sm:$0xff] %v18334_v5 }
 0xab2   : > { %v10541_v16 = vpop.f32.mrf.mxu3 }
 0xab3   : > { %12603 = vmatmul.msk.f32.gmra.mxu0 %vm250_vm2, %v10673_v52 }
 0xab7   : > { %12578 = vmatmul.msk.f32.gmra.mxu3 %vm250_vm2, %v18175_v38  ;;  %v18360_v38 = vpop.f32.mrf.mxu1 }
 0xab8   : > { %v18339_v8 = vpop.f32.mrf.mxu0 }
 0xab9   : > { %19517 = vst [vmem:[#allocation151_spill] sm:$0xff] %v18339_v8 }
 0xaba   : > { %v10544_v43 = vpop.f32.mrf.mxu3 }
 0xabb   : > { %12604 = vmatmul.msk.f32.gmra.mxu0 %vm250_vm2, %v10674_v37  ;;  %v10407_v37 = vld [vmem:[#allocation2 + $0x308] sm:$0xff] }
 0xabf   : > { %12579 = vmatmul.msk.f32.gmra.mxu3 %vm250_vm2, %v18194_v39 }
 0xac0   : > { %v18346_v40 = vpop.f32.mrf.mxu0 }
 0xac1   : > { %19518 = vst [vmem:[#allocation129_spill] sm:$0xff] %v18346_v40 }
 0xac2   : > { %v10547_v52 = vpop.f32.mrf.mxu3 }
 0xac3   : > { %12605 = vmatmul.msk.f32.gmra.mxu0 %vm250_vm2, %v18121_v13  ;;  %v10408_v13 = vld [vmem:[#allocation2 + $0x310] sm:$0xff] }
 0xac7   : > { %12580 = vmatmul.msk.f32.gmra.mxu3 %vm250_vm2, %v18213_v27  ;;  %v10409_v27 = vld [vmem:[#allocation2 + $0x328] sm:$0xff] }
 0xac8   : > { %v18354_v8 = vpop.f32.mrf.mxu0 }
 0xac9   : > { %19519 = vst [vmem:[#allocation152_spill] sm:$0xff] %v18354_v8  ;;  %v18369_v8 = vpop.f32.mrf.mxu1 }
 0xaca   : > { %v18362_v40 = vpop.f32.mrf.mxu3 }
 0xacb   : > { %12606 = vmatmul.msk.f32.gmra.mxu0 %vm250_vm2, %v18141_v59 }
 0xacf   : > { %12581 = vmatmul.msk.f32.gmra.mxu3 %vm250_vm2, %v10407_v37  ;;  %v18382_v37 = vld [vmem:[%s18821_s4 + $0x5] ss:$0 sm:$0xff] }
 0xad0   : > { %v18364_v39 = vpop.f32.mrf.mxu0 }
 0xad1   : > { %19520 = vst [vmem:[#allocation131_spill] sm:$0xff] %v18364_v39  ;;  %v10631_v39 = vadd.f32 %v10535_v3, %v18081_v36  ;;  %v10410_v36 = vld [vmem:[#allocation2 + $0x330] sm:$0xff]  ;;  %v10632_v3 = vadd.f32 %v10538_v7, %v18099_v12  ;;  %v10633_v12 = vadd.f32 %v10541_v16, %v18117_v46 }
 0xad2   : > { %v18374_v59 = vpop.f32.mrf.mxu3 }
 0xad3   : > { %12607 = vmatmul.msk.f32.gmra.mxu0 %vm250_vm2, %v18161_v11 }
 0xad7   : > { %12582 = vmatmul.msk.f32.gmra.mxu3 %vm250_vm2, %v10408_v13 }
 0xad8   : > { %v18371_v5 = vpop.f32.mrf.mxu0 }
 0xad9   : > { %19521 = vst [vmem:[#allocation77_spill] sm:$0xff] %v18371_v5  ;;  %v18385_v5 = vpop.f32.mrf.mxu1 }
 0xadb   : > { %12608 = vmatmul.msk.f32.gmra.mxu0 %vm250_vm2, %v18181_v32  ;;  %v18390_v32 = vpop.f32.mrf.mxu3 }
 0xadf   : > { %12583 = vmatmul.msk.f32.gmra.mxu3 %vm250_vm2, %v10409_v27 }
 0xae0   : > { %v10813_v11 = vpop.f32.mrf.mxu0 }
 0xae1   : > { %v10909_v33 = vadd.f32 %v10813_v11, %v10631_v39  ;;  %v18395_v39 = vpop.f32.mrf.mxu2  ;;  %v10411_v11 = vld [vmem:[#allocation2 + $0x348] sm:$0xff] }
 0xae3   : > { %v10943_v13 = vadd.f32 %v18382_v37, %v10909_v33  ;;  %12609 = vmatmul.msk.f32.gmra.mxu0 %vm250_vm2, %v18200_v54  ;;  %v18400_v33 = vpop.f32.mrf.mxu1  ;;  %v18403_v54 = vpop.f32.mrf.mxu3 }
 0xae5   : > { %12627 = vmatmul.msk.f32.vlgmr.msrb.gmra.mxu1 %vm250_vm2, %v10943_v13 }
 0xae7   : > { %12584 = vmatmul.msk.f32.gmra.mxu3 %vm250_vm2, %v10410_v36  ;;  %v10412_v36 = vld [vmem:[#allocation2 + $0x350] sm:$0xff] }
 0xae8   : > { %v10816_v56 = vpop.f32.mrf.mxu0 }
 0xae9   : > { %v10910_v24 = vadd.f32 %v10816_v56, %v10632_v3  ;;  %v10634_v3 = vadd.f32 %v10544_v43, %v18137_v28 }
 0xaeb   : > { %v10944_v27 = vadd.f32 %v18382_v37, %v10910_v24  ;;  %12610 = vmatmul.msk.f32.gmra.mxu0 %vm250_vm2, %v18219_v48  ;;  %v18410_v24 = vpop.f32.mrf.mxu2  ;;  %v18413_v48 = vpop.f32.mrf.mxu1 }
 0xaed   : > { %12628 = vmatmul.msk.f32.gmra.mxu1 %vm250_vm2, %v10944_v27  ;;  %v18416_v27 = vpop.f32.mrf.mxu3 }
 0xaef   : > { %12585 = vmatmul.msk.f32.gmra.mxu3 %vm250_vm2, %v10411_v11 }
 0xaf0   : > { %v10819_v7 = vpop.f32.mrf.mxu0 }
 0xaf1   : > { %v10911_v56 = vadd.f32 %v10819_v7, %v10633_v12  ;;  %v10635_v7 = vadd.f32 %v10547_v52, %v18157_v15 }
 0xaf3   : > { %v10945_v13 = vadd.f32 %v18382_v37, %v10911_v56  ;;  %12611 = vmatmul.msk.f32.gmra.mxu0 %vm250_vm2, %v18231_v51  ;;  %v10413_v51 = vld [vmem:[#allocation2 + $0x368] sm:$0xff]  ;;  %v18423_v12 = vpop.f32.mrf.mxu2  ;;  %v18426_v56 = vpop.f32.mrf.mxu1 }
 0xaf5   : > { %12629 = vmatmul.msk.f32.gmra.mxu1 %vm250_vm2, %v10945_v13  ;;  %v18429_v13 = vpop.f32.mrf.mxu3 }
 0xaf7   : > { %12586 = vmatmul.msk.f32.gmra.mxu3 %vm250_vm2, %v10412_v36 }
 0xaf8   : > { %v10822_v46 = vpop.f32.mrf.mxu0 }
 0xaf9   : > { %v10912_v16 = vadd.f32 %v10822_v46, %v10634_v3  ;;  %v10636_v3 = vadd.f32 %v18362_v40, %v18177_v41  ;;  %v10637_v41 = vadd.f32 %v18374_v59, %v18196_v44  ;;  %v9804_v44 = vadd.f32 %v18076_v53, %v17938_v2 }
 0xafa   : > { %v10638_v59 = vadd.f32 %v18390_v32, %v18215_v6  ;;  %v9805_v53 = vadd.f32 %v18094_v4, %v17956_v0 }
 0xafb   : > { %v10946_v11 = vadd.f32 %v18382_v37, %v10912_v16  ;;  %12612 = vmatmul.msk.f32.gmra.mxu0 %vm250_vm2, %v18243_v55  ;;  %v10414_v55 = vld [vmem:[#allocation2 + $0x370] sm:$0xff]  ;;  %v18437_v52 = vpop.f32.mrf.mxu2  ;;  %v18440_v16 = vpop.f32.mrf.mxu1 }
 0xafd   : > { %12630 = vmatmul.msk.f32.gmra.mxu1 %vm250_vm2, %v10946_v11 }
 0xaff   : > { %12587 = vmatmul.msk.f32.gmra.mxu3 %vm250_vm2, %v10413_v51  ;;  %v10415_v51 = vld [vmem:[#allocation2 + $0x388] sm:$0xff] }
 0xb00   : > { %v10825_v28 = vpop.f32.mrf.mxu0 }
 0xb01   : > { %v10913_v43 = vadd.f32 %v10825_v28, %v10635_v7  ;;  %v10685_v7 = vld [vmem:[#allocation2 + $0x30d] sm:$0xff] }
 0xb03   : > { %v10947_v36 = vadd.f32 %v18382_v37, %v10913_v43  ;;  %12613 = vmatmul.msk.f32.gmra.mxu0 %vm250_vm2, %v18257_v19  ;;  %v18445_v19 = vpop.f32.mrf.mxu3  ;;  %v18451_v43 = vpop.f32.mrf.mxu2 }
 0xb05   : > { %12631 = vmatmul.msk.f32.gmra.mxu1 %vm250_vm2, %v10947_v36 }
 0xb07   : > { %12588 = vmatmul.msk.f32.gmra.mxu3 %vm250_vm2, %v10414_v55 }
 0xb08   : > { %v10828_v15 = vpop.f32.mrf.mxu0 }
 0xb09   : > { %v10914_v46 = vadd.f32 %v10828_v15, %v10636_v3  ;;  %v10416_v3 = vld [vmem:[#allocation2 + $0x390] sm:$0xff] }
 0xb0b   : > { %v10948_v11 = vadd.f32 %v18382_v37, %v10914_v46  ;;  %12614 = vmatmul.msk.f32.gmra.mxu0 %vm250_vm2, %v18269_v30  ;;  %v18455_v30 = vpop.f32.mrf.mxu1  ;;  %v18458_v55 = vpop.f32.mrf.mxu3  ;;  %v10686_v46 = vld [vmem:[#allocation2 + $0x315] sm:$0xff] }
 0xb0d   : > { %12632 = vmatmul.msk.f32.gmra.mxu1 %vm250_vm2, %v10948_v11  ;;  %v10082_v11 = vadd.f32 %v18255_v45, %v9804_v44 }
 0xb0f   : > { %12589 = vmatmul.msk.f32.gmra.mxu3 %vm250_vm2, %v10415_v51 }
 0xb10   : > { %v10831_v40 = vpop.f32.mrf.mxu0 }
 0xb11   : > { %v10915_v28 = vadd.f32 %v10831_v40, %v10637_v41  ;;  %v10361_v40 = vadd.f32 %v18395_v39, %v10082_v11 }
 0xb13   : > { %v10949_v36 = vadd.f32 %v18382_v37, %v10915_v28  ;;  %12615 = vmatmul.msk.f32.gmra.mxu0 %vm250_vm2, %v10685_v7  ;;  %v10296_v7 = vpop.f32.mrf.mxu2  ;;  %v18470_v2 = vpop.f32.mrf.mxu1  ;;  %v10639_v6 = vadd.f32 %v18403_v54, %v10361_v40  ;;  %v10687_v28 = vld [vmem:[#allocation2 + $0x32d] sm:$0xff] }
 0xb14   : > { %v10574_v45 = vpop.f32.mrf.mxu3  ;;  %v10689_v40 = vld [vmem:[#allocation2 + $0x34d] sm:$0xff] }
 0xb15   : > { %12633 = vmatmul.msk.f32.gmra.mxu1 %vm250_vm2, %v10949_v36  ;;  %v10083_v36 = vadd.f32 %v18276_v29, %v9805_v53 }
 0xb17   : > { %12590 = vmatmul.msk.f32.gmra.mxu3 %vm250_vm2, %v10416_v3  ;;  %v10362_v39 = vadd.f32 %v18410_v24, %v10083_v36 }
 0xb18   : > { %v10834_v15 = vpop.f32.mrf.mxu0 }
 0xb19   : > { %v10916_v51 = vadd.f32 %v10834_v15, %v10638_v59  ;;  %v9806_v59 = vadd.f32 %v18112_v17, %v17974_v60  ;;  %v10640_v4 = vadd.f32 %v18416_v27, %v10362_v39  ;;  %v9807_v60 = vadd.f32 %v18132_v31, %v17992_v63 }
 0xb1a   : > { %v9808_v63 = vadd.f32 %v18152_v42, %v18010_v26  ;;  %v9809_v26 = vadd.f32 %v18172_v21, %v18028_v22  ;;  %v9810_v22 = vadd.f32 %v18191_v1, %v18048_v14 }
 0xb1b   : > { %v10950_v41 = vadd.f32 %v18382_v37, %v10916_v51  ;;  %12616 = vmatmul.msk.f32.gmra.mxu0 %vm250_vm2, %v10686_v46  ;;  %v10299_v0 = vpop.f32.mrf.mxu2  ;;  %v18483_v54 = vpop.f32.mrf.mxu1  ;;  %v10688_v46 = vld [vmem:[#allocation2 + $0x335] sm:$0xff]  ;;  %v10084_v29 = vadd.f32 %v18288_v58, %v9806_v59  ;;  %v10085_v53 = vadd.f32 %v18303_v20, %v9807_v60 }
 0xb1c   : > { %v10577_v51 = vpop.f32.mrf.mxu3  ;;  %v10690_v20 = vld [vmem:[#allocation2 + $0x355] sm:$0xff] }
 0xb1d   : > { %12634 = vmatmul.msk.f32.gmra.mxu1 %vm250_vm2, %v10950_v41  ;;  %v10363_v24 = vadd.f32 %v18423_v12, %v10084_v29  ;;  %v10364_v36 = vadd.f32 %v18437_v52, %v10085_v53  ;;  %v9811_v53 = vadd.f32 %v18210_v18, %v18070_v35  ;;  %v9812_v35 = vadd.f32 %v18227_v9, %v18088_v10  ;;  %v19522_v10 = vld [vmem:[#allocation16_spill] sm:$0xff]  ;;  %v19523_v9 = vld [vmem:[#allocation54_spill] sm:$0xff] }
 0xb1f   : > { %v10641_v17 = vadd.f32 %v18429_v13, %v10363_v24  ;;  %v10642_v31 = vadd.f32 %v18445_v19, %v10364_v36  ;;  %v10089_v36 = vadd.f32 %v18343_v57, %v9811_v53 }
 0xb20   : > { %v10837_v32 = vpop.f32.mrf.mxu0 }
 0xb21   : > { %v10917_v3 = vadd.f32 %v10837_v32, %v10639_v6 }
 0xb23   : > { %v10951_v44 = vadd.f32 %v18382_v37, %v10917_v3  ;;  %12617 = vmatmul.msk.f32.gmra.mxu0 %vm250_vm2, %v10687_v28  ;;  %v10302_v58 = vpop.f32.mrf.mxu2  ;;  %v18494_v32 = vpop.f32.mrf.mxu1  ;;  %v10086_v3 = vadd.f32 %v18315_v25, %v9808_v63  ;;  %v10691_v25 = vld [vmem:[#allocation2 + $0x36d] sm:$0xff] }
 0xb24   : > { %v10580_v12 = vpop.f32.mrf.mxu3 }
 0xb25   : > { %12635 = vmatmul.msk.f32.gmra.mxu1 %vm250_vm2, %v10951_v44  ;;  %v10365_v52 = vadd.f32 %v18451_v43, %v10086_v3 }
 0xb27   : > { %v10643_v42 = vadd.f32 %v18458_v55, %v10365_v52 }
 0xb28   : > { %v10840_v15 = vpop.f32.mrf.mxu0 }
 0xb29   : > { %v10918_v11 = vadd.f32 %v10840_v15, %v10640_v4 }
 0xb2b   : > { %v10952_v41 = vadd.f32 %v18382_v37, %v10918_v11  ;;  %12618 = vmatmul.msk.f32.gmra.mxu0 %vm250_vm2, %v10688_v46  ;;  %v10305_v39 = vpop.f32.mrf.mxu2  ;;  %v18506_v4 = vpop.f32.mrf.mxu1  ;;  %v10087_v46 = vadd.f32 %v18325_v23, %v9809_v26  ;;  %v10088_v23 = vadd.f32 %v18332_v34, %v9810_v22 }
 0xb2c   : > { %v10583_v15 = vpop.f32.mrf.mxu3 }
 0xb2d   : > { %12636 = vmatmul.msk.f32.gmra.mxu1 %vm250_vm2, %v10952_v41  ;;  %v10366_v41 = vadd.f32 %v10296_v7, %v10087_v46  ;;  %v10367_v7 = vadd.f32 %v10299_v0, %v10088_v23  ;;  %v10368_v0 = vadd.f32 %v10302_v58, %v10089_v36  ;;  %v19527_v23 = vld [vmem:[#allocation105_spill] sm:$0xff] }
 0xb2f   : > { %v10644_v21 = vadd.f32 %v10574_v45, %v10366_v41  ;;  %v10693_v45 = vld [vmem:[#allocation2 + $0x38d] sm:$0xff]  ;;  %v10646_v18 = vadd.f32 %v10580_v12, %v10368_v0  ;;  %v906_v12 = vadd.f32 %v19523_v9, %v19522_v10 }
 0xb30   : > { %v10843_v27 = vpop.f32.mrf.mxu0  ;;  %v19530_v0 = vld [vmem:[#allocation56_spill] sm:$0xff] }
 0xb31   : > { %v10919_v6 = vadd.f32 %v10843_v27, %v10641_v17  ;;  %v10692_v17 = vld [vmem:[#allocation2 + $0x375] sm:$0xff] }
 0xb33   : > { %v10953_v28 = vadd.f32 %v18382_v37, %v10919_v6  ;;  %12619 = vmatmul.msk.f32.gmra.mxu0 %vm250_vm2, %v10689_v40  ;;  %v10308_v24 = vpop.f32.mrf.mxu2  ;;  %v18517_v43 = vpop.f32.mrf.mxu1 }
 0xb34   : > { %v10586_v55 = vpop.f32.mrf.mxu3 }
 0xb35   : > { %12637 = vmatmul.msk.f32.gmra.mxu1 %vm250_vm2, %v10953_v28  ;;  %v10645_v28 = vadd.f32 %v10577_v51, %v10367_v7  ;;  %v19528_v7 = vld [vmem:[#allocation161_spill] sm:$0xff] }
 0xb38   : > { %v10846_v13 = vpop.f32.mrf.mxu0 }
 0xb39   : > { %v10920_v44 = vadd.f32 %v10846_v13, %v10642_v31  ;;  %v10694_v13 = vld [vmem:[#allocation2 + $0x395] sm:$0xff] }
 0xb3b   : > { %v10954_v59 = vadd.f32 %v18382_v37, %v10920_v44  ;;  %12620 = vmatmul.msk.f32.gmra.mxu0 %vm250_vm2, %v10690_v20  ;;  %v10311_v6 = vpop.f32.mrf.mxu2  ;;  %v18527_v14 = vpop.f32.mrf.mxu1  ;;  %v10090_v20 = vadd.f32 %v18352_v62, %v9812_v35  ;;  %v9813_v62 = vadd.f32 %v18239_v50, %v18106_v47  ;;  %v19525_v50 = vld [vmem:[#allocation19_spill] sm:$0xff] }
 0xb3c   : > { %v10589_v63 = vpop.f32.mrf.mxu3 }
 0xb3d   : > { %12638 = vmatmul.msk.f32.gmra.mxu1 %vm250_vm2, %v10954_v59  ;;  %v10369_v52 = vadd.f32 %v10305_v39, %v10090_v20  ;;  %v10091_v46 = vadd.f32 %v18360_v38, %v9813_v62  ;;  %v9814_v38 = vadd.f32 %v19527_v23, %v18126_v61 }
 0xb3f   : > { %v10647_v26 = vadd.f32 %v10583_v15, %v10369_v52  ;;  %v19526_v15 = vld [vmem:[#allocation55_spill] sm:$0xff]  ;;  %v10092_v53 = vadd.f32 %v18369_v8, %v9814_v38 }
 0xb40   : > { %v10849_v19 = vpop.f32.mrf.mxu0 }
 0xb41   : > { %v10921_v29 = vadd.f32 %v10849_v19, %v10643_v42  ;;  %v19524_v19 = vld [vmem:[#allocation126_spill] sm:$0xff] }
 0xb43   : > { %v10955_v11 = vadd.f32 %v18382_v37, %v10921_v29  ;;  %12621 = vmatmul.msk.f32.gmra.mxu0 %vm250_vm2, %v10691_v25  ;;  %v10314_v57 = vpop.f32.mrf.mxu2  ;;  %v18536_v44 = vpop.f32.mrf.mxu1  ;;  %v5491_v25 = vadd.f32 %v19524_v19, %v906_v12  ;;  %v19535_v19 = vld [vmem:[#allocation96_spill] sm:$0xff] }
 0xb44   : > { %v10592_v58 = vpop.f32.mrf.mxu3 }
 0xb45   : > { %12639 = vmatmul.msk.f32.gmra.mxu1 %vm250_vm2, %v10955_v11 }
 0xb48   : > { %v10852_v60 = vpop.f32.mrf.mxu0 }
 0xb49   : > { %v10922_v27 = vadd.f32 %v10852_v60, %v10644_v21  ;;  %v10370_v21 = vadd.f32 %v10308_v24, %v10091_v46 }
 0xb4b   : > { %v10956_v40 = vadd.f32 %v18382_v37, %v10922_v27  ;;  %12622 = vmatmul.msk.f32.gmra.mxu0 %vm250_vm2, %v10692_v17  ;;  %v10317_v22 = vpop.f32.mrf.mxu2  ;;  %v907_v17 = vadd.f32 %v19526_v15, %v19525_v50  ;;  %v10648_v27 = vadd.f32 %v10586_v55, %v10370_v21  ;;  %v19529_v55 = vld [vmem:[#allocation21_spill] sm:$0xff] }
 0xb4c   : > { %v10595_v47 = vpop.f32.mrf.mxu3  ;;  %v908_v35 = vadd.f32 %v19530_v0, %v19529_v55 }
 0xb4d   : > { %12640 = vmatmul.msk.f32.gmra.mxu1 %vm250_vm2, %v10956_v40  ;;  %v5492_v24 = vadd.f32 %v19528_v7, %v907_v17  ;;  %v19540_v7 = vld [vmem:[#allocation150_spill] sm:$0xff] }
 0xb50   : > { %v10855_v1 = vpop.f32.mrf.mxu0 }
 0xb51   : > { %v10923_v34 = vadd.f32 %v10855_v1, %v10645_v28 }
 0xb53   : > { %v10957_v31 = vadd.f32 %v18382_v37, %v10923_v34  ;;  %12623 = vmatmul.msk.f32.gmra.mxu0 %vm250_vm2, %v10693_v45  ;;  %v10371_v34 = vadd.f32 %v10311_v6, %v10092_v53  ;;  %v10320_v61 = vpop.f32.mrf.mxu2 }
 0xb54   : > { %v10598_v8 = vpop.f32.mrf.mxu3 }
 0xb55   : > { %12641 = vmatmul.msk.f32.gmra.mxu1 %vm250_vm2, %v10957_v31 }
 0xb58   : > { %v10858_v51 = vpop.f32.mrf.mxu0 }
 0xb59   : > { %v10924_v3 = vadd.f32 %v10858_v51, %v10646_v18  ;;  %v19531_v18 = vld [vmem:[#allocation117_spill] sm:$0xff] }
 0xb5a   : > { %v9815_v51 = vadd.f32 %v18265_v49, %v19531_v18  ;;  %v19533_v49 = vld [vmem:[#allocation23_spill] sm:$0xff] }
 0xb5b   : > { %v10958_v59 = vadd.f32 %v18382_v37, %v10924_v3  ;;  %12624 = vmatmul.msk.f32.gmra.mxu0 %vm250_vm2, %v10694_v13  ;;  %v10649_v13 = vadd.f32 %v10589_v63, %v10371_v34  ;;  %v19532_v3 = vld [vmem:[#allocation130_spill] sm:$0xff]  ;;  %v19534_v63 = vld [vmem:[#allocation57_spill] sm:$0xff] }
 0xb5c   : > { %v10093_v6 = vadd.f32 %v18385_v5, %v9815_v51  ;;  %v10323_v5 = vpop.f32.mrf.mxu2 }
 0xb5d   : > { %12642 = vmatmul.msk.f32.gmra.mxu1 %vm250_vm2, %v10958_v59  ;;  %v5493_v59 = vadd.f32 %v19532_v3, %v908_v35  ;;  %v19545_v3 = vld [vmem:[#allocation143_spill] sm:$0xff] }
 0xb5e   : > { %v10372_v62 = vadd.f32 %v10314_v57, %v10093_v6 }
 0xb60   : > { %v10861_v42 = vpop.f32.mrf.mxu0 }
 0xb61   : > { %v10925_v29 = vadd.f32 %v10861_v42, %v10647_v26  ;;  %v909_v42 = vadd.f32 %v19534_v63, %v19533_v49 }
 0xb62   : > { %v11093_v11 = vpop.f32.mrf.mxu1 }
 0xb63   : > { %v10959_v39 = vadd.f32 %v18382_v37, %v10925_v29  ;;  %v11189_v41 = vadd.f32 %v11093_v11, %v5491_v25  ;;  %v19536_v25 = vld [vmem:[#allocation101_spill] sm:$0xff]  ;;  %v10650_v29 = vadd.f32 %v10592_v58, %v10372_v62 }
 0xb64   : > { %v9816_v46 = vadd.f32 %v19536_v25, %v19535_v19  ;;  %v19538_v58 = vld [vmem:[#allocation25_spill] sm:$0xff] }
 0xb65   : > { %v11221_v60 = vmax.f32 %v11189_v41, 0.0  ;;  %12643 = vmatmul.msk.f32.gmra.mxu1 %vm250_vm2, %v10959_v39  ;;  %v19537_v39 = vld [vmem:[#allocation71_spill] sm:$0xff] }
 0xb66   : > { %v5494_v41 = vadd.f32 %v19537_v39, %v909_v42  ;;  %v10094_v21 = vadd.f32 %v18400_v33, %v9816_v46  ;;  %v19549_v46 = vld [vmem:[#allocation60_spill] sm:$0xff] }
 0xb67   : > { %11254 = vst.msk [vmem:[%s18556_s10] sm:$0xff] %vm11253_vm3, %v11221_v60  ;;  %v10601_v60 = vpop.f32.mrf.mxu3  ;;  %v19551_v39 = vld [vmem:[#allocation108_spill] sm:$0xff] }
 0xb68   : > { %v10864_v40 = vpop.f32.mrf.mxu0  ;;  %v10373_v23 = vadd.f32 %v10317_v22, %v10094_v21  ;;  %v10326_v22 = vpop.f32.mrf.mxu2 }
 0xb69   : > { %v10926_v28 = vadd.f32 %v10864_v40, %v10648_v27  ;;  %v19539_v27 = vld [vmem:[#allocation58_spill] sm:$0xff] }
 0xb6a   : > { %v11096_v1 = vpop.f32.mrf.mxu1  ;;  %v910_v40 = vadd.f32 %v19539_v27, %v19538_v58 }
 0xb6b   : > { %v10960_v45 = vadd.f32 %v18382_v37, %v10926_v28  ;;  %v11190_v36 = vadd.f32 %v11096_v1, %v5492_v24  ;;  %v19541_v24 = vld [vmem:[#allocation84_spill] sm:$0xff]  ;;  %v10651_v28 = vadd.f32 %v10595_v47, %v10373_v23  ;;  %v19543_v47 = vld [vmem:[#allocation26_spill] sm:$0xff] }
 0xb6c   : > { %v9817_v53 = vadd.f32 %v19541_v24, %v19540_v7  ;;  %v19542_v1 = vld [vmem:[#allocation72_spill] sm:$0xff]  ;;  %v19553_v7 = vld [vmem:[#allocation29_spill] sm:$0xff] }
 0xb6d   : > { %v11222_v31 = vmax.f32 %v11190_v36, 0.0  ;;  %12644 = vmatmul.msk.f32.gmra.mxu1 %vm250_vm2, %v10960_v45  ;;  %v5495_v45 = vadd.f32 %v19542_v1, %v910_v40 }
 0xb6e   : > { %v10095_v36 = vadd.f32 %v18413_v48, %v9817_v53  ;;  %v19555_v53 = vld [vmem:[#allocation137_spill] sm:$0xff] }
 0xb6f   : > { %11255 = vst.msk [vmem:[%s18556_s10 + $0x8] sm:$0xff] %vm11253_vm3, %v11222_v31  ;;  %v10604_v35 = vpop.f32.mrf.mxu3 }
 0xb70   : > { %v10867_v20 = vpop.f32.mrf.mxu0  ;;  %v10374_v18 = vadd.f32 %v10320_v61, %v10095_v36  ;;  %v10329_v63 = vpop.f32.mrf.mxu2  ;;  %v19557_v36 = vld [vmem:[#allocation75_spill] sm:$0xff] }
 0xb71   : > { %v10927_v52 = vadd.f32 %v10867_v20, %v10649_v13  ;;  %v19544_v13 = vld [vmem:[#allocation59_spill] sm:$0xff] }
 0xb72   : > { %v11099_v10 = vpop.f32.mrf.mxu1  ;;  %v911_v20 = vadd.f32 %v19544_v13, %v19543_v47  ;;  %v19558_v13 = vld [vmem:[#allocation30_spill] sm:$0xff] }
 0xb73   : > { %v10961_v9 = vadd.f32 %v18382_v37, %v10927_v52  ;;  %v11191_v12 = vadd.f32 %v11099_v10, %v5493_v59  ;;  %v19546_v59 = vld [vmem:[#allocation85_spill] sm:$0xff]  ;;  %v10652_v52 = vadd.f32 %v10598_v8, %v10374_v18  ;;  %v19547_v10 = vld [vmem:[#allocation138_spill] sm:$0xff]  ;;  %v19548_v8 = vld [vmem:[#allocation28_spill] sm:$0xff] }
 0xb74   : > { %v9818_v6 = vadd.f32 %v19546_v59, %v19545_v3  ;;  %v19560_v3 = vld [vmem:[#allocation166_spill] sm:$0xff]  ;;  %v19561_v59 = vld [vmem:[#allocation180_spill] sm:$0xff] }
 0xb75   : > { %v11223_v26 = vmax.f32 %v11191_v12, 0.0  ;;  %12645 = vmatmul.msk.f32.gmra.mxu1 %vm250_vm2, %v10961_v9  ;;  %v5496_v9 = vadd.f32 %v19547_v10, %v911_v20  ;;  %v19562_v10 = vld [vmem:[#allocation170_spill] sm:$0xff] }
 0xb76   : > { %v10096_v12 = vadd.f32 %v18426_v56, %v9818_v6  ;;  %v9821_v6 = vadd.f32 %v19561_v59, %v19560_v3  ;;  %v19576_v3 = vld [vmem:[#allocation129_spill] sm:$0xff] }
 0xb77   : > { %11256 = vst.msk [vmem:[%s18556_s10 + $0x10] sm:$0xff] %vm11253_vm3, %v11223_v26  ;;  %v10607_v25 = vpop.f32.mrf.mxu3 }
 0xb78   : > { %v10870_v11 = vpop.f32.mrf.mxu0  ;;  %v10375_v42 = vadd.f32 %v10323_v5, %v10096_v12  ;;  %v10332_v40 = vpop.f32.mrf.mxu2  ;;  %v10099_v12 = vadd.f32 %v18470_v2, %v9821_v6 }
 0xb79   : > { %v10928_v57 = vadd.f32 %v10870_v11, %v10650_v29  ;;  %v912_v29 = vadd.f32 %v19549_v46, %v19548_v8  ;;  %v19550_v11 = vld [vmem:[#allocation120_spill] sm:$0xff]  ;;  %v19564_v8 = vld [vmem:[#allocation63_spill] sm:$0xff] }
 0xb7a   : > { %v11102_v50 = vpop.f32.mrf.mxu1  ;;  %v10653_v21 = vadd.f32 %v10601_v60, %v10375_v42  ;;  %v19554_v60 = vld [vmem:[#allocation61_spill] sm:$0xff]  ;;  %v10378_v42 = vadd.f32 %v10332_v40, %v10099_v12  ;;  %v19568_v40 = vld [vmem:[#allocation32_spill] sm:$0xff] }
 0xb7b   : > { %v10962_v15 = vadd.f32 %v18382_v37, %v10928_v57  ;;  %v11192_v17 = vadd.f32 %v11102_v50, %v5494_v41  ;;  %v9819_v41 = vadd.f32 %v19551_v39, %v19550_v11  ;;  %v19552_v57 = vld [vmem:[#allocation74_spill] sm:$0xff]  ;;  %v913_v24 = vadd.f32 %v19554_v60, %v19553_v7  ;;  %v19566_v11 = vld [vmem:[#allocation183_spill] sm:$0xff]  ;;  %v19569_v7 = vld [vmem:[#allocation64_spill] sm:$0xff] }
 0xb7c   : > { %v5497_v50 = vadd.f32 %v19552_v57, %v912_v29  ;;  %v19565_v29 = vld [vmem:[#allocation159_spill] sm:$0xff]  ;;  %v916_v60 = vadd.f32 %v19569_v7, %v19568_v40 }
 0xb7d   : > { %v11224_v38 = vmax.f32 %v11192_v17, 0.0  ;;  %12646 = vmatmul.msk.f32.gmra.mxu1 %vm250_vm2, %v10962_v15  ;;  %v10097_v15 = vadd.f32 %v18440_v16, %v9819_v41  ;;  %v9822_v39 = vadd.f32 %v19566_v11, %v19565_v29 }
 0xb7f   : > { %11257 = vst.msk [vmem:[%s18556_s10 + $0x18] sm:$0xff] %vm11253_vm3, %v11224_v38  ;;  %v10376_v58 = vadd.f32 %v10326_v22, %v10097_v15  ;;  %v10610_v16 = vpop.f32.mrf.mxu3  ;;  %v10100_v57 = vadd.f32 %v18483_v54, %v9822_v39  ;;  %v19582_v39 = vld [vmem:[#allocation149_spill] sm:$0xff] }
 0xb80   : > { %v10873_v33 = vpop.f32.mrf.mxu0  ;;  %v10656_v41 = vadd.f32 %v10610_v16, %v10378_v42  ;;  %v19579_v42 = vld [vmem:[#allocation66_spill] sm:$0xff] }
 0xb81   : > { %v10929_v34 = vadd.f32 %v10873_v33, %v10651_v28  ;;  %v19556_v28 = vld [vmem:[#allocation119_spill] sm:$0xff]  ;;  %v10654_v1 = vadd.f32 %v10604_v35, %v10376_v58  ;;  %v19559_v35 = vld [vmem:[#allocation62_spill] sm:$0xff] }
 0xb82   : > { %v11105_v31 = vpop.f32.mrf.mxu1  ;;  %v9820_v33 = vadd.f32 %v19556_v28, %v19555_v53  ;;  %v914_v20 = vadd.f32 %v19559_v35, %v19558_v13  ;;  %v19571_v53 = vld [vmem:[#allocation151_spill] sm:$0xff]  ;;  %v19574_v13 = vld [vmem:[#allocation65_spill] sm:$0xff] }
 0xb83   : > { %v10963_v55 = vadd.f32 %v18382_v37, %v10929_v34  ;;  %v11193_v0 = vadd.f32 %v11105_v31, %v5495_v45  ;;  %v5498_v34 = vadd.f32 %v19557_v36, %v913_v24  ;;  %v19570_v24 = vld [vmem:[#allocation141_spill] sm:$0xff] }
 0xb84   : > { %v10098_v22 = vadd.f32 %v18455_v30, %v9820_v33  ;;  %v10335_v30 = vpop.f32.mrf.mxu2  ;;  %v9823_v28 = vadd.f32 %v19571_v53, %v19570_v24  ;;  %v19587_v24 = vld [vmem:[#allocation80_spill] sm:$0xff] }
 0xb85   : > { %v11225_v51 = vmax.f32 %v11193_v0, 0.0  ;;  %12647 = vmatmul.msk.f32.gmra.mxu1 %vm250_vm2, %v10963_v55  ;;  %v10379_v58 = vadd.f32 %v10335_v30, %v10100_v57 }
 0xb87   : > { %11258 = vst.msk [vmem:[%s18556_s10 + $0x20] sm:$0xff] %vm11253_vm3, %v11225_v51  ;;  %v10377_v51 = vadd.f32 %v10329_v63, %v10098_v22 }
 0xb88   : > { %v10876_v48 = vpop.f32.mrf.mxu0 }
 0xb89   : > { %v10930_v62 = vadd.f32 %v10876_v48, %v10652_v52  ;;  %v10655_v52 = vadd.f32 %v10607_v25, %v10377_v51  ;;  %v19563_v25 = vld [vmem:[#allocation31_spill] sm:$0xff] }
 0xb8a   : > { %v11108_v61 = vpop.f32.mrf.mxu1  ;;  %v915_v46 = vadd.f32 %v19564_v8, %v19563_v25  ;;  %v19580_v25 = vld [vmem:[#allocation97_spill] sm:$0xff]  ;;  %v19581_v8 = vld [vmem:[#allocation152_spill] sm:$0xff] }
 0xb8b   : > { %v10964_v26 = vadd.f32 %v18382_v37, %v10930_v62  ;;  %v11194_v49 = vadd.f32 %v11108_v61, %v5496_v9  ;;  %v5499_v9 = vadd.f32 %v19562_v10, %v914_v20  ;;  %v10613_v61 = vpop.f32.mrf.mxu3  ;;  %v19575_v20 = vld [vmem:[#allocation175_spill] sm:$0xff] }
 0xb8c   : > { %v10338_v15 = vpop.f32.mrf.mxu2  ;;  %v10657_v33 = vadd.f32 %v10613_v61, %v10379_v58  ;;  %v9824_v59 = vadd.f32 %v19576_v3, %v19575_v20  ;;  %v19585_v58 = vld [vmem:[#allocation171_spill] sm:$0xff] }
 0xb8d   : > { %v11226_v19 = vmax.f32 %v11194_v49, 0.0  ;;  %12648 = vmatmul.msk.f32.gmra.mxu1 %vm250_vm2, %v10964_v26 }
 0xb8f   : > { %11259 = vst.msk [vmem:[%s18556_s10 + $0x28] sm:$0xff] %vm11253_vm3, %v11226_v19 }
 0xb90   : > { %v10879_v56 = vpop.f32.mrf.mxu0 }
 0xb91   : > { %v10931_v5 = vadd.f32 %v10879_v56, %v10653_v21  ;;  %v19567_v21 = vld [vmem:[#allocation142_spill] sm:$0xff] }
 0xb92   : > { %v11111_v17 = vpop.f32.mrf.mxu1  ;;  %v5500_v56 = vadd.f32 %v19567_v21, %v915_v46  ;;  %v9825_v46 = vadd.f32 %v19581_v8, %v19580_v25 }
 0xb93   : > { %v10965_v23 = vadd.f32 %v18382_v37, %v10931_v5  ;;  %v11195_v38 = vadd.f32 %v11111_v17, %v5497_v50 }
 0xb95   : > { %v11227_v27 = vmax.f32 %v11195_v38, 0.0  ;;  %12649 = vmatmul.msk.f32.gmra.mxu1 %vm250_vm2, %v10965_v23  ;;  %v10616_v38 = vpop.f32.mrf.mxu3 }
 0xb97   : > { %11260 = vst.msk [vmem:[%s18556_s10 + $0x30] sm:$0xff] %vm11253_vm3, %v11227_v27 }
 0xb98   : > { %v10882_v45 = vpop.f32.mrf.mxu0 }
 0xb99   : > { %v10932_v31 = vadd.f32 %v10882_v45, %v10654_v1  ;;  %v19572_v1 = vld [vmem:[#allocation81_spill] sm:$0xff]  ;;  %v10101_v45 = vadd.f32 %v18494_v32, %v9823_v28 }
 0xb9a   : > { %v11114_v55 = vpop.f32.mrf.mxu1  ;;  %v5501_v16 = vadd.f32 %v19572_v1, %v916_v60 }
 0xb9b   : > { %v10966_v0 = vadd.f32 %v18382_v37, %v10932_v31  ;;  %v11196_v18 = vadd.f32 %v11114_v55, %v5498_v34  ;;  %v10341_v55 = vpop.f32.mrf.mxu2 }
 0xb9d   : > { %v11228_v47 = vmax.f32 %v11196_v18, 0.0  ;;  %12650 = vmatmul.msk.f32.gmra.mxu1 %vm250_vm2, %v10966_v0  ;;  %v10380_v0 = vadd.f32 %v10338_v15, %v10101_v45  ;;  %v10619_v51 = vpop.f32.mrf.mxu3 }
 0xb9f   : > { %11261 = vst.msk [vmem:[%s18556_s10 + $0x38] sm:$0xff] %vm11253_vm3, %v11228_v47  ;;  %v19573_v47 = vld [vmem:[#allocation33_spill] sm:$0xff]  ;;  %v10658_v6 = vadd.f32 %v10616_v38, %v10380_v0 }
 0xba0   : > { %v10885_v48 = vpop.f32.mrf.mxu0  ;;  %v917_v35 = vadd.f32 %v19574_v13, %v19573_v47  ;;  %v19590_v0 = vld [vmem:[#allocation113_spill] sm:$0xff]  ;;  %v19592_v13 = vld [vmem:[#allocation82_spill] sm:$0xff] }
 0xba1   : > { %v10933_v62 = vadd.f32 %v10885_v48, %v10655_v52  ;;  %v19577_v52 = vld [vmem:[#allocation83_spill] sm:$0xff]  ;;  %v10102_v48 = vadd.f32 %v18506_v4, %v9824_v59 }
 0xba2   : > { %v11117_v26 = vpop.f32.mrf.mxu1  ;;  %v5502_v30 = vadd.f32 %v19577_v52, %v917_v35 }
 0xba3   : > { %v10967_v49 = vadd.f32 %v18382_v37, %v10933_v62  ;;  %v11197_v63 = vadd.f32 %v11117_v26, %v5499_v9  ;;  %v10381_v61 = vadd.f32 %v10341_v55, %v10102_v48 }
 0xba5   : > { %v11229_v19 = vmax.f32 %v11197_v63, 0.0  ;;  %12651 = vmatmul.msk.f32.gmra.mxu1 %vm250_vm2, %v10967_v49  ;;  %v10344_v49 = vpop.f32.mrf.mxu2  ;;  %v19578_v63 = vld [vmem:[#allocation34_spill] sm:$0xff]  ;;  %v10659_v29 = vadd.f32 %v10619_v51, %v10381_v61  ;;  %v10622_v4 = vpop.f32.mrf.mxu3 }
 0xba7   : > { %11262 = vst.msk [vmem:[%s18556_s10 + $0x40] sm:$0xff] %vm11253_vm3, %v11229_v19  ;;  %v918_v19 = vadd.f32 %v19579_v42, %v19578_v63 }
 0xba8   : > { %v10888_v2 = vpop.f32.mrf.mxu0 }
 0xba9   : > { %v10934_v50 = vadd.f32 %v10888_v2, %v10656_v41  ;;  %v5503_v41 = vadd.f32 %v19582_v39, %v918_v19  ;;  %v10103_v2 = vadd.f32 %v18517_v43, %v9825_v46  ;;  %v19596_v46 = vld [vmem:[#allocation6_spill] sm:$0xff] }
 0xbaa   : > { %v11120_v5 = vpop.f32.mrf.mxu1 }
 0xbab   : > { %v10968_v17 = vadd.f32 %v18382_v37, %v10934_v50  ;;  %v11198_v23 = vadd.f32 %v11120_v5, %v5500_v56  ;;  %v10382_v15 = vadd.f32 %v10344_v49, %v10103_v2 }
 0xbad   : > { %v11230_v27 = vmax.f32 %v11198_v23, 0.0  ;;  %12652 = vmatmul.msk.f32.gmra.mxu1 %vm250_vm2, %v10968_v17  ;;  %v19583_v17 = vld [vmem:[#allocation35_spill] sm:$0xff]  ;;  %v10660_v7 = vadd.f32 %v10622_v4, %v10382_v15  ;;  %v10347_v43 = vpop.f32.mrf.mxu2 }
 0xbae   : > { %v19584_v23 = vld [vmem:[#allocation67_spill] sm:$0xff] }
 0xbaf   : > { %11263 = vst.msk [vmem:[%s18556_s10 + $0x48] sm:$0xff] %vm11253_vm3, %v11230_v27  ;;  %v919_v38 = vadd.f32 %v19584_v23, %v19583_v17  ;;  %v19586_v27 = vld [vmem:[#allocation131_spill] sm:$0xff] }
 0xbb0   : > { %v10891_v54 = vpop.f32.mrf.mxu0  ;;  %v9826_v40 = vadd.f32 %v19586_v27, %v19585_v58  ;;  %v19603_v58 = vld [vmem:[#allocation40_spill] sm:$0xff] }
 0xbb1   : > { %v10935_v36 = vadd.f32 %v10891_v54, %v10657_v33  ;;  %v5504_v53 = vadd.f32 %v19587_v24, %v919_v38  ;;  %v10625_v54 = vpop.f32.mrf.mxu3  ;;  %v19602_v38 = vld [vmem:[#allocation8_spill] sm:$0xff] }
 0xbb2   : > { %v11123_v34 = vpop.f32.mrf.mxu1  ;;  %v10104_v28 = vadd.f32 %v18527_v14, %v9826_v40  ;;  %v924_v27 = vadd.f32 %v19603_v58, %v19602_v38  ;;  %v19604_v40 = vld [vmem:[#allocation160_spill] sm:$0xff]  ;;  %v19626_v38 = vld [vmem:[#allocation17_spill] sm:$0xff] }
 0xbb3   : > { %v10969_v22 = vadd.f32 %v18382_v37, %v10935_v36  ;;  %v11199_v31 = vadd.f32 %v11123_v34, %v5501_v16  ;;  %v19627_v58 = vld [vmem:[#allocation48_spill] sm:$0xff] }
 0xbb4   : > { %v10383_v36 = vadd.f32 %v10347_v43, %v10104_v28  ;;  %v19606_v28 = vld [vmem:[#allocation41_spill] sm:$0xff] }
 0xbb5   : > { %v11231_v18 = vmax.f32 %v11199_v31, 0.0  ;;  %12653 = vmatmul.msk.f32.gmra.mxu1 %vm250_vm2, %v10969_v22  ;;  %v19588_v22 = vld [vmem:[#allocation36_spill] sm:$0xff]  ;;  %v10350_v59 = vpop.f32.mrf.mxu2 }
 0xbb6   : > { %v19589_v31 = vld [vmem:[#allocation68_spill] sm:$0xff]  ;;  %v10661_v47 = vadd.f32 %v10625_v54, %v10383_v36  ;;  %v19607_v54 = vld [vmem:[#allocation89_spill] sm:$0xff] }
 0xbb7   : > { %11264 = vst.msk [vmem:[%s18556_s10 + $0x50] sm:$0xff] %vm11253_vm3, %v11231_v18  ;;  %v920_v55 = vadd.f32 %v19589_v31, %v19588_v22  ;;  %v19591_v18 = vld [vmem:[#allocation77_spill] sm:$0xff]  ;;  %v19609_v22 = vld [vmem:[#allocation42_spill] sm:$0xff] }
 0xbb8   : > { %v10894_v32 = vpop.f32.mrf.mxu0  ;;  %v9827_v51 = vadd.f32 %v19591_v18, %v19590_v0 }
 0xbb9   : > { %v10936_v10 = vadd.f32 %v10894_v32, %v10658_v6  ;;  %v5505_v35 = vadd.f32 %v19592_v13, %v920_v55  ;;  %v19610_v55 = vld [vmem:[#allocation91_spill] sm:$0xff] }
 0xbba   : > { %v11126_v9 = vpop.f32.mrf.mxu1  ;;  %v10105_v20 = vadd.f32 %v18536_v44, %v9827_v51  ;;  %v19612_v13 = vld [vmem:[#allocation43_spill] sm:$0xff] }
 0xbbb   : > { %v10970_v12 = vadd.f32 %v18382_v37, %v10936_v10  ;;  %v11200_v62 = vadd.f32 %v11126_v9, %v5502_v30  ;;  %v10628_v30 = vpop.f32.mrf.mxu3  ;;  %v19593_v9 = vld [vmem:[#allocation37_spill] sm:$0xff] }
 0xbbc   : > { %v10384_v48 = vadd.f32 %v10350_v59, %v10105_v20  ;;  %v19613_v20 = vld [vmem:[#allocation164_spill] sm:$0xff] }
 0xbbd   : > { %v11232_v26 = vmax.f32 %v11200_v62, 0.0  ;;  %12654 = vmatmul.msk.f32.gmra.mxu1 %vm250_vm2, %v10970_v12  ;;  %v19594_v12 = vld [vmem:[#allocation69_spill] sm:$0xff] }
 0xbbe   : > { %v921_v62 = vadd.f32 %v19594_v12, %v19593_v9  ;;  %v10662_v61 = vadd.f32 %v10628_v30, %v10384_v48  ;;  %v19615_v30 = vld [vmem:[#allocation44_spill] sm:$0xff] }
 0xbbf   : > { %11265 = vst.msk [vmem:[%s18556_s10 + $0x58] sm:$0xff] %vm11253_vm3, %v11232_v26  ;;  %v19595_v26 = vld [vmem:[#allocation153_spill] sm:$0xff] }
 0xbc0   : > { %v10897_v11 = vpop.f32.mrf.mxu0  ;;  %v5506_v49 = vadd.f32 %v19595_v26, %v921_v62  ;;  %v19618_v26 = vld [vmem:[#allocation45_spill] sm:$0xff] }
 0xbc1   : > { %v10937_v21 = vadd.f32 %v10897_v11, %v10659_v29  ;;  %v19597_v29 = vld [vmem:[#allocation38_spill] sm:$0xff]  ;;  %v19598_v11 = vld [vmem:[#allocation88_spill] sm:$0xff] }
 0xbc2   : > { %v11129_v56 = vpop.f32.mrf.mxu1  ;;  %v922_v4 = vadd.f32 %v19597_v29, %v19596_v46  ;;  %v19620_v46 = vld [vmem:[#allocation14_spill] sm:$0xff] }
 0xbc3   : > { %v10971_v57 = vadd.f32 %v18382_v37, %v10937_v21  ;;  %v11201_v50 = vadd.f32 %v11129_v56, %v5503_v41  ;;  %v19599_v56 = vld [vmem:[#allocation7_spill] sm:$0xff]  ;;  %v19621_v29 = vld [vmem:[#allocation46_spill] sm:$0xff] }
 0xbc4   : > { %v5507_v39 = vadd.f32 %v19598_v11, %v922_v4  ;;  %v930_v4 = vadd.f32 %v19621_v29, %v19620_v46  ;;  %v19622_v11 = vld [vmem:[#allocation100_spill] sm:$0xff] }
 0xbc5   : > { %v11233_v5 = vmax.f32 %v11201_v50, 0.0  ;;  %12655 = vmatmul.msk.f32.gmra.mxu1 %vm250_vm2, %v10971_v57  ;;  %v19600_v57 = vld [vmem:[#allocation39_spill] sm:$0xff] }
 0xbc6   : > { %v923_v50 = vadd.f32 %v19600_v57, %v19599_v56  ;;  %v19623_v56 = vld [vmem:[#allocation15_spill] sm:$0xff] }
 0xbc7   : > { %11266 = vst.msk [vmem:[%s18556_s10 + $0x60] sm:$0xff] %vm11253_vm3, %v11233_v5  ;;  %v19624_v57 = vld [vmem:[#allocation47_spill] sm:$0xff] }
 0xbc8   : > { %v10900_v60 = vpop.f32.mrf.mxu0 }
 0xbc9   : > { %v10938_v33 = vadd.f32 %v10900_v60, %v10660_v7  ;;  %v5509_v7 = vadd.f32 %v19604_v40, %v924_v27  ;;  %v932_v27 = vadd.f32 %v19627_v58, %v19626_v38  ;;  %v19628_v40 = vld [vmem:[#allocation110_spill] sm:$0xff] }
 0xbca   : > { %v11132_v1 = vpop.f32.mrf.mxu1 }
 0xbcb   : > { %v10972_v16 = vadd.f32 %v18382_v37, %v10938_v33  ;;  %v11202_v45 = vadd.f32 %v11132_v1, %v5504_v53  ;;  %v19605_v53 = vld [vmem:[#allocation9_spill] sm:$0xff] }
 0xbcc   : > { %v925_v33 = vadd.f32 %v19606_v28, %v19605_v53  ;;  %v19629_v53 = vld [vmem:[#allocation18_spill] sm:$0xff]  ;;  %v19630_v28 = vld [vmem:[#allocation49_spill] sm:$0xff] }
 0xbcd   : > { %v11234_v34 = vmax.f32 %v11202_v45, 0.0  ;;  %12656 = vmatmul.msk.f32.gmra.mxu1 %vm250_vm2, %v10972_v16 }
 0xbce   : > { %v5510_v1 = vadd.f32 %v19607_v54, %v925_v33  ;;  %v933_v33 = vadd.f32 %v19630_v28, %v19629_v53  ;;  %v19631_v54 = vld [vmem:[#allocation176_spill] sm:$0xff] }
 0xbcf   : > { %11267 = vst.msk [vmem:[%s18556_s10 + $0x68] sm:$0xff] %vm11253_vm3, %v11234_v34  ;;  %v19608_v34 = vld [vmem:[#allocation10_spill] sm:$0xff] }
 0xbd0   : > { %v10903_v14 = vpop.f32.mrf.mxu0  ;;  %v926_v31 = vadd.f32 %v19609_v22, %v19608_v34  ;;  %v19632_v34 = vld [vmem:[#allocation20_spill] sm:$0xff]  ;;  %v19633_v22 = vld [vmem:[#allocation50_spill] sm:$0xff] }
 0xbd1   : > { %v10939_v3 = vadd.f32 %v10903_v14, %v10661_v47  ;;  %v19611_v14 = vld [vmem:[#allocation11_spill] sm:$0xff] }
 0xbd2   : > { %v11135_v6 = vpop.f32.mrf.mxu1  ;;  %v5511_v0 = vadd.f32 %v19610_v55, %v926_v31  ;;  %v934_v31 = vadd.f32 %v19633_v22, %v19632_v34  ;;  %v19634_v55 = vld [vmem:[#allocation122_spill] sm:$0xff] }
 0xbd3   : > { %v10973_v32 = vadd.f32 %v18382_v37, %v10939_v3  ;;  %v11203_v52 = vadd.f32 %v11135_v6, %v5505_v35  ;;  %v927_v35 = vadd.f32 %v19612_v13, %v19611_v14  ;;  %v19635_v14 = vld [vmem:[#allocation22_spill] sm:$0xff]  ;;  %v19636_v13 = vld [vmem:[#allocation51_spill] sm:$0xff] }
 0xbd5   : > { %v11235_v10 = vmax.f32 %v11203_v52, 0.0  ;;  %12657 = vmatmul.msk.f32.gmra.mxu1 %vm250_vm2, %v10973_v32  ;;  %v5512_v3 = vadd.f32 %v19613_v20, %v927_v35  ;;  %v19614_v52 = vld [vmem:[#allocation12_spill] sm:$0xff]  ;;  %v935_v35 = vadd.f32 %v19636_v13, %v19635_v14 }
 0xbd6   : > { %v928_v48 = vadd.f32 %v19615_v30, %v19614_v52  ;;  %v19637_v20 = vld [vmem:[#allocation128_spill] sm:$0xff] }
 0xbd7   : > { %11268 = vst.msk [vmem:[%s18556_s10 + $0x70] sm:$0xff] %vm11253_vm3, %v11235_v10  ;;  %v19616_v10 = vld [vmem:[#allocation98_spill] sm:$0xff]  ;;  %v19638_v52 = vld [vmem:[#allocation24_spill] sm:$0xff] }
 0xbd8   : > { %v10906_v44 = vpop.f32.mrf.mxu0  ;;  %v5513_v9 = vadd.f32 %v19616_v10, %v928_v48  ;;  %v19639_v30 = vld [vmem:[#allocation52_spill] sm:$0xff] }
 0xbd9   : > { %v10940_v63 = vadd.f32 %v10906_v44, %v10662_v61  ;;  %v19617_v44 = vld [vmem:[#allocation13_spill] sm:$0xff]  ;;  %v936_v48 = vadd.f32 %v19639_v30, %v19638_v52  ;;  %v19640_v10 = vld [vmem:[#allocation76_spill] sm:$0xff] }
 0xbda   : > { %v11138_v42 = vpop.f32.mrf.mxu1 }
 0xbdb   : > { %v10974_v19 = vadd.f32 %v18382_v37, %v10940_v63  ;;  %v11204_v25 = vadd.f32 %v11138_v42, %v5506_v49  ;;  %v19601_v37 = vld [vmem:[#allocation90_spill] sm:$0xff]  ;;  %v929_v49 = vadd.f32 %v19618_v26, %v19617_v44  ;;  %v19641_v44 = vld [vmem:[#allocation27_spill] sm:$0xff]  ;;  %v19642_v26 = vld [vmem:[#allocation53_spill] sm:$0xff] }
 0xbdc   : > { %v5508_v15 = vadd.f32 %v19601_v37, %v923_v50  ;;  %v19619_v63 = vld [vmem:[#allocation174_spill] sm:$0xff]  ;;  %v931_v50 = vadd.f32 %v19624_v57, %v19623_v56  ;;  %v19625_v37 = vld [vmem:[#allocation107_spill] sm:$0xff] }
 0xbdd   : > { %v11236_v8 = vmax.f32 %v11204_v25, 0.0  ;;  %12658 = vmatmul.msk.f32.gmra.mxu1 %vm250_vm2, %v10974_v19  ;;  %v5514_v42 = vadd.f32 %v19619_v63, %v929_v49  ;;  %v937_v49 = vadd.f32 %v19642_v26, %v19641_v44  ;;  %v19643_v63 = vld [vmem:[#allocation134_spill] sm:$0xff] }
 0xbdf   : > { %11269 = vst.msk [vmem:[%s18556_s10 + $0x78] sm:$0xff] %vm11253_vm3, %v11236_v8 }
 0xbe2   : > { %v11141_v41 = vpop.f32.mrf.mxu1 }
 0xbe3   : > { %v11205_v2 = vadd.f32 %v11141_v41, %v5507_v39  ;;  %v5515_v39 = vadd.f32 %v19622_v11, %v930_v4 }
 0xbe5   : > { %v11237_v21 = vmax.f32 %v11205_v2, 0.0 }
 0xbe7   : > { %11270 = vst.msk [vmem:[%s18556_s10 + $0x80] sm:$0xff] %vm11253_vm3, %v11237_v21 }
 0xbea   : > { %v11144_v5 = vpop.f32.mrf.mxu1 }
 0xbeb   : > { %v11206_v17 = vadd.f32 %v11144_v5, %v5508_v15  ;;  %v5516_v15 = vadd.f32 %v19625_v37, %v931_v50 }
 0xbed   : > { %v11238_v23 = vmax.f32 %v11206_v17, 0.0 }
 0xbef   : > { %11271 = vst.msk [vmem:[%s18556_s10 + $0x88] sm:$0xff] %vm11253_vm3, %v11238_v23 }
 0xbf2   : > { %v11147_v43 = vpop.f32.mrf.mxu1 }
 0xbf3   : > { %v11207_v60 = vadd.f32 %v11147_v43, %v5509_v7  ;;  %v5517_v7 = vadd.f32 %v19628_v40, %v932_v27 }
 0xbf5   : > { %v11239_v24 = vmax.f32 %v11207_v60, 0.0 }
 0xbf7   : > { %11272 = vst.msk [vmem:[%s18556_s10 + $0x90] sm:$0xff] %vm11253_vm3, %v11239_v24 }
 0xbfa   : > { %v11150_v16 = vpop.f32.mrf.mxu1 }
 0xbfb   : > { %v11208_v45 = vadd.f32 %v11150_v16, %v5510_v1  ;;  %v5518_v1 = vadd.f32 %v19631_v54, %v933_v33 }
 0xbfd   : > { %v11240_v36 = vmax.f32 %v11208_v45, 0.0 }
 0xbff   : > { %11273 = vst.msk [vmem:[%s18556_s10 + $0x98] sm:$0xff] %vm11253_vm3, %v11240_v36 }
 0xc02   : > { %v11153_v18 = vpop.f32.mrf.mxu1 }
 0xc03   : > { %v11209_v51 = vadd.f32 %v11153_v18, %v5511_v0  ;;  %v5519_v0 = vadd.f32 %v19634_v55, %v934_v31 }
 0xc05   : > { %v11241_v47 = vmax.f32 %v11209_v51, 0.0 }
 0xc07   : > { %11274 = vst.msk [vmem:[%s18556_s10 + $0xa0] sm:$0xff] %vm11253_vm3, %v11241_v47 }
 0xc0a   : > { %v11156_v59 = vpop.f32.mrf.mxu1 }
 0xc0b   : > { %v11210_v6 = vadd.f32 %v11156_v59, %v5512_v3  ;;  %v5520_v3 = vadd.f32 %v19637_v20, %v935_v35 }
 0xc0d   : > { %v11242_v32 = vmax.f32 %v11210_v6, 0.0 }
 0xc0f   : > { %11275 = vst.msk [vmem:[%s18556_s10 + $0xa8] sm:$0xff] %vm11253_vm3, %v11242_v32 }
 0xc12   : > { %v11159_v12 = vpop.f32.mrf.mxu1 }
 0xc13   : > { %v11211_v62 = vadd.f32 %v11159_v12, %v5513_v9  ;;  %v5521_v9 = vadd.f32 %v19640_v10, %v936_v48 }
 0xc15   : > { %v11243_v61 = vmax.f32 %v11211_v62, 0.0 }
 0xc17   : > { %11276 = vst.msk [vmem:[%s18556_s10 + $0xb0] sm:$0xff] %vm11253_vm3, %v11243_v61 }
 0xc1a   : > { %v11162_v19 = vpop.f32.mrf.mxu1 }
 0xc1b   : > { %v11212_v25 = vadd.f32 %v11162_v19, %v5514_v42  ;;  %v5522_v42 = vadd.f32 %v19643_v63, %v937_v49 }
 0xc1d   : > { %v11244_v8 = vmax.f32 %v11212_v25, 0.0 }
 0xc1f   : > { %11277 = vst.msk [vmem:[%s18556_s10 + $0xb8] sm:$0xff] %vm11253_vm3, %v11244_v8 }
 0xc22   : > { %v11165_v41 = vpop.f32.mrf.mxu1 }
 0xc23   : > { %v11213_v2 = vadd.f32 %v11165_v41, %v5515_v39 }
 0xc25   : > { %v11245_v21 = vmax.f32 %v11213_v2, 0.0 }
 0xc27   : > { %11278 = vst.msk [vmem:[%s18556_s10 + $0xc0] sm:$0xff] %vm11253_vm3, %v11245_v21 }
 0xc2a   : > { %v11168_v5 = vpop.f32.mrf.mxu1 }
 0xc2b   : > { %v11214_v17 = vadd.f32 %v11168_v5, %v5516_v15 }
 0xc2d   : > { %v11246_v23 = vmax.f32 %v11214_v17, 0.0 }
 0xc2f   : > { %11279 = vst.msk [vmem:[%s18556_s10 + $0xc8] sm:$0xff] %vm11253_vm3, %v11246_v23 }
 0xc32   : > { %v11171_v43 = vpop.f32.mrf.mxu1 }
 0xc33   : > { %v11215_v60 = vadd.f32 %v11171_v43, %v5517_v7 }
 0xc35   : > { %v11247_v24 = vmax.f32 %v11215_v60, 0.0 }
 0xc37   : > { %11280 = vst.msk [vmem:[%s18556_s10 + $0xd0] sm:$0xff] %vm11253_vm3, %v11247_v24 }
 0xc3a   : > { %v11174_v16 = vpop.f32.mrf.mxu1 }
 0xc3b   : > { %v11216_v45 = vadd.f32 %v11174_v16, %v5518_v1 }
 0xc3d   : > { %v11248_v36 = vmax.f32 %v11216_v45, 0.0 }
 0xc3f   : > { %11281 = vst.msk [vmem:[%s18556_s10 + $0xd8] sm:$0xff] %vm11253_vm3, %v11248_v36 }
 0xc42   : > { %v11177_v18 = vpop.f32.mrf.mxu1 }
 0xc43   : > { %v11217_v51 = vadd.f32 %v11177_v18, %v5519_v0 }
 0xc45   : > { %v11249_v47 = vmax.f32 %v11217_v51, 0.0 }
 0xc47   : > { %11282 = vst.msk [vmem:[%s18556_s10 + $0xe0] sm:$0xff] %vm11253_vm3, %v11249_v47 }
 0xc4a   : > { %v11180_v59 = vpop.f32.mrf.mxu1 }
 0xc4b   : > { %v11218_v6 = vadd.f32 %v11180_v59, %v5520_v3 }
 0xc4d   : > { %v11250_v32 = vmax.f32 %v11218_v6, 0.0 }
 0xc4f   : > { %11283 = vst.msk [vmem:[%s18556_s10 + $0xe8] sm:$0xff] %vm11253_vm3, %v11250_v32 }
 0xc52   : > { %v11183_v12 = vpop.f32.mrf.mxu1 }
 0xc53   : > { %v11219_v62 = vadd.f32 %v11183_v12, %v5521_v9 }
 0xc55   : > { %v11251_v61 = vmax.f32 %v11219_v62, 0.0 }
 0xc57   : > { %11284 = vst.msk [vmem:[%s18556_s10 + $0xf0] sm:$0xff] %vm11253_vm3, %v11251_v61 }
 0xc5a   : > { %v11186_v19 = vpop.f32.mrf.mxu1 }
 0xc5b   : > { %v11220_v25 = vadd.f32 %v11186_v19, %v5522_v42 }
 0xc5d   : > { %v11252_v8 = vmax.f32 %v11220_v25, 0.0 }
 0xc5f   : > { %11285 = vst.msk [vmem:[%s18556_s10 + $0xf8] sm:$0xff] %vm11253_vm3, %v11252_v8 }
 0xc60   : > { %12750 = shalt.err (!%p12747_p3)
}
 0xc61   : > { %s12791_s29 = smov 128   ;;  %s12792_s10 = smov 8  }
 0xc62   : > { %12668 = dma.vmem_to_hbm [thread:$0]  (%p12866_p5), %s11300_s15, 4096, %s11302_s16, %s11287_s25, %s12791_s29, %s12791_s29, %s12792_s10  }
 0xc63 PF: > { %p12674_p4 = scmp.ge.s32.totalorder %s12785_s24, 2  ;;  %s11316_s11 = sand.u32 1, %s12773_s21  }
 0xc64   : > { %s11317_s12 = scalar_lea.sflag [#allocation4], %s11316_s11 }
 0xc65   : > { %p12671_p7 = pnand %p12674_p4, %p12870_p6 }
 0xc67   : > { %p12672_p8 = pneg %p12671_p7 }
 0xc69   : > { %12768 = dma.done.wait (%p12672_p8), %s11317_s12, 4096  }
 0xc6a   : > { %12770 = vsyncadd (%p12672_p8), %s11317_s12, 4294963200  ;;  %p16_p9 = scmp.ge.s32.totalorder %s12853_s27, 4   ;;  %s19644_s21 = smov %s12777_s22 }
 0xc6b   : > { %s19645_s22 = smov %s12781_s23  ;;  %s19646_s23 = smov %s12864_s30 }
 0xc6c   : > { %s19647_s24 = smov %s12853_s27  ;;  %18 = sbr.rel (!%p16_p9) target bundleno = 3 (0x3), region = 124 }
 0xc71   :  { %11323 = vsyncpa [#allocation4], 1 }
 0xc72   :  { %11325 = vsyncpa [#allocation4 + $0x1], 1 }

</bundles_post_ra>
